<compile_context>
chip_gen: v6e
topology: v6e:2x2x1
jax: 0.10.0
libtpu: 0.0.40
codegen_flags: <defaults>
</compile_context>

<pallas_src>
from functools import partial

import jax
import jax.numpy as jnp
from jax.experimental import pallas as pl
from jax.experimental.pallas import tpu as pltpu


# ----------------------------------------------------------------------------
# Configuration (synthetic scaled-down backbone; lane-dense channel widths)
# ----------------------------------------------------------------------------
IMG_C = 3                 # RGB input
IMG_HW = 16               # small test spatial size (must be even)
STEM_C = 128              # stem width     (multiple of 128 -> lane-dense)
BLOCK_C = 256             # block width    (multiple of 128 -> lane-dense)
OUT_FEATURES = BLOCK_C    # backbone output width feeding the fc head
HEAD_DIM = 256            # nn.Linear(out_features, 256)
STEM_K = 3 * 3 * IMG_C    # 27
STEM_K_PAD = 32           # pad ragged stem K up to a multiple of 8 for the MXU


# ----------------------------------------------------------------------------
# In-kernel helpers (static slices / concats / 2-D dots / elementwise only)
# ----------------------------------------------------------------------------
def _shift_down(x):
    """out[:, i] = x[:, i-1] with zeros at i == 0.  x: (NB, H, W, C)."""
    return jnp.concatenate([jnp.zeros_like(x[:, :1]), x[:, :-1]], axis=1)


def _shift_right(x):
    """out[:, :, j] = x[:, :, j-1] with zeros at j == 0.  x: (NB, H, W, C)."""
    return jnp.concatenate([jnp.zeros_like(x[:, :, :1]), x[:, :, :-1]], axis=2)


def _im2col_taps(x):
    """Fused in-kernel im2col for a 3x3 / stride-1 / pad-1 conv.

    x: (NB, ho, wo, C) bf16 activation.
    Returns (NB*ho*wo, 9*C) bf16 with column layout [(di*3+dj)*C + ci],
    matching the (9*C, Cout) folded conv weight.  Only two sublane column
    shifts are materialized; row shifts select whole (wo, C) vreg tiles.
    """
    nb, ho, wo, c = x.shape
    zc = jnp.zeros_like(x[:, :, :1])
    col_shift = {
        -1: jnp.concatenate([zc, x[:, :, :-1]], axis=2),   # x[.., j-1]
        0: x,
        1: jnp.concatenate([x[:, :, 1:], zc], axis=2),     # x[.., j+1]
    }
    zr = jnp.zeros_like(x[:, :1])
    taps = []
    for dy in (-1, 0, 1):            # di = dy + 1
        for dx in (-1, 0, 1):        # dj = dx + 1
            xc = col_shift[dx]
            if dy == -1:
                t = jnp.concatenate([zr, xc[:, :-1]], axis=1)   # x[i-1, ...]
            elif dy == 1:
                t = jnp.concatenate([xc[:, 1:], zr], axis=1)    # x[i+1, ...]
            else:
                t = xc
            taps.append(t.reshape(nb * ho * wo, c))
    return jnp.concatenate(taps, axis=-1)


# ----------------------------------------------------------------------------
# The single fused kernel
# ----------------------------------------------------------------------------
def _fused_kernel(pat_ref, stem_w_ref, stem_b_ref, w1_ref, b1_ref,
                  w2_ref, b2_ref, wsc_ref, bsc_ref, fcw_ref, fcb_ref,
                  out_ref, *, ho, wo):
    nb = pat_ref.shape[0]
    hw = ho * wo
    m = nb * hw

    # ---- stem conv (+folded eval BN) + ReLU: ONE dot over all images/phases.
    patches = pat_ref[...].reshape(nb * 4 * hw, STEM_K_PAD)           # bf16
    z = jnp.dot(patches, stem_w_ref[...], preferred_element_type=jnp.float32)
    z = jnp.maximum(z + stem_b_ref[...], 0.0)                          # f32
    z = z.reshape(nb, 4, ho, wo, STEM_C)

    # ---- fused MaxPool2d(3, stride=2, padding=1) over stride-2 phase planes.
    # phase p = 2*a + c holds conv-output positions (2i+a, 2j+c).  Inputs are
    # post-ReLU (>= 0) so zero-fill at the borders == -inf pool padding.
    p00, p01, p10, p11 = z[:, 0], z[:, 1], z[:, 2], z[:, 3]
    sr01 = _shift_right(p01)
    sr11 = _shift_right(p11)
    pooled = p00
    for term in (p01, sr01, p10, p11, sr11,
                 _shift_down(p10), _shift_down(p11), _shift_down(sr11)):
        pooled = jnp.maximum(pooled, term)
    x0 = pooled.astype(jnp.bfloat16)                       # (nb, ho, wo, STEM_C)

    # ---- BasicBlock conv1 + BN + ReLU: one long-K dot (K = 9*STEM_C).
    cols1 = _im2col_taps(x0)                               # (m, 9*STEM_C) bf16
    h1 = jnp.dot(cols1, w1_ref[...], preferred_element_type=jnp.float32)
    h1 = jnp.maximum(h1 + b1_ref[...], 0.0)
    x1 = h1.astype(jnp.bfloat16).reshape(nb, ho, wo, BLOCK_C)

    # ---- conv2 + BN: one long-K dot (K = 9*BLOCK_C).
    cols2 = _im2col_taps(x1)                               # (m, 9*BLOCK_C) bf16
    h2 = jnp.dot(cols2, w2_ref[...], preferred_element_type=jnp.float32) + b2_ref[...]

    # ---- 1x1 projection shortcut (downsample conv + BN), residual add, ReLU.
    sc = jnp.dot(x0.reshape(m, STEM_C), wsc_ref[...],
                 preferred_element_type=jnp.float32) + bsc_ref[...]
    res = jnp.maximum(h2 + sc, 0.0)                        # (m, BLOCK_C) f32

    # ---- AdaptiveAvgPool2d((1,1)) + flatten, then Linear(.,256) + ReLU.
    #      Dropout(0.3) is identity in eval mode.
    feats = jnp.mean(res.reshape(nb, hw, BLOCK_C), axis=1)             # (nb, BLOCK_C)
    y = jnp.dot(feats.astype(jnp.bfloat16), fcw_ref[...],
                preferred_element_type=jnp.float32) + fcb_ref[...]
    out_ref[0] = jnp.maximum(y, 0.0)                       # (nb, HEAD_DIM) f32


# ----------------------------------------------------------------------------
# Wrapper-side glue
# ----------------------------------------------------------------------------
def _stem_im2col_phased(x_nhwc):
    """Phase-ordered, K-padded im2col patches for the 3x3/s1/p1 stem conv.

    Cin = 3 so the patches are tiny (~64 KiB here); the zero pad to K=32 is
    folded into the single concatenate (no extra full-tensor jnp.pad pass).
    Phase p = 2*a + c holds the patches of conv-output positions (2i+a, 2j+c),
    which lets the kernel fuse MaxPool2d(3,2,1) with shifts + max only.
    """
    b, h, w, _ = x_nhwc.shape
    assert h % 2 == 0 and w % 2 == 0, "even spatial size expected"
    xp = jnp.pad(x_nhwc, ((0, 0), (1, 1), (1, 1), (0, 0)))
    cols = [xp[:, di:di + h, dj:dj + w, :] for di in range(3) for dj in range(3)]
    cols.append(jnp.zeros((b, h, w, STEM_K_PAD - STEM_K), x_nhwc.dtype))
    pat = jnp.concatenate(cols, axis=-1).astype(jnp.bfloat16)      # (B, H, W, 32)
    pat = pat.reshape(b, h // 2, 2, w // 2, 2, STEM_K_PAD)
    pat = jnp.transpose(pat, (0, 2, 4, 1, 3, 5))                   # (B, 2, 2, h/2, w/2, K)
    return pat.reshape(b, 4, (h // 2) * (w // 2), STEM_K_PAD)


def _pick_batch_tile(b):
    """Images per grid step: prefer >= 2 grid steps (both v7x TCs), then the
    largest per-step batch dividing b (fills MXU rows)."""
    for nb in (8, 4, 2, 1):
        if b % nb == 0 and b // nb >= 2:
            return nb
    for nb in (8, 4, 2, 1):
        if b % nb == 0:
            return nb
    return 1


def _conv_bn_params(key, k, cin, cout, scale):
    k1, k2, k3, k4 = jax.random.split(key, 4)
    return {
        "w": scale * jax.random.normal(k1, (k * k * cin, cout), jnp.float32),
        "gamma": 1.0 + 0.1 * jax.random.normal(k2, (cout,), jnp.float32),
        "beta": 0.1 * jax.random.normal(k3, (cout,), jnp.float32),
        "mean": 0.1 * jax.random.normal(k4, (cout,), jnp.float32),
        "var": jnp.ones((cout,), jnp.float32),
    }


def init_params(key):
    ks = jax.random.split(key, 6)
    return {
        "stem": _conv_bn_params(ks[0], 3, IMG_C, STEM_C, 0.1),
        "conv1": _conv_bn_params(ks[1], 3, STEM_C, BLOCK_C, 0.04),
        "conv2": _conv_bn_params(ks[2], 3, BLOCK_C, BLOCK_C, 0.03),
        "down": _conv_bn_params(ks[3], 1, STEM_C, BLOCK_C, 0.12),
        "fc_w": 0.08 * jax.random.normal(ks[4], (OUT_FEATURES, HEAD_DIM), jnp.float32),
        "fc_b": 0.01 * jax.random.normal(ks[5], (HEAD_DIM,), jnp.float32),
    }


def _fold_bn(p, eps=1e-5):
    """Fold eval-mode BatchNorm into the preceding conv weight / bias."""
    scale = p["gamma"] / jnp.sqrt(p["var"] + eps)
    return p["w"] * scale[None, :], p["beta"] - p["mean"] * scale


def _prepare_params(params):
    """Fold BN, pad the stem K, cast MXU operands to bf16 (biases stay f32)."""
    sw, sb = _fold_bn(params["stem"])
    sw = jnp.pad(sw, ((0, STEM_K_PAD - STEM_K), (0, 0)))
    w1, b1 = _fold_bn(params["conv1"])
    w2, b2 = _fold_bn(params["conv2"])
    wsc, bsc = _fold_bn(params["down"])
    bf16 = lambda a: a.astype(jnp.bfloat16)
    row = lambda a: a.reshape(1, -1).astype(jnp.float32)
    return {
        "stem_w": bf16(sw), "stem_b": row(sb),
        "w1": bf16(w1), "b1": row(b1),
        "w2": bf16(w2), "b2": row(b2),
        "wsc": bf16(wsc), "bsc": row(bsc),
        "fc_w": bf16(params["fc_w"]), "fc_b": row(params["fc_b"]),
    }


def image_feature_extractor(x_nchw, params):
    """Forward of ImageFeatureExtractor (resnet branch, eval mode): one kernel."""
    b = x_nchw.shape[0]
    x = jnp.transpose(x_nchw, (0, 2, 3, 1)).astype(jnp.float32)     # NCHW -> NHWC
    h, w = x.shape[1], x.shape[2]
    ho, wo = h // 2, w // 2
    hw = ho * wo
    p = _prepare_params(params)

    nb = _pick_batch_tile(b)
    nsteps = b // nb

    pat = _stem_im2col_phased(x)                                    # (B, 4, hw, 32) bf16

    inv = lambda idx: (lambda i: idx)                               # grid-invariant blocks
    y = pl.pallas_call(
        partial(_fused_kernel, ho=ho, wo=wo),
        grid=(nsteps,),
        in_specs=[
            pl.BlockSpec((nb, 4, hw, STEM_K_PAD), lambda i: (i, 0, 0, 0)),
            pl.BlockSpec((STEM_K_PAD, STEM_C), inv((0, 0))),
            pl.BlockSpec((1, STEM_C), inv((0, 0))),
            pl.BlockSpec((9 * STEM_C, BLOCK_C), inv((0, 0))),
            pl.BlockSpec((1, BLOCK_C), inv((0, 0))),
            pl.BlockSpec((9 * BLOCK_C, BLOCK_C), inv((0, 0))),
            pl.BlockSpec((1, BLOCK_C), inv((0, 0))),
            pl.BlockSpec((STEM_C, BLOCK_C), inv((0, 0))),
            pl.BlockSpec((1, BLOCK_C), inv((0, 0))),
            pl.BlockSpec((OUT_FEATURES, HEAD_DIM), inv((0, 0))),
            pl.BlockSpec((1, HEAD_DIM), inv((0, 0))),
        ],
        out_specs=pl.BlockSpec((1, nb, HEAD_DIM), lambda i: (i, 0, 0)),
        out_shape=jax.ShapeDtypeStruct((nsteps, nb, HEAD_DIM), jnp.float32),
        compiler_params=pltpu.CompilerParams(dimension_semantics=("parallel",)),
    )(pat, p["stem_w"], p["stem_b"], p["w1"], p["b1"], p["w2"], p["b2"],
      p["wsc"], p["bsc"], p["fc_w"], p["fc_b"])
    return y.reshape(b, HEAD_DIM)


# ----------------------------------------------------------------------------
# Pure-JAX (XLA) reference of the same forward pass, for a numerical check.
# ----------------------------------------------------------------------------
def _reference_forward(x_nchw, params):
    p = _prepare_params(params)
    f32 = lambda a: a.astype(jnp.float32)
    x = jnp.transpose(x_nchw, (0, 2, 3, 1)).astype(jnp.float32)
    dn = ("NHWC", "HWIO", "NHWC")
    w_stem = f32(p["stem_w"])[:STEM_K].reshape(3, 3, IMG_C, STEM_C)
    y = jax.lax.conv_general_dilated(x, w_stem, (1, 1), "SAME", dimension_numbers=dn)
    y = jnp.maximum(y + p["stem_b"].reshape(1, 1, 1, -1), 0.0)
    y = jax.lax.reduce_window(y, -jnp.inf, jax.lax.max,
                              (1, 3, 3, 1), (1, 2, 2, 1),
                              ((0, 0), (1, 1), (1, 1), (0, 0)))
    w1 = f32(p["w1"]).reshape(3, 3, STEM_C, BLOCK_C)
    h1 = jax.lax.conv_general_dilated(y, w1, (1, 1), "SAME", dimension_numbers=dn)
    h1 = jnp.maximum(h1 + p["b1"].reshape(1, 1, 1, -1), 0.0)
    w2 = f32(p["w2"]).reshape(3, 3, BLOCK_C, BLOCK_C)
    h2 = jax.lax.conv_general_dilated(h1, w2, (1, 1), "SAME", dimension_numbers=dn)
    h2 = h2 + p["b2"].reshape(1, 1, 1, -1)
    sc = jnp.einsum("bhwc,cd->bhwd", y, f32(p["wsc"])) + p["bsc"].reshape(1, 1, 1, -1)
    res = jnp.maximum(h2 + sc, 0.0)
    feats = jnp.mean(res, axis=(1, 2))
    return jnp.maximum(feats @ f32(p["fc_w"]) + p["fc_b"], 0.0)


# ----------------------------------------------------------------------------
if __name__ == "__main__":
    key = jax.random.PRNGKey(0)
    k_x, k_p = jax.random.split(key)

    B = 8                                       # -> NB=4 per step, grid=(2,)
    x = jax.random.normal(k_x, (B, IMG_C, IMG_HW, IMG_HW), jnp.float32)   # NCHW
    params = init_params(k_p)

    fwd = jax.jit(image_feature_extractor)
    y = jax.block_until_ready(fwd(x, params))

    assert y.shape == (B, HEAD_DIM), y.shape
    assert bool(jnp.all(jnp.isfinite(y)))

    # Numerical check vs the XLA reference (kernel uses bf16 matmul operands
    # and bf16 intermediate activations; the reference keeps f32 activations
    # -> loose tolerance).
    y_ref = _reference_forward(x, params)
    err = float(jnp.max(jnp.abs(y - y_ref)))
    scale = float(jnp.maximum(jnp.max(jnp.abs(y_ref)), 1.0))
    assert err <= 0.1 * scale, (err, scale)

    print("KERNEL_OK")
</pallas_src>

<mosaic_0001>
module attributes {stable_mosaic.version = 11 : i64} {
  func.func @_fused_kernel(%arg0: i32, %arg1: memref<4x4x64x32xbf16, #tpu.memory_space<vmem>>, %arg2: memref<32x128xbf16, #tpu.memory_space<vmem>>, %arg3: memref<1x128xf32, #tpu.memory_space<vmem>>, %arg4: memref<1152x256xbf16, #tpu.memory_space<vmem>>, %arg5: memref<1x256xf32, #tpu.memory_space<vmem>>, %arg6: memref<2304x256xbf16, #tpu.memory_space<vmem>>, %arg7: memref<1x256xf32, #tpu.memory_space<vmem>>, %arg8: memref<128x256xbf16, #tpu.memory_space<vmem>>, %arg9: memref<1x256xf32, #tpu.memory_space<vmem>>, %arg10: memref<256x256xbf16, #tpu.memory_space<vmem>>, %arg11: memref<1x256xf32, #tpu.memory_space<vmem>>, %arg12: memref<1x4x256xf32, #tpu.memory_space<vmem>>) attributes {dimension_semantics = [#tpu.dimension_semantics<parallel>], iteration_bounds = array<i64: 2>, scalar_prefetch = 0 : i64, scratch_operands = 0 : i64, tpu.core_type = #tpu.core_type<tc>, window_params = [{transform_indices = @transform_0, window_bounds = array<i64: 4, 4, 64, 32>}, {pipeline_mode = #tpu.pipeline_mode<synchronous>, transform_indices = @transform_1, window_bounds = array<i64: 32, 128>}, {pipeline_mode = #tpu.pipeline_mode<synchronous>, transform_indices = @transform_2, window_bounds = array<i64: 1, 128>}, {pipeline_mode = #tpu.pipeline_mode<synchronous>, transform_indices = @transform_3, window_bounds = array<i64: 1152, 256>}, {pipeline_mode = #tpu.pipeline_mode<synchronous>, transform_indices = @transform_4, window_bounds = array<i64: 1, 256>}, {pipeline_mode = #tpu.pipeline_mode<synchronous>, transform_indices = @transform_5, window_bounds = array<i64: 2304, 256>}, {pipeline_mode = #tpu.pipeline_mode<synchronous>, transform_indices = @transform_6, window_bounds = array<i64: 1, 256>}, {pipeline_mode = #tpu.pipeline_mode<synchronous>, transform_indices = @transform_7, window_bounds = array<i64: 128, 256>}, {pipeline_mode = #tpu.pipeline_mode<synchronous>, transform_indices = @transform_8, window_bounds = array<i64: 1, 256>}, {pipeline_mode = #tpu.pipeline_mode<synchronous>, transform_indices = @transform_9, window_bounds = array<i64: 256, 256>}, {pipeline_mode = #tpu.pipeline_mode<synchronous>, transform_indices = @transform_10, window_bounds = array<i64: 1, 256>}, {transform_indices = @transform_11, window_bounds = array<i64: 1, 4, 256>}]} {
    %c0 = arith.constant 0 : index
    %c0_0 = arith.constant 0 : index
    %c0_1 = arith.constant 0 : index
    %c0_2 = arith.constant 0 : index
    %0 = vector.load %arg1[%c0, %c0_0, %c0_1, %c0_2] : memref<4x4x64x32xbf16, #tpu.memory_space<vmem>>, vector<4x4x64x32xbf16>
    %1 = vector.shape_cast %0 : vector<4x4x64x32xbf16> to vector<1024x32xbf16>
    %c0_3 = arith.constant 0 : index
    %c0_4 = arith.constant 0 : index
    %2 = vector.load %arg2[%c0_3, %c0_4] : memref<32x128xbf16, #tpu.memory_space<vmem>>, vector<32x128xbf16>
    %cst = arith.constant dense<0.000000e+00> : vector<1024x128xf32>
    %3 = tpu.matmul %1, %2, %cst {dimension_numbers = #tpu.dot_dimension_numbers<[1], [0], [0], [1], [0, 0, 1, 1], [], []>} : vector<1024x32xbf16>, vector<32x128xbf16>, vector<1024x128xf32> -> vector<1024x128xf32>
    %c0_5 = arith.constant 0 : index
    %c0_6 = arith.constant 0 : index
    %4 = vector.load %arg3[%c0_5, %c0_6] : memref<1x128xf32, #tpu.memory_space<vmem>>, vector<1x128xf32>
    %5 = vector.broadcast %4 : vector<1x128xf32> to vector<1024x128xf32>
    %6 = arith.addf %3, %5 : vector<1024x128xf32>
    %cst_7 = arith.constant 0.000000e+00 : f32
    %7 = vector.broadcast %cst_7 : f32 to vector<1024x128xf32>
    %8 = arith.maximumf %6, %7 : vector<1024x128xf32>
    %9 = vector.shape_cast %8 : vector<1024x128xf32> to vector<4x4x8x8x128xf32>
    %10 = vector.extract_strided_slice %9 {offsets = [0, 0, 0, 0, 0], sizes = [4, 1, 8, 8, 128], strides = [1, 1, 1, 1, 1]} : vector<4x4x8x8x128xf32> to vector<4x1x8x8x128xf32>
    %11 = vector.shape_cast %10 : vector<4x1x8x8x128xf32> to vector<4x8x8x128xf32>
    %12 = vector.extract_strided_slice %9 {offsets = [0, 1, 0, 0, 0], sizes = [4, 1, 8, 8, 128], strides = [1, 1, 1, 1, 1]} : vector<4x4x8x8x128xf32> to vector<4x1x8x8x128xf32>
    %13 = vector.shape_cast %12 : vector<4x1x8x8x128xf32> to vector<4x8x8x128xf32>
    %14 = vector.extract_strided_slice %9 {offsets = [0, 2, 0, 0, 0], sizes = [4, 1, 8, 8, 128], strides = [1, 1, 1, 1, 1]} : vector<4x4x8x8x128xf32> to vector<4x1x8x8x128xf32>
    %15 = vector.shape_cast %14 : vector<4x1x8x8x128xf32> to vector<4x8x8x128xf32>
    %16 = vector.extract_strided_slice %9 {offsets = [0, 3, 0, 0, 0], sizes = [4, 1, 8, 8, 128], strides = [1, 1, 1, 1, 1]} : vector<4x4x8x8x128xf32> to vector<4x1x8x8x128xf32>
    %17 = vector.shape_cast %16 : vector<4x1x8x8x128xf32> to vector<4x8x8x128xf32>
    %cst_8 = arith.constant 0.000000e+00 : f32
    %18 = vector.broadcast %cst_8 : f32 to vector<4x8x1x128xf32>
    %19 = vector.extract_strided_slice %13 {offsets = [0, 0, 0, 0], sizes = [4, 8, 7, 128], strides = [1, 1, 1, 1]} : vector<4x8x8x128xf32> to vector<4x8x7x128xf32>
    %20 = tpu.concatenate %18, %19 in 2 : vector<4x8x1x128xf32>, vector<4x8x7x128xf32> -> vector<4x8x8x128xf32>
    %cst_9 = arith.constant 0.000000e+00 : f32
    %21 = vector.broadcast %cst_9 : f32 to vector<4x8x1x128xf32>
    %22 = vector.extract_strided_slice %17 {offsets = [0, 0, 0, 0], sizes = [4, 8, 7, 128], strides = [1, 1, 1, 1]} : vector<4x8x8x128xf32> to vector<4x8x7x128xf32>
    %23 = tpu.concatenate %21, %22 in 2 : vector<4x8x1x128xf32>, vector<4x8x7x128xf32> -> vector<4x8x8x128xf32>
    %cst_10 = arith.constant 0.000000e+00 : f32
    %24 = vector.broadcast %cst_10 : f32 to vector<4x1x8x128xf32>
    %25 = vector.extract_strided_slice %15 {offsets = [0, 0, 0, 0], sizes = [4, 7, 8, 128], strides = [1, 1, 1, 1]} : vector<4x8x8x128xf32> to vector<4x7x8x128xf32>
    %26 = tpu.concatenate %24, %25 in 1 : vector<4x1x8x128xf32>, vector<4x7x8x128xf32> -> vector<4x8x8x128xf32>
    %cst_11 = arith.constant 0.000000e+00 : f32
    %27 = vector.broadcast %cst_11 : f32 to vector<4x1x8x128xf32>
    %28 = vector.extract_strided_slice %17 {offsets = [0, 0, 0, 0], sizes = [4, 7, 8, 128], strides = [1, 1, 1, 1]} : vector<4x8x8x128xf32> to vector<4x7x8x128xf32>
    %29 = tpu.concatenate %27, %28 in 1 : vector<4x1x8x128xf32>, vector<4x7x8x128xf32> -> vector<4x8x8x128xf32>
    %cst_12 = arith.constant 0.000000e+00 : f32
    %30 = vector.broadcast %cst_12 : f32 to vector<4x1x8x128xf32>
    %31 = vector.extract_strided_slice %23 {offsets = [0, 0, 0, 0], sizes = [4, 7, 8, 128], strides = [1, 1, 1, 1]} : vector<4x8x8x128xf32> to vector<4x7x8x128xf32>
    %32 = tpu.concatenate %30, %31 in 1 : vector<4x1x8x128xf32>, vector<4x7x8x128xf32> -> vector<4x8x8x128xf32>
    %33 = arith.maximumf %11, %13 : vector<4x8x8x128xf32>
    %34 = arith.maximumf %33, %20 : vector<4x8x8x128xf32>
    %35 = arith.maximumf %34, %15 : vector<4x8x8x128xf32>
    %36 = arith.maximumf %35, %17 : vector<4x8x8x128xf32>
    %37 = arith.maximumf %36, %23 : vector<4x8x8x128xf32>
    %38 = arith.maximumf %37, %26 : vector<4x8x8x128xf32>
    %39 = arith.maximumf %38, %29 : vector<4x8x8x128xf32>
    %40 = arith.maximumf %39, %32 : vector<4x8x8x128xf32>
    %41 = arith.truncf %40 : vector<4x8x8x128xf32> to vector<4x8x8x128xbf16>
    %cst_13 = arith.constant 0.000000e+00 : bf16
    %42 = vector.broadcast %cst_13 : bf16 to vector<4x8x1x128xbf16>
    %43 = vector.extract_strided_slice %41 {offsets = [0, 0, 0, 0], sizes = [4, 8, 7, 128], strides = [1, 1, 1, 1]} : vector<4x8x8x128xbf16> to vector<4x8x7x128xbf16>
    %44 = tpu.concatenate %42, %43 in 2 : vector<4x8x1x128xbf16>, vector<4x8x7x128xbf16> -> vector<4x8x8x128xbf16>
    %45 = vector.extract_strided_slice %41 {offsets = [0, 0, 1, 0], sizes = [4, 8, 7, 128], strides = [1, 1, 1, 1]} : vector<4x8x8x128xbf16> to vector<4x8x7x128xbf16>
    %46 = tpu.concatenate %45, %42 in 2 : vector<4x8x7x128xbf16>, vector<4x8x1x128xbf16> -> vector<4x8x8x128xbf16>
    %cst_14 = arith.constant 0.000000e+00 : bf16
    %47 = vector.broadcast %cst_14 : bf16 to vector<4x1x8x128xbf16>
    %48 = vector.extract_strided_slice %44 {offsets = [0, 0, 0, 0], sizes = [4, 7, 8, 128], strides = [1, 1, 1, 1]} : vector<4x8x8x128xbf16> to vector<4x7x8x128xbf16>
    %49 = tpu.concatenate %47, %48 in 1 : vector<4x1x8x128xbf16>, vector<4x7x8x128xbf16> -> vector<4x8x8x128xbf16>
    %50 = vector.shape_cast %49 : vector<4x8x8x128xbf16> to vector<256x128xbf16>
    %51 = vector.extract_strided_slice %41 {offsets = [0, 0, 0, 0], sizes = [4, 7, 8, 128], strides = [1, 1, 1, 1]} : vector<4x8x8x128xbf16> to vector<4x7x8x128xbf16>
    %52 = tpu.concatenate %47, %51 in 1 : vector<4x1x8x128xbf16>, vector<4x7x8x128xbf16> -> vector<4x8x8x128xbf16>
    %53 = vector.shape_cast %52 : vector<4x8x8x128xbf16> to vector<256x128xbf16>
    %54 = vector.extract_strided_slice %46 {offsets = [0, 0, 0, 0], sizes = [4, 7, 8, 128], strides = [1, 1, 1, 1]} : vector<4x8x8x128xbf16> to vector<4x7x8x128xbf16>
    %55 = tpu.concatenate %47, %54 in 1 : vector<4x1x8x128xbf16>, vector<4x7x8x128xbf16> -> vector<4x8x8x128xbf16>
    %56 = vector.shape_cast %55 : vector<4x8x8x128xbf16> to vector<256x128xbf16>
    %57 = vector.shape_cast %44 : vector<4x8x8x128xbf16> to vector<256x128xbf16>
    %58 = vector.shape_cast %41 : vector<4x8x8x128xbf16> to vector<256x128xbf16>
    %59 = vector.shape_cast %46 : vector<4x8x8x128xbf16> to vector<256x128xbf16>
    %60 = vector.extract_strided_slice %44 {offsets = [0, 1, 0, 0], sizes = [4, 7, 8, 128], strides = [1, 1, 1, 1]} : vector<4x8x8x128xbf16> to vector<4x7x8x128xbf16>
    %61 = tpu.concatenate %60, %47 in 1 : vector<4x7x8x128xbf16>, vector<4x1x8x128xbf16> -> vector<4x8x8x128xbf16>
    %62 = vector.shape_cast %61 : vector<4x8x8x128xbf16> to vector<256x128xbf16>
    %63 = vector.extract_strided_slice %41 {offsets = [0, 1, 0, 0], sizes = [4, 7, 8, 128], strides = [1, 1, 1, 1]} : vector<4x8x8x128xbf16> to vector<4x7x8x128xbf16>
    %64 = tpu.concatenate %63, %47 in 1 : vector<4x7x8x128xbf16>, vector<4x1x8x128xbf16> -> vector<4x8x8x128xbf16>
    %65 = vector.shape_cast %64 : vector<4x8x8x128xbf16> to vector<256x128xbf16>
    %66 = vector.extract_strided_slice %46 {offsets = [0, 1, 0, 0], sizes = [4, 7, 8, 128], strides = [1, 1, 1, 1]} : vector<4x8x8x128xbf16> to vector<4x7x8x128xbf16>
    %67 = tpu.concatenate %66, %47 in 1 : vector<4x7x8x128xbf16>, vector<4x1x8x128xbf16> -> vector<4x8x8x128xbf16>
    %68 = vector.shape_cast %67 : vector<4x8x8x128xbf16> to vector<256x128xbf16>
    %69 = tpu.concatenate %50, %53, %56, %57, %58, %59, %62, %65, %68 in 1 : vector<256x128xbf16>, vector<256x128xbf16>, vector<256x128xbf16>, vector<256x128xbf16>, vector<256x128xbf16>, vector<256x128xbf16>, vector<256x128xbf16>, vector<256x128xbf16>, vector<256x128xbf16> -> vector<256x1152xbf16>
    %c0_15 = arith.constant 0 : index
    %c0_16 = arith.constant 0 : index
    %70 = vector.load %arg4[%c0_15, %c0_16] : memref<1152x256xbf16, #tpu.memory_space<vmem>>, vector<1152x256xbf16>
    %cst_17 = arith.constant dense<0.000000e+00> : vector<256x256xf32>
    %71 = tpu.matmul %69, %70, %cst_17 {dimension_numbers = #tpu.dot_dimension_numbers<[1], [0], [0], [1], [0, 0, 1, 1], [], []>} : vector<256x1152xbf16>, vector<1152x256xbf16>, vector<256x256xf32> -> vector<256x256xf32>
    %c0_18 = arith.constant 0 : index
    %c0_19 = arith.constant 0 : index
    %72 = vector.load %arg5[%c0_18, %c0_19] : memref<1x256xf32, #tpu.memory_space<vmem>>, vector<1x256xf32>
    %73 = vector.broadcast %72 : vector<1x256xf32> to vector<256x256xf32>
    %74 = arith.addf %71, %73 : vector<256x256xf32>
    %cst_20 = arith.constant 0.000000e+00 : f32
    %75 = vector.broadcast %cst_20 : f32 to vector<256x256xf32>
    %76 = arith.maximumf %74, %75 : vector<256x256xf32>
    %77 = arith.truncf %76 : vector<256x256xf32> to vector<256x256xbf16>
    %78 = vector.shape_cast %77 : vector<256x256xbf16> to vector<4x8x8x256xbf16>
    %cst_21 = arith.constant 0.000000e+00 : bf16
    %79 = vector.broadcast %cst_21 : bf16 to vector<4x8x1x256xbf16>
    %80 = vector.extract_strided_slice %78 {offsets = [0, 0, 0, 0], sizes = [4, 8, 7, 256], strides = [1, 1, 1, 1]} : vector<4x8x8x256xbf16> to vector<4x8x7x256xbf16>
    %81 = tpu.concatenate %79, %80 in 2 : vector<4x8x1x256xbf16>, vector<4x8x7x256xbf16> -> vector<4x8x8x256xbf16>
    %82 = vector.extract_strided_slice %78 {offsets = [0, 0, 1, 0], sizes = [4, 8, 7, 256], strides = [1, 1, 1, 1]} : vector<4x8x8x256xbf16> to vector<4x8x7x256xbf16>
    %83 = tpu.concatenate %82, %79 in 2 : vector<4x8x7x256xbf16>, vector<4x8x1x256xbf16> -> vector<4x8x8x256xbf16>
    %cst_22 = arith.constant 0.000000e+00 : bf16
    %84 = vector.broadcast %cst_22 : bf16 to vector<4x1x8x256xbf16>
    %85 = vector.extract_strided_slice %81 {offsets = [0, 0, 0, 0], sizes = [4, 7, 8, 256], strides = [1, 1, 1, 1]} : vector<4x8x8x256xbf16> to vector<4x7x8x256xbf16>
    %86 = tpu.concatenate %84, %85 in 1 : vector<4x1x8x256xbf16>, vector<4x7x8x256xbf16> -> vector<4x8x8x256xbf16>
    %87 = vector.shape_cast %86 : vector<4x8x8x256xbf16> to vector<256x256xbf16>
    %88 = vector.extract_strided_slice %78 {offsets = [0, 0, 0, 0], sizes = [4, 7, 8, 256], strides = [1, 1, 1, 1]} : vector<4x8x8x256xbf16> to vector<4x7x8x256xbf16>
    %89 = tpu.concatenate %84, %88 in 1 : vector<4x1x8x256xbf16>, vector<4x7x8x256xbf16> -> vector<4x8x8x256xbf16>
    %90 = vector.shape_cast %89 : vector<4x8x8x256xbf16> to vector<256x256xbf16>
    %91 = vector.extract_strided_slice %83 {offsets = [0, 0, 0, 0], sizes = [4, 7, 8, 256], strides = [1, 1, 1, 1]} : vector<4x8x8x256xbf16> to vector<4x7x8x256xbf16>
    %92 = tpu.concatenate %84, %91 in 1 : vector<4x1x8x256xbf16>, vector<4x7x8x256xbf16> -> vector<4x8x8x256xbf16>
    %93 = vector.shape_cast %92 : vector<4x8x8x256xbf16> to vector<256x256xbf16>
    %94 = vector.shape_cast %81 : vector<4x8x8x256xbf16> to vector<256x256xbf16>
    %95 = vector.shape_cast %78 : vector<4x8x8x256xbf16> to vector<256x256xbf16>
    %96 = vector.shape_cast %83 : vector<4x8x8x256xbf16> to vector<256x256xbf16>
    %97 = vector.extract_strided_slice %81 {offsets = [0, 1, 0, 0], sizes = [4, 7, 8, 256], strides = [1, 1, 1, 1]} : vector<4x8x8x256xbf16> to vector<4x7x8x256xbf16>
    %98 = tpu.concatenate %97, %84 in 1 : vector<4x7x8x256xbf16>, vector<4x1x8x256xbf16> -> vector<4x8x8x256xbf16>
    %99 = vector.shape_cast %98 : vector<4x8x8x256xbf16> to vector<256x256xbf16>
    %100 = vector.extract_strided_slice %78 {offsets = [0, 1, 0, 0], sizes = [4, 7, 8, 256], strides = [1, 1, 1, 1]} : vector<4x8x8x256xbf16> to vector<4x7x8x256xbf16>
    %101 = tpu.concatenate %100, %84 in 1 : vector<4x7x8x256xbf16>, vector<4x1x8x256xbf16> -> vector<4x8x8x256xbf16>
    %102 = vector.shape_cast %101 : vector<4x8x8x256xbf16> to vector<256x256xbf16>
    %103 = vector.extract_strided_slice %83 {offsets = [0, 1, 0, 0], sizes = [4, 7, 8, 256], strides = [1, 1, 1, 1]} : vector<4x8x8x256xbf16> to vector<4x7x8x256xbf16>
    %104 = tpu.concatenate %103, %84 in 1 : vector<4x7x8x256xbf16>, vector<4x1x8x256xbf16> -> vector<4x8x8x256xbf16>
    %105 = vector.shape_cast %104 : vector<4x8x8x256xbf16> to vector<256x256xbf16>
    %106 = tpu.concatenate %87, %90, %93, %94, %95, %96, %99, %102, %105 in 1 : vector<256x256xbf16>, vector<256x256xbf16>, vector<256x256xbf16>, vector<256x256xbf16>, vector<256x256xbf16>, vector<256x256xbf16>, vector<256x256xbf16>, vector<256x256xbf16>, vector<256x256xbf16> -> vector<256x2304xbf16>
    %c0_23 = arith.constant 0 : index
    %c0_24 = arith.constant 0 : index
    %107 = vector.load %arg6[%c0_23, %c0_24] : memref<2304x256xbf16, #tpu.memory_space<vmem>>, vector<2304x256xbf16>
    %cst_25 = arith.constant dense<0.000000e+00> : vector<256x256xf32>
    %108 = tpu.matmul %106, %107, %cst_25 {dimension_numbers = #tpu.dot_dimension_numbers<[1], [0], [0], [1], [0, 0, 1, 1], [], []>} : vector<256x2304xbf16>, vector<2304x256xbf16>, vector<256x256xf32> -> vector<256x256xf32>
    %c0_26 = arith.constant 0 : index
    %c0_27 = arith.constant 0 : index
    %109 = vector.load %arg7[%c0_26, %c0_27] : memref<1x256xf32, #tpu.memory_space<vmem>>, vector<1x256xf32>
    %110 = vector.broadcast %109 : vector<1x256xf32> to vector<256x256xf32>
    %111 = arith.addf %108, %110 : vector<256x256xf32>
    %112 = vector.shape_cast %41 : vector<4x8x8x128xbf16> to vector<256x128xbf16>
    %c0_28 = arith.constant 0 : index
    %c0_29 = arith.constant 0 : index
    %113 = vector.load %arg8[%c0_28, %c0_29] : memref<128x256xbf16, #tpu.memory_space<vmem>>, vector<128x256xbf16>
    %cst_30 = arith.constant dense<0.000000e+00> : vector<256x256xf32>
    %114 = tpu.matmul %112, %113, %cst_30 {dimension_numbers = #tpu.dot_dimension_numbers<[1], [0], [0], [1], [0, 0, 1, 1], [], []>} : vector<256x128xbf16>, vector<128x256xbf16>, vector<256x256xf32> -> vector<256x256xf32>
    %c0_31 = arith.constant 0 : index
    %c0_32 = arith.constant 0 : index
    %115 = vector.load %arg9[%c0_31, %c0_32] : memref<1x256xf32, #tpu.memory_space<vmem>>, vector<1x256xf32>
    %116 = vector.broadcast %115 : vector<1x256xf32> to vector<256x256xf32>
    %117 = arith.addf %114, %116 : vector<256x256xf32>
    %118 = arith.addf %111, %117 : vector<256x256xf32>
    %cst_33 = arith.constant 0.000000e+00 : f32
    %119 = vector.broadcast %cst_33 : f32 to vector<256x256xf32>
    %120 = arith.maximumf %118, %119 : vector<256x256xf32>
    %121 = vector.shape_cast %120 : vector<256x256xf32> to vector<4x64x256xf32>
    %cst_34 = arith.constant dense<0.000000e+00> : vector<4x256xf32>
    %122 = vector.multi_reduction <add>, %121, %cst_34 [1] : vector<4x64x256xf32> to vector<4x256xf32>
    %cst_35 = arith.constant 6.400000e+01 : f32
    %123 = vector.broadcast %cst_35 : f32 to vector<4x256xf32>
    %124 = arith.divf %122, %123 : vector<4x256xf32>
    %125 = arith.truncf %124 : vector<4x256xf32> to vector<4x256xbf16>
    %c0_36 = arith.constant 0 : index
    %c0_37 = arith.constant 0 : index
    %126 = vector.load %arg10[%c0_36, %c0_37] : memref<256x256xbf16, #tpu.memory_space<vmem>>, vector<256x256xbf16>
    %cst_38 = arith.constant dense<0.000000e+00> : vector<4x256xf32>
    %127 = tpu.matmul %125, %126, %cst_38 {dimension_numbers = #tpu.dot_dimension_numbers<[1], [0], [0], [1], [0, 0, 1, 1], [], []>} : vector<4x256xbf16>, vector<256x256xbf16>, vector<4x256xf32> -> vector<4x256xf32>
    %c0_39 = arith.constant 0 : index
    %c0_40 = arith.constant 0 : index
    %128 = vector.load %arg11[%c0_39, %c0_40] : memref<1x256xf32, #tpu.memory_space<vmem>>, vector<1x256xf32>
    %129 = vector.broadcast %128 : vector<1x256xf32> to vector<4x256xf32>
    %130 = arith.addf %127, %129 : vector<4x256xf32>
    %cst_41 = arith.constant 0.000000e+00 : f32
    %131 = vector.broadcast %cst_41 : f32 to vector<4x256xf32>
    %132 = arith.maximumf %130, %131 : vector<4x256xf32>
    %c0_42 = arith.constant 0 : index
    %c0_43 = arith.constant 0 : index
    %c0_44 = arith.constant 0 : index
    %133 = vector.load %arg12[%c0_42, %c0_43, %c0_44] : memref<1x4x256xf32, #tpu.memory_space<vmem>>, vector<1x4x256xf32>
    %134 = vector.shape_cast %133 : vector<1x4x256xf32> to vector<4x256xf32>
    %135 = vector.shape_cast %132 : vector<4x256xf32> to vector<1x4x256xf32>
    tpu.vector_store %arg12[%c0_42, %c0_43, %c0_44], %135 {strides = array<i32>} : memref<1x4x256xf32, #tpu.memory_space<vmem>>, vector<1x4x256xf32>,
    return
  }
  func.func @transform_0(%arg0: i32) -> (i32, i32, i32, i32) {
    %c0_i32 = arith.constant 0 : i32
    %c0_i32_0 = arith.constant 0 : i32
    %c0_i32_1 = arith.constant 0 : i32
    %c0_i32_2 = arith.constant 0 : i32
    return %arg0, %c0_i32, %c0_i32_0, %c0_i32_1 : i32, i32, i32, i32
  }
  func.func @transform_1(%arg0: i32) -> (i32, i32) {
    %c0_i32 = arith.constant 0 : i32
    %c0_i32_0 = arith.constant 0 : i32
    %c0_i32_1 = arith.constant 0 : i32
    return %c0_i32, %c0_i32_0 : i32, i32
  }
  func.func @transform_2(%arg0: i32) -> (i32, i32) {
    %c0_i32 = arith.constant 0 : i32
    %c0_i32_0 = arith.constant 0 : i32
    %c0_i32_1 = arith.constant 0 : i32
    return %c0_i32, %c0_i32_0 : i32, i32
  }
  func.func @transform_3(%arg0: i32) -> (i32, i32) {
    %c0_i32 = arith.constant 0 : i32
    %c0_i32_0 = arith.constant 0 : i32
    %c0_i32_1 = arith.constant 0 : i32
    return %c0_i32, %c0_i32_0 : i32, i32
  }
  func.func @transform_4(%arg0: i32) -> (i32, i32) {
    %c0_i32 = arith.constant 0 : i32
    %c0_i32_0 = arith.constant 0 : i32
    %c0_i32_1 = arith.constant 0 : i32
    return %c0_i32, %c0_i32_0 : i32, i32
  }
  func.func @transform_5(%arg0: i32) -> (i32, i32) {
    %c0_i32 = arith.constant 0 : i32
    %c0_i32_0 = arith.constant 0 : i32
    %c0_i32_1 = arith.constant 0 : i32
    return %c0_i32, %c0_i32_0 : i32, i32
  }
  func.func @transform_6(%arg0: i32) -> (i32, i32) {
    %c0_i32 = arith.constant 0 : i32
    %c0_i32_0 = arith.constant 0 : i32
    %c0_i32_1 = arith.constant 0 : i32
    return %c0_i32, %c0_i32_0 : i32, i32
  }
  func.func @transform_7(%arg0: i32) -> (i32, i32) {
    %c0_i32 = arith.constant 0 : i32
    %c0_i32_0 = arith.constant 0 : i32
    %c0_i32_1 = arith.constant 0 : i32
    return %c0_i32, %c0_i32_0 : i32, i32
  }
  func.func @transform_8(%arg0: i32) -> (i32, i32) {
    %c0_i32 = arith.constant 0 : i32
    %c0_i32_0 = arith.constant 0 : i32
    %c0_i32_1 = arith.constant 0 : i32
    return %c0_i32, %c0_i32_0 : i32, i32
  }
  func.func @transform_9(%arg0: i32) -> (i32, i32) {
    %c0_i32 = arith.constant 0 : i32
    %c0_i32_0 = arith.constant 0 : i32
    %c0_i32_1 = arith.constant 0 : i32
    return %c0_i32, %c0_i32_0 : i32, i32
  }
  func.func @transform_10(%arg0: i32) -> (i32, i32) {
    %c0_i32 = arith.constant 0 : i32
    %c0_i32_0 = arith.constant 0 : i32
    %c0_i32_1 = arith.constant 0 : i32
    return %c0_i32, %c0_i32_0 : i32, i32
  }
  func.func @transform_11(%arg0: i32) -> (i32, i32, i32) {
    %c0_i32 = arith.constant 0 : i32
    %c0_i32_0 = arith.constant 0 : i32
    %c0_i32_1 = arith.constant 0 : i32
    return %arg0, %c0_i32, %c0_i32_0 : i32, i32, i32
  }
}

</mosaic_0001>

<bundles_post_ra>
// kernel: image_feature_extractor.1
= control target key start
LH: loop header
LB: loop body
LE: loop exit
PB: predicated region body
PF: predicated region fallthrough
CT: control target
= control target key end

     0   :  { %s13133_s17 = smov 0   ;;  %s21092_s0 = inlined_call_operand.vmem [shape: bf16[8,4,64,32], index: 0, kind: input, shape index: {}]   ;;  %s21093_s1 = inlined_call_operand.vmem [shape: bf16[32,128], index: 1, kind: input, shape index: {}]   ;;  %s21094_s2 = inlined_call_operand.vmem [shape: f32[1,128], index: 2, kind: input, shape index: {}]   ;;  %s21095_s3 = inlined_call_operand.vmem [shape: bf16[1152,256], index: 3, kind: input, shape index: {}]   ;;  %s21096_s4 = inlined_call_operand.vmem [shape: f32[1,256], index: 4, kind: input, shape index: {}]   ;;  %s21097_s5 = inlined_call_operand.vmem [shape: bf16[2304,256], index: 5, kind: input, shape index: {}]   ;;  %s21098_s6 = inlined_call_operand.vmem [shape: f32[1,256], index: 6, kind: input, shape index: {}]   ;;  %s21099_s7 = inlined_call_operand.vmem [shape: bf16[128,256], index: 7, kind: input, shape index: {}]   ;;  %s21100_s8 = inlined_call_operand.vmem [shape: f32[1,256], index: 8, kind: input, shape index: {}]   ;;  %s21101_s9 = inlined_call_operand.vmem [shape: bf16[256,256], index: 9, kind: input, shape index: {}]   ;;  %s21102_s10 = inlined_call_operand.vmem [shape: f32[1,256], index: 10, kind: input, shape index: {}]   ;;  %s21103_s11 = inlined_call_operand.vmem [shape: f32[2,4,256], index: 11, kind: output, shape index: {}]  }
   0x1 LB: > { %s13139_s18 = sadd.s32 4294967295, %s13070_s17   ;;  %p11028_p0 = scmp.ge.s32.totalorder %s13070_s17, 1  ;;  %s13070_s17 = sphi %s13133_s17, %s21_s17  }
   0x2   : > { %p339_p1 = scmp.lt.s32.totalorder %s13070_s17, 3 }
   0x4   : > { %p340_p2 = pnand %p11028_p0, %p339_p1 }
   0x6   : > { %343 = sbr.rel (%p340_p2) target bundleno = 2026 (0x7ea), region = 64 }
   0xb   : > { %v12276_v0 = vld [vmem:[%s21093_s1 + $0x8] sm:$0xff]   ;;  %s11029_s21 = sshll.u32 %s13139_s18, 2  ;;  %v12277_v1 = vld [vmem:[%s21093_s1] sm:$0xff]   ;;  %vm864_vm0 = vcmask 261120   ;;  %v12330_v24 = vld [vmem:[%s21095_s3 + $0x74] ss:$8 sps:$4 sm:$0xff]  }
   0xc   : > { %p381_p3 = scmp.lt.s32.totalorder %s11029_s21, 7  ;;  %12135 = vmatprep.subr.bf16.mxu0 %v12276_v0  ;;  %v12332_v25 = vld [vmem:[%s21095_s3 + $0x70] ss:$8 sps:$4 sm:$0xff]   ;;  %3983 = vmatprep.subr.bf16.mxu1 %v12330_v24  ;;  %v12335_v27 = vld [vmem:[%s21095_s3 + $0x64] ss:$8 sps:$4 sm:$0xff]   ;;  %vm1826_vm1 = vcmask 1040384  }
   0xd   : > { %12136 = vmatpush3.bf16.msra.mxu0 %v12276_v0  ;;  %3984 = vmatpush1.bf16.msra.mxu1 %v12332_v25  ;;  %v12337_v28 = vld [vmem:[%s21095_s3 + $0x60] ss:$8 sps:$4 sm:$0xff]   ;;  %v12340_v29 = vld [vmem:[%s21095_s3 + $0x274] ss:$8 sps:$4 sm:$0xff]   ;;  %v12338_v30 = vld [vmem:[%s21095_s3 + $0x270] ss:$8 sps:$4 sm:$0xff]  }
   0xe   : > { %s23123_s21 = smov (!%p381_p3, %s11029_s21), 7  ;;  %12137 = vmatprep.subr.bf16.mxu0 %v12277_v1  ;;  %3985 = vmatprep.subr.bf16.mxu1 %v12335_v27  ;;  %v12341_v33 = vld [vmem:[%s21095_s3 + $0x54] ss:$8 sps:$4 sm:$0xff]   ;;  %v12343_v34 = vld [vmem:[%s21095_s3 + $0x50] ss:$8 sps:$4 sm:$0xff]   ;;  %vm2662_vm3 = vcmask 1043456  }
   0xf   : > { %s11975_s24 = sshll.u32 %s23123_s21, 7  ;;  %v12346_v35 = vld [vmem:[%s21095_s3 + $0x264] ss:$8 sps:$4 sm:$0xff]   ;;  %v12344_v36 = vld [vmem:[%s21095_s3 + $0x260] ss:$8 sps:$4 sm:$0xff]   ;;  %vm10748_vm7 = vcmask 1041409  }
  0x10   : > { %s13153_s27 = scalar_lea.vmem %s21092_s0, %s11975_s24  ;;  %v12349_v37 = vld [vmem:[%s21095_s3 + $0x44] ss:$8 sps:$4 sm:$0xff]   ;;  %v12351_v38 = vld [vmem:[%s21095_s3 + $0x40] ss:$8 sps:$4 sm:$0xff]   ;;  %v12354_v39 = vld [vmem:[%s21095_s3 + $0x254] ss:$8 sps:$4 sm:$0xff]  }
  0x11   : > { %12138 = vmatpush3.bf16.msra.mxu0 %v12277_v1  ;;  %v12278_v2 = vld [vmem:[%s13153_s27] sm:$0xff]   ;;  %v12279_v3 = vld [vmem:[%s13153_s27 + $0x8] sm:$0xff]   ;;  %v12280_v4 = vld [vmem:[%s13153_s27 + $0x10] sm:$0xff]   ;;  %3986 = vmatpush1.bf16.msra.mxu1 %v12337_v28  ;;  %vm2532_vm2 = vsmask.f32 256  ;;  %vm10750_vm8 = vcmask 1042434  }
  0x12   : > { %12139 = vmatprep.mubr.msk.bf16.mxu0 %vm864_vm0, %v12278_v2  ;;  %v12281_v5 = vld [vmem:[%s13153_s27 + $0x18] sm:$0xff]   ;;  %v12282_v6 = vld [vmem:[%s13153_s27 + $0x20] sm:$0xff]   ;;  %v12283_v7 = vld [vmem:[%s13153_s27 + $0x28] sm:$0xff]   ;;  %4369 = vmatprep.subr.bf16.mxu0 %v12340_v29  ;;  %vm2663_vm4 = vsmask.f32 3328  ;;  %vm10752_vm9 = vcmask 1043459  }
  0x13   : > { %v12284_v8 = vld [vmem:[%s13153_s27 + $0x30] sm:$0xff]   ;;  %v12285_v9 = vld [vmem:[%s13153_s27 + $0x38] sm:$0xff]   ;;  %v12286_v10 = vld [vmem:[%s13153_s27 + $0x40] sm:$0xff]   ;;  %3987 = vmatprep.subr.bf16.mxu1 %v12341_v33  ;;  %p387_p4 = scmp.lt.s32.totalorder %s13139_s18, 1 }
  0x14   : > { %12140 = vmatmul.mubr.msk.bf16.vlgmr.msra.gmra.mxu0 %vm864_vm0, %v12279_v3  ;;  %v12287_v11 = vld [vmem:[%s13153_s27 + $0x48] sm:$0xff]   ;;  %v12288_v12 = vld [vmem:[%s13153_s27 + $0x50] sm:$0xff]   ;;  %v12289_v13 = vld [vmem:[%s13153_s27 + $0x58] sm:$0xff]  }
  0x15   : > { %12143 = vmatprep.mubr.msk.bf16.mxu0 %vm864_vm0, %v12280_v4  ;;  %v12290_v14 = vld [vmem:[%s13153_s27 + $0x60] sm:$0xff]   ;;  %v12291_v15 = vld [vmem:[%s13153_s27 + $0x68] sm:$0xff]   ;;  %v12292_v16 = vld [vmem:[%s13153_s27 + $0x70] sm:$0xff]   ;;  %4370 = vmatpush1.bf16.msra.mxu0 %v12338_v30  ;;  %s23125_s18 = smov (!%p387_p4, %s13139_s18), 1 }
  0x16   : > { %v12293_v17 = vld [vmem:[%s13153_s27 + $0x78] sm:$0xff]   ;;  %v12294_v18 = vld [vmem:[%s13153_s27 + $0x80] sm:$0xff]   ;;  %v12295_v19 = vld [vmem:[%s13153_s27 + $0x88] sm:$0xff]   ;;  %3988 = vmatpush1.bf16.msra.mxu1 %v12343_v34  ;;  %4371 = vmatprep.subr.bf16.mxu0 %v12346_v35  ;;  %s11976_s23 = sshll.u32 %s23125_s18, 3 }
  0x17   : > { %v12296_v20 = vld [vmem:[%s13153_s27 + $0x90] sm:$0xff]   ;;  %v12297_v21 = vld [vmem:[%s13153_s27 + $0x98] sm:$0xff]   ;;  %v12298_v22 = vld [vmem:[%s13153_s27 + $0xa0] sm:$0xff]   ;;  %3989 = vmatprep.subr.bf16.mxu1 %v12349_v37  ;;  %s391_s26 = scalar_lea.vmem %s21103_s11, %s11976_s23 }
  0x18   : > { %v12299_v23 = vld [vmem:[%s13153_s27 + $0xa8] sm:$0xff]   ;;  %v12300_v26 = vld [vmem:[%s13153_s27 + $0xb0] sm:$0xff]   ;;  %v12301_v31 = vld [vmem:[%s13153_s27 + $0xb8] sm:$0xff]  }
  0x19   : > { %v12302_v32 = vld [vmem:[%s13153_s27 + $0xc0] sm:$0xff]   ;;  %4372 = vmatpush1.bf16.msra.mxu0 %v12344_v36  ;;  %v12303_v40 = vld [vmem:[%s13153_s27 + $0xc8] sm:$0xff]   ;;  %v12352_v41 = vld [vmem:[%s21095_s3 + $0x250] ss:$8 sps:$4 sm:$0xff]  }
  0x1a   : > { %v12304_v42 = vld [vmem:[%s13153_s27 + $0xd0] sm:$0xff]   ;;  %3990 = vmatpush1.bf16.msra.mxu1 %v12351_v38  ;;  %4373 = vmatprep.subr.bf16.mxu0 %v12354_v39  ;;  %v12360_v45 = vld [vmem:[%s21095_s3 + $0x244] ss:$8 sps:$4 sm:$0xff]   ;;  %v12358_v46 = vld [vmem:[%s21095_s3 + $0x240] ss:$8 sps:$4 sm:$0xff]  }
  0x1b   : > { %v12355_v43 = vld [vmem:[%s21095_s3 + $0x34] ss:$8 sps:$4 sm:$0xff]   ;;  %v12357_v44 = vld [vmem:[%s21095_s3 + $0x30] ss:$8 sps:$4 sm:$0xff]   ;;  %v12363_v47 = vld [vmem:[%s21095_s3 + $0x24] ss:$8 sps:$4 sm:$0xff]  }
  0x1c   : > { %12144 = vmatmul.mubr.msk.bf16.gmra.mxu0 %vm864_vm0, %v12281_v5  ;;  %3991 = vmatprep.subr.bf16.mxu1 %v12355_v43  ;;  %v12365_v48 = vld [vmem:[%s21095_s3 + $0x20] ss:$8 sps:$4 sm:$0xff]   ;;  %v12368_v49 = vld [vmem:[%s21095_s3 + $0x234] ss:$8 sps:$4 sm:$0xff]   ;;  %v12366_v51 = vld [vmem:[%s21095_s3 + $0x230] ss:$8 sps:$4 sm:$0xff]  }
  0x1d   : > { %12147 = vmatprep.mubr.msk.bf16.mxu0 %vm864_vm0, %v12282_v6  ;;  %4374 = vmatpush1.bf16.msra.mxu0 %v12352_v41  ;;  %v12305_v50 = vld [vmem:[%s13153_s27 + $0xd8] sm:$0xff]   ;;  %v12306_v52 = vld [vmem:[%s13153_s27 + $0xe0] sm:$0xff]   ;;  %v12307_v58 = vld [vmem:[%s13153_s27 + $0xe8] sm:$0xff]  }
  0x1e   : > { %3992 = vmatpush1.bf16.msra.mxu1 %v12357_v44  ;;  %4375 = vmatprep.subr.bf16.mxu0 %v12360_v45  ;;  %v12369_v53 = vld [vmem:[%s21095_s3 + $0x14] ss:$8 sps:$4 sm:$0xff]   ;;  %v12371_v54 = vld [vmem:[%s21095_s3 + $0x10] ss:$8 sps:$4 sm:$0xff]   ;;  %v12374_v55 = vld [vmem:[%s21095_s3 + $0x224] ss:$8 sps:$4 sm:$0xff]  }
  0x1f   : > { %3993 = vmatprep.subr.bf16.mxu1 %v12363_v47  ;;  %v12372_v56 = vld [vmem:[%s21095_s3 + $0x220] ss:$8 sps:$4 sm:$0xff]   ;;  %v12377_v57 = vld [vmem:[%s21095_s3 + $0x4] ss:$8 sps:$4 sm:$0xff]   ;;  %v12382_v60 = vld [vmem:[%s21095_s3 + $0x214] ss:$8 sps:$4 sm:$0xff]  }
  0x20   : > { %v12379_v59 = vld [vmem:[%s21095_s3] ss:$8 sps:$4 sm:$0xff]   ;;  %v12308_v61 = vld [vmem:[%s13153_s27 + $0xf0] sm:$0xff]   ;;  %v12388_v1 = vld [vmem:[%s21095_s3 + $0x204] ss:$8 sps:$4 sm:$0xff]  }
  0x21   : > { %4376 = vmatpush1.bf16.msra.mxu0 %v12358_v46  ;;  %v12380_v62 = vld [vmem:[%s21095_s3 + $0x210] ss:$8 sps:$4 sm:$0xff]   ;;  %v12383_v63 = vld [vmem:[%s21095_s3 + $0xf4] ss:$8 sps:$4 sm:$0xff]   ;;  %v12386_v2 = vld [vmem:[%s21095_s3 + $0x200] ss:$8 sps:$4 sm:$0xff]  }
  0x22   : > { %3994 = vmatpush1.bf16.msra.mxu1 %v12365_v48  ;;  %4377 = vmatprep.subr.bf16.mxu0 %v12368_v49  ;;  %v12385_v0 = vld [vmem:[%s21095_s3 + $0xf0] ss:$8 sps:$4 sm:$0xff]   ;;  %v12391_v3 = vld [vmem:[%s21095_s3 + $0xe4] ss:$8 sps:$4 sm:$0xff]   ;;  %v12393_v5 = vld [vmem:[%s21095_s3 + $0xe0] ss:$8 sps:$4 sm:$0xff]  }
  0x23   : > { %3995 = vmatprep.subr.bf16.mxu1 %v12369_v53  ;;  %v12309_v4 = vld [vmem:[%s13153_s27 + $0xf8] sm:$0xff]   ;;  %v12419_v25 = vld [vmem:[%s21095_s3 + $0xa0] ss:$8 sps:$4 sm:$0xff]   ;;  %v12429_v33 = vld [vmem:[%s21095_s3 + $0x84] ss:$8 sps:$4 sm:$0xff]  }
  0x24   : > { %12148 = vmatmul.mubr.msk.bf16.gmra.mxu0 %vm864_vm0, %v12283_v7  ;;  %v12396_v6 = vld [vmem:[%s21095_s3 + $0x2f4] ss:$8 sps:$4 sm:$0xff]   ;;  %v12310_v7 = vld [vmem:[%s13153_s27 + $0x100] sm:$0xff]   ;;  %v12420_v28 = vld [vmem:[%s21095_s3 + $0x2b0] ss:$8 sps:$4 sm:$0xff]  }
  0x25   : > { %12151 = vmatprep.mubr.msk.bf16.mxu0 %vm864_vm0, %v12284_v8  ;;  %4378 = vmatpush1.bf16.msra.mxu0 %v12366_v51  ;;  %v12394_v8 = vld [vmem:[%s21095_s3 + $0x2f0] ss:$8 sps:$4 sm:$0xff]   ;;  %v12314_v27 = vld [vmem:[%s13153_s27 + $0x120] sm:$0xff]   ;;  %v12423_v29 = vld [vmem:[%s21095_s3 + $0x94] ss:$8 sps:$4 sm:$0xff]  }
  0x26   : > { %3996 = vmatpush1.bf16.msra.mxu1 %v12371_v54  ;;  %4379 = vmatprep.subr.bf16.mxu0 %v12374_v55  ;;  %v12313_v24 = vld [vmem:[%s13153_s27 + $0x118] sm:$0xff]   ;;  %v12315_v34 = vld [vmem:[%s13153_s27 + $0x128] sm:$0xff]   ;;  %v12316_v37 = vld [vmem:[%s13153_s27 + $0x130] sm:$0xff]  }
  0x27   : > { %3997 = vmatprep.subr.bf16.mxu1 %v12377_v57  ;;  %v12425_v30 = vld [vmem:[%s21095_s3 + $0x90] ss:$8 sps:$4 sm:$0xff]   ;;  %v12431_v35 = vld [vmem:[%s21095_s3 + $0x80] ss:$8 sps:$4 sm:$0xff]   ;;  %v12434_v36 = vld [vmem:[%s21095_s3 + $0x294] ss:$8 sps:$4 sm:$0xff]  }
  0x28   : > { %v12432_v38 = vld [vmem:[%s21095_s3 + $0x290] ss:$8 sps:$4 sm:$0xff]   ;;  %v12437_v41 = vld [vmem:[%s21095_s3 + $0x284] ss:$8 sps:$4 sm:$0xff]   ;;  %vm13683_vm5 = vmand %vm1826_vm1, %vm2532_vm2 }
  0x29   : > { %4380 = vmatpush1.bf16.msra.mxu0 %v12372_v56  ;;  %v12317_v39 = vld [vmem:[%s13153_s27 + $0x138] sm:$0xff]   ;;  %v12319_v43 = vld [vmem:[%s13153_s27 + $0x148] sm:$0xff]   ;;  %v12320_v44 = vld [vmem:[%s13153_s27 + $0x150] sm:$0xff]  }
  0x2a   : > { %3998 = vmatpush1.bf16.msra.mxu1 %v12379_v59  ;;  %4381 = vmatprep.subr.bf16.mxu0 %v12382_v60  ;;  %v12321_v45 = vld [vmem:[%s13153_s27 + $0x158] sm:$0xff]   ;;  %v12322_v46 = vld [vmem:[%s13153_s27 + $0x160] sm:$0xff]   ;;  %v12323_v47 = vld [vmem:[%s13153_s27 + $0x168] sm:$0xff]  }
  0x2b   : > { %3999 = vmatprep.subr.bf16.mxu1 %v12383_v63  ;;  %v12324_v48 = vld [vmem:[%s13153_s27 + $0x170] sm:$0xff]   ;;  %v12325_v49 = vld [vmem:[%s13153_s27 + $0x178] sm:$0xff]   ;;  %v12327_v51 = vld [vmem:[%s13153_s27 + $0x188] sm:$0xff]  }
  0x2c   : > { %12152 = vmatmul.mubr.msk.bf16.gmra.mxu0 %vm864_vm0, %v12285_v9  ;;  %v12397_v9 = vld [vmem:[%s21095_s3 + $0xd4] ss:$8 sps:$4 sm:$0xff]   ;;  %v12333_v56 = vld [vmem:[%s13153_s27 + $0x1a0] sm:$0xff]   ;;  %vm13718_vm6 = vmand %vm2662_vm3, %vm2663_vm4 }
  0x2d   : > { %12155 = vmatprep.mubr.msk.bf16.mxu0 %vm864_vm0, %v12286_v10  ;;  %4382 = vmatpush1.bf16.msra.mxu0 %v12380_v62  ;;  %v12399_v10 = vld [vmem:[%s21095_s3 + $0xd0] ss:$8 sps:$4 sm:$0xff]  }
  0x2e   : > { %4000 = vmatpush2.bf16.msra.mxu1 %v12385_v0  ;;  %4383 = vmatprep.subr.bf16.mxu0 %v12388_v1  ;;  %v12329_v55 = vld [vmem:[%s13153_s27 + $0x198] sm:$0xff]   ;;  %v12347_v62 = vld [vmem:[%s13153_s27 + $0x1b0] sm:$0xff]  }
  0x2f   : > { %4001 = vmatprep.subr.bf16.mxu1 %v12391_v3  ;;  %v12348_v3 = vld [vmem:[%s13153_s27 + $0x1b8] sm:$0xff]  }
  0x31   : > { %4384 = vmatpush1.bf16.msra.mxu0 %v12386_v2 }
  0x32   : > { %4002 = vmatpush2.bf16.msra.mxu1 %v12393_v5  ;;  %4385 = vmatprep.subr.bf16.mxu0 %v12396_v6 }
  0x33   : > { %4003 = vmatprep.subr.bf16.mxu1 %v12397_v9  ;;  %v12362_v9 = vld [vmem:[%s13153_s27 + $0x1c8] sm:$0xff]  }
  0x34   : > { %12156 = vmatmul.mubr.msk.bf16.gmra.mxu0 %vm864_vm0, %v12287_v11  ;;  %v12402_v11 = vld [vmem:[%s21095_s3 + $0x2e4] ss:$8 sps:$4 sm:$0xff]  }
  0x35   : > { %12159 = vmatprep.mubr.msk.bf16.mxu0 %vm864_vm0, %v12288_v12  ;;  %4386 = vmatpush2.bf16.msra.mxu0 %v12394_v8  ;;  %v12400_v12 = vld [vmem:[%s21095_s3 + $0x2e0] ss:$8 sps:$4 sm:$0xff]  }
  0x36   : > { %4004 = vmatpush2.bf16.msra.mxu1 %v12399_v10  ;;  %4387 = vmatprep.subr.bf16.mxu0 %v12402_v11  ;;  %v12375_v10 = vld [vmem:[%s13153_s27 + $0x1d0] sm:$0xff]   ;;  %v13466_v11 = vld [vmem:[%s21094_s2] ss:$0 sm:$0xff] }
  0x39   : > { %4388 = vmatpush2.bf16.msra.mxu0 %v12400_v12 }
  0x3c   : > { %12160 = vmatmul.mubr.msk.bf16.gmra.mxu0 %vm864_vm0, %v12289_v13  ;;  %v12405_v13 = vld [vmem:[%s21095_s3 + $0xc4] ss:$8 sps:$4 sm:$0xff]  }
  0x3d   : > { %12163 = vmatprep.mubr.msk.bf16.mxu0 %vm864_vm0, %v12290_v14  ;;  %v12311_v14 = vld [vmem:[%s13153_s27 + $0x108] sm:$0xff]   ;;  %4005 = vmatprep.subr.bf16.mxu1 %v12405_v13 }
  0x44   : > { %12164 = vmatmul.mubr.msk.bf16.gmra.mxu0 %vm864_vm0, %v12291_v15  ;;  %v12407_v15 = vld [vmem:[%s21095_s3 + $0xc0] ss:$8 sps:$4 sm:$0xff]  }
  0x45   : > { %12167 = vmatprep.mubr.msk.bf16.mxu0 %vm864_vm0, %v12292_v16  ;;  %v12410_v16 = vld [vmem:[%s21095_s3 + $0x2d4] ss:$8 sps:$4 sm:$0xff]   ;;  %4006 = vmatpush2.bf16.msra.mxu1 %v12407_v15 }
  0x46   : > { %4389 = vmatprep.subr.bf16.mxu0 %v12410_v16 }
  0x4c   : > { %12168 = vmatmul.mubr.msk.bf16.gmra.mxu0 %vm864_vm0, %v12293_v17  ;;  %v12312_v17 = vld [vmem:[%s13153_s27 + $0x110] sm:$0xff]  }
  0x4d   : > { %12171 = vmatprep.mubr.msk.bf16.mxu0 %vm864_vm0, %v12294_v18  ;;  %v12408_v18 = vld [vmem:[%s21095_s3 + $0x2d0] ss:$8 sps:$4 sm:$0xff]  }
  0x4e   : > { %4390 = vmatpush2.bf16.msra.mxu0 %v12408_v18 }
  0x54   : > { %12172 = vmatmul.mubr.msk.bf16.gmra.mxu0 %vm864_vm0, %v12295_v19  ;;  %v12411_v19 = vld [vmem:[%s21095_s3 + $0xb4] ss:$8 sps:$4 sm:$0xff]  }
  0x55   : > { %12175 = vmatprep.mubr.msk.bf16.mxu0 %vm864_vm0, %v12296_v20  ;;  %v12413_v20 = vld [vmem:[%s21095_s3 + $0xb0] ss:$8 sps:$4 sm:$0xff]   ;;  %4007 = vmatprep.subr.bf16.mxu1 %v12411_v19 }
  0x56   : > { %4008 = vmatpush2.bf16.msra.mxu1 %v12413_v20 }
  0x5c   : > { %12176 = vmatmul.mubr.msk.bf16.gmra.mxu0 %vm864_vm0, %v12297_v21  ;;  %v12416_v21 = vld [vmem:[%s21095_s3 + $0x2c4] ss:$8 sps:$4 sm:$0xff]  }
  0x5d   : > { %12179 = vmatprep.mubr.msk.bf16.mxu0 %vm864_vm0, %v12298_v22  ;;  %v12414_v22 = vld [vmem:[%s21095_s3 + $0x2c0] ss:$8 sps:$4 sm:$0xff]   ;;  %4391 = vmatprep.subr.bf16.mxu0 %v12416_v21  ;;  %v12376_v21 = vld [vmem:[%s13153_s27 + $0x1d8] sm:$0xff]  }
  0x5e   : > { %4392 = vmatpush2.bf16.msra.mxu0 %v12414_v22 }
  0x64   : > { %12180 = vmatmul.mubr.msk.bf16.gmra.mxu0 %vm864_vm0, %v12299_v23  ;;  %v12417_v23 = vld [vmem:[%s21095_s3 + $0xa4] ss:$8 sps:$4 sm:$0xff]  }
  0x65   : > { %12183 = vmatprep.mubr.msk.bf16.mxu0 %vm864_vm0, %v12300_v26  ;;  %v12422_v26 = vld [vmem:[%s21095_s3 + $0x2b4] ss:$8 sps:$4 sm:$0xff]   ;;  %4009 = vmatprep.subr.bf16.mxu1 %v12417_v23 }
  0x66   : > { %4010 = vmatpush2.bf16.msra.mxu1 %v12419_v25  ;;  %4393 = vmatprep.subr.bf16.mxu0 %v12422_v26  ;;  %v12389_v25 = vld [vmem:[%s13153_s27 + $0x1e0] sm:$0xff]  }
  0x67   : > { %4394 = vmatpush2.bf16.msra.mxu0 %v12420_v28  ;;  %4011 = vmatprep.subr.bf16.mxu1 %v12423_v29 }
  0x6a   : > { %4012 = vmatpush2.bf16.msra.mxu1 %v12425_v30 }
  0x6b   : > { %4013 = vmatprep.subr.bf16.mxu1 %v12429_v33 }
  0x6c   : > { %12184 = vmatmul.mubr.msk.bf16.gmra.mxu0 %vm864_vm0, %v12301_v31  ;;  %v12428_v31 = vld [vmem:[%s21095_s3 + $0x2a4] ss:$8 sps:$4 sm:$0xff]  }
  0x6d   : > { %12187 = vmatprep.mubr.msk.bf16.mxu0 %vm864_vm0, %v12302_v32  ;;  %v12426_v32 = vld [vmem:[%s21095_s3 + $0x2a0] ss:$8 sps:$4 sm:$0xff]   ;;  %4395 = vmatprep.subr.bf16.mxu0 %v12428_v31 }
  0x6e   : > { %4396 = vmatpush2.bf16.msra.mxu0 %v12426_v32  ;;  %4014 = vmatpush2.bf16.msra.mxu1 %v12431_v35 }
  0x6f   : > { %4397 = vmatprep.subr.bf16.mxu0 %v12434_v36 }
  0x72   : > { %4398 = vmatpush2.bf16.msra.mxu0 %v12432_v38 }
  0x73   : > { %4399 = vmatprep.subr.bf16.mxu0 %v12437_v41 }
  0x74   : > { %12188 = vmatmul.mubr.msk.bf16.gmra.mxu0 %vm864_vm0, %v12303_v40  ;;  %v12435_v40 = vld [vmem:[%s21095_s3 + $0x280] ss:$8 sps:$4 sm:$0xff]  }
  0x75   : > { %12191 = vmatprep.mubr.msk.bf16.mxu0 %vm864_vm0, %v12304_v42  ;;  %v12318_v42 = vld [vmem:[%s13153_s27 + $0x140] sm:$0xff]  }
  0x76   : > { %4400 = vmatpush2.bf16.msra.mxu0 %v12435_v40 }
  0x7c   : > { %12192 = vmatmul.mubr.msk.bf16.gmra.mxu0 %vm864_vm0, %v12305_v50  ;;  %v12326_v50 = vld [vmem:[%s13153_s27 + $0x180] sm:$0xff]  }
  0x7d   : > { %12195 = vmatprep.mubr.msk.bf16.mxu0 %vm864_vm0, %v12306_v52  ;;  %v12328_v52 = vld [vmem:[%s13153_s27 + $0x190] sm:$0xff]  }
  0x84   : > { %12196 = vmatmul.mubr.msk.bf16.gmra.mxu0 %vm864_vm0, %v12307_v58 }
  0x85   : > { %12199 = vmatprep.mubr.msk.bf16.mxu0 %vm864_vm0, %v12308_v61  ;;  %v12334_v61 = vld [vmem:[%s13153_s27 + $0x1a8] sm:$0xff]  }
  0x8c   : > { %12200 = vmatmul.mubr.msk.bf16.gmra.mxu0 %vm864_vm0, %v12309_v4  ;;  %v12361_v4 = vld [vmem:[%s13153_s27 + $0x1c0] sm:$0xff]  }
  0x8d   : > { %12203 = vmatprep.mubr.msk.bf16.mxu0 %vm864_vm0, %v12310_v7 }
  0x94   : > { %12204 = vmatmul.mubr.msk.bf16.gmra.mxu0 %vm864_vm0, %v12311_v14 }
  0x95   : > { %12207 = vmatprep.mubr.msk.bf16.mxu0 %vm864_vm0, %v12312_v17 }
  0x9c   : > { %12208 = vmatmul.mubr.msk.bf16.gmra.mxu0 %vm864_vm0, %v12313_v24 }
  0x9d   : > { %12211 = vmatprep.mubr.msk.bf16.mxu0 %vm864_vm0, %v12314_v27 }
  0xa4   : > { %12212 = vmatmul.mubr.msk.bf16.gmra.mxu0 %vm864_vm0, %v12315_v34 }
  0xa5   : > { %12215 = vmatprep.mubr.msk.bf16.mxu0 %vm864_vm0, %v12316_v37 }
  0xac   : > { %12216 = vmatmul.mubr.msk.bf16.gmra.mxu0 %vm864_vm0, %v12317_v39 }
  0xad   : > { %12219 = vmatprep.mubr.msk.bf16.mxu0 %vm864_vm0, %v12318_v42 }
  0xb4   : > { %12220 = vmatmul.mubr.msk.bf16.gmra.mxu0 %vm864_vm0, %v12319_v43 }
  0xb5   : > { %12223 = vmatprep.mubr.msk.bf16.mxu0 %vm864_vm0, %v12320_v44 }
  0xbc   : > { %12224 = vmatmul.mubr.msk.bf16.gmra.mxu0 %vm864_vm0, %v12321_v45 }
  0xbd   : > { %12227 = vmatprep.mubr.msk.bf16.mxu0 %vm864_vm0, %v12322_v46 }
  0xc4   : > { %12228 = vmatmul.mubr.msk.bf16.gmra.mxu0 %vm864_vm0, %v12323_v47 }
  0xc5   : > { %12231 = vmatprep.mubr.msk.bf16.mxu0 %vm864_vm0, %v12324_v48 }
  0xcc   : > { %12232 = vmatmul.mubr.msk.bf16.gmra.mxu0 %vm864_vm0, %v12325_v49 }
  0xcd   : > { %12235 = vmatprep.mubr.msk.bf16.mxu0 %vm864_vm0, %v12326_v50 }
  0xd4   : > { %v12141_v53 = vpop.f32.mrf.mxu0  ;;  %12236 = vmatmul.mubr.msk.bf16.gmra.mxu0 %vm864_vm0, %v12327_v51 }
  0xd5   : > { %12239 = vmatprep.mubr.msk.bf16.mxu0 %vm864_vm0, %v12328_v52  ;;  %v1100_v17 = vadd.f32 %v12141_v53, %v13466_v11 }
  0xd6   : > { %v1091_v54 = vpop.f32.mrf.mxu0 }
  0xd7   : > { %v1092_v19 = vadd.f32 %v13466_v11, %v1091_v54  ;;  %v1604_v30 = vmax.f32 %v1100_v17, 0.0  ;;  %v12390_v54 = vld [vmem:[%s13153_s27 + $0x1e8] sm:$0xff]  }
  0xd8   : > { %v12142_v57 = vpop.f32.mrf.mxu0 }
  0xd9   : > { %v1103_v22 = vadd.f32 %v12142_v57, %v13466_v11  ;;  %v1602_v34 = vmax.f32 %v1092_v19, 0.0 }
  0xda   : > { %v1094_v58 = vpop.f32.mrf.mxu0 }
  0xdb   : > { %v1095_v26 = vadd.f32 %v13466_v11, %v1094_v58  ;;  %v1605_v39 = vmax.f32 %v1103_v22, 0.0 }
  0xdc   : > { %v12145_v59 = vpop.f32.mrf.mxu0  ;;  %12240 = vmatmul.mubr.msk.bf16.gmra.mxu0 %vm864_vm0, %v12329_v55 }
  0xdd   : > { %12243 = vmatprep.mubr.msk.bf16.mxu0 %vm864_vm0, %v12333_v56  ;;  %v1116_v31 = vadd.f32 %v12145_v59, %v13466_v11  ;;  %v1603_v42 = vmax.f32 %v1095_v26, 0.0  ;;  %v12403_v59 = vld [vmem:[%s13153_s27 + $0x1f0] sm:$0xff]  }
  0xde   : > { %v1107_v60 = vpop.f32.mrf.mxu0 }
  0xdf   : > { %v1108_v35 = vadd.f32 %v13466_v11, %v1107_v60  ;;  %v1608_v47 = vmax.f32 %v1116_v31, 0.0 }
  0xe0   : > { %v12146_v63 = vpop.f32.mrf.mxu0 }
  0xe1   : > { %v1119_v36 = vadd.f32 %v12146_v63, %v13466_v11  ;;  %v1606_v50 = vmax.f32 %v1108_v35, 0.0 }
  0xe2   : > { %v1110_v0 = vpop.f32.mrf.mxu0 }
  0xe3   : > { %v13486_v37 = vadd.f32 %v13466_v11, %v1110_v0  ;;  %v1609_v51 = vmax.f32 %v1119_v36, 0.0 }
  0xe4   : > { %v12149_v1 = vpop.f32.mrf.mxu0  ;;  %12244 = vmatmul.mubr.msk.bf16.gmra.mxu0 %vm864_vm0, %v12334_v61 }
  0xe5   : > { %12247 = vmatprep.mubr.msk.bf16.mxu0 %vm864_vm0, %v12347_v62  ;;  %v1132_v14 = vadd.f32 %v12149_v1, %v13466_v11  ;;  %v1607_v52 = vmax.f32 %v13486_v37, 0.0 }
  0xe6   : > { %v1123_v2 = vpop.f32.mrf.mxu0 }
  0xe7   : > { %v1124_v15 = vadd.f32 %v13466_v11, %v1123_v2  ;;  %v1612_v23 = vmax.f32 %v1132_v14, 0.0 }
  0xe8   : > { %v12150_v5 = vpop.f32.mrf.mxu0 }
  0xe9   : > { %v1135_v18 = vadd.f32 %v12150_v5, %v13466_v11  ;;  %v1610_v27 = vmax.f32 %v1124_v15, 0.0  ;;  %v1764_v40 = vrot.slane %v1612_v23, 7  ;;  %v1989_v56 = vmax.f32 %v1604_v30, %v1612_v23 }
  0xea   : > { %v1126_v6 = vpop.f32.mrf.mxu0 }
  0xeb   : > { %v1127_v24 = vadd.f32 %v13466_v11, %v1126_v6  ;;  %v1613_v32 = vmax.f32 %v1135_v18, 0.0  ;;  %v1762_v43 = vrot.slane %v1610_v27, 7  ;;  %v1829_v55 = vsel %vm1826_vm1, 0.0, %v1764_v40 }
  0xec   : > { %v12153_v7 = vpop.f32.mrf.mxu0  ;;  %12248 = vmatmul.mubr.msk.bf16.gmra.mxu0 %vm864_vm0, %v12348_v3  ;;  %v1987_v57 = vmax.f32 %v1602_v34, %v1610_v27 }
  0xed   : > { %12251 = vmatprep.mubr.msk.bf16.mxu0 %vm864_vm0, %v12361_v4  ;;  %v1148_v28 = vadd.f32 %v12153_v7, %v13466_v11  ;;  %v1611_v41 = vmax.f32 %v1127_v24, 0.0  ;;  %v1765_v48 = vrot.slane %v1613_v32, 7  ;;  %v1827_v60 = vsel %vm1826_vm1, 0.0, %v1762_v43 }
  0xee   : > { %v1139_v8 = vpop.f32.mrf.mxu0  ;;  %v1990_v2 = vmax.f32 %v1605_v39, %v1613_v32  ;;  %v2019_v14 = vmax.f32 %v1987_v57, %v1827_v60 }
  0xef   : > { %v1140_v33 = vadd.f32 %v13466_v11, %v1139_v8  ;;  %v1616_v44 = vmax.f32 %v1148_v28, 0.0  ;;  %v1763_v58 = vrot.slane %v1611_v41, 7  ;;  %v1830_v1 = vsel %vm1826_vm1, 0.0, %v1765_v48 }
  0xf0   : > { %v12154_v12 = vpop.f32.mrf.mxu0  ;;  %v1988_v5 = vmax.f32 %v1603_v42, %v1611_v41  ;;  %v2022_v22 = vmax.f32 %v1990_v2, %v1830_v1 }
  0xf1   : > { %v1151_v45 = vadd.f32 %v12154_v12, %v13466_v11  ;;  %v1614_v49 = vmax.f32 %v1140_v33, 0.0  ;;  %v1768_v61 = vrot.slane %v1616_v44, 7  ;;  %v13513_v12 = vmax.f32 %v1608_v47, %v1616_v44 }
  0xf2   : > { %v1142_v13 = vpop.f32.mrf.mxu0 }
  0xf3   : > { %v1617_v62 = vmax.f32 %v1151_v45, 0.0  ;;  %v1143_v63 = vadd.f32 %v13466_v11, %v1142_v13  ;;  %v1766_v3 = vrot.slane %v1614_v49, 7  ;;  %v2021_v13 = vmax.f32 %v1989_v56, %v1829_v55 }
  0xf4   : > { %v12157_v16 = vpop.f32.mrf.mxu0  ;;  %12252 = vmatmul.mubr.msk.bf16.gmra.mxu0 %vm864_vm0, %v12362_v9  ;;  %v13516_v15 = vsel %vm1826_vm1, 0.0, %v1768_v61  ;;  %v13518_v17 = vmax.f32 %v1606_v50, %v1614_v49  ;;  %v12440_v49 = vld [vmem:[%s21095_s3 + $0x174] ss:$8 sps:$4 sm:$0xff]  }
  0xf5   : > { %12255 = vmatprep.mubr.msk.bf16.mxu0 %vm864_vm0, %v12375_v10  ;;  %v13504_v6 = vadd.f32 %v12157_v16, %v13466_v11  ;;  %v1828_v10 = vsel %vm1826_vm1, 0.0, %v1763_v58  ;;  %v1769_v16 = vrot.slane %v1617_v62, 7  ;;  %v1615_v18 = vmax.f32 %v1143_v63, 0.0  ;;  %4176 = vmatprep.subr.bf16.mxu1 %v12440_v49 }
  0xf6   : > { %v1155_v20 = vpop.f32.mrf.mxu0  ;;  %v2020_v27 = vmax.f32 %v1988_v5, %v1828_v10  ;;  %v2025_v30 = vmax.f32 %v13513_v12, %v13516_v15 }
  0xf7   : > { %v13501_v4 = vadd.f32 %v13466_v11, %v1155_v20  ;;  %v13522_v20 = vsel %vm1826_vm1, 0.0, %v1766_v3  ;;  %v1620_v24 = vmax.f32 %v13504_v6, 0.0  ;;  %v1834_v33 = vsel %vm1826_vm1, 0.0, %v1769_v16 }
  0xf8   : > { %v12158_v29 = vpop.f32.mrf.mxu0  ;;  %v1767_v34 = vrot.slane %v1615_v18, 7  ;;  %v13538_v35 = vmax.f32 %v1607_v52, %v1615_v18  ;;  %v2023_v36 = vmax.f32 %v13518_v17, %v13522_v20 }
  0xf9   : > { %v13507_v7 = vadd.f32 %v12158_v29, %v13466_v11  ;;  %v13530_v29 = vmax.f32 %v1609_v51, %v1617_v62  ;;  %v2053_v43 = vmax.f32 %v2021_v13, %v1620_v24 }
  0xfa   : > { %v1158_v38 = vpop.f32.mrf.mxu0  ;;  %v1832_v55 = vsel %vm1826_vm1, 0.0, %v1767_v34 }
  0xfb   : > { %v13510_v8 = vadd.f32 %v13466_v11, %v1158_v38  ;;  %v12404_v38 = vld [vmem:[%s13153_s27 + $0x1f8] sm:$0xff]  }
  0xfc   : > { %v13489_v46 = vpop.f32.mrf.mxu0  ;;  %12256 = vmatmul.mubr.msk.bf16.gmra.mxu0 %vm864_vm0, %v12376_v21  ;;  %v1618_v21 = vmax.f32 %v13501_v4, 0.0 }
  0xfd   : > { %12259 = vmatprep.mubr.msk.bf16.mxu0 %vm864_vm0, %v12389_v25  ;;  %v1621_v25 = vmax.f32 %v13507_v7, 0.0  ;;  %v1619_v26 = vmax.f32 %v13510_v8, 0.0  ;;  %v13557_v47 = vadd.f32 %v13489_v46, %v13466_v11  ;;  %v21536_v7 = vmov 0 }
  0xfe   : > { %v1171_v53 = vpop.f32.mrf.mxu0  ;;  %v2051_v39 = vmax.f32 %v2019_v14, %v1618_v21  ;;  %v21537_v7 = vsel %vm13683_vm5, 4294967295, %v21536_v7 }
  0xff   : > { %v2054_v44 = vmax.f32 %v2022_v22, %v1621_v25  ;;  %v2052_v45 = vmax.f32 %v2020_v27, %v1619_v26  ;;  %v13563_v50 = vadd.f32 %v13466_v11, %v1171_v53  ;;  %v1624_v62 = vmax.f32 %v13557_v47, 0.0  ;;  %21538 = vst [vmem:[#allocation2_spill] sm:$0xff] %v21537_v7 }
 0x100   : > { %v12162_v0 = vpop.f32.mrf.mxu0 }
 0x101   : > { %v1183_v56 = vadd.f32 %v12162_v0, %v13466_v11 }
 0x102   : > { %v1174_v9 = vpop.f32.mrf.mxu0 }
 0x103   : > { %v13588_v3 = vadd.f32 %v13466_v11, %v1174_v9  ;;  %v1625_v13 = vmax.f32 %v1183_v56, 0.0  ;;  %v2026_v9 = vmax.f32 %v13530_v29, %v1834_v33 }
 0x104   : > { %v12165_v19 = vpop.f32.mrf.mxu0  ;;  %12260 = vmatmul.mubr.msk.bf16.gmra.mxu0 %vm864_vm0, %v12390_v54 }
 0x105   : > { %v1196_v23 = vadd.f32 %v12165_v19, %v13466_v11  ;;  %12263 = vmatprep.mubr.msk.bf16.mxu0 %vm864_vm0, %v12403_v59  ;;  %v1622_v19 = vmax.f32 %v13563_v50, 0.0  ;;  %v2058_v33 = vmax.f32 %v2026_v9, %v1625_v13 }
 0x106   : > { %v1187_v28 = vpop.f32.mrf.mxu0 }
 0x107   : > { %v13534_v31 = vmax.f32 %v1196_v23, 0.0  ;;  %v1188_v32 = vadd.f32 %v13466_v11, %v1187_v28 }
 0x108   : > { %v12166_v37 = vpop.f32.mrf.mxu0 }
 0x109   : > { %v1893_v40 = vrot.slane %v13534_v31, 7  ;;  %v13546_v41 = vmax.f32 %v1188_v32, 0.0  ;;  %v1199_v42 = vadd.f32 %v12166_v37, %v13466_v11  ;;  %v2085_v46 = vmax.f32 %v2053_v43, %v13534_v31 }
 0x10a   : > { %v1190_v48 = vpop.f32.mrf.mxu0 }
 0x10b   : > { %v1891_v51 = vrot.slane %v13546_v41, 7  ;;  %v2083_v52 = vmax.f32 %v2051_v39, %v13546_v41  ;;  %v13567_v54 = vmax.f32 %v1199_v42, 0.0  ;;  %v1191_v57 = vadd.f32 %v13466_v11, %v1190_v48 }
 0x10c   : > { %v12169_v58 = vpop.f32.mrf.mxu0  ;;  %12264 = vmatmul.mubr.msk.bf16.gmra.mxu0 %vm864_vm0, %v12404_v38  ;;  %v13575_v53 = vsel %vm1826_vm1, 0.0, %v1893_v40  ;;  %v2057_v38 = vmax.f32 %v2025_v30, %v1624_v62  ;;  %v1623_v39 = vmax.f32 %v13588_v3, 0.0  ;;  %v2024_v40 = vmax.f32 %v13538_v35, %v1832_v55 }
 0x10d   : > { %v13578_v59 = vsel %vm1826_vm1, 0.0, %v1891_v51  ;;  %v1894_v60 = vrot.slane %v13567_v54, 7  ;;  %v1212_v61 = vadd.f32 %v12169_v58, %v13466_v11  ;;  %v2086_v0 = vmax.f32 %v2054_v44, %v13567_v54 }
 0x10e   : > { %v2115_v63 = vmax.f32 %v2083_v52, %v13578_v59  ;;  %v13585_v1 = vmax.f32 %v1191_v57, 0.0  ;;  %v1203_v2 = vpop.f32.mrf.mxu0  ;;  %v2117_v14 = vmax.f32 %v2085_v46, %v13575_v53  ;;  %v2055_v35 = vmax.f32 %v2023_v36, %v1622_v19 }
 0x10f   : > { %v13591_v5 = vsel %vm1826_vm1, 0.0, %v1894_v60  ;;  %v13593_v10 = vmax.f32 %v1212_v61, 0.0  ;;  %v1204_v12 = vadd.f32 %v13466_v11, %v1203_v2 }
 0x110   : > { %v1892_v15 = vrot.slane %v13585_v1, 7  ;;  %v2084_v16 = vmax.f32 %v2052_v45, %v13585_v1  ;;  %v12170_v18 = vpop.f32.mrf.mxu0  ;;  %v2118_v27 = vmax.f32 %v2086_v0, %v13591_v5  ;;  %v2147_v37 = vmax.f32 %v2115_v63, 0.0 }
 0x111   : > { %v13601_v22 = vmax.f32 %v1204_v12, 0.0  ;;  %v1215_v23 = vadd.f32 %v12170_v18, %v13466_v11  ;;  %v1897_v32 = vrot.slane %v13593_v10, 7  ;;  %v2149_v42 = vmax.f32 %v2117_v14, %v1619_v26 }
 0x112   : > { %v1956_v28 = vsel %vm1826_vm1, 0.0, %v1892_v15  ;;  %v1206_v34 = vpop.f32.mrf.mxu0  ;;  %v2089_v49 = vmax.f32 %v2057_v38, %v13593_v10  ;;  %v2179_v51 = vmax.f32 %v2147_v37, 0.0  ;;  %v2150_v8 = vmax.f32 %v2118_v27, %v1620_v24 }
 0x113   : > { %v2116_v29 = vmax.f32 %v2084_v16, %v1956_v28  ;;  %v1633_v43 = vmax.f32 %v1215_v23, 0.0  ;;  %v1207_v44 = vadd.f32 %v13466_v11, %v1206_v34  ;;  %v1895_v30 = vrot.slane %v13601_v22, 7 }
 0x114   : > { %v12173_v45 = vpop.f32.mrf.mxu0  ;;  %v13626_v26 = vsel %vm1826_vm1, 0.0, %v1897_v32  ;;  %v2181_v57 = vmax.f32 %v2149_v42, %v13585_v1  ;;  %v2087_v58 = vmax.f32 %v2055_v35, %v13601_v22  ;;  %v2211_v6 = vmax.f32 %v2179_v51, 0.0 }
 0x115   : > { %v2148_v48 = vmax.f32 %v2116_v29, %v1618_v21  ;;  %v1898_v52 = vrot.slane %v1633_v43, 7  ;;  %v2056_v21 = vmax.f32 %v2024_v40, %v1623_v39  ;;  %v2090_v56 = vmax.f32 %v2058_v33, %v1633_v43 }
 0x116   : > { %v1219_v4 = vpop.f32.mrf.mxu0  ;;  %v13629_v46 = vmax.f32 %v1207_v44, 0.0  ;;  %v2121_v24 = vmax.f32 %v2089_v49, %v13626_v26  ;;  %v13636_v36 = vsel %vm1826_vm1, 0.0, %v1895_v30  ;;  %v2182_v61 = vmax.f32 %v2150_v8, %v13534_v31  ;;  %v12438_v30 = vld [vmem:[%s21095_s3 + $0x170] ss:$8 sps:$4 sm:$0xff]  }
 0x117   : > { %v2180_v55 = vmax.f32 %v2148_v48, %v13546_v41  ;;  %v1962_v17 = vsel %vm1826_vm1, 0.0, %v1898_v52  ;;  %v2243_v0 = vpack.c.bf16 %v2211_v6, %v2211_v6  ;;  %v13645_v3 = vadd.f32 %v12173_v45, %v13466_v11 }
 0x118   : > { %v12174_v20 = vpop.f32.mrf.mxu0  ;;  %v1896_v60 = vrot.slane %v13629_v46, 7  ;;  %v2088_v41 = vmax.f32 %v2056_v21, %v13629_v46  ;;  %v2122_v1 = vmax.f32 %v2090_v56, %v1962_v17  ;;  %v2119_v13 = vmax.f32 %v2087_v58, %v13636_v36 }
 0x119   : > { %v2212_v12 = vmax.f32 %v2180_v55, %v13578_v59  ;;  %v2276_v14 = vshrl.u32 %v2243_v0, 16  ;;  %v21104_v15 = vmov 0   ;;  %v13650_v31 = vmax.f32 %v2181_v57, %v1956_v28 }
 0x11a   : > { %v1222_v63 = vpop.f32.mrf.mxu0  ;;  %v13642_v2 = vsel %vm1826_vm1, 0.0, %v1896_v60  ;;  %v11181_v16 = vcombine.low %v21104_v15, %v2243_v0  ;;  %v13653_v23 = vmax.f32 %v2121_v24, %v1623_v39  ;;  %v13656_v27 = vadd.f32 %v13466_v11, %v1219_v4  ;;  %v12443_v4 = vld [vmem:[%s21095_s3 + $0x164] ss:$8 sps:$4 sm:$0xff]  }
 0x11b   : > { %v2120_v9 = vmax.f32 %v2088_v41, %v13642_v2  ;;  %v13659_v32 = vadd.f32 %v12174_v20, %v13466_v11  ;;  %v2278_v34 = vrot.slane %v2276_v14, 7  ;;  %v2279_v37 = vshll.u32 %v2243_v0, 16 }
 0x11c   : > { %v12177_v18 = vpop.f32.mrf.mxu0  ;;  %4015 = vmatprep.mubr.bf16.mxu1 %v11181_v16  ;;  %v13662_v38 = vmax.f32 %v2182_v61, %v13575_v53  ;;  %v2154_v28 = vmax.f32 %v2122_v1, %v1624_v62  ;;  %v1636_v39 = vmax.f32 %v13645_v3, 0.0  ;;  %v2244_v40 = vpack.c.bf16 %v2212_v12, %v2212_v12  ;;  %v12446_v16 = vld [vmem:[%s21095_s3 + $0x154] ss:$8 sps:$4 sm:$0xff]   ;;  %v12450_v3 = vld [vmem:[%s21095_s3 + $0x130] ss:$8 sps:$4 sm:$0xff]  }
 0x11d   : > { %v13669_v29 = vmax.f32 %v2119_v13, %v1621_v25  ;;  %v2281_v42 = vor.u32 %v2279_v37, %v2278_v34  ;;  %v2566_v43 = vrot.slane %v2279_v37, 1  ;;  %v2245_v44 = vpack.c.bf16 %v13650_v31, %v13650_v31 }
 0x11e   : > { %v1235_v59 = vpop.f32.mrf.mxu0  ;;  %v2152_v53 = vmax.f32 %v2120_v9, %v1622_v19  ;;  %v2185_v47 = vmax.f32 %v13653_v23, %v13629_v46  ;;  %v1634_v62 = vmax.f32 %v13656_v27, 0.0  ;;  %v13679_v45 = vadd.f32 %v13466_v11, %v1222_v63 }
 0x11f   : > { %v1637_v25 = vmax.f32 %v13659_v32, 0.0  ;;  %v13690_v50 = vsel %vm13683_vm5, 0, %v2281_v42  ;;  %v2283_v48 = vshrl.u32 %v2244_v40, 16  ;;  %v2286_v49 = vshll.u32 %v2244_v40, 16 }
 0x120   : > { %v12178_v33 = vpop.f32.mrf.mxu0  ;;  %v2186_v51 = vmax.f32 %v2154_v28, %v13593_v10  ;;  %v11165_v35 = vcombine.low %v21104_v15, %v13690_v50  ;;  %v2567_v8 = vor.u32 %v2566_v43, %v2276_v14  ;;  %v13700_v52 = vpack.c.bf16 %v13662_v38, %v13662_v38 }
 0x121   : > { %v13706_v21 = vpack.c.bf16 %v13650_v31, %v2212_v12  ;;  %v2568_v56 = vrot.slane %v2286_v49, 1  ;;  %v2290_v57 = vshrl.u32 %v2245_v44, 16  ;;  %v2293_v58 = vshll.u32 %v2245_v44, 16 }
 0x122   : > { %v1238_v19 = vpop.f32.mrf.mxu0  ;;  %v2184_v10 = vmax.f32 %v2152_v53, %v13601_v22  ;;  %v13710_v20 = vpack.c.bf16 %v2212_v12, %v2211_v6  ;;  %v13713_v24 = vadd.f32 %v12177_v18, %v13466_v11  ;;  %4016 = vmatmul.mubr.bf16.vlgmr.msra.gmra.mxu1 %v11165_v35  ;;  %v21541_v41 = vmov 0  ;;  %v12441_v6 = vld [vmem:[%s21095_s3 + $0x160] ss:$8 sps:$4 sm:$0xff]  }
 0x123   : > { %21539 = vst [vmem:[#allocation3_spill] sm:$0xff] %v13706_v21  ;;  %4025 = vmatprep.mubr.bf16.mxu1 %v13706_v21  ;;  %v2569_v60 = vor.u32 %v2568_v56, %v2283_v48  ;;  %v21542_v41 = vsel %vm13718_vm6, 4294967295, %v21541_v41  ;;  %v2300_v22 = vshll.u32 %v13700_v52, 16  ;;  %v2570_v63 = vrot.slane %v2293_v58, 1  ;;  %4177 = vmatpush1.bf16.msra.mxu1 %v12438_v30 }
 0x124   : > { %v12181_v55 = vpop.f32.mrf.mxu0  ;;  %21540 = vst [vmem:[#allocation4_spill] sm:$0xff] %v13710_v20  ;;  %21543 = vst [vmem:[#allocation5_spill] sm:$0xff] %v21542_v41  ;;  %v2285_v0 = vrot.slane %v2283_v48, 7  ;;  %v13729_v12 = vsel %vm13718_vm6, %v2567_v8, 0  ;;  %v2297_v13 = vshrl.u32 %v13700_v52, 16  ;;  %v2292_v14 = vrot.slane %v2290_v57, 7  ;;  %4178 = vmatprep.subr.bf16.mxu1 %v12443_v4 }
 0x125   : > { %v1260_v1 = vadd.f32 %v12181_v55, %v13466_v11  ;;  %v2666_v18 = vsel %vm13718_vm6, %v2569_v60, 0  ;;  %v2571_v9 = vor.u32 %v2570_v63, %v2290_v57  ;;  %v2572_v34 = vrot.slane %v2300_v22, 1 }
 0x126   : > { %v1251_v61 = vpop.f32.mrf.mxu0  ;;  %v2288_v28 = vor.u32 %v2286_v49, %v2285_v0  ;;  %v13740_v40 = vmax.f32 %v2186_v51, %v13626_v26  ;;  %v13743_v42 = vadd.f32 %v13466_v11, %v1235_v59  ;;  %v11245_v43 = vcombine.low %v13729_v12, %v2666_v18  ;;  %v12444_v59 = vld [vmem:[%s21095_s3 + $0x150] ss:$8 sps:$4 sm:$0xff]  }
 0x127   : > { %v13747_v44 = vadd.f32 %v13466_v11, %v1251_v61  ;;  %v2573_v53 = vor.u32 %v2572_v34, %v2297_v13  ;;  %v2667_v48 = vsel %vm13718_vm6, %v2571_v9, 0  ;;  %v2295_v30 = vor.u32 %v2293_v58, %v2292_v14  ;;  %4179 = vmatpush1.bf16.msra.mxu1 %v12441_v6  ;;  %v12452_v9 = vld [vmem:[%s21095_s3 + $0x134] ss:$8 sps:$4 sm:$0xff]  }
 0x128   : > { %v12182_v37 = vpop.f32.mrf.mxu0  ;;  %v2183_v26 = vmax.f32 %v13669_v29, %v13567_v54  ;;  %v13759_v49 = vmax.f32 %v2184_v10, %v13636_v36  ;;  %v13762_v51 = vadd.f32 %v12178_v33, %v13466_v11  ;;  %v1644_v8 = vmax.f32 %v1260_v1, 0.0  ;;  %4401 = vmatprep.mubr.bf16.mxu0 %v11245_v43  ;;  %4180 = vmatprep.subr.bf16.mxu1 %v12446_v16  ;;  %v12447_v1 = vld [vmem:[%s21095_s3 + $0x140] ss:$8 sps:$4 sm:$0xff]  }
 0x129   : > { %v13764_v4 = vcombine.low %v2666_v18, %v2667_v48  ;;  %v13767_v55 = vadd.f32 %v13466_v11, %v1238_v19  ;;  %4402 = vmatmul.mubr.bf16.vlgmr.msra.gmra.mxu0 %v13710_v20  ;;  %v13772_v54 = vsel %vm13718_vm6, %v2573_v53, 0  ;;  %v13776_v36 = vsel %vm13683_vm5, 0, %v2288_v28  ;;  %v12449_v19 = vld [vmem:[%s21095_s3 + $0x144] ss:$8 sps:$4 sm:$0xff]  }
 0x12a   : > { %v1254_v35 = vpop.f32.mrf.mxu0  ;;  %v13780_v29 = vsel %vm13683_vm5, 0, %v2295_v30  ;;  %v1642_v56 = vmax.f32 %v13747_v44, 0.0  ;;  %v11246_v57 = vcombine.low %v2667_v48, %v13772_v54  ;;  %v13788_v58 = vadd.f32 %v12182_v37, %v13466_v11 }
 0x12b   : > { %v13792_v10 = vcombine.low %v13776_v36, %v13780_v29  ;;  %v13796_v60 = vpack.c.bf16 %v13740_v40, %v13740_v40  ;;  %v13800_v63 = vadd.f32 %v13466_v11, %v1254_v35  ;;  %v13803_v0 = vmax.f32 %v2183_v26, %v13591_v5  ;;  %4181 = vmatpush1.bf16.msra.mxu1 %v12444_v59 }
 0x12c   : > { %v12185_v33 = vpop.f32.mrf.mxu0  ;;  %v1772_v14 = vrot.slane %v1644_v8, 7  ;;  %4411 = vmatprep.mubr.bf16.mxu0 %v11246_v57  ;;  %v13817_v5 = vpack.c.bf16 %v13759_v49, %v13759_v49  ;;  %4182 = vmatprep.subr.bf16.mxu1 %v12449_v19  ;;  %v13833_v48 = vmax.f32 %v1636_v39, %v1644_v8  ;;  %v1770_v30 = vrot.slane %v1642_v56, 7 }
 0x12d   : > { %21544 = vst [vmem:[#allocation6_spill] sm:$0xff] %v13792_v10  ;;  %21545 = vst [vmem:[#allocation7_spill] sm:$0xff] %v13796_v60  ;;  %4026 = vmatmul.mubr.bf16.gmra.mxu1 %v13792_v10  ;;  %v13810_v16 = vadd.f32 %v12185_v33, %v13466_v11  ;;  %v13826_v28 = vpack.c.bf16 %v13803_v0, %v13662_v38  ;;  %v2247_v43 = vpack.c.bf16 %v13803_v0, %v13803_v0 }
 0x12e   : > { %v1267_v6 = vpop.f32.mrf.mxu0  ;;  %v1645_v35 = vmax.f32 %v13788_v58, 0.0  ;;  %v1643_v26 = vmax.f32 %v13800_v63, 0.0  ;;  %v13840_v59 = vpack.c.bf16 %v13662_v38, %v13650_v31  ;;  %v13846_v39 = vsel %vm1826_vm1, 0.0, %v1772_v14  ;;  %v12455_v31 = vld [vmem:[%s21095_s3 + $0x124] ss:$8 sps:$4 sm:$0xff]  }
 0x12f   : > { %v13813_v18 = vadd.f32 %v13466_v11, %v1267_v6  ;;  %21546 = vst [vmem:[#allocation8_spill] sm:$0xff] %v13826_v28  ;;  %4035 = vmatprep.mubr.bf16.mxu1 %v13826_v28  ;;  %v2304_v33 = vshrl.u32 %v2247_v43, 16  ;;  %v2307_v57 = vshll.u32 %v2247_v43, 16  ;;  %4183 = vmatpush1.bf16.msra.mxu1 %v12447_v1  ;;  %v1648_v8 = vmax.f32 %v13810_v16, 0.0 }
 0x130   : > { %v12186_v44 = vpop.f32.mrf.mxu0  ;;  %21547 = vst [vmem:[#allocation9_spill] sm:$0xff] %v13840_v59  ;;  %v21106_v63 = vshll.u32 %v13817_v5, 16  ;;  %4184 = vmatprep.subr.bf16.mxu1 %v12452_v9  ;;  %v13856_v38 = vmax.f32 %v1634_v62, %v1642_v56  ;;  %v2299_v14 = vrot.slane %v2297_v13, 7  ;;  %v2311_v9 = vshrl.u32 %v13817_v5, 16  ;;  %v12453_v13 = vld [vmem:[%s21095_s3 + $0x120] ss:$8 sps:$4 sm:$0xff]  }
 0x131   : > { %v1646_v58 = vmax.f32 %v13813_v18, 0.0  ;;  %4412 = vmatmul.mubr.bf16.gmra.mxu0 %v13840_v59  ;;  %v2574_v6 = vrot.slane %v2307_v57, 1  ;;  %v13860_v1 = vadd.f32 %v12186_v44, %v13466_v11  ;;  %v13865_v18 = vsel %vm1826_vm1, 0.0, %v1770_v30 }
 0x132   : > { %v1270_v19 = vpop.f32.mrf.mxu0  ;;  %v2576_v27 = vrot.slane %v21106_v63, 1  ;;  %v2306_v62 = vrot.slane %v2304_v33, 7  ;;  %v1773_v56 = vrot.slane %v1645_v35, 7  ;;  %v1771_v43 = vrot.slane %v1643_v26, 7 }
 0x133   : > { %v2575_v15 = vor.u32 %v2574_v6, %v2304_v33  ;;  %v2302_v44 = vor.u32 %v2300_v22, %v2299_v14  ;;  %4185 = vmatpush1.bf16.msra.mxu1 %v12450_v3  ;;  %v1776_v30 = vrot.slane %v1648_v8, 7  ;;  %v1774_v37 = vrot.slane %v1646_v58, 7 }
 0x134   : > { %v12189_v16 = vpop.f32.mrf.mxu0  ;;  %v2577_v34 = vor.u32 %v2576_v27, %v2311_v9  ;;  %v2309_v61 = vor.u32 %v2307_v57, %v2306_v62  ;;  %4186 = vmatprep.subr.bf16.mxu1 %v12455_v31  ;;  %v1649_v17 = vmax.f32 %v13860_v1, 0.0  ;;  %v1271_v33 = vadd.f32 %v13466_v11, %v1270_v19 }
 0x135   : > { %v2669_v63 = vsel %vm13718_vm6, %v2575_v15, 0  ;;  %v13883_v52 = vmax.f32 %v2185_v47, %v13642_v2  ;;  %v13894_v15 = vsel %vm13683_vm5, 0, %v2302_v44  ;;  %v13901_v46 = vsel %vm1826_vm1, 0.0, %v1773_v56 }
 0x136   : > { %v1283_v53 = vpop.f32.mrf.mxu0  ;;  %v13887_v3 = vsel %vm13718_vm6, %v2577_v34, 0  ;;  %v13890_v57 = vcombine.low %v13772_v54, %v2669_v63  ;;  %v13898_v19 = vsel %vm13683_vm5, 0, %v2309_v61  ;;  %v13905_v2 = vmax.f32 %v1637_v25, %v1645_v35  ;;  %v12456_v35 = vld [vmem:[%s21095_s3 + $0x110] ss:$8 sps:$4 sm:$0xff]  }
 0x137   : > { %v11247_v23 = vcombine.low %v2669_v63, %v13887_v3  ;;  %v13910_v47 = vcombine.low %v13894_v15, %v13898_v19  ;;  %4187 = vmatpush1.bf16.msra.mxu1 %v12453_v13  ;;  %v13913_v34 = vsel %vm1826_vm1, 0.0, %v1771_v43  ;;  %v21549_v61 = vmax.f32 %v13679_v45, 0.0  ;;  %v12458_v63 = vld [vmem:[%s21095_s3 + $0x114] ss:$8 sps:$4 sm:$0xff]  }
 0x138   : > { %v12190_v22 = vpop.f32.mrf.mxu0  ;;  %v21550_v6 = vmax.f32 %v13713_v24, 0.0  ;;  %v13925_v25 = vpack.c.bf16 %v13883_v52, %v13759_v49  ;;  %v13934_v45 = vsel %vm1826_vm1, 0.0, %v1776_v30  ;;  %v13943_v1 = vpack.c.bf16 %v13759_v49, %v13803_v0  ;;  %4188 = vmatprep.subr.bf16.mxu1 %v12458_v63 }
 0x139   : > { %21548 = vst [vmem:[#allocation10_spill] sm:$0xff] %v13910_v47  ;;  %v13917_v31 = vmax.f32 %v21549_v61, %v1643_v26  ;;  %v21552_v26 = vmax.f32 %v13743_v42, 0.0  ;;  %4421 = vmatprep.mubr.bf16.mxu0 %v11247_v23  ;;  %4036 = vmatmul.mubr.bf16.gmra.mxu1 %v13910_v47  ;;  %v13946_v27 = vsel %vm1826_vm1, 0.0, %v1774_v37  ;;  %v1777_v62 = vrot.slane %v1649_v17, 7 }
 0x13a   : > { %v1286_v54 = vpop.f32.mrf.mxu0  ;;  %v13921_v32 = vmax.f32 %v21550_v6, %v1648_v8  ;;  %21551 = vst [vmem:[#allocation11_spill] sm:$0xff] %v13925_v25  ;;  %v1647_v8 = vmax.f32 %v1271_v33, 0.0  ;;  %21553 = vst [vmem:[#allocation12_spill] sm:$0xff] %v13943_v1  ;;  %4045 = vmatprep.mubr.bf16.mxu1 %v13925_v25  ;;  %v2249_v42 = vpack.c.bf16 %v13883_v52, %v13883_v52  ;;  %4422 = vmatmul.mubr.bf16.gmra.mxu0 %v13943_v1 }
 0x13b   : > { %v13938_v24 = vmax.f32 %v21552_v26, %v1646_v58  ;;  %v21107_v58 = vshll.u32 %v13796_v60, 16  ;;  %v13953_v56 = vadd.f32 %v12189_v16, %v13466_v11  ;;  %v13956_v43 = vadd.f32 %v13466_v11, %v1283_v53  ;;  %4189 = vmatpush1.bf16.msra.mxu1 %v12456_v35 }
 0x13c   : > { %v12193_v14 = vpop.f32.mrf.mxu0  ;;  %v13960_v49 = vadd.f32 %v12190_v22, %v13466_v11  ;;  %v2313_v0 = vrot.slane %v2311_v9, 7  ;;  %v2318_v44 = vshrl.u32 %v2249_v42, 16  ;;  %v2321_v13 = vshll.u32 %v2249_v42, 16 }
 0x13d   : > { %v2325_v30 = vshrl.u32 %v13796_v60, 16  ;;  %v2580_v16 = vrot.slane %v21107_v58, 1  ;;  %v21554_v33 = vmax.f32 %v13762_v51, 0.0  ;;  %v1775_v23 = vrot.slane %v1647_v8, 7 }
 0x13e   : > { %v13962_v37 = vpop.f32.mrf.mxu0  ;;  %v21555_v61 = vshll.u32 %v13817_v5, 16  ;;  %v13974_v9 = vadd.f32 %v13466_v11, %v1286_v54  ;;  %v13977_v35 = vsel %vm1826_vm1, 0.0, %v1777_v62  ;;  %v2578_v63 = vrot.slane %v2321_v13, 1 }
 0x13f   : > { %v13969_v53 = vmax.f32 %v21554_v33, %v1649_v17  ;;  %v2581_v26 = vor.u32 %v2580_v16, %v2325_v30  ;;  %v2320_v42 = vrot.slane %v2318_v44, 7  ;;  %v21556_v58 = vmax.f32 %v13767_v55, 0.0 }
 0x140   : > { %v2316_v22 = vor.u32 %v21555_v61, %v2313_v0  ;;  %v12194_v6 = vpop.f32.mrf.mxu0  ;;  %v21111_v17 = vmax.f32 %v13953_v56, 0.0  ;;  %v21110_v51 = vmax.f32 %v13956_v43, 0.0  ;;  %v21109_v5 = vmax.f32 %v13960_v49, 0.0 }
 0x141   : > { %v13981_v1 = vmax.f32 %v21556_v58, %v1647_v8  ;;  %v2579_v54 = vor.u32 %v2578_v63, %v2318_v44  ;;  %v13990_v62 = vsel %vm13718_vm6, %v2581_v26, 0  ;;  %v2323_v33 = vor.u32 %v2321_v13, %v2320_v42  ;;  %v12459_v26 = vld [vmem:[%s21095_s3 + $0x100] ss:$8 sps:$4 sm:$0xff]  }
 0x142   : > { %v13986_v0 = vpop.f32.mrf.mxu0  ;;  %21557 = vst [vmem:[#allocation13_spill] sm:$0xff] %v13990_v62  ;;  %v13994_v16 = vsel %vm13683_vm5, 0, %v2316_v22  ;;  %v2029_v55 = vmax.f32 %v13833_v48, %v13846_v39  ;;  %v2027_v8 = vmax.f32 %v13856_v38, %v13865_v18  ;;  %v21112_v58 = vmax.f32 %v13974_v9, 0.0 }
 0x143   : > { %v14003_v44 = vpack.c.bf16 %v13740_v40, %v13883_v52  ;;  %v2671_v13 = vsel %vm13718_vm6, %v2579_v54, 0  ;;  %v2030_v22 = vmax.f32 %v13905_v2, %v13901_v46  ;;  %v14011_v63 = vsel %vm13683_vm5, 0, %v2323_v33 }
 0x144   : > { %v12197_v61 = vpop.f32.mrf.mxu0  ;;  %v14014_v48 = vadd.f32 %v12193_v14, %v13466_v11  ;;  %v14017_v39 = vcombine.low %v13887_v3, %v2671_v13  ;;  %v11248_v40 = vcombine.low %v2671_v13, %v13990_v62  ;;  %v14022_v38 = vcombine.low %v13994_v16, %v14011_v63 }
 0x145   : > { %21558 = vst [vmem:[#allocation14_spill] sm:$0xff] %v14003_v44  ;;  %v2028_v18 = vmax.f32 %v13917_v31, %v13913_v34  ;;  %v14027_v46 = vsel %vm1826_vm1, 0.0, %v1775_v23  ;;  %v2061_v2 = vmax.f32 %v2029_v55, %v21111_v17  ;;  %v2059_v3 = vmax.f32 %v2027_v8, %v21110_v51  ;;  %v12461_v34 = vld [vmem:[%s21095_s3 + $0x104] ss:$8 sps:$4 sm:$0xff]  }
 0x146   : > { %21559 = vst [vmem:[#allocation15_spill] sm:$0xff] %v14022_v38  ;;  %v1315_v52 = vpop.f32.mrf.mxu0  ;;  %v2062_v14 = vmax.f32 %v2030_v22, %v21109_v5  ;;  %4431 = vmatprep.mubr.bf16.mxu0 %v11248_v40  ;;  %4046 = vmatmul.mubr.bf16.gmra.mxu1 %v14022_v38  ;;  %v1324_v23 = vadd.f32 %v12197_v61, %v13466_v11  ;;  %v2327_v33 = vrot.slane %v2325_v30, 7  ;;  %v21113_v55 = vmax.f32 %v14014_v48, 0.0  ;;  %v12462_v30 = vld [vmem:[%s21095_s3 + $0x1f0] ss:$8 sps:$4 sm:$0xff]  }
 0x147   : > { %v2060_v31 = vmax.f32 %v2028_v18, %v21112_v58  ;;  %v1316_v42 = vadd.f32 %v13466_v11, %v1315_v52  ;;  %v2033_v8 = vmax.f32 %v13921_v32, %v13934_v45  ;;  %4432 = vmatmul.mubr.bf16.gmra.mxu0 %v14003_v44  ;;  %4190 = vmatprep.subr.bf16.mxu1 %v12461_v34  ;;  %v12464_v32 = vld [vmem:[%s21095_s3 + $0x1f4] ss:$8 sps:$4 sm:$0xff]  }
 0x148   : > { %v12198_v54 = vpop.f32.mrf.mxu0  ;;  %v14053_v40 = vmax.f32 %v1324_v23, 0.0  ;;  %4191 = vmatpush1.bf16.msra.mxu1 %v12459_v26  ;;  %v1311_v34 = vadd.f32 %v12194_v6, %v13466_v11  ;;  %v14077_v22 = vadd.f32 %v13466_v11, %v13962_v37  ;;  %v2034_v44 = vmax.f32 %v13969_v53, %v13977_v35 }
 0x149   : > { %v1327_v13 = vadd.f32 %v12198_v54, %v13466_v11  ;;  %v14055_v61 = vmax.f32 %v1316_v42, 0.0  ;;  %v21560_v42 = vshll.u32 %v13796_v60, 16  ;;  %4192 = vmatprep.subr.bf16.mxu1 %v12464_v32  ;;  %v2065_v37 = vmax.f32 %v2033_v8, %v21113_v55 }
 0x14a   : > { %v1318_v18 = vpop.f32.mrf.mxu0  ;;  %v1901_v5 = vrot.slane %v14053_v40, 7  ;;  %v2093_v6 = vmax.f32 %v2061_v2, %v14053_v40 }
 0x14b   : > { %v14068_v23 = vmax.f32 %v1327_v13, 0.0  ;;  %v1319_v26 = vadd.f32 %v13466_v11, %v1318_v18  ;;  %v14073_v54 = vor.u32 %v21560_v42, %v2327_v33  ;;  %v1899_v45 = vrot.slane %v14055_v61, 7  ;;  %v14089_v33 = vld [vmem:[%s21094_s2] ss:$0 sm:$0xff] }
 0x14c   : > { %v2091_v52 = vmax.f32 %v2059_v3, %v14055_v61  ;;  %v12201_v51 = vpop.f32.mrf.mxu0  ;;  %v14095_v3 = vsel %vm1826_vm1, 0.0, %v1901_v5  ;;  %4193 = vmatpush2.bf16.msra.mxu1 %v12462_v30  ;;  %v1657_v42 = vmax.f32 %v1311_v34, 0.0  ;;  %v1303_v8 = vadd.f32 %v14089_v33, %v13986_v0 }
 0x14d   : > { %v1902_v13 = vrot.slane %v14068_v23, 7  ;;  %v14084_v18 = vmax.f32 %v1319_v26, 0.0  ;;  %v1340_v11 = vadd.f32 %v14089_v33, %v12201_v51  ;;  %v14098_v32 = vsel %vm1826_vm1, 0.0, %v1899_v45 }
 0x14e   : > { %v2094_v2 = vmax.f32 %v2062_v14, %v14068_v23  ;;  %v1331_v26 = vpop.f32.mrf.mxu0  ;;  %v2123_v17 = vmax.f32 %v2091_v52, %v14098_v32  ;;  %v2125_v30 = vmax.f32 %v2093_v6, %v14095_v3  ;;  %v2066_v38 = vmax.f32 %v2034_v44, %v1657_v42 }
 0x14f   : > { %v14103_v58 = vsel %vm1826_vm1, 0.0, %v1902_v13  ;;  %v1900_v51 = vrot.slane %v14084_v18, 7  ;;  %v2092_v5 = vmax.f32 %v2060_v31, %v14084_v18  ;;  %v14109_v55 = vmax.f32 %v1340_v11, 0.0 }
 0x150   : > { %v1332_v45 = vadd.f32 %v14089_v33, %v1331_v26  ;;  %v12202_v14 = vpop.f32.mrf.mxu0  ;;  %v2155_v34 = vmax.f32 %v2123_v17, 0.0  ;;  %v2126_v0 = vmax.f32 %v2094_v2, %v14103_v58  ;;  %v2031_v2 = vmax.f32 %v13938_v24, %v13946_v27  ;;  %v12467_v24 = vld [vmem:[%s21095_s3 + $0x1e4] ss:$8 sps:$4 sm:$0xff]  }
 0x151   : > { %v14114_v52 = vsel %vm1826_vm1, 0.0, %v1900_v51  ;;  %v1343_v13 = vadd.f32 %v14089_v33, %v12202_v14  ;;  %v1905_v11 = vrot.slane %v14109_v55, 7  ;;  %v2097_v20 = vmax.f32 %v2065_v37, %v14109_v55  ;;  %4194 = vmatprep.subr.bf16.mxu1 %v12467_v24 }
 0x152   : > { %v2124_v31 = vmax.f32 %v2092_v5, %v14114_v52  ;;  %v1334_v59 = vpop.f32.mrf.mxu0  ;;  %v2187_v26 = vmax.f32 %v2155_v34, 0.0  ;;  %v14123_v6 = vmax.f32 %v1332_v45, 0.0  ;;  %v1655_v5 = vmax.f32 %v1303_v8, 0.0 }
 0x153   : > { %v1665_v17 = vmax.f32 %v1343_v13, 0.0  ;;  %v14127_v14 = vsel %vm1826_vm1, 0.0, %v1905_v11  ;;  %v1335_v53 = vadd.f32 %v14089_v33, %v1334_v59  ;;  %v21561_v37 = vmax.f32 %v13974_v9, 0.0  ;;  %v12465_v59 = vld [vmem:[%s21095_s3 + $0x1e0] ss:$8 sps:$4 sm:$0xff]  }
 0x154   : > { %v12205_v35 = vpop.f32.mrf.mxu0  ;;  %v14132_v60 = vmax.f32 %v2187_v26, 0.0  ;;  %v21562_v34 = vmax.f32 %v13953_v56, 0.0  ;;  %v2032_v27 = vmax.f32 %v13981_v1, %v14027_v46  ;;  %v21563_v9 = vmax.f32 %v13956_v43, 0.0  ;;  %4195 = vmatpush2.bf16.msra.mxu1 %v12465_v59 }
 0x155   : > { %v2157_v45 = vmax.f32 %v2125_v30, %v21561_v37  ;;  %v1906_v51 = vrot.slane %v1665_v17, 7  ;;  %v2098_v44 = vmax.f32 %v2066_v38, %v1665_v17  ;;  %v14138_v42 = vmax.f32 %v1335_v53, 0.0 }
 0x156   : > { %v2158_v13 = vmax.f32 %v2126_v0, %v21562_v34  ;;  %v1347_v11 = vpop.f32.mrf.mxu0  ;;  %v2156_v56 = vmax.f32 %v2124_v31, %v21563_v9  ;;  %v2129_v8 = vmax.f32 %v2097_v20, %v14127_v14  ;;  %v1903_v38 = vrot.slane %v14123_v6, 7 }
 0x157   : > { %v21564_v30 = vmax.f32 %v14077_v22, 0.0  ;;  %v1970_v26 = vsel %vm1826_vm1, 0.0, %v1906_v51  ;;  %v1904_v17 = vrot.slane %v14138_v42, 7  ;;  %v2064_v37 = vmax.f32 %v2032_v27, %v1655_v5 }
 0x158   : > { %v12206_v53 = vpop.f32.mrf.mxu0  ;;  %v2130_v34 = vmax.f32 %v2098_v44, %v1970_v26  ;;  %v2190_v1 = vmax.f32 %v2158_v13, %v14053_v40  ;;  %v2189_v43 = vmax.f32 %v2157_v45, %v14084_v18  ;;  %v2251_v31 = vpack.c.bf16 %v14132_v60, %v14132_v60 }
 0x159   : > { %v2063_v0 = vmax.f32 %v2031_v2, %v21564_v30  ;;  %v14162_v2 = vsel %vm1826_vm1, 0.0, %v1903_v38  ;;  %v2096_v51 = vmax.f32 %v2064_v37, %v14138_v42  ;;  %v14165_v9 = vmax.f32 %v2129_v8, %v1655_v5 }
 0x15a   : > { %v1350_v46 = vpop.f32.mrf.mxu0  ;;  %v2188_v44 = vmax.f32 %v2156_v56, %v14055_v61  ;;  %v14169_v59 = vsel %vm1826_vm1, 0.0, %v1904_v17  ;;  %v21565_v40 = vmov 0   ;;  %v2332_v13 = vshrl.u32 %v2251_v31, 16 }
 0x15b   : > { %v2095_v20 = vmax.f32 %v2063_v0, %v14123_v6  ;;  %v11185_v18 = vcombine.low %v21565_v40, %v2251_v31  ;;  %v2335_v24 = vshll.u32 %v2251_v31, 16  ;;  %v21566_v27 = vmax.f32 %v14014_v48, 0.0 }
 0x15c   : > { %v14172_v45 = vpop.f32.mrf.mxu0  ;;  %v14177_v38 = vadd.f32 %v14089_v33, %v12205_v35  ;;  %v2334_v61 = vrot.slane %v2332_v13, 7  ;;  %v2220_v56 = vmax.f32 %v2188_v44, %v14098_v32  ;;  %v14184_v0 = vmax.f32 %v2190_v1, %v14095_v3  ;;  %v12476_v3 = vld [vmem:[%s21095_s3 + $0x1b4] ss:$8 sps:$4 sm:$0xff]  }
 0x15d   : > { %v2162_v30 = vmax.f32 %v2130_v34, %v21566_v27  ;;  %v2127_v5 = vmax.f32 %v2095_v20, %v14162_v2  ;;  %4055 = vmatprep.mubr.bf16.mxu1 %v11185_v18  ;;  %v2128_v26 = vmax.f32 %v2096_v51, %v14169_v59  ;;  %v14188_v17 = vadd.f32 %v14089_v33, %v1347_v11  ;;  %v12468_v51 = vld [vmem:[%s21095_s3 + $0x1d0] ss:$8 sps:$4 sm:$0xff]  }
 0x15e   : > { %v14180_v8 = vpop.f32.mrf.mxu0  ;;  %v2582_v48 = vrot.slane %v2335_v24, 1  ;;  %v2337_v34 = vor.u32 %v2335_v24, %v2334_v61  ;;  %v14195_v20 = vmax.f32 %v2189_v43, %v14114_v52  ;;  %v2252_v31 = vpack.c.bf16 %v2220_v56, %v2220_v56  ;;  %v12470_v52 = vld [vmem:[%s21095_s3 + $0x1d4] ss:$8 sps:$4 sm:$0xff]  }
 0x15f   : > { %v2194_v32 = vmax.f32 %v2162_v30, %v14109_v55  ;;  %v14200_v1 = vadd.f32 %v14089_v33, %v12206_v53  ;;  %v14203_v11 = vadd.f32 %v14089_v33, %v1350_v46  ;;  %v21567_v43 = vmax.f32 %v13960_v49, 0.0  ;;  %4196 = vmatprep.subr.bf16.mxu1 %v12470_v52  ;;  %v12473_v49 = vld [vmem:[%s21095_s3 + $0x1c4] ss:$8 sps:$4 sm:$0xff]  }
 0x160   : > { %v14192_v37 = vpop.f32.mrf.mxu0  ;;  %v14215_v55 = vsel %vm13683_vm5, 0, %v2337_v34  ;;  %v2339_v18 = vshrl.u32 %v2252_v31, 16  ;;  %v2342_v46 = vshll.u32 %v2252_v31, 16  ;;  %v21569_v24 = vmax.f32 %v14077_v22, 0.0  ;;  %4197 = vmatpush2.bf16.msra.mxu1 %v12468_v51 }
 0x161   : > { %v2159_v44 = vmax.f32 %v2127_v5, %v21567_v43  ;;  %21568 = vst [vmem:[#allocation16_spill] sm:$0xff] %v14215_v55  ;;  %v11169_v30 = vcombine.low %v21565_v40, %v14215_v55  ;;  %v14224_v61 = vpack.c.bf16 %v14195_v20, %v2220_v56  ;;  %v2583_v35 = vor.u32 %v2582_v48, %v2332_v13  ;;  %v12471_v13 = vld [vmem:[%s21095_s3 + $0x1c0] ss:$8 sps:$4 sm:$0xff]  }
 0x162   : > { %v14217_v53 = vpop.f32.mrf.mxu0  ;;  %v2160_v27 = vmax.f32 %v2128_v26, %v21569_v24  ;;  %v2584_v34 = vrot.slane %v2342_v46, 1  ;;  %v2253_v31 = vpack.c.bf16 %v14195_v20, %v14195_v20  ;;  %v14233_v22 = vpack.c.bf16 %v14184_v0, %v14184_v0  ;;  %4198 = vmatprep.subr.bf16.mxu1 %v12473_v49 }
 0x163   : > { %21570 = vst [vmem:[#allocation17_spill] sm:$0xff] %v14224_v61  ;;  %v2341_v26 = vrot.slane %v2339_v18, 7  ;;  %v14239_v48 = vmax.f32 %v2194_v32, %v14127_v14  ;;  %4056 = vmatmul.mubr.bf16.gmra.mxu1 %v11169_v30  ;;  %v2191_v14 = vmax.f32 %v2159_v44, %v14068_v23  ;;  %v14252_v43 = vsel %vm13718_vm6, %v2583_v35, 0  ;;  %v12474_v23 = vld [vmem:[%s21095_s3 + $0x1b0] ss:$8 sps:$4 sm:$0xff]  }
 0x164   : > { %v12213_v5 = vpop.f32.mrf.mxu0  ;;  %4065 = vmatprep.mubr.bf16.mxu1 %v14224_v61  ;;  %v2585_v51 = vor.u32 %v2584_v34, %v2339_v18  ;;  %v2346_v47 = vshrl.u32 %v2253_v31, 16  ;;  %v2349_v28 = vshll.u32 %v2253_v31, 16  ;;  %v2192_v32 = vmax.f32 %v2160_v27, %v14123_v6  ;;  %21571 = vst [vmem:[#allocation18_spill] sm:$0xff] %v14252_v43  ;;  %4199 = vmatpush2.bf16.msra.mxu1 %v12471_v13 }
 0x165   : > { %v21122_v30 = vshll.u32 %v14233_v22, 16  ;;  %v2344_v49 = vor.u32 %v2342_v46, %v2341_v26  ;;  %v14258_v52 = vpack.c.bf16 %v2220_v56, %v14132_v60  ;;  %v14264_v6 = vadd.f32 %v14089_v33, %v12213_v5  ;;  %4200 = vmatprep.subr.bf16.mxu1 %v12476_v3  ;;  %v12477_v3 = vld [vmem:[%s21095_s3 + $0x470] ss:$8 sps:$4 sm:$0xff]  }
 0x166   : > { %v1379_v25 = vpop.f32.mrf.mxu0  ;;  %v2674_v24 = vsel %vm13718_vm6, %v2585_v51, 0  ;;  %v2586_v18 = vrot.slane %v2349_v28, 1  ;;  %v2348_v31 = vrot.slane %v2346_v47, 7  ;;  %v2353_v46 = vshrl.u32 %v14233_v22, 16 }
 0x167   : > { %21572 = vst [vmem:[#allocation19_spill] sm:$0xff] %v14258_v52  ;;  %v11249_v35 = vcombine.low %v14252_v43, %v2674_v24  ;;  %v14268_v44 = vadd.f32 %v14089_v33, %v1379_v25  ;;  %v2588_v56 = vrot.slane %v21122_v30, 1  ;;  %v14274_v13 = vmax.f32 %v2191_v14, %v14103_v58 }
 0x168   : > { %v12214_v34 = vpop.f32.mrf.mxu0  ;;  %v2587_v60 = vor.u32 %v2586_v18, %v2346_v47  ;;  %v2351_v27 = vor.u32 %v2349_v28, %v2348_v31  ;;  %v14277_v5 = vmax.f32 %v2192_v32, %v14162_v2  ;;  %v14281_v51 = vadd.f32 %v14089_v33, %v14172_v45  ;;  %4201 = vmatpush2.bf16.msra.mxu1 %v12474_v23  ;;  %v12479_v18 = vld [vmem:[%s21095_s3 + $0x474] ss:$8 sps:$4 sm:$0xff]  }
 0x169   : > { %v14285_v25 = vadd.f32 %v14089_v33, %v14180_v8  ;;  %4441 = vmatprep.mubr.bf16.mxu0 %v11249_v35  ;;  %v14289_v47 = vsel %vm13683_vm5, 0, %v2344_v49  ;;  %v14293_v28 = vadd.f32 %v14089_v33, %v14192_v37  ;;  %v2589_v58 = vor.u32 %v2588_v56, %v2353_v46  ;;  %4755 = vmatprep.subr.bf16.mxu0 %v12479_v18 }
 0x16a   : > { %v1382_v26 = vpop.f32.mrf.mxu0  ;;  %21573 = vst [vmem:[#allocation20_spill] sm:$0xff] %v14289_v47  ;;  %4442 = vmatmul.mubr.bf16.gmra.mxu0 %v14258_v52  ;;  %v2675_v2 = vsel %vm13718_vm6, %v2587_v60, 0  ;;  %v14300_v45 = vsel %vm13683_vm5, 0, %v2351_v27  ;;  %v1676_v14 = vmax.f32 %v14264_v6, 0.0  ;;  %v1674_v37 = vmax.f32 %v14268_v44, 0.0 }
 0x16b   : > { %21574 = vst [vmem:[#allocation21_spill] sm:$0xff] %v14300_v45  ;;  %v14307_v32 = vcombine.low %v2674_v24, %v2675_v2  ;;  %v14311_v49 = vcombine.low %v14289_v47, %v14300_v45  ;;  %v14318_v31 = vpack.c.bf16 %v14239_v48, %v14239_v48  ;;  %v14322_v23 = vadd.f32 %v14089_v33, %v14217_v53  ;;  %v12480_v44 = vld [vmem:[%s21095_s3 + $0x1a0] ss:$8 sps:$4 sm:$0xff]   ;;  %v12482_v60 = vld [vmem:[%s21095_s3 + $0x1a4] ss:$8 sps:$4 sm:$0xff]  }
 0x16c   : > { %v12217_v8 = vpop.f32.mrf.mxu0  ;;  %v14326_v24 = vsel %vm13718_vm6, %v2589_v58, 0  ;;  %v14330_v6 = vpack.c.bf16 %v14274_v13, %v14184_v0  ;;  %v14341_v27 = vadd.f32 %v14089_v33, %v12214_v34  ;;  %v14345_v58 = vadd.f32 %v14089_v33, %v1382_v26  ;;  %4756 = vmatpush1.bf16.msra.mxu0 %v12477_v3  ;;  %v12485_v26 = vld [vmem:[%s21095_s3 + $0x464] ss:$8 sps:$4 sm:$0xff]   ;;  %4202 = vmatprep.subr.bf16.mxu1 %v12482_v60 }
 0x16d   : > { %21575 = vst [vmem:[#allocation22_spill] sm:$0xff] %v14307_v32  ;;  %21576 = vst [vmem:[#allocation23_spill] sm:$0xff] %v14311_v49  ;;  %v11250_v56 = vcombine.low %v2675_v2, %v14326_v24  ;;  %4066 = vmatmul.mubr.bf16.gmra.mxu1 %v14311_v49  ;;  %v2255_v53 = vpack.c.bf16 %v14274_v13, %v14274_v13  ;;  %v14354_v2 = vpack.c.bf16 %v14277_v5, %v14277_v5 }
 0x16e   : > { %21577 = vst [vmem:[#allocation24_spill] sm:$0xff] %v14318_v31  ;;  %21578 = vst [vmem:[#allocation25_spill] sm:$0xff] %v14330_v6  ;;  %v1395_v35 = vpop.f32.mrf.mxu0  ;;  %4075 = vmatprep.mubr.bf16.mxu1 %v14330_v6  ;;  %v1780_v18 = vrot.slane %v1676_v14, 7  ;;  %v1778_v49 = vrot.slane %v1674_v37, 7  ;;  %v14361_v52 = vpack.c.bf16 %v14184_v0, %v14195_v20  ;;  %v2355_v30 = vrot.slane %v2353_v46, 7  ;;  %4203 = vmatpush2.bf16.msra.mxu1 %v12480_v44 }
 0x16f   : > { %4451 = vmatprep.mubr.bf16.mxu0 %v11250_v56  ;;  %v12483_v6 = vld [vmem:[%s21095_s3 + $0x460] ss:$8 sps:$4 sm:$0xff]   ;;  %v14367_v61 = vadd.f32 %v14089_v33, %v12217_v8  ;;  %v2360_v3 = vshrl.u32 %v2255_v53, 16  ;;  %v2363_v10 = vshll.u32 %v2255_v53, 16  ;;  %v21131_v21 = vshll.u32 %v14354_v2, 16  ;;  %4757 = vmatprep.subr.bf16.mxu0 %v12485_v26 }
 0x170   : > { %v12218_v34 = vpop.f32.mrf.mxu0  ;;  %21579 = vst [vmem:[#allocation26_spill] sm:$0xff] %v14361_v52  ;;  %v1677_v0 = vmax.f32 %v14341_v27, 0.0  ;;  %v1675_v20 = vmax.f32 %v14345_v58, 0.0  ;;  %v1396_v46 = vadd.f32 %v14089_v33, %v1395_v35  ;;  %v21580_v60 = vmax.f32 %v14177_v38, 0.0  ;;  %v12488_v27 = vld [vmem:[%s21095_s3 + $0x454] ss:$8 sps:$4 sm:$0xff]   ;;  %4758 = vmatpush1.bf16.msra.mxu0 %v12483_v6 }
 0x171   : > { %v2590_v53 = vrot.slane %v2363_v10, 1  ;;  %v2592_v44 = vrot.slane %v21131_v21, 1  ;;  %v14386_v58 = vsel %vm1826_vm1, 0.0, %v1780_v18  ;;  %v21581_v38 = vmax.f32 %v14188_v17, 0.0  ;;  %v12486_v21 = vld [vmem:[%s21095_s3 + $0x450] ss:$8 sps:$4 sm:$0xff]   ;;  %4759 = vmatprep.subr.bf16.mxu0 %v12488_v27 }
 0x172   : > { %v1398_v32 = vpop.f32.mrf.mxu0  ;;  %v14376_v45 = vmax.f32 %v21580_v60, %v1676_v14  ;;  %4452 = vmatmul.mubr.bf16.gmra.mxu0 %v14361_v52  ;;  %v21582_v35 = vshll.u32 %v14233_v22, 16  ;;  %v2362_v56 = vrot.slane %v2360_v3, 7  ;;  %v14398_v8 = vsel %vm1826_vm1, 0.0, %v1778_v49  ;;  %v12489_v22 = vld [vmem:[%s21095_s3 + $0x190] ss:$8 sps:$4 sm:$0xff]  }
 0x173   : > { %v14390_v14 = vmax.f32 %v21581_v38, %v1674_v37  ;;  %v1680_v52 = vmax.f32 %v14367_v61, 0.0  ;;  %v2591_v18 = vor.u32 %v2590_v53, %v2360_v3  ;;  %v21583_v43 = vshrl.u32 %v14354_v2, 16 }
 0x174   : > { %v12221_v26 = vpop.f32.mrf.mxu0  ;;  %v2358_v60 = vor.u32 %v21582_v35, %v2355_v30  ;;  %v12491_v30 = vld [vmem:[%s21095_s3 + $0x194] ss:$8 sps:$4 sm:$0xff]   ;;  %v1781_v6 = vrot.slane %v1677_v0, 7  ;;  %v1779_v38 = vrot.slane %v1675_v20, 7  ;;  %v1678_v49 = vmax.f32 %v1396_v46, 0.0  ;;  %4760 = vmatpush1.bf16.msra.mxu0 %v12486_v21 }
 0x175   : > { %v2593_v17 = vor.u32 %v2592_v44, %v21583_v43  ;;  %v2365_v35 = vor.u32 %v2363_v10, %v2362_v56  ;;  %v2677_v61 = vsel %vm13718_vm6, %v2591_v18, 0  ;;  %v14416_v3 = vadd.f32 %v14089_v33, %v12218_v34  ;;  %4204 = vmatprep.subr.bf16.mxu1 %v12491_v30 }
 0x176   : > { %v1411_v37 = vpop.f32.mrf.mxu0  ;;  %v21584_v53 = vmax.f32 %v14165_v9, %v14138_v42  ;;  %v14425_v10 = vcombine.low %v14326_v24, %v2677_v61  ;;  %v14430_v46 = vsel %vm13683_vm5, 0, %v2358_v60  ;;  %4205 = vmatpush2.bf16.msra.mxu1 %v12489_v22  ;;  %v21588_v42 = vmax.f32 %v14200_v1, 0.0 }
 0x177   : > { %v14413_v43 = vsel %vm13718_vm6, %v2593_v17, 0  ;;  %21586 = vst [vmem:[#allocation28_spill] sm:$0xff] %v14430_v46  ;;  %v14434_v34 = vsel %vm13683_vm5, 0, %v2365_v35  ;;  %v14445_v18 = vadd.f32 %v14089_v33, %v1398_v32  ;;  %v14448_v17 = vsel %vm1826_vm1, 0.0, %v1781_v6 }
 0x178   : > { %v14422_v44 = vmax.f32 %v21584_v53, %v14169_v59  ;;  %v12222_v27 = vpop.f32.mrf.mxu0  ;;  %21585 = vst [vmem:[#allocation27_spill] sm:$0xff] %v14425_v10  ;;  %v11251_v56 = vcombine.low %v2677_v61, %v14413_v43  ;;  %21587 = vst [vmem:[#allocation29_spill] sm:$0xff] %v14434_v34  ;;  %v14438_v9 = vmax.f32 %v21588_v42, %v1677_v0  ;;  %v1784_v59 = vrot.slane %v1680_v52, 7 }
 0x179   : > { %v14442_v24 = vcombine.low %v14430_v46, %v14434_v34  ;;  %v14451_v30 = vsel %vm1826_vm1, 0.0, %v1779_v38  ;;  %v21590_v21 = vmax.f32 %v14203_v11, 0.0  ;;  %v1782_v22 = vrot.slane %v1678_v49, 7 }
 0x17a   : > { %v1414_v60 = vpop.f32.mrf.mxu0  ;;  %4461 = vmatprep.mubr.bf16.mxu0 %v11251_v56  ;;  %v14459_v0 = vpack.c.bf16 %v14422_v44, %v14277_v5  ;;  %v1681_v32 = vmax.f32 %v14416_v3, 0.0  ;;  %v14465_v6 = vpack.c.bf16 %v14277_v5, %v14274_v13  ;;  %v2257_v38 = vpack.c.bf16 %v14422_v44, %v14422_v44  ;;  %v12492_v5 = vld [vmem:[%s21095_s3 + $0x440] ss:$8 sps:$4 sm:$0xff]  }
 0x17b   : > { %21589 = vst [vmem:[#allocation30_spill] sm:$0xff] %v14442_v24  ;;  %v14455_v1 = vmax.f32 %v21590_v21, %v1675_v20  ;;  %4076 = vmatmul.mubr.bf16.gmra.mxu1 %v14442_v24  ;;  %v21593_v20 = vmax.f32 %v14281_v51, 0.0  ;;  %v21594_v61 = vmax.f32 %v14285_v25, 0.0  ;;  %v14479_v3 = vadd.f32 %v14089_v33, %v12221_v26  ;;  %v12494_v26 = vld [vmem:[%s21095_s3 + $0x444] ss:$8 sps:$4 sm:$0xff]  }
 0x17c   : > { %21591 = vst [vmem:[#allocation31_spill] sm:$0xff] %v14459_v0  ;;  %21592 = vst [vmem:[#allocation32_spill] sm:$0xff] %v14465_v6  ;;  %v12225_v11 = vpop.f32.mrf.mxu0  ;;  %4085 = vmatprep.mubr.bf16.mxu1 %v14459_v0  ;;  %v21139_v13 = vshll.u32 %v14318_v31, 16  ;;  %v14486_v56 = vsel %vm1826_vm1, 0.0, %v1784_v59  ;;  %4462 = vmatmul.mubr.bf16.gmra.mxu0 %v14465_v6  ;;  %v2374_v51 = vshrl.u32 %v2257_v38, 16  ;;  %v2377_v25 = vshll.u32 %v2257_v38, 16 }
 0x17d   : > { %v14471_v35 = vmax.f32 %v21593_v20, %v1680_v52  ;;  %v14475_v53 = vmax.f32 %v21594_v61, %v1678_v49  ;;  %v1679_v52 = vmax.f32 %v14445_v18, 0.0  ;;  %v14496_v42 = vadd.f32 %v14089_v33, %v1411_v37  ;;  %4761 = vmatprep.subr.bf16.mxu0 %v12494_v26  ;;  %v12497_v26 = vld [vmem:[%s21095_s3 + $0x434] ss:$8 sps:$4 sm:$0xff]  }
 0x17e   : > { %v14490_v49 = vpop.f32.mrf.mxu0  ;;  %v21142_v21 = vshrl.u32 %v14318_v31, 16  ;;  %v2596_v59 = vrot.slane %v21139_v13, 1  ;;  %v21595_v18 = vshrl.u32 %v14354_v2, 16  ;;  %v14504_v61 = vsel %vm1826_vm1, 0.0, %v1782_v22  ;;  %4762 = vmatpush1.bf16.msra.mxu0 %v12492_v5  ;;  %v12495_v22 = vld [vmem:[%s21095_s3 + $0x430] ss:$8 sps:$4 sm:$0xff]  }
 0x17f   : > { %v1785_v38 = vrot.slane %v1681_v32, 7  ;;  %v2594_v6 = vrot.slane %v2377_v25, 1  ;;  %v2376_v0 = vrot.slane %v2374_v51, 7  ;;  %v14510_v34 = vadd.f32 %v14089_v33, %v12222_v27  ;;  %4763 = vmatprep.subr.bf16.mxu0 %v12497_v26 }
 0x180   : > { %v2369_v20 = vrot.slane %v21595_v18, 7  ;;  %v12226_v24 = vpop.f32.mrf.mxu0  ;;  %v2597_v37 = vor.u32 %v2596_v59, %v21142_v21  ;;  %v21596_v13 = vshll.u32 %v14354_v2, 16  ;;  %v1783_v18 = vrot.slane %v1679_v52, 7 }
 0x181   : > { %v2595_v10 = vor.u32 %v2594_v6, %v2374_v51  ;;  %v2379_v62 = vor.u32 %v2377_v25, %v2376_v0  ;;  %v14521_v59 = vadd.f32 %v14089_v33, %v1414_v60  ;;  %v21144_v2 = vmax.f32 %v14496_v42, 0.0 }
 0x182   : > { %v2372_v46 = vor.u32 %v21596_v13, %v2369_v20  ;;  %v14523_v27 = vpop.f32.mrf.mxu0  ;;  %v14528_v13 = vsel %vm13718_vm6, %v2597_v37, 0  ;;  %v14535_v20 = vadd.f32 %v14089_v33, %v12225_v11  ;;  %v21599_v0 = vmax.f32 %v14293_v28, 0.0  ;;  %v12498_v11 = vld [vmem:[%s21095_s3 + $0x180] ss:$8 sps:$4 sm:$0xff]   ;;  %v12500_v28 = vld [vmem:[%s21095_s3 + $0x184] ss:$8 sps:$4 sm:$0xff]   ;;  %4764 = vmatpush1.bf16.msra.mxu0 %v12495_v22 }
 0x183   : > { %21597 = vst [vmem:[#allocation33_spill] sm:$0xff] %v14528_v13  ;;  %v2037_v6 = vmax.f32 %v14376_v45, %v14386_v58  ;;  %v2679_v51 = vsel %vm13718_vm6, %v2595_v10, 0  ;;  %v14547_v25 = vsel %vm13683_vm5, 0, %v2379_v62  ;;  %v14565_v10 = vsel %vm1826_vm1, 0.0, %v1785_v38  ;;  %4206 = vmatprep.subr.bf16.mxu1 %v12500_v28 }
 0x184   : > { %v14532_v5 = vsel %vm13683_vm5, 0, %v2372_v46  ;;  %v14539_v60 = vmax.f32 %v21599_v0, %v1681_v32  ;;  %21600 = vst [vmem:[#allocation35_spill] sm:$0xff] %v14547_v25  ;;  %v12229_v46 = vpop.f32.mrf.mxu0  ;;  %v14556_v32 = vcombine.low %v14413_v43, %v2679_v51  ;;  %v11252_v45 = vcombine.low %v2679_v51, %v14528_v13  ;;  %4207 = vmatpush2.bf16.msra.mxu1 %v12498_v11 }
 0x185   : > { %21598 = vst [vmem:[#allocation34_spill] sm:$0xff] %v14532_v5  ;;  %v14562_v62 = vcombine.low %v14532_v5, %v14547_v25  ;;  %v21603_v37 = vmax.f32 %v14322_v23, 0.0  ;;  %v21145_v0 = vmax.f32 %v14521_v59, 0.0  ;;  %v14574_v43 = vpack.c.bf16 %v14239_v48, %v14422_v44 }
 0x186   : > { %21601 = vst [vmem:[#allocation36_spill] sm:$0xff] %v14556_v32  ;;  %v1443_v51 = vpop.f32.mrf.mxu0  ;;  %v21605_v21 = vmax.f32 %v14479_v3, 0.0  ;;  %v2035_v22 = vmax.f32 %v14390_v14, %v14398_v8  ;;  %4471 = vmatprep.mubr.bf16.mxu0 %v11252_v45  ;;  %v2038_v23 = vmax.f32 %v14438_v9, %v14448_v17  ;;  %v14585_v38 = vsel %vm1826_vm1, 0.0, %v1783_v18 }
 0x187   : > { %21602 = vst [vmem:[#allocation37_spill] sm:$0xff] %v14562_v62  ;;  %v14569_v26 = vmax.f32 %v21603_v37, %v1679_v52  ;;  %21604 = vst [vmem:[#allocation38_spill] sm:$0xff] %v14574_v43  ;;  %4086 = vmatmul.mubr.bf16.gmra.mxu1 %v14562_v62  ;;  %v21143_v52 = vmax.f32 %v14535_v20, 0.0  ;;  %v2036_v48 = vmax.f32 %v14455_v1, %v14451_v30  ;;  %4472 = vmatmul.mubr.bf16.gmra.mxu0 %v14574_v43  ;;  %v12501_v30 = vld [vmem:[%s21095_s3 + $0x420] ss:$8 sps:$4 sm:$0xff]  }
 0x188   : > { %v2069_v58 = vmax.f32 %v2037_v6, %v21605_v21  ;;  %v1452_v44 = vadd.f32 %v14089_v33, %v12229_v46  ;;  %v1444_v8 = vadd.f32 %v14089_v33, %v1443_v51  ;;  %v12230_v14 = vpop.f32.mrf.mxu0  ;;  %v2067_v9 = vmax.f32 %v2035_v22, %v21144_v2  ;;  %v12503_v1 = vld [vmem:[%s21095_s3 + $0x424] ss:$8 sps:$4 sm:$0xff]  }
 0x189   : > { %v21606_v17 = vmax.f32 %v14510_v34, 0.0  ;;  %v2041_v18 = vmax.f32 %v14471_v35, %v14486_v56  ;;  %v1455_v6 = vadd.f32 %v14089_v33, %v12230_v14  ;;  %v2068_v46 = vmax.f32 %v2036_v48, %v21145_v0  ;;  %4765 = vmatprep.subr.bf16.mxu0 %v12503_v1 }
 0x18a   : > { %v14609_v11 = vadd.f32 %v14089_v33, %v14490_v49  ;;  %v14611_v28 = vmax.f32 %v1452_v44, 0.0  ;;  %v14613_v35 = vmax.f32 %v1444_v8, 0.0  ;;  %v1446_v56 = vpop.f32.mrf.mxu0  ;;  %v1439_v37 = vadd.f32 %v14089_v33, %v12226_v24  ;;  %4766 = vmatpush1.bf16.msra.mxu0 %v12501_v30 }
 0x18b   : > { %v2070_v21 = vmax.f32 %v2038_v23, %v21606_v17  ;;  %v14617_v45 = vmax.f32 %v2041_v18, %v21143_v52  ;;  %v14620_v51 = vmax.f32 %v1455_v6, 0.0  ;;  %v1447_v22 = vadd.f32 %v14089_v33, %v1446_v56  ;;  %v12504_v6 = vld [vmem:[%s21095_s3 + $0x410] ss:$8 sps:$4 sm:$0xff]   ;;  %v21689_v7 = vld [vmem:[#allocation35_spill] sm:$0xff] }
 0x18c   : > { %v1909_v23 = vrot.slane %v14611_v28, 7  ;;  %v2101_v49 = vmax.f32 %v2069_v58, %v14611_v28  ;;  %v1907_v48 = vrot.slane %v14613_v35, 7  ;;  %v2099_v44 = vmax.f32 %v2067_v9, %v14613_v35  ;;  %v12233_v8 = vpop.f32.mrf.mxu0  ;;  %v12506_v58 = vld [vmem:[%s21095_s3 + $0x414] ss:$8 sps:$4 sm:$0xff]  }
 0x18d   : > { %v1910_v14 = vrot.slane %v14620_v51, 7  ;;  %v2102_v17 = vmax.f32 %v2070_v21, %v14620_v51  ;;  %v14629_v24 = vmax.f32 %v1447_v22, 0.0  ;;  %v1468_v18 = vadd.f32 %v14089_v33, %v12233_v8  ;;  %4767 = vmatprep.subr.bf16.mxu0 %v12506_v58 }
 0x18e   : > { %v14641_v30 = vadd.f32 %v14089_v33, %v14523_v27  ;;  %v14644_v21 = vsel %vm1826_vm1, 0.0, %v1909_v23  ;;  %v14647_v1 = vsel %vm1826_vm1, 0.0, %v1907_v48  ;;  %v1459_v56 = vpop.f32.mrf.mxu0  ;;  %v1689_v22 = vmax.f32 %v1439_v37, 0.0  ;;  %v12509_v27 = vld [vmem:[%s21095_s3 + $0x374] ss:$8 sps:$4 sm:$0xff]   ;;  %4768 = vmatpush1.bf16.msra.mxu0 %v12504_v6 }
 0x18f   : > { %v2131_v8 = vmax.f32 %v2099_v44, %v14647_v1  ;;  %v14651_v52 = vsel %vm1826_vm1, 0.0, %v1910_v14  ;;  %v1908_v2 = vrot.slane %v14629_v24, 7  ;;  %v2133_v23 = vmax.f32 %v2101_v49, %v14644_v21  ;;  %v12510_v44 = vld [vmem:[%s21095_s3 + $0x400] ss:$8 sps:$4 sm:$0xff]   ;;  %v12512_v14 = vld [vmem:[%s21095_s3 + $0x404] ss:$8 sps:$4 sm:$0xff]   ;;  %4562 = vmatprep.subr.bf16.mxu1 %v12509_v27 }
 0x190   : > { %v2100_v9 = vmax.f32 %v2068_v46, %v14629_v24  ;;  %v14659_v48 = vmax.f32 %v1468_v18, 0.0  ;;  %v1460_v37 = vadd.f32 %v14089_v33, %v1459_v56  ;;  %v12234_v0 = vpop.f32.mrf.mxu0  ;;  %v2134_v43 = vmax.f32 %v2102_v17, %v14651_v52  ;;  %4769 = vmatprep.subr.bf16.mxu0 %v12512_v14 }
 0x191   : > { %v2163_v58 = vmax.f32 %v2131_v8, 0.0  ;;  %v14670_v49 = vsel %vm1826_vm1, 0.0, %v1908_v2  ;;  %v1471_v46 = vadd.f32 %v14089_v33, %v12234_v0  ;;  %v2042_v18 = vmax.f32 %v14539_v60, %v14565_v10 }
 0x192   : > { %v1687_v6 = vmax.f32 %v14641_v30, 0.0  ;;  %v2132_v56 = vmax.f32 %v2100_v9, %v14670_v49  ;;  %v1913_v62 = vrot.slane %v14659_v48, 7  ;;  %v1462_v13 = vpop.f32.mrf.mxu0  ;;  %v2105_v17 = vmax.f32 %v14617_v45, %v14659_v48  ;;  %4770 = vmatpush1.bf16.msra.mxu0 %v12510_v44 }
 0x193   : > { %v2195_v8 = vmax.f32 %v2163_v58, 0.0  ;;  %v14680_v2 = vmax.f32 %v1460_v37, 0.0  ;;  %v1697_v32 = vmax.f32 %v1471_v46, 0.0  ;;  %v2039_v0 = vmax.f32 %v14475_v53, %v14504_v61 }
 0x194   : > { %v2074_v27 = vmax.f32 %v2042_v18, %v1689_v22  ;;  %v14685_v60 = vsel %vm1826_vm1, 0.0, %v1913_v62  ;;  %v1463_v10 = vadd.f32 %v14089_v33, %v1462_v13  ;;  %v12237_v9 = vpop.f32.mrf.mxu0  ;;  %v2040_v30 = vmax.f32 %v14569_v26, %v14585_v38 }
 0x195   : > { %v14690_v14 = vmax.f32 %v2195_v8, 0.0  ;;  %v21607_v45 = vmax.f32 %v14479_v3, 0.0  ;;  %v21608_v58 = vmax.f32 %v14521_v59, 0.0  ;;  %v1911_v53 = vrot.slane %v14680_v2, 7 }
 0x196   : > { %v1914_v61 = vrot.slane %v1697_v32, 7  ;;  %v2106_v62 = vmax.f32 %v2074_v27, %v1697_v32  ;;  %v14697_v22 = vmax.f32 %v1463_v10, 0.0  ;;  %v1475_v13 = vpop.f32.mrf.mxu0  ;;  %v21609_v44 = vmax.f32 %v14609_v11, 0.0 }
 0x197   : > { %v2166_v37 = vmax.f32 %v2134_v43, %v21607_v45  ;;  %v2165_v46 = vmax.f32 %v2133_v23, %v21608_v58  ;;  %v2072_v25 = vmax.f32 %v2040_v30, %v1687_v6  ;;  %v21610_v26 = vmax.f32 %v14496_v42, 0.0 }
 0x198   : > { %v2071_v18 = vmax.f32 %v2039_v0, %v21609_v44  ;;  %v2137_v3 = vmax.f32 %v2105_v17, %v14685_v60  ;;  %v1978_v43 = vsel %vm1826_vm1, 0.0, %v1914_v61  ;;  %v1912_v59 = vrot.slane %v14697_v22, 7  ;;  %v12238_v23 = vpop.f32.mrf.mxu0 }
 0x199   : > { %v2164_v38 = vmax.f32 %v2132_v56, %v21610_v26  ;;  %v2197_v8 = vmax.f32 %v2165_v46, %v14629_v24  ;;  %v2138_v27 = vmax.f32 %v2106_v62, %v1978_v43  ;;  %v2104_v10 = vmax.f32 %v2072_v25, %v14697_v22 }
 0x19a   : > { %v2103_v32 = vmax.f32 %v2071_v18, %v14680_v2  ;;  %v2198_v0 = vmax.f32 %v2166_v37, %v14611_v28  ;;  %v14711_v30 = vsel %vm1826_vm1, 0.0, %v1911_v53  ;;  %v14714_v42 = vsel %vm1826_vm1, 0.0, %v1912_v59  ;;  %v1478_v56 = vpop.f32.mrf.mxu0 }
 0x19b   : > { %v2259_v17 = vpack.c.bf16 %v14690_v14, %v14690_v14  ;;  %v21611_v45 = vmax.f32 %v14535_v20, 0.0  ;;  %v14720_v58 = vmax.f32 %v2137_v3, %v1687_v6  ;;  %v14723_v46 = vadd.f32 %v14089_v33, %v12237_v9 }
 0x19c   : > { %v2196_v25 = vmax.f32 %v2164_v38, %v14613_v35  ;;  %v14727_v28 = vadd.f32 %v14089_v33, %v1475_v13  ;;  %v12241_v53 = vpop.f32.mrf.mxu0  ;;  %v2135_v44 = vmax.f32 %v2103_v32, %v14711_v30  ;;  %v2136_v20 = vmax.f32 %v2104_v10, %v14714_v42 }
 0x19d   : > { %v2170_v24 = vmax.f32 %v2138_v27, %v21611_v45  ;;  %v11189_v37 = vcombine.low %v21565_v40, %v2259_v17  ;;  %v2388_v61 = vshrl.u32 %v2259_v17, 16  ;;  %v2391_v62 = vshll.u32 %v2259_v17, 16 }
 0x19e   : > { %v14733_v6 = vadd.f32 %v14089_v33, %v12238_v23  ;;  %v14736_v9 = vmax.f32 %v2198_v0, %v14644_v21  ;;  %v14739_v35 = vadd.f32 %v14089_v33, %v1478_v56  ;;  %v1491_v13 = vpop.f32.mrf.mxu0  ;;  %v2228_v26 = vmax.f32 %v2196_v25, %v14647_v1 }
 0x19f   : > { %4095 = vmatprep.mubr.bf16.mxu1 %v11189_v37  ;;  %v2390_v18 = vrot.slane %v2388_v61, 7  ;;  %v2202_v38 = vmax.f32 %v2170_v24, %v14659_v48  ;;  %v2598_v59 = vrot.slane %v2391_v62, 1  ;;  %v14748_v27 = vmax.f32 %v2197_v8, %v14670_v49 }
 0x1a0   : > { %v12242_v21 = vpop.f32.mrf.mxu0  ;;  %v2260_v10 = vpack.c.bf16 %v2228_v26, %v2228_v26  ;;  %v21612_v0 = vmax.f32 %v14510_v34, 0.0  ;;  %v21613_v1 = vmax.f32 %v14609_v11, 0.0  ;;  %v14756_v45 = vadd.f32 %v14089_v33, %v12241_v53 }
 0x1a1   : > { %v2393_v32 = vor.u32 %v2391_v62, %v2390_v18  ;;  %v14764_v34 = vmax.f32 %v2202_v38, %v14685_v60  ;;  %v14769_v62 = vpack.c.bf16 %v14748_v27, %v2228_v26  ;;  %v2599_v53 = vor.u32 %v2598_v59, %v2388_v61 }
 0x1a2   : > { %v2167_v56 = vmax.f32 %v2135_v44, %v21612_v0  ;;  %v2168_v48 = vmax.f32 %v2136_v20, %v21613_v1  ;;  %v1494_v49 = vpop.f32.mrf.mxu0  ;;  %v2395_v8 = vshrl.u32 %v2260_v10, 16  ;;  %v2398_v37 = vshll.u32 %v2260_v10, 16 }
 0x1a3   : > { %v14761_v25 = vsel %vm13683_vm5, 0, %v2393_v32  ;;  %21615 = vst [vmem:[#allocation40_spill] sm:$0xff] %v14769_v62  ;;  %v2261_v18 = vpack.c.bf16 %v14748_v27, %v14748_v27  ;;  %v14775_v32 = vpack.c.bf16 %v14736_v9, %v14736_v9  ;;  %v14780_v0 = vadd.f32 %v14089_v33, %v1491_v13 }
 0x1a4   : > { %21614 = vst [vmem:[#allocation39_spill] sm:$0xff] %v14761_v25  ;;  %v11173_v11 = vcombine.low %v21565_v40, %v14761_v25  ;;  %v12245_v44 = vpop.f32.mrf.mxu0  ;;  %v2600_v20 = vrot.slane %v2398_v37, 1  ;;  %v2397_v10 = vrot.slane %v2395_v8, 7  ;;  %v2200_v60 = vmax.f32 %v2168_v48, %v14680_v2 }
 0x1a5   : > { %v1516_v61 = vadd.f32 %v14089_v33, %v12245_v44  ;;  %v2402_v24 = vshrl.u32 %v2261_v18, 16  ;;  %v2405_v3 = vshll.u32 %v2261_v18, 16  ;;  %v2199_v17 = vmax.f32 %v2167_v56, %v14620_v51 }
 0x1a6   : > { %4096 = vmatmul.mubr.bf16.gmra.mxu1 %v11173_v11  ;;  %v2601_v59 = vor.u32 %v2600_v20, %v2395_v8  ;;  %v1507_v1 = vpop.f32.mrf.mxu0  ;;  %v14786_v23 = vadd.f32 %v14089_v33, %v12242_v21  ;;  %v14790_v2 = vsel %vm13718_vm6, %v2599_v53, 0  ;;  %v21151_v13 = vshll.u32 %v14775_v32, 16 }
 0x1a7   : > { %4105 = vmatprep.mubr.bf16.mxu1 %v14769_v62  ;;  %21616 = vst [vmem:[#allocation41_spill] sm:$0xff] %v14790_v2  ;;  %v2400_v48 = vor.u32 %v2398_v37, %v2397_v10  ;;  %v14796_v8 = vpack.c.bf16 %v2228_v26, %v14690_v14  ;;  %v2602_v44 = vrot.slane %v2405_v3, 1  ;;  %v2404_v18 = vrot.slane %v2402_v24, 7 }
 0x1a8   : > { %v2682_v11 = vsel %vm13718_vm6, %v2601_v59, 0  ;;  %v12246_v20 = vpop.f32.mrf.mxu0  ;;  %v1708_v51 = vmax.f32 %v1516_v61, 0.0  ;;  %v1508_v56 = vadd.f32 %v14089_v33, %v1507_v1  ;;  %v2409_v53 = vshrl.u32 %v14775_v32, 16 }
 0x1a9   : > { %21617 = vst [vmem:[#allocation42_spill] sm:$0xff] %v14796_v8  ;;  %v11253_v21 = vcombine.low %v14790_v2, %v2682_v11  ;;  %v2603_v38 = vor.u32 %v2602_v44, %v2402_v24  ;;  %v2604_v37 = vrot.slane %v21151_v13, 1  ;;  %v2407_v10 = vor.u32 %v2405_v3, %v2404_v18 }
 0x1aa   : > { %v1510_v43 = vpop.f32.mrf.mxu0  ;;  %v14804_v59 = vmax.f32 %v2199_v17, %v14651_v52  ;;  %v14808_v14 = vpack.c.bf16 %v14764_v34, %v14764_v34  ;;  %v14811_v26 = vmax.f32 %v2200_v60, %v14711_v30  ;;  %v14816_v24 = vsel %vm13683_vm5, 0, %v2400_v48 }
 0x1ab   : > { %4481 = vmatprep.mubr.bf16.mxu0 %v11253_v21  ;;  %21618 = vst [vmem:[#allocation43_spill] sm:$0xff] %v14816_v24  ;;  %v14819_v3 = vadd.f32 %v14089_v33, %v1494_v49  ;;  %v2605_v52 = vor.u32 %v2604_v37, %v2409_v53  ;;  %v2683_v17 = vsel %vm13718_vm6, %v2603_v38, 0  ;;  %v14826_v30 = vsel %vm13683_vm5, 0, %v2407_v10 }
 0x1ac   : > { %4482 = vmatmul.mubr.bf16.gmra.mxu0 %v14796_v8  ;;  %21619 = vst [vmem:[#allocation44_spill] sm:$0xff] %v14826_v30  ;;  %v12249_v60 = vpop.f32.mrf.mxu0  ;;  %v1706_v1 = vmax.f32 %v1508_v56, 0.0  ;;  %v14828_v44 = vcombine.low %v2682_v11, %v2683_v17  ;;  %v1519_v48 = vadd.f32 %v14089_v33, %v12246_v20  ;;  %v14833_v49 = vcombine.low %v14816_v24, %v14826_v30  ;;  %v14846_v33 = vld [vmem:[%s21094_s2] ss:$0 sm:$0xff] }
 0x1ad   : > { %v1788_v21 = vrot.slane %v1708_v51, 7  ;;  %v2684_v38 = vsel %vm13718_vm6, %v2605_v52, 0  ;;  %v14840_v37 = vpack.c.bf16 %v14804_v59, %v14736_v9  ;;  %v1511_v11 = vadd.f32 %v14846_v33, %v1510_v43 }
 0x1ae   : > { %21620 = vst [vmem:[#allocation45_spill] sm:$0xff] %v14828_v44  ;;  %21621 = vst [vmem:[#allocation46_spill] sm:$0xff] %v14833_v49  ;;  %v1523_v10 = vpop.f32.mrf.mxu0  ;;  %v11254_v56 = vcombine.low %v2683_v17, %v2684_v38  ;;  %4106 = vmatmul.mubr.bf16.gmra.mxu1 %v14833_v49  ;;  %v1532_v20 = vadd.f32 %v14846_v33, %v12249_v60  ;;  %v14855_v17 = vpack.c.bf16 %v14736_v9, %v14748_v27 }
 0x1af   : > { %21622 = vst [vmem:[#allocation47_spill] sm:$0xff] %v14840_v37  ;;  %v1524_v18 = vadd.f32 %v14846_v33, %v1523_v10  ;;  %4115 = vmatprep.mubr.bf16.mxu1 %v14840_v37  ;;  %v2263_v61 = vpack.c.bf16 %v14804_v59, %v14804_v59  ;;  %v14861_v13 = vpack.c.bf16 %v14811_v26, %v14811_v26  ;;  %v21624_v60 = vmax.f32 %v14723_v46, 0.0 }
 0x1b0   : > { %21623 = vst [vmem:[#allocation48_spill] sm:$0xff] %v14855_v17  ;;  %v12250_v43 = vpop.f32.mrf.mxu0  ;;  %v1786_v10 = vrot.slane %v1706_v1, 7  ;;  %4491 = vmatprep.mubr.bf16.mxu0 %v11254_v56  ;;  %v1709_v52 = vmax.f32 %v1519_v48, 0.0  ;;  %v2411_v37 = vrot.slane %v2409_v53, 7  ;;  %v14868_v49 = vsel %vm1826_vm1, 0.0, %v1788_v21 }
 0x1b1   : > { %v14865_v8 = vmax.f32 %v21624_v60, %v1708_v51  ;;  %v2416_v9 = vshrl.u32 %v2263_v61, 16  ;;  %v2419_v27 = vshll.u32 %v2263_v61, 16  ;;  %v21165_v62 = vshll.u32 %v14861_v13, 16 }
 0x1b2   : > { %v1526_v44 = vpop.f32.mrf.mxu0  ;;  %v21625_v30 = vmax.f32 %v14727_v28, 0.0  ;;  %v1707_v25 = vmax.f32 %v1511_v11, 0.0  ;;  %v1712_v46 = vmax.f32 %v1532_v20, 0.0  ;;  %v1710_v51 = vmax.f32 %v1524_v18, 0.0 }
 0x1b3   : > { %v2423_v48 = vshrl.u32 %v14861_v13, 16  ;;  %v2606_v53 = vrot.slane %v2419_v27, 1  ;;  %v2608_v21 = vrot.slane %v21165_v62, 1  ;;  %v1535_v61 = vadd.f32 %v14846_v33, %v12250_v43 }
 0x1b4   : > { %v14873_v2 = vmax.f32 %v21625_v30, %v1706_v1  ;;  %4492 = vmatmul.mubr.bf16.gmra.mxu0 %v14855_v17  ;;  %v12253_v56 = vpop.f32.mrf.mxu0  ;;  %v14881_v60 = vsel %vm1826_vm1, 0.0, %v1786_v10  ;;  %v1789_v28 = vrot.slane %v1709_v52, 7  ;;  %v21626_v30 = vshll.u32 %v14775_v32, 16 }
 0x1b5   : > { %v2418_v11 = vrot.slane %v2416_v9, 7  ;;  %v21627_v18 = vmax.f32 %v14733_v6, 0.0  ;;  %v2607_v17 = vor.u32 %v2606_v53, %v2416_v9  ;;  %v2609_v24 = vor.u32 %v2608_v21, %v2423_v48 }
 0x1b6   : > { %v2414_v1 = vor.u32 %v21626_v30, %v2411_v37  ;;  %v1713_v5 = vmax.f32 %v1535_v61, 0.0  ;;  %v1539_v31 = vpop.f32.mrf.mxu0  ;;  %v1787_v62 = vrot.slane %v1707_v25, 7  ;;  %v1792_v55 = vrot.slane %v1712_v46, 7 }
 0x1b7   : > { %v14887_v20 = vmax.f32 %v21627_v18, %v1709_v52  ;;  %v1790_v43 = vrot.slane %v1710_v51, 7  ;;  %v2421_v47 = vor.u32 %v2419_v27, %v2418_v11  ;;  %v2685_v10 = vsel %vm13718_vm6, %v2607_v17, 0 }
 0x1b8   : > { %v2686_v32 = vsel %vm13718_vm6, %v2609_v24, 0  ;;  %v14894_v37 = vadd.f32 %v14846_v33, %v1526_v44  ;;  %v21628_v6 = vmax.f32 %v14720_v58, %v14697_v22  ;;  %v12254_v9 = vpop.f32.mrf.mxu0  ;;  %v14902_v53 = vcombine.low %v2684_v38, %v2685_v10 }
 0x1b9   : > { %v11255_v21 = vcombine.low %v2685_v10, %v2686_v32  ;;  %v14906_v27 = vsel %vm13683_vm5, 0, %v2414_v1  ;;  %v14910_v24 = vsel %vm13683_vm5, 0, %v2421_v47  ;;  %v14913_v44 = vsel %vm1826_vm1, 0.0, %v1789_v28 }
 0x1ba   : > { %v14900_v52 = vmax.f32 %v21628_v6, %v14714_v42  ;;  %21629 = vst [vmem:[#allocation49_spill] sm:$0xff] %v14902_v53  ;;  %v21630_v17 = vmax.f32 %v14739_v35, 0.0  ;;  %v1793_v42 = vrot.slane %v1713_v5, 7  ;;  %v14921_v58 = vcombine.low %v14906_v27, %v14910_v24  ;;  %v1542_v38 = vpop.f32.mrf.mxu0 }
 0x1bb   : > { %v14924_v61 = vsel %vm1826_vm1, 0.0, %v1787_v62  ;;  %v21632_v30 = vmax.f32 %v14756_v45, 0.0  ;;  %v21633_v28 = vmax.f32 %v14780_v0, 0.0  ;;  %4501 = vmatprep.mubr.bf16.mxu0 %v11255_v21  ;;  %v14943_v62 = vadd.f32 %v14846_v33, %v12253_v56 }
 0x1bc   : > { %v14917_v22 = vmax.f32 %v21630_v17, %v1707_v25  ;;  %21631 = vst [vmem:[#allocation50_spill] sm:$0xff] %v14921_v58  ;;  %v14936_v35 = vpack.c.bf16 %v14900_v52, %v14811_v26  ;;  %v14939_v25 = vsel %vm1826_vm1, 0.0, %v1792_v55  ;;  %4116 = vmatmul.mubr.bf16.gmra.mxu1 %v14921_v58  ;;  %v14947_v45 = vpack.c.bf16 %v14811_v26, %v14804_v59 }
 0x1bd   : > { %v14928_v47 = vmax.f32 %v21632_v30, %v1712_v46  ;;  %v14932_v1 = vmax.f32 %v21633_v28, %v1710_v51  ;;  %v2265_v0 = vpack.c.bf16 %v14900_v52, %v14900_v52  ;;  %v12257_v46 = vpop.f32.mrf.mxu0  ;;  %v14952_v51 = vsel %vm1826_vm1, 0.0, %v1790_v43 }
 0x1be   : > { %21634 = vst [vmem:[#allocation51_spill] sm:$0xff] %v14936_v35  ;;  %21635 = vst [vmem:[#allocation52_spill] sm:$0xff] %v14947_v45  ;;  %v21636_v11 = vmax.f32 %v14786_v23, 0.0  ;;  %v1711_v18 = vmax.f32 %v14894_v37, 0.0  ;;  %4125 = vmatprep.mubr.bf16.mxu1 %v14936_v35  ;;  %v21170_v56 = vshll.u32 %v14808_v14, 16  ;;  %v14962_v59 = vsel %vm1826_vm1, 0.0, %v1793_v42  ;;  %4502 = vmatmul.mubr.bf16.gmra.mxu0 %v14947_v45 }
 0x1bf   : > { %v14965_v26 = vadd.f32 %v14846_v33, %v1539_v31  ;;  %v2430_v43 = vshrl.u32 %v2265_v0, 16  ;;  %v2433_v10 = vshll.u32 %v2265_v0, 16  ;;  %v1555_v6 = vpop.f32.mrf.mxu0  ;;  %v14972_v37 = vadd.f32 %v14846_v33, %v12254_v9 }
 0x1c0   : > { %v14956_v55 = vmax.f32 %v21636_v11, %v1713_v5  ;;  %v21173_v5 = vshrl.u32 %v14808_v14, 16  ;;  %v2612_v23 = vrot.slane %v21170_v56, 1  ;;  %v2425_v21 = vrot.slane %v2423_v48, 7 }
 0x1c1   : > { %v2610_v42 = vrot.slane %v2433_v10, 1  ;;  %v2432_v30 = vrot.slane %v2430_v43, 7  ;;  %v14976_v31 = vadd.f32 %v14846_v33, %v1542_v38  ;;  %v12258_v28 = vpop.f32.mrf.mxu0  ;;  %v1791_v11 = vrot.slane %v1711_v18, 7 }
 0x1c2   : > { %v2613_v0 = vor.u32 %v2612_v23, %v21173_v5  ;;  %v21637_v45 = vshll.u32 %v14861_v13, 16  ;;  %v14983_v56 = vadd.f32 %v14846_v33, %v12257_v46  ;;  %v2045_v48 = vmax.f32 %v14865_v8, %v14868_v49 }
 0x1c3   : > { %v2043_v9 = vmax.f32 %v14873_v2, %v14881_v60  ;;  %v2611_v17 = vor.u32 %v2610_v42, %v2430_v43  ;;  %v2435_v38 = vor.u32 %v2433_v10, %v2432_v30  ;;  %v1558_v58 = vpop.f32.mrf.mxu0  ;;  %v21176_v53 = vmax.f32 %v14965_v26, 0.0 }
 0x1c4   : > { %v2428_v35 = vor.u32 %v21637_v45, %v2425_v21  ;;  %v14992_v23 = vsel %vm13718_vm6, %v2613_v0, 0  ;;  %v21174_v13 = vmax.f32 %v14972_v37, 0.0  ;;  %v21177_v49 = vmax.f32 %v14976_v31, 0.0 }
 0x1c5   : > { %21638 = vst [vmem:[#allocation53_spill] sm:$0xff] %v14992_v23  ;;  %v2687_v8 = vsel %vm13718_vm6, %v2611_v17, 0  ;;  %v15003_v2 = vsel %vm13683_vm5, 0, %v2435_v38  ;;  %v21175_v60 = vmax.f32 %v14983_v56, 0.0  ;;  %v12261_v46 = vpop.f32.mrf.mxu0  ;;  %v15015_v21 = vadd.f32 %v14846_v33, %v1555_v6 }
 0x1c6   : > { %v14997_v45 = vsel %vm13683_vm5, 0, %v2428_v35  ;;  %v15007_v43 = vcombine.low %v2686_v32, %v2687_v8  ;;  %v11256_v10 = vcombine.low %v2687_v8, %v14992_v23  ;;  %v21641_v17 = vmax.f32 %v14819_v3, 0.0 }
 0x1c7   : > { %v15012_v35 = vcombine.low %v14997_v45, %v15003_v2  ;;  %v2046_v30 = vmax.f32 %v14887_v20, %v14913_v44  ;;  %v2044_v32 = vmax.f32 %v14917_v22, %v14924_v61  ;;  %v15027_v0 = vpack.c.bf16 %v14764_v34, %v14900_v52  ;;  %v1571_v38 = vpop.f32.mrf.mxu0 }
 0x1c8   : > { %21639 = vst [vmem:[#allocation54_spill] sm:$0xff] %v15007_v43  ;;  %v15019_v42 = vmax.f32 %v21641_v17, %v1711_v18  ;;  %v1856_v8 = vsel %vm1826_vm1, 0.0, %v1791_v11  ;;  %v21643_v6 = vmax.f32 %v14943_v62, 0.0  ;;  %v2075_v3 = vmax.f32 %v2043_v9, %v21176_v53  ;;  %4511 = vmatprep.mubr.bf16.mxu0 %v11256_v10 }
 0x1c9   : > { %21640 = vst [vmem:[#allocation55_spill] sm:$0xff] %v15012_v35  ;;  %21642 = vst [vmem:[#allocation56_spill] sm:$0xff] %v15027_v0  ;;  %4126 = vmatmul.mubr.bf16.gmra.mxu1 %v15012_v35  ;;  %v2049_v20 = vmax.f32 %v14928_v47, %v14939_v25  ;;  %v2078_v44 = vmax.f32 %v2046_v30, %v21174_v13  ;;  %v2076_v34 = vmax.f32 %v2044_v32, %v21177_v49  ;;  %v12262_v61 = vpop.f32.mrf.mxu0 }
 0x1ca   : > { %v2077_v5 = vmax.f32 %v2045_v48, %v21643_v6  ;;  %4512 = vmatmul.mubr.bf16.gmra.mxu0 %v15027_v0  ;;  %v1580_v52 = vadd.f32 %v14846_v33, %v12261_v46  ;;  %v1572_v22 = vadd.f32 %v14846_v33, %v1571_v38  ;;  %v1718_v11 = vmax.f32 %v15015_v21, 0.0 }
 0x1cb   : > { %v15046_v18 = vmax.f32 %v2049_v20, %v21175_v60  ;;  %v2047_v47 = vmax.f32 %v14932_v1, %v14952_v51  ;;  %v1583_v25 = vadd.f32 %v14846_v33, %v12262_v61  ;;  %v1567_v48 = vadd.f32 %v14846_v33, %v12258_v28  ;;  %v1574_v17 = vpop.f32.mrf.mxu0 }
 0x1cc   : > { %v15054_v9 = vadd.f32 %v14846_v33, %v1558_v58  ;;  %v15056_v46 = vmax.f32 %v1580_v52, 0.0  ;;  %v15058_v10 = vmax.f32 %v1572_v22, 0.0  ;;  %v2050_v30 = vmax.f32 %v14956_v55, %v14962_v59 }
 0x1cd   : > { %v2048_v32 = vmax.f32 %v15019_v42, %v1856_v8  ;;  %v15063_v38 = vmax.f32 %v1583_v25, 0.0  ;;  %v1575_v1 = vadd.f32 %v14846_v33, %v1574_v17  ;;  %v12265_v20 = vpop.f32.mrf.mxu0  ;;  %v1721_v42 = vmax.f32 %v1567_v48, 0.0 }
 0x1ce   : > { %v1917_v51 = vrot.slane %v15056_v46, 7  ;;  %v2109_v28 = vmax.f32 %v2077_v5, %v15056_v46  ;;  %v1915_v58 = vrot.slane %v15058_v10, 7  ;;  %v2107_v6 = vmax.f32 %v2075_v3, %v15058_v10 }
 0x1cf   : > { %v1918_v52 = vrot.slane %v15063_v38, 7  ;;  %v2110_v22 = vmax.f32 %v2078_v44, %v15063_v38  ;;  %v1723_v55 = vmax.f32 %v1575_v1, 0.0  ;;  %v1596_v59 = vadd.f32 %v14846_v33, %v12265_v20  ;;  %v1587_v5 = vpop.f32.mrf.mxu0 }
 0x1d0   : > { %v1981_v61 = vsel %vm1826_vm1, 0.0, %v1917_v51  ;;  %v1979_v25 = vsel %vm1826_vm1, 0.0, %v1915_v58  ;;  %v1588_v48 = vadd.f32 %v14846_v33, %v1587_v5  ;;  %v2079_v51 = vmax.f32 %v2047_v47, %v1718_v11 }
 0x1d1   : > { %v2141_v17 = vmax.f32 %v2109_v28, %v1981_v61  ;;  %v2139_v13 = vmax.f32 %v2107_v6, %v1979_v25  ;;  %v15077_v3 = vsel %vm1826_vm1, 0.0, %v1918_v52  ;;  %v1916_v60 = vrot.slane %v1723_v55, 7  ;;  %v12266_v20 = vpop.f32.mrf.mxu0 }
 0x1d2   : > { %v2142_v53 = vmax.f32 %v2110_v22, %v15077_v3  ;;  %v2108_v44 = vmax.f32 %v2076_v34, %v1723_v55  ;;  %v15080_v1 = vmax.f32 %v1596_v59, 0.0  ;;  %v1599_v28 = vadd.f32 %v14846_v33, %v12266_v20 }
 0x1d3   : > { %v2171_v8 = vmax.f32 %v2139_v13, 0.0  ;;  %v1980_v58 = vsel %vm1826_vm1, 0.0, %v1916_v60  ;;  %v2082_v6 = vmax.f32 %v2050_v30, %v1721_v42  ;;  %v21644_v52 = vmax.f32 %v14943_v62, 0.0  ;;  %v1590_v22 = vpop.f32.mrf.mxu0 }
 0x1d4   : > { %v2140_v0 = vmax.f32 %v2108_v44, %v1980_v58  ;;  %v1921_v34 = vrot.slane %v15080_v1, 7  ;;  %v21645_v5 = vmax.f32 %v14976_v31, 0.0  ;;  %v1726_v23 = vmax.f32 %v1588_v48, 0.0 }
 0x1d5   : > { %v2174_v49 = vmax.f32 %v2142_v53, %v21644_v52  ;;  %v2203_v59 = vmax.f32 %v2171_v8, 0.0  ;;  %v1729_v43 = vmax.f32 %v1599_v28, 0.0  ;;  %v21646_v13 = vmax.f32 %v15054_v9, 0.0 }
 0x1d6   : > { %v2173_v35 = vmax.f32 %v2141_v17, %v21645_v5  ;;  %v21647_v60 = vmax.f32 %v14965_v26, 0.0  ;;  %v2113_v62 = vmax.f32 %v15046_v18, %v15080_v1  ;;  %v1591_v53 = vadd.f32 %v14846_v33, %v1590_v22 }
 0x1d7   : > { %v2080_v47 = vmax.f32 %v2048_v32, %v21646_v13  ;;  %v15099_v30 = vmax.f32 %v2203_v59, 0.0  ;;  %v2206_v42 = vmax.f32 %v2174_v49, %v15056_v46  ;;  %v1985_v31 = vsel %vm1826_vm1, 0.0, %v1921_v34 }
 0x1d8   : > { %v2172_v20 = vmax.f32 %v2140_v0, %v21647_v60  ;;  %v1919_v8 = vrot.slane %v1726_v23, 7  ;;  %v2111_v17 = vmax.f32 %v2079_v51, %v1726_v23  ;;  %v1922_v44 = vrot.slane %v1729_v43, 7 }
 0x1d9   : > { %v2114_v48 = vmax.f32 %v2082_v6, %v1729_v43  ;;  %v15103_v28 = vmax.f32 %v1591_v53, 0.0  ;;  %v2205_v32 = vmax.f32 %v2173_v35, %v1723_v55  ;;  %v2267_v0 = vpack.c.bf16 %v15099_v30, %v15099_v30 }
 0x1da   : > { %v1983_v26 = vsel %vm1826_vm1, 0.0, %v1919_v8  ;;  %v2204_v33 = vmax.f32 %v2172_v20, %v15058_v10  ;;  %v2145_v18 = vmax.f32 %v2113_v62, %v1985_v31  ;;  %v1986_v52 = vsel %vm1826_vm1, 0.0, %v1922_v44 }
 0x1db   : > { %v1920_v49 = vrot.slane %v15103_v28, 7  ;;  %v2112_v46 = vmax.f32 %v2080_v47, %v15103_v28  ;;  %v15112_v51 = vmax.f32 %v2206_v42, %v1981_v61  ;;  %v2146_v43 = vmax.f32 %v2114_v48, %v1986_v52 }
 0x1dc   : > { %v11193_v6 = vcombine.low %v21565_v40, %v2267_v0  ;;  %v2444_v35 = vshrl.u32 %v2267_v0, 16  ;;  %v2143_v55 = vmax.f32 %v2111_v17, %v1983_v26  ;;  %v2447_v22 = vshll.u32 %v2267_v0, 16 }
 0x1dd   : > { %v15116_v34 = vsel %vm1826_vm1, 0.0, %v1920_v49  ;;  %v2236_v59 = vmax.f32 %v2204_v33, %v1979_v25  ;;  %v21648_v10 = vmax.f32 %v14983_v56, 0.0  ;;  %v15121_v47 = vmax.f32 %v2205_v32, %v1980_v58 }
 0x1de   : > { %v2144_v13 = vmax.f32 %v2112_v46, %v15116_v34  ;;  %4135 = vmatprep.mubr.bf16.mxu1 %v11193_v6  ;;  %v2446_v60 = vrot.slane %v2444_v35, 7  ;;  %v2614_v20 = vrot.slane %v2447_v22, 1  ;;  %v2270_v25 = vpack.c.bf16 %v15112_v51, %v15112_v51 }
 0x1df   : > { %v2178_v5 = vmax.f32 %v2146_v43, %v21648_v10  ;;  %v2268_v61 = vpack.c.bf16 %v2236_v59, %v2236_v59  ;;  %v21649_v56 = vmax.f32 %v15054_v9, 0.0  ;;  %v2269_v58 = vpack.c.bf16 %v15121_v47, %v15121_v47 }
 0x1e0   : > { %v2176_v53 = vmax.f32 %v2144_v13, %v1718_v11  ;;  %v2449_v42 = vor.u32 %v2447_v22, %v2446_v60  ;;  %v21650_v48 = vmax.f32 %v14972_v37, 0.0  ;;  %v2615_v11 = vor.u32 %v2614_v20, %v2444_v35 }
 0x1e1   : > { %v2210_v62 = vmax.f32 %v2178_v5, %v15080_v1  ;;  %v2177_v8 = vmax.f32 %v2145_v18, %v21649_v56  ;;  %v2451_v17 = vshrl.u32 %v2268_v61, 16  ;;  %v2454_v44 = vshll.u32 %v2268_v61, 16 }
 0x1e2   : > { %v2175_v32 = vmax.f32 %v2143_v55, %v21650_v48  ;;  %v2208_v0 = vmax.f32 %v2176_v53, %v1726_v23  ;;  %v15136_v21 = vsel %vm13683_vm5, 0, %v2449_v42  ;;  %v15141_v9 = vpack.c.bf16 %v15121_v47, %v2236_v59  ;;  %v15194_v48 = vpop.f32.mrf.mxu1 }
 0x1e3   : > { %v11177_v1 = vcombine.low %v21565_v40, %v15136_v21  ;;  %v2616_v33 = vrot.slane %v2454_v44, 1  ;;  %v2458_v18 = vshrl.u32 %v2269_v58, 16  ;;  %v15143_v52 = vmax.f32 %v2210_v62, %v1985_v31 }
 0x1e4   : > { %v15145_v49 = vmax.f32 %v2208_v0, %v1983_v26  ;;  %v2461_v37 = vshll.u32 %v2269_v58, 16  ;;  %v2465_v46 = vshrl.u32 %v2270_v25, 16  ;;  %v2468_v43 = vshll.u32 %v2270_v25, 16 }
 0x1e5   : > { %4136 = vmatmul.mubr.bf16.gmra.mxu1 %v11177_v1  ;;  %v2617_v23 = vor.u32 %v2616_v33, %v2451_v17  ;;  %v2453_v6 = vrot.slane %v2451_v17, 7  ;;  %v2460_v55 = vrot.slane %v2458_v18, 7  ;;  %v15150_v35 = vsel %vm13718_vm6, %v2615_v11, 0 }
 0x1e6   : > { %4145 = vmatprep.mubr.bf16.mxu1 %v15141_v9  ;;  %v2618_v22 = vrot.slane %v2461_v37, 1  ;;  %v2207_v10 = vmax.f32 %v2175_v32, %v15063_v38  ;;  %v2272_v31 = vpack.c.bf16 %v15145_v49, %v15145_v49  ;;  %v2620_v5 = vrot.slane %v2468_v43, 1 }
 0x1e7   : > { %v2690_v26 = vsel %vm13718_vm6, %v2617_v23, 0  ;;  %v2456_v13 = vor.u32 %v2454_v44, %v2453_v6  ;;  %v2463_v60 = vor.u32 %v2461_v37, %v2460_v55  ;;  %v2209_v61 = vmax.f32 %v2177_v8, %v15103_v28 }
 0x1e8   : > { %v11257_v20 = vcombine.low %v15150_v35, %v2690_v26  ;;  %v2619_v62 = vor.u32 %v2618_v22, %v2458_v18  ;;  %v15160_v53 = vmax.f32 %v2207_v10, %v15077_v3  ;;  %v15163_v42 = vpack.c.bf16 %v2236_v59, %v15099_v30 }
 0x1e9   : > { %v2621_v38 = vor.u32 %v2620_v5, %v2465_v46  ;;  %v15167_v25 = vsel %vm13683_vm5, 0, %v2456_v13  ;;  %v15171_v56 = vsel %vm13683_vm5, 0, %v2463_v60  ;;  %v15175_v28 = vpack.c.bf16 %v15143_v52, %v15143_v52 }
 0x1ea   : > { %21651 = vst [vmem:[#allocation57_spill] sm:$0xff] %v15163_v42  ;;  %4521 = vmatprep.mubr.bf16.mxu0 %v11257_v20  ;;  %v2691_v3 = vsel %vm13718_vm6, %v2619_v62, 0  ;;  %v15181_v30 = vcombine.low %v15167_v25, %v15171_v56  ;;  %v2271_v59 = vpack.c.bf16 %v15160_v53, %v15160_v53  ;;  %v15192_v44 = vpack.c.bf16 %v15160_v53, %v15112_v51 }
 0x1eb   : > { %4522 = vmatmul.mubr.bf16.gmra.mxu0 %v15163_v42  ;;  %v2692_v8 = vsel %vm13718_vm6, %v2621_v38, 0  ;;  %v15188_v17 = vcombine.low %v2690_v26, %v2691_v3  ;;  %v2482_v58 = vshll.u32 %v2272_v31, 16  ;;  %v2467_v1 = vrot.slane %v2465_v46, 7  ;;  %v15207_v26 = vpop.f32.mrf.mxu1  ;;  %v21679_v42 = vld [vmem:[#allocation24_spill] sm:$0xff] }
 0x1ec   : > { %v11258_v32 = vcombine.low %v2691_v3, %v2692_v8  ;;  %v2472_v0 = vshrl.u32 %v2271_v59, 16  ;;  %v2475_v11 = vshll.u32 %v2271_v59, 16  ;;  %v2479_v33 = vshrl.u32 %v2272_v31, 16 }
 0x1ed   : > { %4146 = vmatmul.mubr.bf16.gmra.mxu1 %v15181_v30  ;;  %v2624_v18 = vrot.slane %v2482_v58, 1  ;;  %v15198_v37 = vmax.f32 %v2209_v61, %v15116_v34  ;;  %v2470_v6 = vor.u32 %v2468_v43, %v2467_v1  ;;  %v15203_v22 = vpack.c.bf16 %v15112_v51, %v15121_v47 }
 0x1ee   : > { %4531 = vmatprep.mubr.bf16.mxu0 %v11258_v32  ;;  %4155 = vmatprep.mubr.bf16.mxu1 %v15192_v44  ;;  %v2622_v23 = vrot.slane %v2475_v11, 1  ;;  %v2474_v55 = vrot.slane %v2472_v0, 7  ;;  %v2493_v34 = vshrl.u32 %v15175_v28, 16  ;;  %v2496_v13 = vshll.u32 %v15175_v28, 16 }
 0x1ef   : > { %21652 = vst [vmem:[#allocation58_spill] sm:$0xff] %v15203_v22  ;;  %v2625_v10 = vor.u32 %v2624_v18, %v2479_v33  ;;  %v2273_v46 = vpack.c.bf16 %v15198_v37, %v15198_v37  ;;  %v2481_v20 = vrot.slane %v2479_v33, 7  ;;  %v15217_v47 = vsel %vm13683_vm5, 0, %v2470_v6 }
 0x1f0   : > { %v2623_v31 = vor.u32 %v2622_v23, %v2472_v0  ;;  %v2477_v5 = vor.u32 %v2475_v11, %v2474_v55  ;;  %v2628_v38 = vrot.slane %v2496_v13, 1  ;;  %v15232_v0 = vpack.c.bf16 %v15198_v37, %v15145_v49  ;;  %v15234_v11 = vpop.f32.mrf.mxu1 }
 0x1f1   : > { %v2694_v43 = vsel %vm13718_vm6, %v2625_v10, 0  ;;  %v2486_v60 = vshrl.u32 %v2273_v46, 16  ;;  %v2489_v61 = vshll.u32 %v2273_v46, 16  ;;  %v2484_v18 = vor.u32 %v2482_v58, %v2481_v20 }
 0x1f2   : > { %v2693_v51 = vsel %vm13718_vm6, %v2623_v31, 0  ;;  %v15221_v62 = vsel %vm13683_vm5, 0, %v2477_v5  ;;  %v2629_v33 = vor.u32 %v2628_v38, %v2493_v34  ;;  %v15246_v46 = vpop.f32.mrf.mxu1  ;;  %v15254_v5 = vpack.c.bf16 %v15145_v49, %v15160_v53  ;;  %v21670_v49 = vld [vmem:[#allocation16_spill] sm:$0xff] }
 0x1f3   : > { %4532 = vmatmul.mubr.bf16.gmra.mxu0 %v15203_v22  ;;  %v15224_v3 = vcombine.low %v2692_v8, %v2693_v51  ;;  %v11259_v59 = vcombine.low %v2693_v51, %v2694_v43  ;;  %v15228_v32 = vcombine.low %v15217_v47, %v15221_v62  ;;  %v2626_v1 = vrot.slane %v2489_v61, 1  ;;  %21653 = vst [vmem:[#allocation59_spill] sm:$0xff] %v15246_v46 }
 0x1f4   : > { %v2488_v23 = vrot.slane %v2486_v60, 7  ;;  %v15240_v6 = vsel %vm13718_vm6, %v2629_v33, 0  ;;  %v15244_v10 = vsel %vm13683_vm5, 0, %v2484_v18  ;;  %21654 = vst [vmem:[#allocation60_spill] sm:$0xff] %v15254_v5  ;;  %v21655_v51 = vshrl.u32 %v14808_v14, 16  ;;  %v15276_v33 = vpop.f32.mrf.mxu1 }
 0x1f5   : > { %4541 = vmatprep.mubr.bf16.mxu0 %v11259_v59  ;;  %4156 = vmatmul.mubr.bf16.gmra.mxu1 %v15228_v32  ;;  %v2627_v8 = vor.u32 %v2626_v1, %v2486_v60  ;;  %v21656_v18 = vshll.u32 %v14808_v14, 16 }
 0x1f6   : > { %4165 = vmatprep.mubr.bf16.mxu1 %v15232_v0  ;;  %v2491_v55 = vor.u32 %v2489_v61, %v2488_v23  ;;  %v2439_v38 = vrot.slane %v21655_v51, 7  ;;  %v15294_v51 = vpop.f32.mrf.mxu1 }
 0x1f7   : > { %v2695_v58 = vsel %vm13718_vm6, %v2627_v8, 0 }
 0x1f8   : > { %v15256_v60 = vcombine.low %v2694_v43, %v2695_v58  ;;  %v11260_v61 = vcombine.low %v2695_v58, %v15240_v6  ;;  %v15261_v20 = vsel %vm13683_vm5, 0, %v2491_v55  ;;  %v2495_v43 = vrot.slane %v2493_v34, 7 }
 0x1f9   : > { %v15274_v53 = vcombine.low %v15244_v10, %v15261_v20  ;;  %v2442_v23 = vor.u32 %v21656_v18, %v2439_v38  ;;  %v21657_v55 = vcombine.low %v13690_v50, %v13776_v36  ;;  %v15300_v50 = vpack.c.bf16 %v15143_v52, %v15198_v37  ;;  %v12507_v36 = vld [vmem:[%s21095_s3 + $0x370] ss:$8 sps:$4 sm:$0xff]   ;;  %v15311_v18 = vpop.f32.mrf.mxu1  ;;  %v12518_v37 = vld [vmem:[%s21095_s3 + $0x354] ss:$8 sps:$4 sm:$0xff]  }
 0x1fa   : > { %v2498_v8 = vor.u32 %v2496_v13, %v2495_v43  ;;  %v11197_v38 = vcombine.low %v21565_v40, %v13729_v12  ;;  %v12515_v43 = vld [vmem:[%s21095_s3 + $0x364] ss:$8 sps:$4 sm:$0xff]   ;;  %v21659_v52 = vcombine.low %v13780_v29, %v13894_v15  ;;  %v12513_v12 = vld [vmem:[%s21095_s3 + $0x360] ss:$8 sps:$4 sm:$0xff]  }
 0x1fb   : > { %4542 = vmatmul.mubr.bf16.gmra.mxu0 %v15254_v5  ;;  %v15286_v58 = vsel %vm13683_vm5, 0, %v2442_v23  ;;  %21658 = vst [vmem:[#allocation61_spill] sm:$0xff] %v15300_v50  ;;  %v15323_v23 = vpop.f32.mrf.mxu0  ;;  %v12521_v29 = vld [vmem:[%s21095_s3 + $0x344] ss:$8 sps:$4 sm:$0xff]   ;;  %v21675_v5 = vld [vmem:[#allocation28_spill] sm:$0xff] }
 0x1fc   : > { %4551 = vmatprep.mubr.bf16.mxu0 %v11260_v61  ;;  %v15292_v61 = vsel %vm13683_vm5, 0, %v2498_v8  ;;  %21660 = vst [vmem:[#allocation62_spill] sm:$0xff] %v15323_v23  ;;  %v15325_v8 = vpop.f32.mrf.mxu1 }
 0x1fd   : > { %4166 = vmatmul.mubr.bf16.gmra.mxu1 %v15274_v53  ;;  %21661 = vst [vmem:[#allocation63_spill] sm:$0xff] %v15325_v8  ;;  %v15334_v15 = vpop.f32.mrf.mxu0 }
 0x1fe   : > { %4208 = vmatprep.mubr.bf16.mxu1 %v21657_v55  ;;  %v12516_v55 = vld [vmem:[%s21095_s3 + $0x350] ss:$8 sps:$4 sm:$0xff]   ;;  %21662 = vst [vmem:[#allocation64_spill] sm:$0xff] %v15334_v15 }
 0x203   : > { %4552 = vmatmul.mubr.bf16.gmra.mxu0 %v15300_v50 }
 0x204   : > { %4787 = vmatprep.mubr.bf16.mxu0 %v21565_v40 }
 0x205   : > { %4209 = vmatmul.mubr.bf16.vlgmr.msra.gmra.mxu1 %v11197_v38  ;;  %v21663_v38 = vcombine.low %v13898_v19, %v13994_v16  ;;  %v12522_v19 = vld [vmem:[%s21095_s3 + $0x330] ss:$8 sps:$4 sm:$0xff]   ;;  %v12527_v16 = vld [vmem:[%s21095_s3 + $0x324] ss:$8 sps:$4 sm:$0xff]  }
 0x206   : > { %4563 = vmatpush1.bf16.msra.mxu1 %v12507_v36  ;;  %4218 = vmatprep.mubr.bf16.mxu1 %v21659_v52  ;;  %v15336_v36 = vpop.f32.mrf.mxu1  ;;  %v12524_v52 = vld [vmem:[%s21095_s3 + $0x334] ss:$8 sps:$4 sm:$0xff]  }
 0x207   : > { %4564 = vmatprep.subr.bf16.mxu1 %v12515_v43  ;;  %v12519_v43 = vld [vmem:[%s21095_s3 + $0x340] ss:$8 sps:$4 sm:$0xff]  }
 0x20a   : > { %4565 = vmatpush1.bf16.msra.mxu1 %v12513_v12  ;;  %v15349_v12 = vpop.f32.mrf.mxu0 }
 0x20b   : > { %4788 = vmatmul.mubr.bf16.vlgmr.msra.gmra.mxu0 %v13764_v4  ;;  %4566 = vmatprep.subr.bf16.mxu1 %v12518_v37  ;;  %21664 = vst [vmem:[#allocation65_spill] sm:$0xff] %v15349_v12  ;;  %v15351_v37 = vpop.f32.mrf.mxu1 }
 0x20c   : > { %4797 = vmatprep.mubr.bf16.mxu0 %v21565_v40 }
 0x20d   : > { %4219 = vmatmul.mubr.bf16.gmra.mxu1 %v13764_v4  ;;  %v15356_v4 = vsel %vm13683_vm5, 0, %v14073_v54 }
 0x20e   : > { %4228 = vmatprep.mubr.bf16.mxu1 %v21663_v38  ;;  %4567 = vmatpush1.bf16.msra.mxu1 %v12516_v55  ;;  %v15365_v55 = vpop.f32.mrf.mxu0  ;;  %v11216_v54 = vcombine.low %v14011_v63, %v15356_v4  ;;  %v12525_v38 = vld [vmem:[%s21095_s3 + $0x320] ss:$8 sps:$4 sm:$0xff]   ;;  %v12533_v63 = vld [vmem:[%s21095_s3 + $0x304] ss:$8 sps:$4 sm:$0xff]  }
 0x20f   : > { %4568 = vmatprep.subr.bf16.mxu1 %v12521_v29  ;;  %21665 = vst [vmem:[#allocation66_spill] sm:$0xff] %v15365_v55  ;;  %v15367_v29 = vpop.f32.mrf.mxu1 }
 0x211   : > { %v15381_v13 = vpop.f32.mrf.mxu1 }
 0x212   : > { %4569 = vmatpush1.bf16.msra.mxu1 %v12519_v43  ;;  %v12530_v43 = vld [vmem:[%s21095_s3 + $0x314] ss:$8 sps:$4 sm:$0xff]   ;;  %21667 = vst [vmem:[#allocation68_spill] sm:$0xff] %v15381_v13 }
 0x213   : > { %4798 = vmatmul.mubr.bf16.gmra.mxu0 %v13890_v57  ;;  %4570 = vmatprep.subr.bf16.mxu1 %v12524_v52  ;;  %v15379_v52 = vpop.f32.mrf.mxu0 }
 0x214   : > { %4807 = vmatprep.mubr.bf16.mxu0 %v21565_v40  ;;  %21666 = vst [vmem:[#allocation67_spill] sm:$0xff] %v15379_v52  ;;  %v21695_v52 = vld [vmem:[#allocation39_spill] sm:$0xff] }
 0x215   : > { %4229 = vmatmul.mubr.bf16.gmra.mxu1 %v13890_v57  ;;  %v12528_v57 = vld [vmem:[%s21095_s3 + $0x310] ss:$8 sps:$4 sm:$0xff]  }
 0x216   : > { %4238 = vmatprep.mubr.bf16.mxu1 %v11216_v54  ;;  %4571 = vmatpush1.bf16.msra.mxu1 %v12522_v19  ;;  %v15390_v19 = vpop.f32.mrf.mxu0  ;;  %v21669_v54 = vld [vmem:[#allocation20_spill] sm:$0xff] }
 0x217   : > { %4572 = vmatprep.subr.bf16.mxu1 %v12527_v16  ;;  %21668 = vst [vmem:[#allocation69_spill] sm:$0xff] %v15390_v19  ;;  %v15392_v16 = vpop.f32.mrf.mxu1  ;;  %v11217_v1 = vcombine.low %v21670_v49, %v21669_v54  ;;  %v21672_v49 = vld [vmem:[#allocation13_spill] sm:$0xff] }
 0x218   : > { %v15404_v59 = vpop.f32.mrf.mxu0  ;;  %v11269_v54 = vcombine.low %v21672_v49, %v21565_v40  ;;  %v21676_v49 = vld [vmem:[#allocation21_spill] sm:$0xff] }
 0x219   : > { %21671 = vst [vmem:[#allocation20_spill] sm:$0xff] %v15404_v59  ;;  %v15406_v34 = vpop.f32.mrf.mxu1 }
 0x21a   : > { %4573 = vmatpush1.bf16.msra.mxu1 %v12525_v38  ;;  %v12531_v38 = vld [vmem:[%s21095_s3 + $0x300] ss:$8 sps:$4 sm:$0xff]   ;;  %v15418_v31 = vpop.f32.mrf.mxu0 }
 0x21b   : > { %4808 = vmatmul.mubr.bf16.gmra.mxu0 %v14017_v39  ;;  %4574 = vmatprep.subr.bf16.mxu1 %v12530_v43  ;;  %v12536_v43 = vld [vmem:[%s21095_s3 + $0x3f4] ss:$8 sps:$4 sm:$0xff]   ;;  %21674 = vst [vmem:[#allocation16_spill] sm:$0xff] %v15418_v31  ;;  %v15420_v50 = vpop.f32.mrf.mxu1 }
 0x21c   : > { %4817 = vmatprep.mubr.bf16.mxu0 %v21565_v40  ;;  %v21684_v31 = vld [vmem:[#allocation29_spill] sm:$0xff] }
 0x21d   : > { %4239 = vmatmul.mubr.bf16.gmra.mxu1 %v14017_v39  ;;  %v12534_v39 = vld [vmem:[%s21095_s3 + $0x3f0] ss:$8 sps:$4 sm:$0xff]   ;;  %v15433_v22 = vpop.f32.mrf.mxu1 }
 0x21e   : > { %4248 = vmatprep.mubr.bf16.mxu1 %v11217_v1  ;;  %4575 = vmatpush1.bf16.msra.mxu1 %v12528_v57  ;;  %v21673_v1 = vld [vmem:[#allocation18_spill] sm:$0xff] }
 0x21f   : > { %4576 = vmatprep.subr.bf16.mxu1 %v12533_v63  ;;  %v11201_v57 = vcombine.low %v21565_v40, %v21673_v1  ;;  %v12539_v63 = vld [vmem:[%s21095_s3 + $0x3e4] ss:$8 sps:$4 sm:$0xff]   ;;  %v15431_v1 = vpop.f32.mrf.mxu0  ;;  %21678 = vst [vmem:[#allocation18_spill] sm:$0xff] %v15433_v22 }
 0x220   : > { %21677 = vst [vmem:[#allocation13_spill] sm:$0xff] %v15431_v1  ;;  %v21683_v1 = vld [vmem:[#allocation34_spill] sm:$0xff] }
 0x221   : > { %v11219_v59 = vcombine.low %v21684_v31, %v21683_v1  ;;  %v12548_v31 = vld [vmem:[%s21095_s3 + $0x3b4] ss:$8 sps:$4 sm:$0xff]  }
 0x222   : > { %4577 = vmatpush1.bf16.msra.mxu1 %v12531_v38  ;;  %v11218_v38 = vcombine.low %v21676_v49, %v21675_v5  ;;  %v21680_v5 = vshrl.u32 %v21679_v42, 16 }
 0x223   : > { %4818 = vmatmul.mubr.bf16.gmra.mxu0 %v11269_v54  ;;  %4578 = vmatprep.subr.bf16.mxu1 %v12536_v43  ;;  %v12537_v43 = vld [vmem:[%s21095_s3 + $0x3e0] ss:$8 sps:$4 sm:$0xff]   ;;  %v12542_v54 = vld [vmem:[%s21095_s3 + $0x3d4] ss:$8 sps:$4 sm:$0xff]   ;;  %v15437_v41 = vpop.f32.mrf.mxu1 }
 0x224   : > { %4827 = vmatprep.mubr.bf16.mxu0 %v21565_v40  ;;  %v2383_v49 = vrot.slane %v21680_v5, 7 }
 0x225   : > { %4249 = vmatmul.mubr.bf16.gmra.mxu1 %v11201_v57  ;;  %v21681_v57 = vld [vmem:[#allocation22_spill] sm:$0xff]  ;;  %v15454_v19 = vpop.f32.mrf.mxu1 }
 0x226   : > { %4258 = vmatprep.mubr.bf16.mxu1 %v11218_v38  ;;  %4579 = vmatpush2.bf16.msra.mxu1 %v12534_v39  ;;  %v12540_v39 = vld [vmem:[%s21095_s3 + $0x3d0] ss:$8 sps:$4 sm:$0xff]   ;;  %v15446_v38 = vpop.f32.mrf.mxu0 }
 0x227   : > { %4580 = vmatprep.subr.bf16.mxu1 %v12539_v63  ;;  %v12545_v63 = vld [vmem:[%s21095_s3 + $0x3c4] ss:$8 sps:$4 sm:$0xff]   ;;  %21682 = vst [vmem:[#allocation28_spill] sm:$0xff] %v15446_v38 }
 0x228   : > { %v15462_v1 = vpop.f32.mrf.mxu0  ;;  %v21694_v38 = vld [vmem:[#allocation43_spill] sm:$0xff] }
 0x229   : > { %21686 = vst [vmem:[#allocation21_spill] sm:$0xff] %v15462_v1  ;;  %v11221_v55 = vcombine.low %v21695_v52, %v21694_v38  ;;  %v21698_v52 = vld [vmem:[#allocation41_spill] sm:$0xff] }
 0x22a   : > { %4581 = vmatpush2.bf16.msra.mxu1 %v12537_v43  ;;  %v21685_v43 = vshll.u32 %v21679_v42, 16  ;;  %v11205_v38 = vcombine.low %v21565_v40, %v21698_v52 }
 0x22b   : > { %4828 = vmatmul.mubr.bf16.gmra.mxu0 %v21681_v57  ;;  %4582 = vmatprep.subr.bf16.mxu1 %v12542_v54  ;;  %v12543_v54 = vld [vmem:[%s21095_s3 + $0x3c0] ss:$8 sps:$4 sm:$0xff]  }
 0x22c   : > { %4837 = vmatprep.mubr.bf16.mxu0 %v21565_v40  ;;  %v2386_v5 = vor.u32 %v21685_v43, %v2383_v49  ;;  %v15468_v49 = vpop.f32.mrf.mxu1  ;;  %v15477_v43 = vpop.f32.mrf.mxu0 }
 0x22d   : > { %4259 = vmatmul.mubr.bf16.gmra.mxu1 %v21681_v57  ;;  %21688 = vst [vmem:[#allocation24_spill] sm:$0xff] %v15477_v43  ;;  %v12554_v43 = vld [vmem:[%s21095_s3 + $0x394] ss:$8 sps:$4 sm:$0xff]  }
 0x22e   : > { %4268 = vmatprep.mubr.bf16.mxu1 %v11219_v59  ;;  %4583 = vmatpush2.bf16.msra.mxu1 %v12540_v39  ;;  %v15466_v57 = vsel %vm13683_vm5, 0, %v2386_v5  ;;  %v12546_v59 = vld [vmem:[%s21095_s3 + $0x3b0] ss:$8 sps:$4 sm:$0xff]   ;;  %v21687_v39 = vld [vmem:[#allocation27_spill] sm:$0xff]  ;;  %v15491_v1 = vpop.f32.mrf.mxu0 }
 0x22f   : > { %4584 = vmatprep.subr.bf16.mxu1 %v12545_v63  ;;  %v12551_v63 = vld [vmem:[%s21095_s3 + $0x3a4] ss:$8 sps:$4 sm:$0xff]   ;;  %v11220_v5 = vcombine.low %v21689_v7, %v15466_v57  ;;  %21691 = vst [vmem:[#allocation34_spill] sm:$0xff] %v15491_v1 }
 0x232   : > { %4585 = vmatpush2.bf16.msra.mxu1 %v12543_v54  ;;  %v15483_v54 = vpop.f32.mrf.mxu1 }
 0x233   : > { %4838 = vmatmul.mubr.bf16.gmra.mxu0 %v21687_v39  ;;  %4586 = vmatprep.subr.bf16.mxu1 %v12548_v31  ;;  %21690 = vst [vmem:[#allocation22_spill] sm:$0xff] %v15483_v54  ;;  %v12549_v31 = vld [vmem:[%s21095_s3 + $0x3a0] ss:$8 sps:$4 sm:$0xff]  }
 0x234   : > { %4847 = vmatprep.mubr.bf16.mxu0 %v21565_v40  ;;  %v15493_v7 = vpop.f32.mrf.mxu1 }
 0x235   : > { %4269 = vmatmul.mubr.bf16.gmra.mxu1 %v21687_v39  ;;  %v12552_v39 = vld [vmem:[%s21095_s3 + $0x390] ss:$8 sps:$4 sm:$0xff]  }
 0x236   : > { %4278 = vmatprep.mubr.bf16.mxu1 %v11220_v5  ;;  %4587 = vmatpush2.bf16.msra.mxu1 %v12546_v59  ;;  %v21692_v5 = vld [vmem:[#allocation36_spill] sm:$0xff]  ;;  %v12557_v59 = vld [vmem:[%s21095_s3 + $0x384] ss:$8 sps:$4 sm:$0xff]  }
 0x237   : > { %4588 = vmatprep.subr.bf16.mxu1 %v12551_v63  ;;  %v15502_v63 = vpop.f32.mrf.mxu0 }
 0x238   : > { %21693 = vst [vmem:[#allocation29_spill] sm:$0xff] %v15502_v63  ;;  %v21697_v63 = vld [vmem:[#allocation33_spill] sm:$0xff] }
 0x239   : > { %v15513_v1 = vpop.f32.mrf.mxu0  ;;  %v11270_v12 = vcombine.low %v21697_v63, %v21565_v40 }
 0x23a   : > { %4589 = vmatpush2.bf16.msra.mxu1 %v12549_v31  ;;  %v15508_v31 = vpop.f32.mrf.mxu1  ;;  %21696 = vst [vmem:[#allocation27_spill] sm:$0xff] %v15513_v1 }
 0x23b   : > { %4848 = vmatmul.mubr.bf16.gmra.mxu0 %v21692_v5  ;;  %4590 = vmatprep.subr.bf16.mxu1 %v12554_v43  ;;  %v12555_v43 = vld [vmem:[%s21095_s3 + $0x380] ss:$8 sps:$4 sm:$0xff]  }
 0x23c   : > { %4857 = vmatprep.mubr.bf16.mxu0 %v21565_v40  ;;  %v15517_v15 = vpop.f32.mrf.mxu1 }
 0x23d   : > { %4279 = vmatmul.mubr.bf16.gmra.mxu1 %v21692_v5  ;;  %v15521_v5 = vpop.f32.mrf.mxu0 }
 0x23e   : > { %4288 = vmatprep.mubr.bf16.mxu1 %v11221_v55  ;;  %4591 = vmatpush2.bf16.msra.mxu1 %v12552_v39  ;;  %21699 = vst [vmem:[#allocation35_spill] sm:$0xff] %v15521_v5  ;;  %v21700_v55 = vld [vmem:[#allocation44_spill] sm:$0xff]  ;;  %v15528_v1 = vpop.f32.mrf.mxu1  ;;  %v21716_v5 = vld [vmem:[#allocation53_spill] sm:$0xff] }
 0x23f   : > { %4592 = vmatprep.subr.bf16.mxu1 %v12557_v59  ;;  %v11222_v39 = vcombine.low %v21700_v55, %v14906_v27  ;;  %v15526_v59 = vpop.f32.mrf.mxu0  ;;  %21702 = vst [vmem:[#allocation43_spill] sm:$0xff] %v15528_v1  ;;  %v11271_v23 = vcombine.low %v21716_v5, %v21565_v40 }
 0x240   : > { %21701 = vst [vmem:[#allocation36_spill] sm:$0xff] %v15526_v59 }
 0x241   : > { %v15530_v63 = vpop.f32.mrf.mxu0 }
 0x242   : > { %4593 = vmatpush2.bf16.msra.mxu1 %v12555_v43  ;;  %21703 = vst [vmem:[#allocation39_spill] sm:$0xff] %v15530_v63  ;;  %v15532_v43 = vpop.f32.mrf.mxu1  ;;  %v21708_v63 = vld [vmem:[#allocation49_spill] sm:$0xff] }
 0x243   : > { %4858 = vmatmul.mubr.bf16.gmra.mxu0 %v11270_v12  ;;  %v21704_v12 = vld [vmem:[#allocation45_spill] sm:$0xff]  ;;  %v15537_v52 = vpop.f32.mrf.mxu0 }
 0x244   : > { %4867 = vmatprep.mubr.bf16.mxu0 %v21565_v40  ;;  %21705 = vst [vmem:[#allocation33_spill] sm:$0xff] %v15537_v52  ;;  %v15539_v27 = vpop.f32.mrf.mxu1  ;;  %v21711_v52 = vcombine.low %v15003_v2, %v15286_v58 }
 0x245   : > { %4289 = vmatmul.mubr.bf16.gmra.mxu1 %v11205_v38  ;;  %v21706_v38 = vcombine.low %v14910_v24, %v14997_v45  ;;  %v15544_v55 = vpop.f32.mrf.mxu0 }
 0x246   : > { %4298 = vmatprep.mubr.bf16.mxu1 %v11222_v39  ;;  %21707 = vst [vmem:[#allocation41_spill] sm:$0xff] %v15544_v55  ;;  %v15546_v39 = vpop.f32.mrf.mxu1  ;;  %v21713_v55 = vld [vmem:[#allocation54_spill] sm:$0xff] }
 0x247   : > { %v15551_v59 = vpop.f32.mrf.mxu0 }
 0x248   : > { %21709 = vst [vmem:[#allocation44_spill] sm:$0xff] %v15551_v59  ;;  %v12563_v59 = vld [vmem:[%s21097_s5 + $0x174] ss:$8 sps:$4 sm:$0xff]  }
 0x249   : > { %v15558_v24 = vpop.f32.mrf.mxu0  ;;  %8594 = vmatprep.subr.bf16.mxu0 %v12563_v59  ;;  %v12567_v59 = vld [vmem:[%s21097_s5 + $0x160] ss:$8 sps:$4 sm:$0xff]  }
 0x24a   : > { %21712 = vst [vmem:[#allocation49_spill] sm:$0xff] %v15558_v24  ;;  %v21715_v24 = vcombine.low %v15136_v21, %v15167_v25  ;;  %v12569_v21 = vld [vmem:[%s21097_s5 + $0x164] ss:$8 sps:$4 sm:$0xff]  }
 0x24b   : > { %4868 = vmatmul.mubr.bf16.gmra.mxu0 %v21704_v12  ;;  %v15574_v2 = vpop.f32.mrf.mxu0 }
 0x24c   : > { %4877 = vmatprep.mubr.bf16.mxu0 %v21565_v40  ;;  %21714 = vst [vmem:[#allocation54_spill] sm:$0xff] %v15574_v2  ;;  %v12584_v2 = vld [vmem:[%s21097_s5 + $0x34] ss:$8 sps:$4 sm:$0xff]  }
 0x24d   : > { %4299 = vmatmul.mubr.bf16.gmra.mxu1 %v21704_v12  ;;  %v15553_v12 = vpop.f32.mrf.mxu1 }
 0x24e   : > { %4308 = vmatprep.mubr.bf16.mxu1 %v21706_v38  ;;  %21710 = vst [vmem:[#allocation45_spill] sm:$0xff] %v15553_v12  ;;  %v12560_v38 = vld [vmem:[%s21097_s5 + $0x74] ss:$8 sps:$4 sm:$0xff]   ;;  %v15583_v12 = vpop.f32.mrf.mxu0 }
 0x24f   : > { %v15560_v45 = vpop.f32.mrf.mxu1  ;;  %8401 = vmatprep.subr.bf16.mxu1 %v12560_v38  ;;  %21717 = vst [vmem:[#allocation53_spill] sm:$0xff] %v15583_v12 }
 0x250   : > { %v15596_v25 = vpop.f32.mrf.mxu0 }
 0x251   : > { %21718 = vst [vmem:[#allocation70_spill] sm:$0xff] %v15596_v25  ;;  %v12572_v25 = vld [vmem:[%s21097_s5 + $0x54] ss:$8 sps:$4 sm:$0xff]  }
 0x253   : > { %4878 = vmatmul.mubr.bf16.gmra.mxu0 %v21708_v63 }
 0x254   : > { %4887 = vmatprep.mubr.bf16.mxu0 %v21565_v40 }
 0x255   : > { %4309 = vmatmul.mubr.bf16.gmra.mxu1 %v21708_v63  ;;  %v12561_v63 = vld [vmem:[%s21097_s5 + $0x170] ss:$8 sps:$4 sm:$0xff]  }
 0x256   : > { %4318 = vmatprep.mubr.bf16.mxu1 %v21711_v52  ;;  %v15576_v52 = vpop.f32.mrf.mxu1  ;;  %8595 = vmatpush1.bf16.msra.mxu0 %v12561_v63 }
 0x257   : > { %8596 = vmatprep.subr.bf16.mxu0 %v12569_v21 }
 0x258   : > { %v15585_v1 = vpop.f32.mrf.mxu1 }
 0x25a   : > { %v15598_v5 = vpop.f32.mrf.mxu1  ;;  %8597 = vmatpush1.bf16.msra.mxu0 %v12567_v59 }
 0x25b   : > { %4888 = vmatmul.mubr.bf16.gmra.mxu0 %v21713_v55  ;;  %21719 = vst [vmem:[#allocation71_spill] sm:$0xff] %v15598_v5 }
 0x25c   : > { %4897 = vmatprep.mubr.bf16.mxu0 %v21565_v40 }
 0x25d   : > { %4319 = vmatmul.mubr.bf16.gmra.mxu1 %v21713_v55  ;;  %v11209_v55 = vcombine.low %v21565_v40, %v15150_v35  ;;  %v15605_v35 = vpop.f32.mrf.mxu0 }
 0x25e   : > { %4328 = vmatprep.mubr.bf16.mxu1 %v21715_v24  ;;  %v21720_v24 = vcombine.low %v15171_v56, %v15217_v47  ;;  %21721 = vst [vmem:[#allocation72_spill] sm:$0xff] %v15605_v35  ;;  %v21723_v47 = vcombine.low %v15221_v62, %v15244_v10  ;;  %v21727_v10 = vcombine.low %v15261_v20, %v15292_v61 }
 0x25f   : > { %v15618_v56 = vpop.f32.mrf.mxu0 }
 0x260   : > { %21722 = vst [vmem:[#allocation73_spill] sm:$0xff] %v15618_v56 }
 0x261   : > { %v15625_v21 = vpop.f32.mrf.mxu0 }
 0x262   : > { %21724 = vst [vmem:[#allocation74_spill] sm:$0xff] %v15625_v21 }
 0x263   : > { %4898 = vmatmul.mubr.bf16.gmra.mxu0 %v11271_v23  ;;  %v12573_v23 = vld [vmem:[%s21097_s5 + $0x150] ss:$8 sps:$4 sm:$0xff]   ;;  %v15638_v62 = vpop.f32.mrf.mxu0 }
 0x264   : > { %4907 = vmatprep.mubr.bf16.mxu0 %v21565_v40  ;;  %21726 = vst [vmem:[#allocation76_spill] sm:$0xff] %v15638_v62  ;;  %v12558_v62 = vld [vmem:[%s21097_s5 + $0x70] ss:$8 sps:$4 sm:$0xff]  }
 0x265   : > { %4329 = vmatmul.mubr.bf16.gmra.mxu1 %v11209_v55  ;;  %v12575_v55 = vld [vmem:[%s21097_s5 + $0x154] ss:$8 sps:$4 sm:$0xff]  }
 0x266   : > { %4338 = vmatprep.mubr.bf16.mxu1 %v21720_v24  ;;  %v15603_v38 = vpop.f32.mrf.mxu1  ;;  %8598 = vmatprep.subr.bf16.mxu0 %v12575_v55  ;;  %v12579_v24 = vld [vmem:[%s21097_s5 + $0x140] ss:$8 sps:$4 sm:$0xff]   ;;  %v15645_v55 = vpop.f32.mrf.mxu0 }
 0x267   : > { %8599 = vmatpush1.bf16.msra.mxu0 %v12573_v23  ;;  %21728 = vst [vmem:[#allocation77_spill] sm:$0xff] %v15645_v55 }
 0x268   : > { %v15610_v63 = vpop.f32.mrf.mxu1  ;;  %v15658_v20 = vpop.f32.mrf.mxu0 }
 0x269   : > { %21729 = vst [vmem:[#allocation78_spill] sm:$0xff] %v15658_v20 }
 0x26a   : > { %v15623_v59 = vpop.f32.mrf.mxu1  ;;  %v15665_v55 = vpop.f32.mrf.mxu0 }
 0x26b   : > { %4908 = vmatmul.mubr.bf16.gmra.mxu0 %v15188_v17 }
 0x26c   : > { %4917 = vmatprep.mubr.bf16.mxu0 %v21565_v40  ;;  %v15630_v35 = vpop.f32.mrf.mxu1 }
 0x26d   : > { %4339 = vmatmul.mubr.bf16.gmra.mxu1 %v15188_v17  ;;  %21725 = vst [vmem:[#allocation75_spill] sm:$0xff] %v15630_v35  ;;  %v12581_v17 = vld [vmem:[%s21097_s5 + $0x144] ss:$8 sps:$4 sm:$0xff]   ;;  %v12596_v35 = vld [vmem:[%s21097_s5 + $0x14] ss:$8 sps:$4 sm:$0xff]  }
 0x26e   : > { %4348 = vmatprep.mubr.bf16.mxu1 %v21723_v47  ;;  %8600 = vmatprep.subr.bf16.mxu0 %v12581_v17  ;;  %v15643_v23 = vpop.f32.mrf.mxu1  ;;  %v12585_v47 = vld [vmem:[%s21097_s5 + $0x130] ss:$8 sps:$4 sm:$0xff]  }
 0x26f   : > { %8601 = vmatpush1.bf16.msra.mxu0 %v12579_v24  ;;  %v21730_v24 = vld [vmem:[#allocation3_spill] sm:$0xff] }
 0x270   : > { %v15650_v21 = vpop.f32.mrf.mxu1  ;;  %21731 = vst [vmem:[#allocation3_spill] sm:$0xff] %v15665_v55  ;;  %v21735_v55 = vld [vmem:[#allocation8_spill] sm:$0xff] }
 0x272   : > { %v15661_v17 = vpop.f32.mrf.mxu1 }
 0x273   : > { %4918 = vmatmul.mubr.bf16.gmra.mxu0 %v15224_v3 }
 0x274   : > { %4927 = vmatprep.mubr.bf16.mxu0 %v21565_v40  ;;  %v15670_v56 = vpop.f32.mrf.mxu1 }
 0x275   : > { %4349 = vmatmul.mubr.bf16.gmra.mxu1 %v15224_v3  ;;  %v12587_v3 = vld [vmem:[%s21097_s5 + $0x134] ss:$8 sps:$4 sm:$0xff]   ;;  %21732 = vst [vmem:[#allocation79_spill] sm:$0xff] %v15670_v56 }
 0x276   : > { %4358 = vmatprep.mubr.bf16.mxu1 %v21727_v10  ;;  %8602 = vmatprep.subr.bf16.mxu0 %v12587_v3  ;;  %v11272_v10 = vcombine.low %v15240_v6, %v21565_v40  ;;  %v12593_v6 = vld [vmem:[%s21097_s5 + $0x124] ss:$8 sps:$4 sm:$0xff]   ;;  %v15681_v3 = vpop.f32.mrf.mxu0 }
 0x277   : > { %8603 = vmatpush1.bf16.msra.mxu0 %v12585_v47  ;;  %v12591_v47 = vld [vmem:[%s21097_s5 + $0x120] ss:$8 sps:$4 sm:$0xff]   ;;  %21733 = vst [vmem:[#allocation80_spill] sm:$0xff] %v15681_v3 }
 0x278   : > { %8604 = vmatprep.subr.bf16.mxu0 %v12593_v6  ;;  %v15693_v12 = vpop.f32.mrf.mxu0  ;;  %v12578_v6 = vld [vmem:[%s21097_s5 + $0x44] ss:$8 sps:$4 sm:$0xff]  }
 0x27b   : > { %4928 = vmatmul.mubr.bf16.gmra.mxu0 %v15256_v60 }
 0x27c   : > { %4937 = vmatprep.mubr.bf16.mxu0 %v21565_v40  ;;  %v15688_v20 = vpop.f32.mrf.mxu1  ;;  %8605 = vmatpush1.bf16.msra.mxu0 %v12591_v47  ;;  %v12599_v47 = vld [vmem:[%s21097_s5 + $0x114] ss:$8 sps:$4 sm:$0xff]  }
 0x27d   : > { %4359 = vmatmul.mubr.bf16.gmra.mxu1 %v15256_v60  ;;  %v12566_v60 = vld [vmem:[%s21097_s5 + $0x64] ss:$8 sps:$4 sm:$0xff]   ;;  %8606 = vmatprep.subr.bf16.mxu0 %v12599_v47 }
 0x27e   : > { %4594 = vmatprep.mubr.bf16.mxu1 %v21730_v24  ;;  %v21734_v24 = vld [vmem:[#allocation6_spill] sm:$0xff] }
 0x27f   : > { %21736 = vst [vmem:[#allocation6_spill] sm:$0xff] %v15693_v12  ;;  %v21739_v12 = vld [vmem:[#allocation11_spill] sm:$0xff] }
 0x280   : > { %v12590_v47 = vld [vmem:[%s21097_s5 + $0x24] ss:$8 sps:$4 sm:$0xff]  }
 0x283   : > { %4938 = vmatmul.mubr.bf16.gmra.mxu0 %v11272_v10  ;;  %v12564_v10 = vld [vmem:[%s21097_s5 + $0x60] ss:$8 sps:$4 sm:$0xff]  }
 0x285   : > { %4595 = vmatmul.mubr.bf16.vlgmr.msra.gmra.mxu1 %v21734_v24  ;;  %v15709_v24 = vpop.f32.mrf.mxu0 }
 0x286   : > { %4604 = vmatprep.mubr.bf16.mxu1 %v21735_v55  ;;  %8402 = vmatpush1.bf16.msra.mxu1 %v12558_v62  ;;  %v12570_v55 = vld [vmem:[%s21097_s5 + $0x50] ss:$8 sps:$4 sm:$0xff]   ;;  %v15698_v62 = vpop.f32.mrf.mxu1  ;;  %21737 = vst [vmem:[#allocation8_spill] sm:$0xff] %v15709_v24  ;;  %v21744_v24 = vld [vmem:[#allocation15_spill] sm:$0xff] }
 0x287   : > { %8403 = vmatprep.subr.bf16.mxu1 %v12566_v60  ;;  %v12597_v60 = vld [vmem:[%s21097_s5 + $0x110] ss:$8 sps:$4 sm:$0xff]   ;;  %v15721_v56 = vpop.f32.mrf.mxu0 }
 0x288   : > { %v15716_v3 = vpop.f32.mrf.mxu1  ;;  %8607 = vmatpush1.bf16.msra.mxu0 %v12597_v60  ;;  %v12605_v60 = vld [vmem:[%s21097_s5 + $0x104] ss:$8 sps:$4 sm:$0xff]  }
 0x289   : > { %8608 = vmatprep.subr.bf16.mxu0 %v12605_v60  ;;  %v12611_v60 = vld [vmem:[%s21097_s5 + $0x1f4] ss:$8 sps:$4 sm:$0xff]  }
 0x28a   : > { %8404 = vmatpush1.bf16.msra.mxu1 %v12564_v10  ;;  %v21738_v10 = vld [vmem:[#allocation10_spill] sm:$0xff] }
 0x28b   : > { %8405 = vmatprep.subr.bf16.mxu1 %v12572_v25  ;;  %v12576_v25 = vld [vmem:[%s21097_s5 + $0x40] ss:$8 sps:$4 sm:$0xff]   ;;  %21740 = vst [vmem:[#allocation10_spill] sm:$0xff] %v15721_v56 }
 0x28d   : > { %4605 = vmatmul.mubr.bf16.gmra.mxu1 %v21738_v10  ;;  %v15737_v10 = vpop.f32.mrf.mxu0 }
 0x28e   : > { %4614 = vmatprep.mubr.bf16.mxu1 %v21739_v12  ;;  %8406 = vmatpush1.bf16.msra.mxu1 %v12570_v55  ;;  %v12582_v12 = vld [vmem:[%s21097_s5 + $0x30] ss:$8 sps:$4 sm:$0xff]   ;;  %v15726_v55 = vpop.f32.mrf.mxu1  ;;  %21742 = vst [vmem:[#allocation81_spill] sm:$0xff] %v15737_v10 }
 0x28f   : > { %8407 = vmatprep.subr.bf16.mxu1 %v12578_v6  ;;  %21741 = vst [vmem:[#allocation11_spill] sm:$0xff] %v15726_v55  ;;  %v12603_v6 = vld [vmem:[%s21097_s5 + $0x100] ss:$8 sps:$4 sm:$0xff]   ;;  %v15750_v10 = vpop.f32.mrf.mxu0 }
 0x290   : > { %v15745_v55 = vpop.f32.mrf.mxu1  ;;  %8609 = vmatpush1.bf16.msra.mxu0 %v12603_v6  ;;  %v12609_v6 = vld [vmem:[%s21097_s5 + $0x1f0] ss:$8 sps:$4 sm:$0xff]  }
 0x291   : > { %8610 = vmatprep.subr.bf16.mxu0 %v12611_v60  ;;  %v12614_v60 = vld [vmem:[%s21097_s5 + $0xe4] ss:$8 sps:$4 sm:$0xff]  }
 0x292   : > { %8408 = vmatpush1.bf16.msra.mxu1 %v12576_v25  ;;  %v21743_v25 = vld [vmem:[#allocation7_spill] sm:$0xff] }
 0x293   : > { %8409 = vmatprep.subr.bf16.mxu1 %v12584_v2  ;;  %v11265_v56 = vcombine.low %v21743_v25, %v21565_v40  ;;  %v12588_v2 = vld [vmem:[%s21097_s5 + $0x20] ss:$8 sps:$4 sm:$0xff]   ;;  %21745 = vst [vmem:[#allocation7_spill] sm:$0xff] %v15750_v10  ;;  %v15768_v25 = vpop.f32.mrf.mxu0  ;;  %v12608_v10 = vld [vmem:[%s21097_s5 + $0xf4] ss:$8 sps:$4 sm:$0xff]  }
 0x294   : > { %21746 = vst [vmem:[#allocation15_spill] sm:$0xff] %v15768_v25  ;;  %8611 = vmatpush2.bf16.msra.mxu0 %v12609_v6  ;;  %v12617_v6 = vld [vmem:[%s21097_s5 + $0x1e4] ss:$8 sps:$4 sm:$0xff]   ;;  %v12612_v25 = vld [vmem:[%s21097_s5 + $0xe0] ss:$8 sps:$4 sm:$0xff]  }
 0x295   : > { %4615 = vmatmul.mubr.bf16.gmra.mxu1 %v21744_v24  ;;  %v11261_v24 = vcombine.low %v15356_v4, %v21565_v40  ;;  %v21747_v4 = vld [vmem:[#allocation17_spill] sm:$0xff]  ;;  %v15779_v5 = vpop.f32.mrf.mxu0  ;;  %8612 = vmatprep.subr.bf16.mxu0 %v12617_v6 }
 0x296   : > { %4624 = vmatprep.mubr.bf16.mxu1 %v11265_v56  ;;  %8410 = vmatpush1.bf16.msra.mxu1 %v12582_v12  ;;  %v12594_v56 = vld [vmem:[%s21097_s5 + $0x10] ss:$8 sps:$4 sm:$0xff]   ;;  %v15757_v12 = vpop.f32.mrf.mxu1  ;;  %21748 = vst [vmem:[#allocation17_spill] sm:$0xff] %v15779_v5  ;;  %v21751_v5 = vld [vmem:[#allocation23_spill] sm:$0xff] }
 0x297   : > { %8411 = vmatprep.subr.bf16.mxu1 %v12590_v47  ;;  %v12602_v47 = vld [vmem:[%s21097_s5 + $0x4] ss:$8 sps:$4 sm:$0xff]  }
 0x29a   : > { %8412 = vmatpush1.bf16.msra.mxu1 %v12588_v2  ;;  %v15774_v2 = vpop.f32.mrf.mxu1 }
 0x29b   : > { %8413 = vmatprep.subr.bf16.mxu1 %v12596_v35  ;;  %v12600_v35 = vld [vmem:[%s21097_s5] ss:$8 sps:$4 sm:$0xff]  }
 0x29d   : > { %4625 = vmatmul.mubr.bf16.gmra.mxu1 %v11261_v24  ;;  %v12606_v24 = vld [vmem:[%s21097_s5 + $0xf0] ss:$8 sps:$4 sm:$0xff]  }
 0x29e   : > { %4634 = vmatprep.mubr.bf16.mxu1 %v21747_v4  ;;  %8414 = vmatpush1.bf16.msra.mxu1 %v12594_v56  ;;  %v15784_v56 = vpop.f32.mrf.mxu1  ;;  %v15795_v4 = vpop.f32.mrf.mxu0 }
 0x29f   : > { %8415 = vmatprep.subr.bf16.mxu1 %v12602_v47  ;;  %21749 = vst [vmem:[#allocation82_spill] sm:$0xff] %v15784_v56  ;;  %v12615_v47 = vld [vmem:[%s21097_s5 + $0x1e0] ss:$8 sps:$4 sm:$0xff]   ;;  %21750 = vst [vmem:[#allocation83_spill] sm:$0xff] %v15795_v4 }
 0x2a0   : > { %8613 = vmatpush2.bf16.msra.mxu0 %v12615_v47  ;;  %v15806_v54 = vpop.f32.mrf.mxu0  ;;  %v12623_v47 = vld [vmem:[%s21097_s5 + $0x1d4] ss:$8 sps:$4 sm:$0xff]   ;;  %v21759_v4 = vld [vmem:[#allocation31_spill] sm:$0xff] }
 0x2a1   : > { %21753 = vst [vmem:[#allocation23_spill] sm:$0xff] %v15806_v54  ;;  %v21758_v54 = vld [vmem:[#allocation30_spill] sm:$0xff]  ;;  %8614 = vmatprep.subr.bf16.mxu0 %v12623_v47 }
 0x2a2   : > { %8416 = vmatpush1.bf16.msra.mxu1 %v12600_v35 }
 0x2a3   : > { %8417 = vmatprep.subr.bf16.mxu1 %v12608_v10  ;;  %v21752_v10 = vld [vmem:[#allocation25_spill] sm:$0xff] }
 0x2a5   : > { %v15797_v35 = vpop.f32.mrf.mxu1  ;;  %4635 = vmatmul.mubr.bf16.gmra.mxu1 %v21751_v5  ;;  %v12618_v5 = vld [vmem:[%s21097_s5 + $0xd0] ss:$8 sps:$4 sm:$0xff]  }
 0x2a6   : > { %4644 = vmatprep.mubr.bf16.mxu1 %v21752_v10  ;;  %8418 = vmatpush2.bf16.msra.mxu1 %v12606_v24  ;;  %v12620_v24 = vld [vmem:[%s21097_s5 + $0xd4] ss:$8 sps:$4 sm:$0xff]   ;;  %v15824_v10 = vpop.f32.mrf.mxu0 }
 0x2a7   : > { %v15804_v56 = vpop.f32.mrf.mxu1  ;;  %8419 = vmatprep.subr.bf16.mxu1 %v12614_v60  ;;  %v12621_v60 = vld [vmem:[%s21097_s5 + $0x1d0] ss:$8 sps:$4 sm:$0xff]   ;;  %21756 = vst [vmem:[#allocation85_spill] sm:$0xff] %v15824_v10  ;;  %v12624_v10 = vld [vmem:[%s21097_s5 + $0xc0] ss:$8 sps:$4 sm:$0xff]  }
 0x2a8   : > { %8615 = vmatpush2.bf16.msra.mxu0 %v12621_v60  ;;  %v15832_v13 = vpop.f32.mrf.mxu0  ;;  %v3253_v60 = vlaneseq }
 0x2a9   : > { %v15808_v22 = vpop.f32.mrf.mxu1  ;;  %21761 = vst [vmem:[#allocation31_spill] sm:$0xff] %v15832_v13  ;;  %v11266_v13 = vcombine.low %v21679_v42, %v21565_v40  ;;  %v12630_v42 = vld [vmem:[%s21097_s5 + $0xb0] ss:$8 sps:$4 sm:$0xff]  }
 0x2aa   : > { %21754 = vst [vmem:[#allocation25_spill] sm:$0xff] %v15808_v22  ;;  %8420 = vmatpush2.bf16.msra.mxu1 %v12612_v25  ;;  %v15850_v47 = vpop.f32.mrf.mxu0 }
 0x2ab   : > { %v15816_v6 = vpop.f32.mrf.mxu1  ;;  %8421 = vmatprep.subr.bf16.mxu1 %v12620_v24  ;;  %v12626_v24 = vld [vmem:[%s21097_s5 + $0xc4] ss:$8 sps:$4 sm:$0xff]   ;;  %21764 = vst [vmem:[#allocation89_spill] sm:$0xff] %v15850_v47 }
 0x2ac   : > { %21755 = vst [vmem:[#allocation84_spill] sm:$0xff] %v15816_v6 }
 0x2ad   : > { %v15826_v25 = vpop.f32.mrf.mxu1  ;;  %4645 = vmatmul.mubr.bf16.gmra.mxu1 %v21758_v54 }
 0x2ae   : > { %21757 = vst [vmem:[#allocation86_spill] sm:$0xff] %v15826_v25  ;;  %4654 = vmatprep.mubr.bf16.mxu1 %v21759_v4  ;;  %8422 = vmatpush2.bf16.msra.mxu1 %v12618_v5  ;;  %v12627_v4 = vld [vmem:[%s21097_s5 + $0x1c0] ss:$8 sps:$4 sm:$0xff]   ;;  %v12629_v5 = vld [vmem:[%s21097_s5 + $0x1c4] ss:$8 sps:$4 sm:$0xff]   ;;  %v15859_v25 = vpop.f32.mrf.mxu0 }
 0x2af   : > { %v15830_v6 = vpop.f32.mrf.mxu1  ;;  %8423 = vmatprep.subr.bf16.mxu1 %v12626_v24  ;;  %8616 = vmatprep.subr.bf16.mxu0 %v12629_v5  ;;  %21768 = vst [vmem:[#allocation91_spill] sm:$0xff] %v15859_v25  ;;  %v12632_v24 = vld [vmem:[%s21097_s5 + $0xb4] ss:$8 sps:$4 sm:$0xff]   ;;  %v3251_v25 = vld [vmem:[%s21096_s4] sm:$0x3] }
 0x2b0   : > { %21760 = vst [vmem:[#allocation30_spill] sm:$0xff] %v15830_v6  ;;  %8617 = vmatpush2.bf16.msra.mxu0 %v12627_v4  ;;  %v3254_v6 = vshrl.u32 %v3253_v60, 7  ;;  %v12635_v4 = vld [vmem:[%s21097_s5 + $0x1b4] ss:$8 sps:$4 sm:$0xff]   ;;  %v15881_v60 = vpop.f32.mrf.mxu0 }
 0x2b1   : > { %v15834_v8 = vpop.f32.mrf.mxu1  ;;  %21772 = vst [vmem:[#allocation95_spill] sm:$0xff] %v15881_v60  ;;  %8618 = vmatprep.subr.bf16.mxu0 %v12635_v4 }
 0x2b2   : > { %21762 = vst [vmem:[#allocation87_spill] sm:$0xff] %v15834_v8  ;;  %v21766_v8 = vld [vmem:[#allocation37_spill] sm:$0xff]  ;;  %8424 = vmatpush2.bf16.msra.mxu1 %v12624_v10  ;;  %v15879_v5 = vsub.s32 0, %v3254_v6  ;;  %v15888_v47 = vsub.s32 1, %v3254_v6  ;;  %v12636_v6 = vld [vmem:[%s21097_s5 + $0xa0] ss:$8 sps:$4 sm:$0xff]  }
 0x2b3   : > { %v15842_v54 = vpop.f32.mrf.mxu1  ;;  %v12633_v10 = vld [vmem:[%s21097_s5 + $0x1b0] ss:$8 sps:$4 sm:$0xff]   ;;  %8425 = vmatprep.subr.bf16.mxu1 %v12632_v24  ;;  %v15896_v24 = vpop.f32.mrf.mxu0 }
 0x2b4   : > { %21763 = vst [vmem:[#allocation88_spill] sm:$0xff] %v15842_v54  ;;  %21771 = vst [vmem:[#allocation94_spill] sm:$0xff] %v15879_v5  ;;  %8619 = vmatpush2.bf16.msra.mxu0 %v12633_v10  ;;  %v12639_v10 = vld [vmem:[%s21097_s5 + $0x1a0] ss:$8 sps:$4 sm:$0xff]  }
 0x2b5   : > { %v15854_v46 = vpop.f32.mrf.mxu1  ;;  %4655 = vmatmul.mubr.bf16.gmra.mxu1 %v21766_v8  ;;  %21774 = vst [vmem:[#allocation97_spill] sm:$0xff] %v15888_v47  ;;  %21777 = vst [vmem:[#allocation98_spill] sm:$0xff] %v15896_v24 }
 0x2b6   : > { %21765 = vst [vmem:[#allocation90_spill] sm:$0xff] %v15854_v46  ;;  %4664 = vmatprep.mubr.bf16.mxu1 %v11266_v13  ;;  %v11262_v13 = vcombine.low %v15466_v57, %v21565_v40  ;;  %8426 = vmatpush2.bf16.msra.mxu1 %v12630_v42  ;;  %v15901_v46 = vrot.slane %v3251_v25, %v15888_v47  ;;  %v12638_v42 = vld [vmem:[%s21097_s5 + $0xa4] ss:$8 sps:$4 sm:$0xff]  }
 0x2b7   : > { %v15857_v54 = vpop.f32.mrf.mxu1  ;;  %8427 = vmatprep.subr.bf16.mxu1 %v12638_v42 }
 0x2b8   : > { %21767 = vst [vmem:[#allocation37_spill] sm:$0xff] %v15857_v54  ;;  %v15894_v54 = vrot.slane %v3251_v25, %v15879_v5  ;;  %v12641_v25 = vld [vmem:[%s21097_s5 + $0x1a4] ss:$8 sps:$4 sm:$0xff]  }
 0x2b9   : > { %v15861_v22 = vpop.f32.mrf.mxu1  ;;  %v21781_v5 = vld [vmem:[#allocation46_spill] sm:$0xff]  ;;  %8620 = vmatprep.subr.bf16.mxu0 %v12641_v25 }
 0x2ba   : > { %21769 = vst [vmem:[#allocation92_spill] sm:$0xff] %v15861_v22  ;;  %v4018_v4 = vadd.f32 %v15194_v48, %v15894_v54  ;;  %8428 = vmatpush2.bf16.msra.mxu1 %v12636_v6  ;;  %8621 = vmatpush2.bf16.msra.mxu0 %v12639_v10  ;;  %v4022_v48 = vadd.f32 %v15234_v11, %v15894_v54  ;;  %v21787_v11 = vld [vmem:[#allocation51_spill] sm:$0xff] }
 0x2bb   : > { %v15871_v8 = vpop.f32.mrf.mxu1  ;;  %v4030_v6 = vadd.f32 %v15294_v51, %v15901_v46  ;;  %v4038_v51 = vadd.f32 %v15336_v36, %v15894_v54  ;;  %v12645_v36 = vld [vmem:[%s21097_s5 + $0x190] ss:$8 sps:$4 sm:$0xff]  }
 0x2bc   : > { %21770 = vst [vmem:[#allocation93_spill] sm:$0xff] %v15871_v8  ;;  %v21775_v8 = vld [vmem:[#allocation40_spill] sm:$0xff] }
 0x2bd   : > { %v15886_v57 = vpop.f32.mrf.mxu1  ;;  %4665 = vmatmul.mubr.bf16.gmra.mxu1 %v11262_v13  ;;  %v15903_v13 = vpop.f32.mrf.mxu0 }
 0x2be   : > { %21773 = vst [vmem:[#allocation96_spill] sm:$0xff] %v15886_v57  ;;  %4674 = vmatprep.mubr.bf16.mxu1 %v21775_v8  ;;  %21779 = vst [vmem:[#allocation100_spill] sm:$0xff] %v15903_v13  ;;  %v4020_v13 = vadd.f32 %v15207_v26, %v15901_v46 }
 0x2bf   : > { %v15891_v22 = vpop.f32.mrf.mxu1  ;;  %v15924_v24 = vpop.f32.mrf.mxu0 }
 0x2c0   : > { %21776 = vst [vmem:[#allocation40_spill] sm:$0xff] %v15891_v22  ;;  %21782 = vst [vmem:[#allocation46_spill] sm:$0xff] %v15924_v24 }
 0x2c1   : > { %v15898_v60 = vpop.f32.mrf.mxu1 }
 0x2c2   : > { %21778 = vst [vmem:[#allocation99_spill] sm:$0xff] %v15898_v60  ;;  %v21783_v60 = vld [vmem:[#allocation47_spill] sm:$0xff] }
 0x2c3   : > { %v15911_v8 = vpop.f32.mrf.mxu1 }
 0x2c4   : > { %21780 = vst [vmem:[#allocation101_spill] sm:$0xff] %v15911_v8 }
 0x2c5   : > { %v4210_v47 = vpop.f32.mrf.mxu1  ;;  %4675 = vmatmul.mubr.bf16.gmra.mxu1 %v21781_v5  ;;  %v15933_v5 = vpop.f32.mrf.mxu0 }
 0x2c6   : > { %v15926_v8 = vadd.f32 %v4210_v47, %v4018_v4  ;;  %4684 = vmatprep.mubr.bf16.mxu1 %v21783_v60  ;;  %21784 = vst [vmem:[#allocation47_spill] sm:$0xff] %v15933_v5  ;;  %v4028_v47 = vadd.f32 %v15276_v33, %v15894_v54  ;;  %v21785_v60 = vld [vmem:[#allocation50_spill] sm:$0xff] }
 0x2c7   : > { %v4212_v22 = vpop.f32.mrf.mxu1  ;;  %v15944_v10 = vpop.f32.mrf.mxu0 }
 0x2c8   : > { %v15931_v42 = vadd.f32 %v4212_v22, %v4020_v13  ;;  %21786 = vst [vmem:[#allocation50_spill] sm:$0xff] %v15944_v10 }
 0x2c9   : > { %v4214_v57 = vpop.f32.mrf.mxu1  ;;  %v15953_v33 = vpop.f32.mrf.mxu0 }
 0x2ca   : > { %v15935_v25 = vadd.f32 %v4214_v57, %v4022_v48  ;;  %v4032_v57 = vadd.f32 %v15311_v18, %v15894_v54  ;;  %21788 = vst [vmem:[#allocation51_spill] sm:$0xff] %v15953_v33  ;;  %v4040_v18 = vadd.f32 %v15351_v37, %v15901_v46  ;;  %v4042_v37 = vadd.f32 %v15367_v29, %v15894_v54 }
 0x2cb   : > { %v15937_v26 = vpop.f32.mrf.mxu1  ;;  %v11263_v33 = vcombine.low %v15286_v58, %v21565_v40  ;;  %v4048_v29 = vadd.f32 %v15392_v16, %v15894_v54  ;;  %v4052_v58 = vadd.f32 %v15420_v50, %v15894_v54  ;;  %v12648_v16 = vld [vmem:[%s21097_s5 + $0x80] ss:$8 sps:$4 sm:$0xff]   ;;  %v12653_v50 = vld [vmem:[%s21097_s5 + $0x184] ss:$8 sps:$4 sm:$0xff]  }
 0x2cd   : > { %v4220_v4 = vpop.f32.mrf.mxu1  ;;  %4685 = vmatmul.mubr.bf16.gmra.mxu1 %v21785_v60 }
 0x2ce   : > { %v15946_v22 = vadd.f32 %v4220_v4, %v4028_v47  ;;  %4694 = vmatprep.mubr.bf16.mxu1 %v21787_v11  ;;  %v11267_v47 = vcombine.low %v14808_v14, %v21565_v40  ;;  %v21789_v11 = vld [vmem:[#allocation55_spill] sm:$0xff]  ;;  %v12644_v14 = vld [vmem:[%s21097_s5 + $0x94] ss:$8 sps:$4 sm:$0xff]  }
 0x2cf   : > { %v4222_v13 = vpop.f32.mrf.mxu1  ;;  %8429 = vmatprep.subr.bf16.mxu1 %v12644_v14 }
 0x2d0   : > { %v15951_v48 = vadd.f32 %v4222_v13, %v4030_v6  ;;  %v15966_v6 = vpop.f32.mrf.mxu0 }
 0x2d1   : > { %v4224_v5 = vpop.f32.mrf.mxu1  ;;  %21790 = vst [vmem:[#allocation55_spill] sm:$0xff] %v15966_v6 }
 0x2d2   : > { %v15955_v24 = vadd.f32 %v4224_v5, %v4032_v57  ;;  %v12642_v57 = vld [vmem:[%s21097_s5 + $0x90] ss:$8 sps:$4 sm:$0xff]  }
 0x2d3   : > { %v15957_v60 = vpop.f32.mrf.mxu1  ;;  %8430 = vmatpush2.bf16.msra.mxu1 %v12642_v57 }
 0x2d5   : > { %v4230_v4 = vpop.f32.mrf.mxu1  ;;  %4695 = vmatmul.mubr.bf16.gmra.mxu1 %v21789_v11 }
 0x2d6   : > { %v15968_v13 = vadd.f32 %v4230_v4, %v4038_v51  ;;  %4704 = vmatprep.mubr.bf16.mxu1 %v11267_v47  ;;  %v12647_v51 = vld [vmem:[%s21097_s5 + $0x194] ss:$8 sps:$4 sm:$0xff]   ;;  %v15986_v4 = vpop.f32.mrf.mxu0 }
 0x2d7   : > { %v4232_v5 = vpop.f32.mrf.mxu1  ;;  %21791 = vst [vmem:[#allocation102_spill] sm:$0xff] %v15986_v4  ;;  %8622 = vmatprep.subr.bf16.mxu0 %v12647_v51 }
 0x2d8   : > { %v15981_v11 = vadd.f32 %v4232_v5, %v4040_v18  ;;  %8623 = vmatpush2.bf16.msra.mxu0 %v12645_v36  ;;  %v4050_v5 = vadd.f32 %v15406_v34, %v15901_v46  ;;  %v15998_v14 = vpop.f32.mrf.mxu0  ;;  %v12650_v34 = vld [vmem:[%s21097_s5 + $0x84] ss:$8 sps:$4 sm:$0xff]  }
 0x2d9   : > { %v4234_v47 = vpop.f32.mrf.mxu1  ;;  %21792 = vst [vmem:[#allocation103_spill] sm:$0xff] %v15998_v14  ;;  %8431 = vmatprep.subr.bf16.mxu1 %v12650_v34  ;;  %8624 = vmatprep.subr.bf16.mxu0 %v12653_v50  ;;  %v4062_v34 = vadd.f32 %v15468_v49, %v15894_v54  ;;  %v12659_v49 = vld [vmem:[%s21097_s5 + $0x374] ss:$8 sps:$4 sm:$0xff]  }
 0x2da   : > { %v15988_v6 = vadd.f32 %v4234_v47, %v4042_v37  ;;  %8432 = vmatpush2.bf16.msra.mxu1 %v12648_v16 }
 0x2db   : > { %v15992_v10 = vpop.f32.mrf.mxu1 }
 0x2dd   : > { %v4240_v18 = vpop.f32.mrf.mxu1  ;;  %4705 = vmatmul.mubr.bf16.gmra.mxu1 %v11263_v33  ;;  %v12651_v33 = vld [vmem:[%s21097_s5 + $0x180] ss:$8 sps:$4 sm:$0xff]  }
 0x2de   : > { %v16000_v37 = vadd.f32 %v4240_v18, %v4048_v29  ;;  %4714 = vmatprep.mubr.bf16.mxu1 %v15141_v9  ;;  %v16016_v9 = vpop.f32.mrf.mxu0  ;;  %v4058_v18 = vadd.f32 %v15437_v41, %v15894_v54  ;;  %8625 = vmatpush2.bf16.msra.mxu0 %v12651_v33 }
 0x2df   : > { %v4242_v57 = vpop.f32.mrf.mxu1  ;;  %21793 = vst [vmem:[#allocation104_spill] sm:$0xff] %v16016_v9  ;;  %8980 = vmatprep.subr.bf16.mxu0 %v12659_v49 }
 0x2e0   : > { %v16005_v51 = vadd.f32 %v4242_v57, %v4050_v5  ;;  %v4060_v57 = vadd.f32 %v15454_v19, %v15901_v46  ;;  %v12656_v19 = vld [vmem:[%s21097_s5 + $0x274] ss:$8 sps:$4 sm:$0xff]  }
 0x2e1   : > { %v4244_v36 = vpop.f32.mrf.mxu1  ;;  %8787 = vmatprep.subr.bf16.mxu1 %v12656_v19 }
 0x2e2   : > { %v16018_v47 = vadd.f32 %v4244_v36, %v4052_v58  ;;  %v16030_v58 = vpop.f32.mrf.mxu0 }
 0x2e3   : > { %v16023_v29 = vpop.f32.mrf.mxu1  ;;  %21794 = vst [vmem:[#allocation105_spill] sm:$0xff] %v16030_v58 }
 0x2e4   : > { %v16039_v50 = vpop.f32.mrf.mxu0 }
 0x2e5   : > { %v4250_v5 = vpop.f32.mrf.mxu1  ;;  %4715 = vmatmul.mubr.bf16.gmra.mxu1 %v15181_v30  ;;  %21795 = vst [vmem:[#allocation106_spill] sm:$0xff] %v16039_v50 }
 0x2e6   : > { %v16032_v36 = vadd.f32 %v4250_v5, %v4058_v18  ;;  %4724 = vmatprep.mubr.bf16.mxu1 %v15192_v44  ;;  %v4068_v44 = vadd.f32 %v15493_v7, %v15894_v54  ;;  %v4070_v18 = vadd.f32 %v15508_v31, %v15901_v46  ;;  %v16056_v5 = vpop.f32.mrf.mxu0  ;;  %v4072_v7 = vadd.f32 %v15517_v15, %v15894_v54 }
 0x2e7   : > { %v4252_v9 = vpop.f32.mrf.mxu1  ;;  %21796 = vst [vmem:[#allocation107_spill] sm:$0xff] %v16056_v5  ;;  %v4078_v31 = vadd.f32 %v15532_v43, %v15894_v54  ;;  %v4080_v15 = vadd.f32 %v15539_v27, %v15901_v46 }
 0x2e8   : > { %v16037_v41 = vadd.f32 %v4252_v9, %v4060_v57  ;;  %v16065_v58 = vpop.f32.mrf.mxu0 }
 0x2e9   : > { %v4254_v16 = vpop.f32.mrf.mxu1  ;;  %21797 = vst [vmem:[#allocation108_spill] sm:$0xff] %v16065_v58 }
 0x2ea   : > { %v16041_v30 = vadd.f32 %v4254_v16, %v4062_v34  ;;  %v16078_v49 = vpop.f32.mrf.mxu0 }
 0x2eb   : > { %v16043_v33 = vpop.f32.mrf.mxu1  ;;  %21798 = vst [vmem:[#allocation109_spill] sm:$0xff] %v16078_v49 }
 0x2ed   : > { %v4260_v9 = vpop.f32.mrf.mxu1  ;;  %4725 = vmatmul.mubr.bf16.gmra.mxu1 %v15228_v32 }
 0x2ee   : > { %v16058_v57 = vadd.f32 %v4260_v9, %v4068_v44  ;;  %4734 = vmatprep.mubr.bf16.mxu1 %v15232_v0  ;;  %v11268_v0 = vcombine.low %v15175_v28, %v21565_v40 }
 0x2ef   : > { %v4262_v34 = vpop.f32.mrf.mxu1 }
 0x2f0   : > { %v16063_v16 = vadd.f32 %v4262_v34, %v4070_v18  ;;  %v4082_v18 = vadd.f32 %v15546_v39, %v15894_v54  ;;  %v4090_v39 = vadd.f32 %v15576_v52, %v15901_v46  ;;  %v4098_v52 = vadd.f32 %v15603_v38, %v15894_v54 }
 0x2f1   : > { %v4264_v50 = vpop.f32.mrf.mxu1 }
 0x2f2   : > { %v16067_v32 = vadd.f32 %v4264_v50, %v4072_v7  ;;  %v16086_v7 = vpop.f32.mrf.mxu0 }
 0x2f3   : > { %v16069_v19 = vpop.f32.mrf.mxu1  ;;  %21799 = vst [vmem:[#allocation110_spill] sm:$0xff] %v16086_v7 }
 0x2f5   : > { %v4270_v44 = vpop.f32.mrf.mxu1  ;;  %4735 = vmatmul.mubr.bf16.gmra.mxu1 %v15274_v53  ;;  %v11264_v53 = vcombine.low %v15292_v61, %v21565_v40 }
 0x2f6   : > { %v16080_v9 = vadd.f32 %v4270_v44, %v4078_v31  ;;  %4744 = vmatprep.mubr.bf16.mxu1 %v11268_v0  ;;  %v4088_v31 = vadd.f32 %v15560_v45, %v15894_v54  ;;  %v16098_v44 = vpop.f32.mrf.mxu0 }
 0x2f7   : > { %v4272_v50 = vpop.f32.mrf.mxu1  ;;  %21800 = vst [vmem:[#allocation111_spill] sm:$0xff] %v16098_v44 }
 0x2f8   : > { %v16084_v34 = vadd.f32 %v4272_v50, %v4080_v15  ;;  %v16106_v7 = vpop.f32.mrf.mxu0 }
 0x2f9   : > { %v4274_v43 = vpop.f32.mrf.mxu1 }
 0x2fa   : > { %v16088_v28 = vadd.f32 %v4274_v43, %v4082_v18  ;;  %v4092_v18 = vadd.f32 %v15585_v1, %v15894_v54 }
 0x2fb   : > { %v16092_v27 = vpop.f32.mrf.mxu1 }
 0x2fd   : > { %v4280_v0 = vpop.f32.mrf.mxu1  ;;  %4745 = vmatmul.mubr.bf16.gmra.mxu1 %v11264_v53 }
 0x2fe   : > { %v16100_v15 = vadd.f32 %v4280_v0, %v4088_v31  ;;  %v4100_v31 = vadd.f32 %v15610_v63, %v15901_v46  ;;  %v16116_v0 = vpop.f32.mrf.mxu0  ;;  %v4108_v63 = vadd.f32 %v15643_v23, %v15894_v54 }
 0x2ff   : > { %v4282_v50 = vpop.f32.mrf.mxu1  ;;  %21801 = vst [vmem:[#allocation112_spill] sm:$0xff] %v16116_v0 }
 0x300   : > { %v16104_v43 = vadd.f32 %v4282_v50, %v4090_v39  ;;  %v4102_v39 = vadd.f32 %v15623_v59, %v15894_v54 }
 0x301   : > { %v4284_v61 = vpop.f32.mrf.mxu1 }
 0x302   : > { %v16108_v49 = vadd.f32 %v4284_v61, %v4092_v18  ;;  %v16124_v61 = vpop.f32.mrf.mxu0 }
 0x303   : > { %v16110_v45 = vpop.f32.mrf.mxu1  ;;  %21804 = vst [vmem:[#allocation115_spill] sm:$0xff] %v16124_v61 }
 0x305   : > { %v4290_v53 = vpop.f32.mrf.mxu1 }
 0x306   : > { %v16118_v44 = vadd.f32 %v4290_v53, %v4098_v52  ;;  %v4110_v52 = vadd.f32 %v15650_v21, %v15901_v46  ;;  %v16134_v53 = vpop.f32.mrf.mxu0  ;;  %v4118_v21 = vadd.f32 %v15688_v20, %v15894_v54 }
 0x307   : > { %v4292_v1 = vpop.f32.mrf.mxu1  ;;  %21806 = vst [vmem:[#allocation117_spill] sm:$0xff] %v16134_v53 }
 0x308   : > { %21802 = vst [vmem:[#allocation113_spill] sm:$0xff] %v16118_v44  ;;  %v16122_v50 = vadd.f32 %v4292_v1, %v4100_v31  ;;  %v4112_v31 = vadd.f32 %v15661_v17, %v15894_v54 }
 0x309   : > { %v4294_v18 = vpop.f32.mrf.mxu1 }
 0x30a   : > { %21803 = vst [vmem:[#allocation114_spill] sm:$0xff] %v16122_v50  ;;  %v16126_v58 = vadd.f32 %v4294_v18, %v4102_v39  ;;  %v16142_v18 = vpop.f32.mrf.mxu0  ;;  %v21869_v50 = vld [vmem:[#allocation101_spill] sm:$0xff] }
 0x30b   : > { %v16128_v38 = vpop.f32.mrf.mxu1  ;;  %21809 = vst [vmem:[#allocation120_spill] sm:$0xff] %v16142_v18 }
 0x30c   : > { %21805 = vst [vmem:[#allocation116_spill] sm:$0xff] %v16126_v58 }
 0x30d   : > { %v4300_v5 = vpop.f32.mrf.mxu1 }
 0x30e   : > { %v16136_v14 = vadd.f32 %v4300_v5, %v4108_v63  ;;  %v4120_v5 = vadd.f32 %v15698_v62, %v15901_v46  ;;  %v16152_v63 = vpop.f32.mrf.mxu0  ;;  %v4128_v62 = vadd.f32 %v15745_v55, %v15894_v54 }
 0x30f   : > { %v4302_v59 = vpop.f32.mrf.mxu1  ;;  %21811 = vst [vmem:[#allocation122_spill] sm:$0xff] %v16152_v63 }
 0x310   : > { %21807 = vst [vmem:[#allocation118_spill] sm:$0xff] %v16136_v14  ;;  %v16140_v1 = vadd.f32 %v4302_v59, %v4110_v52  ;;  %v4122_v52 = vadd.f32 %v15716_v3, %v15894_v54 }
 0x311   : > { %v4304_v39 = vpop.f32.mrf.mxu1 }
 0x312   : > { %21808 = vst [vmem:[#allocation119_spill] sm:$0xff] %v16140_v1  ;;  %v16144_v4 = vadd.f32 %v4304_v39, %v4112_v31  ;;  %v16160_v39 = vpop.f32.mrf.mxu0  ;;  %v21855_v1 = vld [vmem:[#allocation79_spill] sm:$0xff] }
 0x313   : > { %v16146_v23 = vpop.f32.mrf.mxu1  ;;  %21814 = vst [vmem:[#allocation125_spill] sm:$0xff] %v16160_v39  ;;  %v4114_v14 = vadd.f32 %v21855_v1, %v15901_v46  ;;  %v21863_v1 = vld [vmem:[#allocation88_spill] sm:$0xff] }
 0x314   : > { %21810 = vst [vmem:[#allocation121_spill] sm:$0xff] %v16144_v4 }
 0x315   : > { %v4310_v40 = vpop.f32.mrf.mxu1 }
 0x316   : > { %v16154_v53 = vadd.f32 %v4310_v40, %v4118_v21  ;;  %v4130_v40 = vadd.f32 %v15757_v12, %v15901_v46  ;;  %v16170_v21 = vpop.f32.mrf.mxu0  ;;  %v4138_v12 = vadd.f32 %v15797_v35, %v15894_v54 }
 0x317   : > { %v4312_v17 = vpop.f32.mrf.mxu1  ;;  %21816 = vst [vmem:[#allocation127_spill] sm:$0xff] %v16170_v21 }
 0x318   : > { %21812 = vst [vmem:[#allocation123_spill] sm:$0xff] %v16154_v53  ;;  %v16158_v59 = vadd.f32 %v4312_v17, %v4120_v5  ;;  %v4132_v5 = vadd.f32 %v15774_v2, %v15894_v54 }
 0x319   : > { %v4314_v31 = vpop.f32.mrf.mxu1 }
 0x31a   : > { %21813 = vst [vmem:[#allocation124_spill] sm:$0xff] %v16158_v59  ;;  %v16162_v18 = vadd.f32 %v4314_v31, %v4122_v52  ;;  %v16178_v31 = vpop.f32.mrf.mxu0 }
 0x31b   : > { %v16164_v20 = vpop.f32.mrf.mxu1  ;;  %21819 = vst [vmem:[#allocation130_spill] sm:$0xff] %v16178_v31 }
 0x31c   : > { %21815 = vst [vmem:[#allocation126_spill] sm:$0xff] %v16162_v18 }
 0x31d   : > { %v4320_v4 = vpop.f32.mrf.mxu1 }
 0x31e   : > { %v16172_v63 = vadd.f32 %v4320_v4, %v4128_v62  ;;  %v4140_v4 = vadd.f32 %v15804_v56, %v15901_v46  ;;  %v16188_v62 = vpop.f32.mrf.mxu0 }
 0x31f   : > { %v4322_v3 = vpop.f32.mrf.mxu1  ;;  %21822 = vst [vmem:[#allocation133_spill] sm:$0xff] %v16188_v62 }
 0x320   : > { %21817 = vst [vmem:[#allocation128_spill] sm:$0xff] %v16172_v63  ;;  %v16176_v17 = vadd.f32 %v4322_v3, %v4130_v40  ;;  %v21824_v40 = vld [vmem:[#allocation25_spill] sm:$0xff] }
 0x321   : > { %v4324_v52 = vpop.f32.mrf.mxu1  ;;  %v4142_v3 = vadd.f32 %v21824_v40, %v15894_v54 }
 0x322   : > { %21818 = vst [vmem:[#allocation129_spill] sm:$0xff] %v16176_v17  ;;  %v16180_v39 = vadd.f32 %v4324_v52, %v4132_v5  ;;  %v16196_v52 = vpop.f32.mrf.mxu0  ;;  %v21829_v17 = vld [vmem:[#allocation86_spill] sm:$0xff] }
 0x323   : > { %v16182_v55 = vpop.f32.mrf.mxu1  ;;  %21826 = vst [vmem:[#allocation135_spill] sm:$0xff] %v16196_v52  ;;  %v4148_v56 = vadd.f32 %v21829_v17, %v15894_v54 }
 0x324   : > { %21820 = vst [vmem:[#allocation131_spill] sm:$0xff] %v16180_v39  ;;  %21821 = vst [vmem:[#allocation132_spill] sm:$0xff] %v16182_v55  ;;  %v16206_v62 = vpop.f32.mrf.mxu0 }
 0x325   : > { %v4330_v18 = vpop.f32.mrf.mxu1  ;;  %21831 = vst [vmem:[#allocation86_spill] sm:$0xff] %v16206_v62 }
 0x326   : > { %v16190_v21 = vadd.f32 %v4330_v18, %v4138_v12  ;;  %v21830_v18 = vld [vmem:[#allocation30_spill] sm:$0xff] }
 0x327   : > { %v4332_v2 = vpop.f32.mrf.mxu1  ;;  %v4150_v12 = vadd.f32 %v21830_v18, %v15901_v46 }
 0x328   : > { %21823 = vst [vmem:[#allocation134_spill] sm:$0xff] %v16190_v21  ;;  %v16194_v31 = vadd.f32 %v4332_v2, %v4140_v4  ;;  %v21833_v2 = vld [vmem:[#allocation87_spill] sm:$0xff] }
 0x329   : > { %v4334_v5 = vpop.f32.mrf.mxu1  ;;  %v4152_v40 = vadd.f32 %v21833_v2, %v15894_v54 }
 0x32a   : > { %21825 = vst [vmem:[#allocation25_spill] sm:$0xff] %v16194_v31  ;;  %v16198_v39 = vadd.f32 %v4334_v5, %v4142_v3  ;;  %v16214_v5 = vpop.f32.mrf.mxu0  ;;  %v21838_v31 = vld [vmem:[#allocation90_spill] sm:$0xff] }
 0x32b   : > { %v16200_v35 = vpop.f32.mrf.mxu1  ;;  %21835 = vst [vmem:[#allocation138_spill] sm:$0xff] %v16214_v5  ;;  %v4158_v18 = vadd.f32 %v21838_v31, %v15894_v54 }
 0x32c   : > { %21827 = vst [vmem:[#allocation136_spill] sm:$0xff] %v16198_v39  ;;  %21828 = vst [vmem:[#allocation137_spill] sm:$0xff] %v16200_v35  ;;  %v16224_v62 = vpop.f32.mrf.mxu0  ;;  %v21854_v35 = vld [vmem:[#allocation75_spill] sm:$0xff] }
 0x32d   : > { %v4340_v63 = vpop.f32.mrf.mxu1  ;;  %21840 = vst [vmem:[#allocation90_spill] sm:$0xff] %v16224_v62 }
 0x32e   : > { %v16208_v21 = vadd.f32 %v4340_v63, %v4148_v56  ;;  %v21839_v63 = vld [vmem:[#allocation37_spill] sm:$0xff] }
 0x32f   : > { %v4342_v4 = vpop.f32.mrf.mxu1  ;;  %v4160_v56 = vadd.f32 %v21839_v63, %v15901_v46  ;;  %v21847_v63 = vld [vmem:[#allocation18_spill] sm:$0xff] }
 0x330   : > { %21832 = vst [vmem:[#allocation30_spill] sm:$0xff] %v16208_v21  ;;  %v16212_v52 = vadd.f32 %v4342_v4, %v4150_v12  ;;  %v21842_v4 = vld [vmem:[#allocation92_spill] sm:$0xff]  ;;  %v4054_v62 = vadd.f32 %v21847_v63, %v15901_v46  ;;  %v4104_v63 = vadd.f32 %v21854_v35, %v15901_v46 }
 0x331   : > { %v4344_v3 = vpop.f32.mrf.mxu1  ;;  %v4162_v2 = vadd.f32 %v21842_v4, %v15894_v54  ;;  %v21849_v4 = vld [vmem:[#allocation43_spill] sm:$0xff]  ;;  %v21862_v35 = vld [vmem:[#allocation96_spill] sm:$0xff] }
 0x332   : > { %21834 = vst [vmem:[#allocation87_spill] sm:$0xff] %v16212_v52  ;;  %v16216_v39 = vadd.f32 %v4344_v3, %v4152_v40  ;;  %v21844_v40 = vld [vmem:[#allocation59_spill] sm:$0xff]  ;;  %v21846_v52 = vld [vmem:[#allocation68_spill] sm:$0xff] }
 0x333   : > { %v16218_v17 = vpop.f32.mrf.mxu1  ;;  %v4024_v3 = vadd.f32 %v21844_v40, %v15901_v46  ;;  %v16246_v40 = vpop.f32.mrf.mxu0 }
 0x334   : > { %21836 = vst [vmem:[#allocation139_spill] sm:$0xff] %v16216_v39  ;;  %21837 = vst [vmem:[#allocation140_spill] sm:$0xff] %v16218_v17  ;;  %v21845_v39 = vld [vmem:[#allocation63_spill] sm:$0xff]  ;;  %v4044_v17 = vadd.f32 %v21846_v52, %v15901_v46 }
 0x335   : > { %v4350_v59 = vpop.f32.mrf.mxu1  ;;  %v4034_v31 = vadd.f32 %v21845_v39, %v15901_v46  ;;  %21851 = vst [vmem:[#allocation59_spill] sm:$0xff] %v16246_v40  ;;  %v21853_v39 = vld [vmem:[#allocation71_spill] sm:$0xff]  ;;  %v4168_v40 = vadd.f32 %v21862_v35, %v15894_v54  ;;  %v16288_v35 = vadd.f32 %v21869_v50, %v15901_v46  ;;  %v16290_v55 = vpop.f32.mrf.mxu0 }
 0x336   : > { %v16226_v21 = vadd.f32 %v4350_v59, %v4158_v18  ;;  %v21848_v18 = vld [vmem:[#allocation22_spill] sm:$0xff]  ;;  %v4094_v52 = vadd.f32 %v21853_v39, %v15901_v46  ;;  %v21860_v39 = vld [vmem:[#allocation84_spill] sm:$0xff] }
 0x337   : > { %v4352_v12 = vpop.f32.mrf.mxu1 }
 0x338   : > { %21841 = vst [vmem:[#allocation37_spill] sm:$0xff] %v16226_v21  ;;  %v16230_v5 = vadd.f32 %v4352_v12, %v4160_v56  ;;  %v4064_v21 = vadd.f32 %v21848_v18, %v15901_v46  ;;  %v4074_v56 = vadd.f32 %v21849_v4, %v15901_v46  ;;  %v21850_v12 = vld [vmem:[#allocation45_spill] sm:$0xff]  ;;  %v4217_v18 = vadd.f32 %v15937_v26, %v4024_v3  ;;  %v21857_v4 = vld [vmem:[#allocation11_spill] sm:$0xff] }
 0x339   : > { %v4354_v59 = vpop.f32.mrf.mxu1  ;;  %v16275_v26 = vadd.f32 %v21863_v1, %v15901_v46  ;;  %v21865_v3 = vld [vmem:[#allocation93_spill] sm:$0xff] }
 0x33a   : > { %21843 = vst [vmem:[#allocation92_spill] sm:$0xff] %v16230_v5  ;;  %v4084_v5 = vadd.f32 %v21850_v12, %v15901_v46  ;;  %v16248_v53 = vadd.f32 %v4354_v59, %v4162_v2  ;;  %v16261_v12 = vadd.f32 %v21857_v4, %v15901_v46  ;;  %v21858_v2 = vld [vmem:[#allocation82_spill] sm:$0xff]  ;;  %v21867_v4 = vld [vmem:[#allocation40_spill] sm:$0xff] }
 0x33b   : > { %v16257_v61 = vpop.f32.mrf.mxu1  ;;  %v16265_v59 = vadd.f32 %v21858_v2, %v15901_v46  ;;  %21864 = vst [vmem:[#allocation43_spill] sm:$0xff] %v16275_v26  ;;  %v4170_v0 = vadd.f32 %v21867_v4, %v15901_v46  ;;  %v4227_v2 = vadd.f32 %v15957_v60, %v4034_v31  ;;  %v4237_v26 = vadd.f32 %v15992_v10, %v4044_v17  ;;  %v21872_v60 = vld [vmem:[#allocation64_spill] sm:$0xff] }
 0x33c   : > { %21852 = vst [vmem:[#allocation63_spill] sm:$0xff] %v16248_v53  ;;  %21856 = vst [vmem:[#allocation68_spill] sm:$0xff] %v16257_v61  ;;  %v16269_v53 = vadd.f32 %v21860_v39, %v15901_v46  ;;  %v16279_v61 = vadd.f32 %v21865_v3, %v15901_v46  ;;  %v21868_v39 = vld [vmem:[#allocation99_spill] sm:$0xff]  ;;  %v21871_v3 = vld [vmem:[#allocation62_spill] sm:$0xff]  ;;  %v4406_v31 = vadd.f32 %v21872_v60, %v15931_v42 }
 0x33d   : > { %21859 = vst [vmem:[#allocation18_spill] sm:$0xff] %v16265_v59  ;;  %v4360_v58 = vpop.f32.mrf.mxu1  ;;  %v21873_v59 = vld [vmem:[#allocation65_spill] sm:$0xff]  ;;  %v4247_v46 = vadd.f32 %v16023_v29, %v4054_v62  ;;  %v4257_v17 = vadd.f32 %v16043_v33, %v4064_v21  ;;  %v4267_v62 = vadd.f32 %v16069_v19, %v4074_v56  ;;  %v21882_v33 = vld [vmem:[#allocation28_spill] sm:$0xff] }
 0x33e   : > { %21861 = vst [vmem:[#allocation22_spill] sm:$0xff] %v16269_v53  ;;  %21866 = vst [vmem:[#allocation45_spill] sm:$0xff] %v16279_v61  ;;  %v4172_v53 = vadd.f32 %v21868_v39, %v15894_v54  ;;  %v16292_v1 = vadd.f32 %v4360_v58, %v4168_v40  ;;  %v4404_v61 = vadd.f32 %v21871_v3, %v15926_v8  ;;  %v21874_v39 = vld [vmem:[#allocation66_spill] sm:$0xff]  ;;  %v21876_v58 = vld [vmem:[#allocation67_spill] sm:$0xff] }
 0x33f   : > { %v4362_v4 = vpop.f32.mrf.mxu1  ;;  %v4408_v54 = vadd.f32 %v21873_v59, %v15935_v25  ;;  %v4410_v44 = vadd.f32 %v21874_v39, %v4217_v18  ;;  %v16307_v40 = vadd.f32 %v21876_v58, %v15946_v22  ;;  %v21877_v8 = vld [vmem:[#allocation69_spill] sm:$0xff]  ;;  %v21878_v3 = vld [vmem:[#allocation20_spill] sm:$0xff]  ;;  %v16325_v22 = vpop.f32.mrf.mxu0  ;;  %v16332_v21 = vadd.f32 %v21882_v33, %v15981_v11  ;;  %v21887_v11 = vld [vmem:[#allocation27_spill] sm:$0xff] }
 0x340   : > { %21870 = vst [vmem:[#allocation71_spill] sm:$0xff] %v16292_v1  ;;  %v16303_v50 = vadd.f32 %v4362_v4, %v4170_v0  ;;  %v16311_v10 = vadd.f32 %v21877_v8, %v15951_v48  ;;  %v16316_v25 = vadd.f32 %v21878_v3, %v15955_v24  ;;  %v21879_v18 = vld [vmem:[#allocation16_spill] sm:$0xff]  ;;  %v21880_v29 = vld [vmem:[#allocation13_spill] sm:$0xff]  ;;  %v16353_v56 = vadd.f32 %v21887_v11, %v16018_v47  ;;  %v21888_v8 = vld [vmem:[#allocation35_spill] sm:$0xff] }
 0x341   : > { %v4364_v42 = vpop.f32.mrf.mxu1  ;;  %v16319_v59 = vadd.f32 %v21879_v18, %v4227_v2  ;;  %v16323_v0 = vadd.f32 %v21880_v29, %v15968_v13  ;;  %v21883_v24 = vld [vmem:[#allocation21_spill] sm:$0xff]  ;;  %v21884_v60 = vld [vmem:[#allocation24_spill] sm:$0xff]  ;;  %v21885_v13 = vld [vmem:[#allocation34_spill] sm:$0xff] }
 0x342   : > { %21875 = vst [vmem:[#allocation75_spill] sm:$0xff] %v16303_v50  ;;  %v16328_v48 = vadd.f32 %v4364_v42, %v4172_v53  ;;  %v16336_v4 = vadd.f32 %v21883_v24, %v15988_v6  ;;  %v16341_v39 = vadd.f32 %v21884_v60, %v4237_v26  ;;  %v16345_v58 = vadd.f32 %v21885_v13, %v16000_v37  ;;  %v21886_v19 = vld [vmem:[#allocation29_spill] sm:$0xff]  ;;  %v21889_v26 = vld [vmem:[#allocation36_spill] sm:$0xff]  ;;  %v21890_v37 = vld [vmem:[#allocation39_spill] sm:$0xff] }
 0x343   : > { %v16338_v2 = vpop.f32.mrf.mxu1  ;;  %v16349_v53 = vadd.f32 %v21886_v19, %v16005_v51  ;;  %v4277_v6 = vadd.f32 %v16092_v27, %v4084_v5  ;;  %v16357_v42 = vadd.f32 %v21888_v8, %v4247_v46  ;;  %v16361_v3 = vadd.f32 %v21889_v26, %v16032_v36  ;;  %v21891_v33 = vld [vmem:[#allocation33_spill] sm:$0xff]  ;;  %v21893_v5 = vld [vmem:[#allocation44_spill] sm:$0xff]  ;;  %v16379_v36 = vpop.f32.mrf.mxu0 }
 0x344   : > { %21881 = vst [vmem:[#allocation79_spill] sm:$0xff] %v16328_v48  ;;  %v16365_v18 = vadd.f32 %v21890_v37, %v16037_v41  ;;  %v4287_v51 = vadd.f32 %v16110_v45, %v4094_v52  ;;  %v16370_v47 = vadd.f32 %v21891_v33, %v16041_v30  ;;  %v21892_v24 = vld [vmem:[#allocation41_spill] sm:$0xff]  ;;  %v16377_v46 = vadd.f32 %v21893_v5, %v16058_v57  ;;  %v21895_v45 = vld [vmem:[#allocation54_spill] sm:$0xff] }
 0x345   : > { %v4596_v29 = vpop.f32.mrf.mxu1  ;;  %v16373_v27 = vadd.f32 %v21892_v24, %v4257_v17  ;;  %v21894_v41 = vld [vmem:[#allocation49_spill] sm:$0xff]  ;;  %v16387_v52 = vadd.f32 %v21895_v45, %v16067_v32  ;;  %v4297_v17 = vadd.f32 %v16128_v38, %v4104_v63  ;;  %v21897_v57 = vld [vmem:[#allocation70_spill] sm:$0xff]  ;;  %v4307_v32 = vadd.f32 %v16146_v23, %v4114_v14  ;;  %v21909_v14 = vld [vmem:[#allocation3_spill] sm:$0xff] }
 0x346   : > { %v4597_v60 = vadd.f32 %v4596_v29, %v4404_v61  ;;  %v16383_v13 = vadd.f32 %v21894_v41, %v16063_v16  ;;  %v21896_v30 = vld [vmem:[#allocation53_spill] sm:$0xff]  ;;  %v16395_v8 = vadd.f32 %v21897_v57, %v16080_v9  ;;  %v21898_v61 = vld [vmem:[#allocation72_spill] sm:$0xff]  ;;  %v21901_v33 = vld [vmem:[#allocation74_spill] sm:$0xff]  ;;  %v16423_v23 = vadd.f32 %v21909_v14, %v4287_v51 }
 0x347   : > { %v16390_v19 = vadd.f32 %v21896_v30, %v4267_v62  ;;  %v4598_v11 = vpop.f32.mrf.mxu1  ;;  %v16399_v26 = vadd.f32 %v21898_v61, %v16084_v34  ;;  %v21899_v16 = vld [vmem:[#allocation73_spill] sm:$0xff]  ;;  %v16408_v38 = vadd.f32 %v21901_v33, %v4277_v6  ;;  %v21903_v9 = vld [vmem:[#allocation76_spill] sm:$0xff] }
 0x348   : > { %v16403_v37 = vadd.f32 %v21899_v16, %v16088_v28  ;;  %v4790_v62 = vadd.f32 %v16106_v7, %v4597_v60  ;;  %v4599_v29 = vadd.f32 %v4598_v11, %v4406_v31  ;;  %v16412_v24 = vadd.f32 %v21903_v9, %v16100_v15  ;;  %v21905_v34 = vld [vmem:[#allocation77_spill] sm:$0xff]  ;;  %v21907_v28 = vld [vmem:[#allocation78_spill] sm:$0xff]  ;;  %21910 = vst [vmem:[#allocation93_spill] sm:$0xff] %v16423_v23  ;;  %v16425_v7 = vpop.f32.mrf.mxu0  ;;  %v21912_v45 = vld [vmem:[#allocation80_spill] sm:$0xff] }
 0x349   : > { %21902 = vst [vmem:[#allocation82_spill] sm:$0xff] %v16408_v38  ;;  %v4600_v63 = vpop.f32.mrf.mxu1  ;;  %v16416_v5 = vadd.f32 %v21905_v34, %v16104_v43  ;;  %v16420_v41 = vadd.f32 %v21907_v28, %v16108_v49  ;;  %v4317_v31 = vadd.f32 %v16164_v20, %v16261_v12  ;;  %v21911_v15 = vld [vmem:[#allocation113_spill] sm:$0xff]  ;;  %v21914_v43 = vld [vmem:[#allocation18_spill] sm:$0xff]  ;;  %v21915_v11 = vld [vmem:[#allocation132_spill] sm:$0xff] }
 0x34a   : > { %21900 = vst [vmem:[#allocation11_spill] sm:$0xff] %v16403_v37  ;;  %21904 = vst [vmem:[#allocation84_spill] sm:$0xff] %v16412_v24  ;;  %v4948_v6 = vmax.f32 %v4790_v62, 0.0  ;;  %v4601_v60 = vadd.f32 %v4600_v63, %v4408_v54  ;;  %v16431_v30 = vadd.f32 %v21912_v45, %v21911_v15  ;;  %v4327_v57 = vadd.f32 %v21915_v11, %v21914_v43  ;;  %v21916_v49 = vld [vmem:[#allocation114_spill] sm:$0xff]  ;;  %v21919_v51 = vld [vmem:[#allocation116_spill] sm:$0xff] }
 0x34b   : > { %21906 = vst [vmem:[#allocation96_spill] sm:$0xff] %v16416_v5  ;;  %21908 = vst [vmem:[#allocation88_spill] sm:$0xff] %v16420_v41  ;;  %v4602_v61 = vpop.f32.mrf.mxu1  ;;  %v21917_v16 = vld [vmem:[#allocation6_spill] sm:$0xff]  ;;  %v21920_v9 = vld [vmem:[#allocation8_spill] sm:$0xff] }
 0x34c   : > { %21913 = vst [vmem:[#allocation40_spill] sm:$0xff] %v16431_v30  ;;  %v16437_v33 = vadd.f32 %v21917_v16, %v21916_v49  ;;  %v16441_v34 = vadd.f32 %v21920_v9, %v21919_v51  ;;  %v21922_v28 = vld [vmem:[#allocation10_spill] sm:$0xff]  ;;  %v12005_v12 = vpack.c.bf16 %v4948_v6, %v4948_v6  ;;  %v21924_v54 = vld [vmem:[#allocation112_spill] sm:$0xff]  ;;  %v21925_v63 = vld [vmem:[#allocation115_spill] sm:$0xff]  ;;  %v4603_v15 = vadd.f32 %v4602_v61, %v4410_v44 }
 0x34d   : > { %v16444_v20 = vadd.f32 %v21922_v28, %v4297_v17  ;;  %v4792_v62 = vadd.f32 %v21924_v54, %v4599_v29  ;;  %v4794_v14 = vadd.f32 %v21925_v63, %v4601_v60  ;;  %v4606_v45 = vpop.f32.mrf.mxu1  ;;  %v21926_v43 = vld [vmem:[#allocation118_spill] sm:$0xff]  ;;  %v21927_v11 = vld [vmem:[#allocation81_spill] sm:$0xff]  ;;  %v21929_v49 = vld [vmem:[#allocation119_spill] sm:$0xff]  ;;  %v16463_v29 = vpop.f32.mrf.mxu0 }
 0x34e   : > { %21918 = vst [vmem:[#allocation99_spill] sm:$0xff] %v16437_v33  ;;  %21921 = vst [vmem:[#allocation101_spill] sm:$0xff] %v16441_v34  ;;  %v16450_v48 = vadd.f32 %v21927_v11, %v21926_v43  ;;  %v21930_v16 = vld [vmem:[#allocation7_spill] sm:$0xff]  ;;  %v21932_v51 = vld [vmem:[#allocation121_spill] sm:$0xff]  ;;  %v5208_v54 = vshll.u32 %v12005_v12, 16 }
 0x34f   : > { %21923 = vst [vmem:[#allocation62_spill] sm:$0xff] %v16444_v20  ;;  %v16454_v50 = vadd.f32 %v21930_v16, %v21929_v49  ;;  %v21933_v9 = vld [vmem:[#allocation15_spill] sm:$0xff]  ;;  %v21935_v17 = vld [vmem:[#allocation17_spill] sm:$0xff]  ;;  %v21937_v60 = vld [vmem:[#allocation22_spill] sm:$0xff]  ;;  %v4950_v63 = vmax.f32 %v4794_v14, 0.0  ;;  %v4949_v14 = vmax.f32 %v4792_v62, 0.0 }
 0x350   : > { %21928 = vst [vmem:[#allocation64_spill] sm:$0xff] %v16450_v48  ;;  %v16458_v1 = vadd.f32 %v21933_v9, %v21932_v51  ;;  %v16461_v28 = vadd.f32 %v21935_v17, %v4307_v32  ;;  %v21938_v44 = vld [vmem:[#allocation137_spill] sm:$0xff]  ;;  %v21939_v43 = vld [vmem:[#allocation123_spill] sm:$0xff]  ;;  %v4607_v51 = vadd.f32 %v4606_v45, %v16307_v40  ;;  %v4608_v9 = vpop.f32.mrf.mxu1  ;;  %v21952_v45 = vld [vmem:[#allocation120_spill] sm:$0xff] }
 0x351   : > { %21931 = vst [vmem:[#allocation65_spill] sm:$0xff] %v16454_v50  ;;  %v16467_v61 = vadd.f32 %v21938_v44, %v21937_v60  ;;  %v21940_v11 = vld [vmem:[#allocation83_spill] sm:$0xff]  ;;  %v21942_v49 = vld [vmem:[#allocation117_spill] sm:$0xff]  ;;  %v5205_v60 = vshrl.u32 %v12005_v12, 16  ;;  %v5780_v44 = vrot.slane %v5208_v54, 1  ;;  %v21957_v62 = vld [vmem:[#allocation128_spill] sm:$0xff] }
 0x352   : > { %21934 = vst [vmem:[#allocation66_spill] sm:$0xff] %v16458_v1  ;;  %21936 = vst [vmem:[#allocation67_spill] sm:$0xff] %v16461_v28  ;;  %v16471_v48 = vadd.f32 %v21940_v11, %v21939_v43  ;;  %v4796_v16 = vadd.f32 %v21942_v49, %v4603_v15  ;;  %v21943_v1 = vld [vmem:[#allocation124_spill] sm:$0xff]  ;;  %v21944_v32 = vld [vmem:[#allocation23_spill] sm:$0xff]  ;;  %v16486_v43 = vpack.c.bf16 %v4950_v63, %v4948_v6  ;;  %v4610_v49 = vpop.f32.mrf.mxu1 }
 0x353   : > { %v16477_v17 = vadd.f32 %v21944_v32, %v21943_v1  ;;  %v21946_v28 = vld [vmem:[#allocation126_spill] sm:$0xff]  ;;  %v21947_v50 = vld [vmem:[#allocation85_spill] sm:$0xff]  ;;  %v21949_v34 = vld [vmem:[#allocation31_spill] sm:$0xff]  ;;  %v16488_v15 = vpack.c.bf16 %v4950_v63, %v4950_v63  ;;  %v4800_v11 = vadd.f32 %v21952_v45, %v4607_v51  ;;  %v16491_v1 = vpop.f32.mrf.mxu0  ;;  %v16497_v12 = vor.u32 %v5780_v44, %v5205_v60 }
 0x354   : > { %21941 = vst [vmem:[#allocation69_spill] sm:$0xff] %v16471_v48  ;;  %v16481_v20 = vadd.f32 %v21947_v50, %v21946_v28  ;;  %v16484_v33 = vadd.f32 %v21949_v34, %v4317_v31  ;;  %21951 = vst [vmem:[#allocation28_spill] sm:$0xff] %v16486_v43  ;;  %v4951_v40 = vmax.f32 %v4796_v16, 0.0  ;;  %v21953_v32 = vld [vmem:[#allocation43_spill] sm:$0xff]  ;;  %v21958_v28 = vld [vmem:[#allocation89_spill] sm:$0xff]  ;;  %v4609_v45 = vadd.f32 %v4608_v9, %v16311_v10 }
 0x355   : > { %21945 = vst [vmem:[#allocation20_spill] sm:$0xff] %v16477_v17  ;;  %v21954_v17 = vld [vmem:[#allocation140_spill] sm:$0xff]  ;;  %21956 = vst [vmem:[#allocation24_spill] sm:$0xff] %v16497_v12  ;;  %v16501_v31 = vadd.f32 %v21958_v28, %v21957_v62  ;;  %v21960_v6 = vld [vmem:[#allocation129_spill] sm:$0xff]  ;;  %v16512_v44 = vpack.c.bf16 %v4949_v14, %v4949_v14  ;;  %v4952_v12 = vmax.f32 %v4800_v11, 0.0 }
 0x356   : > { %21948 = vst [vmem:[#allocation16_spill] sm:$0xff] %v16481_v20  ;;  %21950 = vst [vmem:[#allocation13_spill] sm:$0xff] %v16484_v33  ;;  %v16495_v50 = vadd.f32 %v21954_v17, %v21953_v32  ;;  %v21961_v34 = vld [vmem:[#allocation91_spill] sm:$0xff]  ;;  %v16508_v51 = vpack.c.bf16 %v4951_v40, %v4949_v14  ;;  %v4611_v33 = vadd.f32 %v4610_v49, %v16316_v25  ;;  %v4612_v17 = vpop.f32.mrf.mxu1  ;;  %v5207_v32 = vrot.slane %v5205_v60, 7  ;;  %v21972_v25 = vld [vmem:[#allocation98_spill] sm:$0xff]  ;;  %v16528_v60 = vpop.f32.mrf.mxu0 }
 0x357   : > { %21959 = vst [vmem:[#allocation34_spill] sm:$0xff] %v16501_v31  ;;  %v16505_v63 = vadd.f32 %v21961_v34, %v21960_v6  ;;  %21964 = vst [vmem:[#allocation35_spill] sm:$0xff] %v16512_v44  ;;  %v21965_v20 = vld [vmem:[#allocation131_spill] sm:$0xff]  ;;  %v21968_v31 = vld [vmem:[#allocation45_spill] sm:$0xff]  ;;  %v16526_v49 = vadd.f32 %v21972_v25, %v4327_v57  ;;  %v16530_v14 = vpack.c.bf16 %v4952_v12, %v4952_v12  ;;  %v22011_v41 = vshll.u32 %v16512_v44, 16 }
 0x358   : > { %21955 = vst [vmem:[#allocation21_spill] sm:$0xff] %v16495_v50  ;;  %21963 = vst [vmem:[#allocation27_spill] sm:$0xff] %v16508_v51  ;;  %v21966_v62 = vld [vmem:[#allocation95_spill] sm:$0xff]  ;;  %v21969_v6 = vld [vmem:[#allocation68_spill] sm:$0xff]  ;;  %v4616_v9 = vpop.f32.mrf.mxu1  ;;  %v4613_v5 = vadd.f32 %v4612_v17, %v16319_v59 }
 0x359   : > { %21962 = vst [vmem:[#allocation29_spill] sm:$0xff] %v16505_v63  ;;  %v16516_v28 = vadd.f32 %v21966_v62, %v21965_v20  ;;  %v16520_v34 = vadd.f32 %v21969_v6, %v21968_v31  ;;  %v21971_v63 = vshll.u32 %v16488_v15, 16  ;;  %21973 = vst [vmem:[#allocation33_spill] sm:$0xff] %v16526_v49  ;;  %v21974_v11 = vld [vmem:[#allocation134_spill] sm:$0xff]  ;;  %v21975_v20 = vld [vmem:[#allocation100_spill] sm:$0xff] }
 0x35a   : > { %v16534_v62 = vadd.f32 %v21975_v20, %v21974_v11  ;;  %v21978_v31 = vld [vmem:[#allocation46_spill] sm:$0xff]  ;;  %v21980_v16 = vld [vmem:[#allocation136_spill] sm:$0xff]  ;;  %v21986_v30 = vld [vmem:[#allocation125_spill] sm:$0xff]  ;;  %v4618_v11 = vpop.f32.mrf.mxu1  ;;  %v5210_v20 = vor.u32 %v5208_v54, %v5207_v32 }
 0x35b   : > { %21967 = vst [vmem:[#allocation36_spill] sm:$0xff] %v16516_v28  ;;  %21970 = vst [vmem:[#allocation39_spill] sm:$0xff] %v16520_v34  ;;  %v5784_v10 = vrot.slane %v21971_v63, 1  ;;  %v21977_v28 = vld [vmem:[#allocation25_spill] sm:$0xff]  ;;  %v21981_v34 = vld [vmem:[#allocation47_spill] sm:$0xff]  ;;  %v21983_v63 = vshrl.u32 %v16488_v15, 16  ;;  %v4804_v23 = vadd.f32 %v21986_v30, %v4611_v33  ;;  %v16562_v33 = vpop.f32.mrf.mxu0 }
 0x35c   : > { %21976 = vst [vmem:[#allocation41_spill] sm:$0xff] %v16534_v62  ;;  %v16538_v6 = vadd.f32 %v21978_v31, %v21977_v28  ;;  %v16542_v48 = vadd.f32 %v21981_v34, %v21980_v16  ;;  %v21985_v25 = vld [vmem:[#allocation122_spill] sm:$0xff]  ;;  %v21195_v28 = vshll.u32 %v16530_v14, 16  ;;  %v4617_v31 = vadd.f32 %v4616_v9, %v16323_v0  ;;  %v4620_v30 = vpop.f32.mrf.mxu1  ;;  %v12657_v59 = vld [vmem:[%s21097_s5 + $0x370] ss:$8 sps:$4 sm:$0xff]   ;;  %v22012_v38 = vld [vmem:[#allocation139_spill] sm:$0xff] }
 0x35d   : > { %v16546_v57 = vor.u32 %v5784_v10, %v21983_v63  ;;  %v4802_v49 = vadd.f32 %v21985_v25, %v4609_v45  ;;  %v21987_v16 = vmov 0   ;;  %v21988_v10 = vld [vmem:[#allocation127_spill] sm:$0xff]  ;;  %v21989_v17 = vld [vmem:[#allocation130_spill] sm:$0xff] }
 0x35e   : > { %21979 = vst [vmem:[#allocation44_spill] sm:$0xff] %v16538_v6  ;;  %21982 = vst [vmem:[#allocation49_spill] sm:$0xff] %v16542_v48  ;;  %v11513_v34 = vcombine.low %v21987_v16, %v16486_v43  ;;  %v4954_v48 = vmax.f32 %v4804_v23, 0.0  ;;  %v4806_v63 = vadd.f32 %v21988_v10, %v4613_v5  ;;  %v11514_v45 = vcombine.low %v21987_v16, %v16508_v51  ;;  %v12665_v5 = vld [vmem:[%s21097_s5 + $0x364] ss:$8 sps:$4 sm:$0xff]   ;;  %v4622_v54 = vpop.f32.mrf.mxu1 }
 0x35f   : > { %21984 = vst [vmem:[#allocation54_spill] sm:$0xff] %v16546_v57  ;;  %v5788_v0 = vrot.slane %v21195_v28, 1  ;;  %v4810_v32 = vadd.f32 %v21989_v17, %v4617_v31  ;;  %v4619_v23 = vadd.f32 %v4618_v11, %v16332_v21  ;;  %v4953_v9 = vmax.f32 %v4802_v49, 0.0  ;;  %v22013_v24 = vld [vmem:[#allocation102_spill] sm:$0xff] }
 0x360   : > { %v16572_v25 = vpack.c.bf16 %v4954_v48, %v4952_v12  ;;  %v16574_v10 = vpack.c.bf16 %v4954_v48, %v4954_v48  ;;  %v16576_v62 = vmax.f32 %v4806_v63, 0.0  ;;  %8626 = vmatprep.mubr.bf16.mxu0 %v11514_v45  ;;  %v16580_v28 = vadd.f32 %v16338_v2, %v16288_v35  ;;  %v21994_v12 = vld [vmem:[#allocation50_spill] sm:$0xff]  ;;  %v4626_v17 = vpop.f32.mrf.mxu1 }
 0x361   : > { %v21992_v21 = vshrl.u32 %v16530_v14, 16  ;;  %8627 = vmatmul.mubr.bf16.vlgmr.msra.gmra.mxu0 %v11513_v34  ;;  %v16589_v49 = vadd.f32 %v21994_v12, %v16467_v61  ;;  %v16593_v63 = vsel %vm13683_vm5, 0, %v5210_v20  ;;  %v16595_v45 = vpack.c.bf16 %v4951_v40, %v4951_v40  ;;  %v12663_v34 = vld [vmem:[%s21097_s5 + $0x360] ss:$8 sps:$4 sm:$0xff]  }
 0x362   : > { %21990 = vst [vmem:[#allocation53_spill] sm:$0xff] %v16572_v25  ;;  %21991 = vst [vmem:[#allocation70_spill] sm:$0xff] %v16580_v28  ;;  %v16599_v2 = vpack.c.bf16 %v16576_v62, %v4953_v9  ;;  %8981 = vmatpush1.bf16.msra.mxu0 %v12657_v59  ;;  %v4956_v61 = vmax.f32 %v4810_v32, 0.0  ;;  %v4621_v20 = vadd.f32 %v4620_v30, %v16336_v4  ;;  %v22002_v40 = vshrl.u32 %v16512_v44, 16  ;;  %v12671_v59 = vld [vmem:[%s21097_s5 + $0x354] ss:$8 sps:$4 sm:$0xff]   ;;  %v16616_v28 = vpop.f32.mrf.mxu1 }
 0x363   : > { %v16585_v11 = vor.u32 %v5788_v0, %v21992_v21  ;;  %21995 = vst [vmem:[#allocation73_spill] sm:$0xff] %v16589_v49  ;;  %21997 = vst [vmem:[#allocation74_spill] sm:$0xff] %v16593_v63  ;;  %v16604_v0 = vpop.f32.mrf.mxu0  ;;  %v22001_v21 = vld [vmem:[#allocation133_spill] sm:$0xff]  ;;  %8982 = vmatprep.subr.bf16.mxu0 %v12665_v5  ;;  %v22004_v32 = vld [vmem:[#allocation30_spill] sm:$0xff]  ;;  %v11481_v50 = vcombine.low %v21987_v16, %v16593_v63 }
 0x364   : > { %21998 = vst [vmem:[#allocation76_spill] sm:$0xff] %v16595_v45  ;;  %21999 = vst [vmem:[#allocation77_spill] sm:$0xff] %v16599_v2  ;;  %v4812_v12 = vadd.f32 %v22001_v21, %v4619_v23  ;;  %v5214_v31 = vrot.slane %v22002_v40, 7  ;;  %v22005_v49 = vld [vmem:[#allocation51_spill] sm:$0xff]  ;;  %v16626_v5 = vpack.c.bf16 %v4956_v61, %v4956_v61 }
 0x365   : > { %21993 = vst [vmem:[#allocation72_spill] sm:$0xff] %v16585_v11  ;;  %22000 = vst [vmem:[#allocation78_spill] sm:$0xff] %v16604_v0  ;;  %v22003_v11 = vshll.u32 %v16574_v10, 16  ;;  %v16620_v23 = vadd.f32 %v22005_v49, %v22004_v32  ;;  %v22007_v4 = vld [vmem:[#allocation87_spill] sm:$0xff]  ;;  %v22015_v49 = vshrl.u32 %v16574_v10, 16 }
 0x366   : > { %v22008_v30 = vld [vmem:[#allocation55_spill] sm:$0xff]  ;;  %v5217_v35 = vor.u32 %v22011_v41, %v5214_v31  ;;  %8983 = vmatpush1.bf16.msra.mxu0 %v12663_v34  ;;  %v12669_v41 = vld [vmem:[%s21097_s5 + $0x350] ss:$8 sps:$4 sm:$0xff]   ;;  %v16646_v31 = vpop.f32.mrf.mxu0 }
 0x367   : > { %v5792_v57 = vrot.slane %v22003_v11, 1  ;;  %22006 = vst [vmem:[#allocation3_spill] sm:$0xff] %v16620_v23  ;;  %v16624_v21 = vadd.f32 %v22008_v30, %v22007_v4  ;;  %v22010_v40 = vld [vmem:[#allocation135_spill] sm:$0xff]  ;;  %v16633_v11 = vadd.f32 %v22013_v24, %v22012_v38  ;;  %v4623_v4 = vadd.f32 %v4622_v54, %v16341_v39  ;;  %22017 = vst [vmem:[#allocation132_spill] sm:$0xff] %v16646_v31 }
 0x368   : > { %v4814_v6 = vadd.f32 %v22010_v40, %v4621_v20  ;;  %v4627_v30 = vadd.f32 %v4626_v17, %v16345_v58  ;;  %v22018_v38 = vshrl.u32 %v16488_v15, 16  ;;  %v4957_v40 = vmax.f32 %v4812_v12, 0.0  ;;  %8984 = vmatprep.subr.bf16.mxu0 %v12671_v59  ;;  %v12677_v39 = vld [vmem:[%s21097_s5 + $0x344] ss:$8 sps:$4 sm:$0xff]   ;;  %v16689_v12 = vpop.f32.mrf.mxu0 }
 0x369   : > { %22009 = vst [vmem:[#allocation113_spill] sm:$0xff] %v16624_v21  ;;  %22014 = vst [vmem:[#allocation80_spill] sm:$0xff] %v16633_v11  ;;  %v16639_v32 = vor.u32 %v5792_v57, %v22015_v49  ;;  %v4630_v21 = vpop.f32.mrf.mxu1  ;;  %v21198_v57 = vshll.u32 %v16626_v5, 16  ;;  %v16657_v54 = vsel %vm13683_vm5, 0, %v5217_v35  ;;  %v22020_v17 = vld [vmem:[#allocation86_spill] sm:$0xff]  ;;  %v16663_v20 = vpack.c.bf16 %v4953_v9, %v4953_v9 }
 0x36a   : > { %v5221_v24 = vrot.slane %v22018_v38, 7  ;;  %v4958_v58 = vmax.f32 %v4814_v6, 0.0  ;;  %22019 = vst [vmem:[#allocation114_spill] sm:$0xff] %v16657_v54  ;;  %v4816_v34 = vadd.f32 %v22020_v17, %v4623_v4  ;;  %v22021_v49 = vld [vmem:[#allocation138_spill] sm:$0xff]  ;;  %v11482_v6 = vcombine.low %v21987_v16, %v16657_v54  ;;  %v12654_v35 = vld [vmem:[%s21097_s5 + $0x270] ss:$8 sps:$4 sm:$0xff]   ;;  %8985 = vmatpush1.bf16.msra.mxu0 %v12669_v41 }
 0x36b   : > { %22016 = vst [vmem:[#allocation18_spill] sm:$0xff] %v16639_v32  ;;  %v4820_v32 = vadd.f32 %v22021_v49, %v4627_v30  ;;  %v16661_v38 = vpop.f32.mrf.mxu1  ;;  %v5796_v59 = vrot.slane %v21198_v57, 1  ;;  %v12662_v17 = vld [vmem:[%s21097_s5 + $0x264] ss:$8 sps:$4 sm:$0xff]   ;;  %v12675_v57 = vld [vmem:[%s21097_s5 + $0x340] ss:$8 sps:$4 sm:$0xff]   ;;  %8986 = vmatprep.subr.bf16.mxu0 %v12677_v39 }
 0x36c   : > { %v16673_v44 = vpack.c.bf16 %v4958_v58, %v4956_v61  ;;  %v16675_v4 = vpack.c.bf16 %v4958_v58, %v4958_v58  ;;  %v16677_v30 = vmax.f32 %v4816_v34, 0.0  ;;  %22023 = vst [vmem:[#allocation116_spill] sm:$0xff] %v16689_v12  ;;  %v22024_v61 = vshll.u32 %v16488_v15, 16  ;;  %8433 = vmatprep.mubr.bf16.mxu1 %v11482_v6  ;;  %v12683_v41 = vld [vmem:[%s21097_s5 + $0x334] ss:$8 sps:$4 sm:$0xff]  }
 0x36d   : > { %v16679_v9 = vmax.f32 %v4820_v32, 0.0  ;;  %v16684_v49 = vpop.f32.mrf.mxu1  ;;  %v22025_v32 = vshrl.u32 %v16530_v14, 16  ;;  %v22026_v11 = vshrl.u32 %v16626_v5, 16  ;;  %v16705_v12 = vpack.c.bf16 %v16576_v62, %v16576_v62  ;;  %8434 = vmatmul.mubr.bf16.vlgmr.msra.gmra.mxu1 %v11481_v50  ;;  %v12660_v50 = vld [vmem:[%s21097_s5 + $0x260] ss:$8 sps:$4 sm:$0xff]  }
 0x36e   : > { %22022 = vst [vmem:[#allocation6_spill] sm:$0xff] %v16673_v44  ;;  %v5224_v58 = vor.u32 %v22024_v61, %v5221_v24  ;;  %v16707_v15 = vpack.c.bf16 %v4957_v40, %v4957_v40  ;;  %v21201_v24 = vshll.u32 %v16675_v4, 16  ;;  %v16711_v61 = vpack.c.bf16 %v16677_v30, %v4957_v40  ;;  %8788 = vmatpush1.bf16.msra.mxu1 %v12654_v35  ;;  %v12668_v40 = vld [vmem:[%s21097_s5 + $0x254] ss:$8 sps:$4 sm:$0xff]  }
 0x36f   : > { %v5235_v54 = vrot.slane %v22025_v32, 7  ;;  %v16698_v23 = vor.u32 %v5796_v59, %v22026_v11  ;;  %22028 = vst [vmem:[#allocation10_spill] sm:$0xff] %v16705_v12  ;;  %v16713_v11 = vpop.f32.mrf.mxu1  ;;  %v16717_v39 = vpack.c.bf16 %v16679_v9, %v16679_v9  ;;  %v5079_v59 = vunpack.c.h.b16 %v16508_v51  ;;  %8789 = vmatprep.subr.bf16.mxu1 %v12662_v17  ;;  %8987 = vmatpush1.bf16.msra.mxu0 %v12675_v57 }
 0x370   : > { %22029 = vst [vmem:[#allocation112_spill] sm:$0xff] %v16707_v15  ;;  %22030 = vst [vmem:[#allocation115_spill] sm:$0xff] %v16711_v61  ;;  %v5081_v62 = vunpack.c.l.b16 %v16599_v2  ;;  %v4631_v6 = vadd.f32 %v4630_v21, %v16353_v56  ;;  %v5800_v34 = vrot.slane %v21201_v24, 1  ;;  %v4629_v51 = vadd.f32 %v16616_v28, %v16349_v53  ;;  %v12681_v21 = vld [vmem:[%s21097_s5 + $0x330] ss:$8 sps:$4 sm:$0xff]   ;;  %8988 = vmatprep.subr.bf16.mxu0 %v12683_v41 }
 0x371   : > { %22027 = vst [vmem:[#allocation8_spill] sm:$0xff] %v16698_v23  ;;  %v16734_v56 = vpop.f32.mrf.mxu1  ;;  %v16739_v23 = vpop.f32.mrf.mxu0  ;;  %v22032_v35 = vshll.u32 %v16530_v14, 16  ;;  %v12689_v53 = vld [vmem:[%s21097_s5 + $0x324] ss:$8 sps:$4 sm:$0xff]   ;;  %v22034_v28 = vshrl.u32 %v16574_v10, 16  ;;  %v22035_v17 = vshrl.u32 %v16675_v4, 16 }
 0x372   : > { %22031 = vst [vmem:[#allocation118_spill] sm:$0xff] %v16739_v23  ;;  %v16745_v31 = vpack.c.b16 %v5081_v62, %v5079_v59  ;;  %v22037_v14 = vld [vmem:[#allocation59_spill] sm:$0xff]  ;;  %8790 = vmatpush1.bf16.msra.mxu1 %v12660_v50  ;;  %v22042_v62 = vshrl.u32 %v16663_v20, 16 }
 0x373   : > { %v5238_v37 = vor.u32 %v22032_v35, %v5235_v54  ;;  %v16752_v57 = vrot.slane %v22034_v28, 7  ;;  %v16756_v23 = vor.u32 %v5800_v34, %v22035_v17  ;;  %v4824_v54 = vadd.f32 %v22037_v14, %v4631_v6  ;;  %v16761_v59 = vpop.f32.mrf.mxu1  ;;  %v12666_v34 = vld [vmem:[%s21097_s5 + $0x250] ss:$8 sps:$4 sm:$0xff]   ;;  %v22040_v6 = vld [vmem:[#allocation90_spill] sm:$0xff]  ;;  %8791 = vmatprep.subr.bf16.mxu1 %v12668_v40  ;;  %8989 = vmatpush1.bf16.msra.mxu0 %v12681_v21 }
 0x374   : > { %22033 = vst [vmem:[#allocation81_spill] sm:$0xff] %v16745_v31  ;;  %v22038_v35 = vshrl.u32 %v16595_v45, 16  ;;  %v22039_v28 = vshll.u32 %v16717_v39, 16  ;;  %8636 = vmatprep.mubr.bf16.mxu0 %v16745_v31  ;;  %v4822_v17 = vadd.f32 %v22040_v6, %v4629_v51  ;;  %v12674_v50 = vld [vmem:[%s21097_s5 + $0x244] ss:$8 sps:$4 sm:$0xff]   ;;  %v16785_v51 = vpop.f32.mrf.mxu0  ;;  %v5080_v40 = vunpack.c.l.b16 %v16572_v25  ;;  %8990 = vmatprep.subr.bf16.mxu0 %v12689_v53 }
 0x375   : > { %22036 = vst [vmem:[#allocation119_spill] sm:$0xff] %v16756_v23  ;;  %v4962_v14 = vmax.f32 %v4824_v54, 0.0  ;;  %v5242_v23 = vrot.slane %v22042_v62, 7  ;;  %v16777_v24 = vpop.f32.mrf.mxu1  ;;  %v22043_v54 = vshrl.u32 %v16717_v39, 16  ;;  %v5078_v62 = vunpack.c.h.b16 %v16486_v43 }
 0x376   : > { %v5228_v32 = vrot.slane %v22038_v35, 7  ;;  %v5804_v0 = vrot.slane %v22039_v28, 1  ;;  %v22041_v35 = vshll.u32 %v16595_v45, 16  ;;  %v12687_v28 = vld [vmem:[%s21097_s5 + $0x320] ss:$8 sps:$4 sm:$0xff]   ;;  %v16795_v6 = vsel %vm13683_vm5, 0, %v5224_v58  ;;  %8792 = vmatpush1.bf16.msra.mxu1 %v12666_v34 }
 0x377   : > { %22045 = vst [vmem:[#allocation121_spill] sm:$0xff] %v16795_v6  ;;  %v22046_v21 = vshrl.u32 %v16626_v5, 16  ;;  %v16802_v31 = vpack.c.bf16 %v4962_v14, %v16679_v9  ;;  %v16804_v45 = vpack.c.bf16 %v4962_v14, %v4962_v14  ;;  %v16808_v43 = vpop.f32.mrf.mxu1  ;;  %v12695_v58 = vld [vmem:[%s21097_s5 + $0x314] ss:$8 sps:$4 sm:$0xff]   ;;  %v16817_v53 = vsel %vm13683_vm5, 0, %v5238_v37  ;;  %8793 = vmatprep.subr.bf16.mxu1 %v12674_v50  ;;  %8991 = vmatpush1.bf16.msra.mxu0 %v12687_v28 }
 0x378   : > { %v5231_v41 = vor.u32 %v22041_v35, %v5228_v32  ;;  %v16789_v32 = vor.u32 %v5804_v0, %v22043_v54  ;;  %v22049_v0 = vshll.u32 %v16663_v20, 16  ;;  %22051 = vst [vmem:[#allocation137_spill] sm:$0xff] %v16817_v53  ;;  %v4633_v14 = vadd.f32 %v16661_v38, %v16357_v42  ;;  %v12680_v42 = vld [vmem:[%s21097_s5 + $0x234] ss:$8 sps:$4 sm:$0xff]   ;;  %v16842_v38 = vpop.f32.mrf.mxu0  ;;  %8992 = vmatprep.subr.bf16.mxu0 %v12695_v58  ;;  %v12678_v58 = vld [vmem:[%s21097_s5 + $0x230] ss:$8 sps:$4 sm:$0xff]  }
 0x379   : > { %v16799_v35 = vrot.slane %v22046_v21, 7  ;;  %22047 = vst [vmem:[#allocation15_spill] sm:$0xff] %v16802_v31  ;;  %22048 = vst [vmem:[#allocation17_spill] sm:$0xff] %v16804_v45  ;;  %v16826_v21 = vmax.f32 %v4822_v17, 0.0  ;;  %v4637_v50 = vadd.f32 %v16684_v49, %v16361_v3  ;;  %v16860_v9 = vcombine.low %v16795_v6, %v16817_v53 }
 0x37a   : > { %22044 = vst [vmem:[#allocation7_spill] sm:$0xff] %v16789_v32  ;;  %v5245_v54 = vor.u32 %v22049_v0, %v5242_v23  ;;  %v16813_v32 = vpack.c.b16 %v5080_v40, %v5078_v62  ;;  %v12672_v23 = vld [vmem:[%s21097_s5 + $0x240] ss:$8 sps:$4 sm:$0xff]   ;;  %v21208_v62 = vshll.u32 %v16804_v45, 16  ;;  %v16831_v40 = vsel %vm13683_vm5, 0, %v5231_v41  ;;  %v16837_v0 = vpop.f32.mrf.mxu1 }
 0x37b   : > { %v4826_v17 = vadd.f32 %v16290_v55, %v4633_v14  ;;  %22054 = vst [vmem:[#allocation117_spill] sm:$0xff] %v16860_v9  ;;  %v5083_v34 = vunpack.c.h.b16 %v16599_v2  ;;  %v12701_v55 = vld [vmem:[%s21097_s5 + $0x304] ss:$8 sps:$4 sm:$0xff]   ;;  %v4830_v49 = vadd.f32 %v16325_v22, %v4637_v50  ;;  %v4639_v14 = vadd.f32 %v16713_v11, %v16365_v18  ;;  %8794 = vmatpush1.bf16.msra.mxu1 %v12672_v23 }
 0x37c   : > { %22050 = vst [vmem:[#allocation22_spill] sm:$0xff] %v16813_v32  ;;  %v16835_v37 = vsel %vm13683_vm5, 0, %v5245_v54  ;;  %8637 = vmatmul.mubr.bf16.gmra.mxu0 %v16813_v32  ;;  %v12693_v54 = vld [vmem:[%s21097_s5 + $0x310] ss:$8 sps:$4 sm:$0xff]   ;;  %v5808_v28 = vrot.slane %v21208_v62, 1  ;;  %v5085_v32 = vunpack.c.l.b16 %v16711_v61  ;;  %v16864_v63 = vpop.f32.mrf.mxu1  ;;  %v4641_v62 = vadd.f32 %v16734_v56, %v16370_v47  ;;  %8795 = vmatprep.subr.bf16.mxu1 %v12680_v42  ;;  %v16895_v56 = vpop.f32.mrf.mxu0 }
 0x37d   : > { %22052 = vst [vmem:[#allocation123_spill] sm:$0xff] %v16835_v37  ;;  %v16847_v41 = vcombine.low %v16831_v40, %v16835_v37  ;;  %v16870_v3 = vmax.f32 %v4826_v17, 0.0  ;;  %v21213_v2 = vshll.u32 %v16705_v12, 16  ;;  %v22055_v53 = vshrl.u32 %v16804_v45, 16  ;;  %v12686_v47 = vld [vmem:[%s21097_s5 + $0x224] ss:$8 sps:$4 sm:$0xff]   ;;  %8993 = vmatpush1.bf16.msra.mxu0 %v12693_v54 }
 0x37e   : > { %v16886_v22 = vpack.c.b16 %v5085_v32, %v5083_v34  ;;  %v22058_v18 = vshrl.u32 %v16705_v12, 16  ;;  %v16890_v17 = vpop.f32.mrf.mxu1  ;;  %v16902_v32 = vpack.c.bf16 %v16677_v30, %v16677_v30  ;;  %v4964_v50 = vmax.f32 %v4830_v49, 0.0  ;;  %v12699_v42 = vld [vmem:[%s21097_s5 + $0x300] ss:$8 sps:$4 sm:$0xff]   ;;  %8994 = vmatprep.subr.bf16.mxu0 %v12701_v55  ;;  %v12707_v54 = vld [vmem:[%s21097_s5 + $0x3f4] ss:$8 sps:$4 sm:$0xff]  }
 0x37f   : > { %22053 = vst [vmem:[#allocation83_spill] sm:$0xff] %v16847_v41  ;;  %8443 = vmatprep.mubr.bf16.mxu1 %v16847_v41  ;;  %v16883_v41 = vor.u32 %v5808_v28, %v22055_v53  ;;  %v22059_v53 = vshll.u32 %v16574_v10, 16  ;;  %v16906_v34 = vpack.c.bf16 %v16870_v3, %v16826_v21  ;;  %v4834_v10 = vadd.f32 %v16425_v7, %v4641_v62  ;;  %v12684_v55 = vld [vmem:[%s21097_s5 + $0x220] ss:$8 sps:$4 sm:$0xff]  }
 0x380   : > { %8444 = vmatmul.mubr.bf16.gmra.mxu1 %v16860_v9  ;;  %22057 = vst [vmem:[#allocation23_spill] sm:$0xff] %v16886_v22  ;;  %v5256_v11 = vrot.slane %v22058_v18, 7  ;;  %22060 = vst [vmem:[#allocation126_spill] sm:$0xff] %v16902_v32  ;;  %8646 = vmatprep.mubr.bf16.mxu0 %v16886_v22  ;;  %v22063_v49 = vshll.u32 %v16626_v5, 16  ;;  %v22064_v9 = vshrl.u32 %v16675_v4, 16  ;;  %v16928_v62 = vpack.c.bf16 %v4964_v50, %v4964_v50 }
 0x381   : > { %22056 = vst [vmem:[#allocation124_spill] sm:$0xff] %v16883_v41  ;;  %v5252_v23 = vor.u32 %v22059_v53, %v16752_v57  ;;  %22061 = vst [vmem:[#allocation85_spill] sm:$0xff] %v16906_v34  ;;  %v22062_v57 = vshrl.u32 %v16707_v15, 16  ;;  %v16918_v53 = vpop.f32.mrf.mxu1  ;;  %8796 = vmatpush1.bf16.msra.mxu1 %v12678_v58  ;;  %v5082_v41 = vunpack.c.h.b16 %v16572_v25  ;;  %v5084_v5 = vunpack.c.l.b16 %v16673_v44  ;;  %8995 = vmatpush1.bf16.msra.mxu0 %v12699_v42 }
 0x382   : > { %v5259_v30 = vor.u32 %v21213_v2, %v5256_v11  ;;  %v5266_v28 = vor.u32 %v22063_v49, %v16799_v35  ;;  %v5277_v7 = vrot.slane %v22064_v9, 7  ;;  %v4832_v11 = vadd.f32 %v16379_v36, %v4639_v14  ;;  %8797 = vmatprep.subr.bf16.mxu1 %v12686_v47  ;;  %v12692_v36 = vld [vmem:[%s21097_s5 + $0x214] ss:$8 sps:$4 sm:$0xff]   ;;  %v16943_v9 = vpop.f32.mrf.mxu0  ;;  %8996 = vmatprep.subr.bf16.mxu0 %v12707_v54 }
 0x383   : > { %v5270_v18 = vrot.slane %v22062_v57, 7  ;;  %v4966_v57 = vmax.f32 %v4834_v10, 0.0  ;;  %v22065_v2 = vshll.u32 %v16707_v15, 16  ;;  %v16938_v35 = vpop.f32.mrf.mxu1  ;;  %v16948_v58 = vpack.c.bf16 %v16826_v21, %v16826_v21  ;;  %v12705_v21 = vld [vmem:[%s21097_s5 + $0x3f0] ss:$8 sps:$4 sm:$0xff]  }
 0x384   : > { %v16953_v10 = vsel %vm13683_vm5, 0, %v5259_v30  ;;  %v16963_v14 = vpack.c.b16 %v5084_v5, %v5082_v41  ;;  %v5317_v30 = vshrl.u32 %v16928_v62, 16  ;;  %v16973_v42 = vmax.f32 %v4832_v11, 0.0  ;;  %v12713_v41 = vld [vmem:[%s21097_s5 + $0x3e4] ss:$8 sps:$4 sm:$0xff]  }
 0x385   : > { %v5273_v22 = vor.u32 %v22065_v2, %v5270_v18  ;;  %22066 = vst [vmem:[#allocation31_spill] sm:$0xff] %v16948_v58  ;;  %v21216_v2 = vshll.u32 %v16928_v62, 16  ;;  %22067 = vst [vmem:[#allocation120_spill] sm:$0xff] %v16953_v10  ;;  %v16955_v47 = vpack.c.bf16 %v4966_v57, %v4964_v50  ;;  %v16957_v18 = vpack.c.bf16 %v4966_v57, %v4966_v57  ;;  %v16965_v25 = vpop.f32.mrf.mxu1  ;;  %v16999_v57 = vpop.f32.mrf.mxu0 }
 0x386   : > { %22070 = vst [vmem:[#allocation128_spill] sm:$0xff] %v16963_v14  ;;  %8798 = vmatpush1.bf16.msra.mxu1 %v12684_v55  ;;  %8647 = vmatmul.mubr.bf16.gmra.mxu0 %v16963_v14  ;;  %v16986_v54 = vsel %vm13683_vm5, 0, %v5252_v23  ;;  %v16990_v11 = vsel %vm13683_vm5, 0, %v5266_v28  ;;  %v4643_v5 = vadd.f32 %v16761_v59, %v16373_v27  ;;  %v22074_v14 = vshrl.u32 %v16717_v39, 16  ;;  %v12698_v59 = vld [vmem:[%s21097_s5 + $0x204] ss:$8 sps:$4 sm:$0xff]  }
 0x387   : > { %22068 = vst [vmem:[#allocation43_spill] sm:$0xff] %v16955_v47  ;;  %v16961_v49 = vsel %vm13683_vm5, 0, %v5273_v22  ;;  %v5812_v50 = vrot.slane %v21216_v2, 1  ;;  %22072 = vst [vmem:[#allocation129_spill] sm:$0xff] %v16986_v54  ;;  %v16994_v55 = vpop.f32.mrf.mxu1  ;;  %v12690_v2 = vld [vmem:[%s21097_s5 + $0x210] ss:$8 sps:$4 sm:$0xff]   ;;  %8799 = vmatprep.subr.bf16.mxu1 %v12692_v36  ;;  %v17008_v28 = vcombine.low %v16986_v54, %v16990_v11  ;;  %v4647_v27 = vadd.f32 %v16777_v24, %v16377_v46 }
 0x388   : > { %22069 = vst [vmem:[#allocation140_spill] sm:$0xff] %v16961_v49  ;;  %v16977_v22 = vcombine.low %v16953_v10, %v16961_v49  ;;  %22073 = vst [vmem:[#allocation91_spill] sm:$0xff] %v16990_v11  ;;  %v5291_v23 = vrot.slane %v22074_v14, 7  ;;  %v5331_v12 = vshrl.u32 %v16957_v18, 16  ;;  %v22077_v14 = vshll.u32 %v16957_v18, 16  ;;  %8997 = vmatpush2.bf16.msra.mxu0 %v12705_v21 }
 0x389   : > { %v17003_v49 = vor.u32 %v5812_v50, %v5317_v30  ;;  %22076 = vst [vmem:[#allocation95_spill] sm:$0xff] %v17008_v28  ;;  %v12711_v46 = vld [vmem:[%s21097_s5 + $0x3e0] ss:$8 sps:$4 sm:$0xff]   ;;  %v4840_v24 = vadd.f32 %v16491_v1, %v4647_v27  ;;  %v5087_v36 = vunpack.c.h.b16 %v16711_v61  ;;  %v5089_v11 = vunpack.c.l.b16 %v16906_v34  ;;  %8998 = vmatprep.subr.bf16.mxu0 %v12713_v41 }
 0x38a   : > { %22071 = vst [vmem:[#allocation89_spill] sm:$0xff] %v16977_v22  ;;  %8453 = vmatprep.mubr.bf16.mxu1 %v16977_v22  ;;  %v5816_v50 = vrot.slane %v22077_v14, 1  ;;  %v4836_v22 = vadd.f32 %v16463_v29, %v4643_v5  ;;  %v4651_v14 = vadd.f32 %v16837_v0, %v16387_v52  ;;  %v12719_v29 = vld [vmem:[%s21097_s5 + $0x3d4] ss:$8 sps:$4 sm:$0xff]   ;;  %v22078_v21 = vshll.u32 %v16675_v4, 16  ;;  %8800 = vmatpush1.bf16.msra.mxu1 %v12690_v2  ;;  %v17050_v0 = vpop.f32.mrf.mxu0 }
 0x38b   : > { %22075 = vst [vmem:[#allocation131_spill] sm:$0xff] %v17003_v49  ;;  %v17020_v49 = vpop.f32.mrf.mxu1  ;;  %8454 = vmatmul.mubr.bf16.gmra.mxu1 %v17008_v28  ;;  %v17041_v1 = vpack.c.bf16 %v16973_v42, %v16973_v42  ;;  %v12696_v52 = vld [vmem:[%s21097_s5 + $0x200] ss:$8 sps:$4 sm:$0xff]   ;;  %v4968_v4 = vmax.f32 %v4840_v24, 0.0  ;;  %8801 = vmatprep.subr.bf16.mxu1 %v12698_v59  ;;  %v4649_v54 = vadd.f32 %v16808_v43, %v16383_v13  ;;  %v22083_v24 = vshrl.u32 %v16948_v58, 16 }
 0x38c   : > { %v17036_v5 = vor.u32 %v22078_v21, %v5277_v7  ;;  %v17043_v27 = vor.u32 %v5816_v50, %v5331_v12  ;;  %v17052_v7 = vpack.c.b16 %v5089_v11, %v5087_v36  ;;  %v4844_v41 = vadd.f32 %v16562_v33, %v4651_v14  ;;  %v12704_v50 = vld [vmem:[%s21097_s5 + $0x2f4] ss:$8 sps:$4 sm:$0xff]   ;;  %8999 = vmatpush2.bf16.msra.mxu0 %v12711_v46  ;;  %v12717_v33 = vld [vmem:[%s21097_s5 + $0x3d0] ss:$8 sps:$4 sm:$0xff]   ;;  %v12725_v46 = vld [vmem:[%s21097_s5 + $0x3c4] ss:$8 sps:$4 sm:$0xff]  }
 0x38d   : > { %22079 = vst [vmem:[#allocation45_spill] sm:$0xff] %v17041_v1  ;;  %v17045_v34 = vpop.f32.mrf.mxu1  ;;  %v22082_v21 = vshrl.u32 %v16902_v32, 16  ;;  %v4967_v61 = vmax.f32 %v4836_v22, 0.0  ;;  %v5298_v11 = vrot.slane %v22083_v24, 7  ;;  %v22084_v59 = vshll.u32 %v16717_v39, 16  ;;  %9000 = vmatprep.subr.bf16.mxu0 %v12719_v29  ;;  %v17091_v29 = vpop.f32.mrf.mxu0 }
 0x38e   : > { %22080 = vst [vmem:[#allocation68_spill] sm:$0xff] %v17043_v27  ;;  %22081 = vst [vmem:[#allocation98_spill] sm:$0xff] %v17052_v7  ;;  %8656 = vmatprep.mubr.bf16.mxu0 %v17052_v7  ;;  %v4970_v22 = vmax.f32 %v4844_v41, 0.0  ;;  %v22085_v13 = vshll.u32 %v16902_v32, 16  ;;  %v17080_v24 = vrot.slane %v5317_v30, 7  ;;  %8802 = vmatpush1.bf16.msra.mxu1 %v12696_v52  ;;  %v17093_v41 = vrot.slane %v5331_v12, 7 }
 0x38f   : > { %v5284_v28 = vrot.slane %v22082_v21, 7  ;;  %v17065_v36 = vpop.f32.mrf.mxu1  ;;  %v5294_v14 = vor.u32 %v22084_v59, %v5291_v23  ;;  %v17072_v21 = vpack.c.bf16 %v4968_v4, %v4968_v4  ;;  %v22086_v23 = vshll.u32 %v16948_v58, 16  ;;  %8803 = vmatprep.subr.bf16.mxu1 %v12704_v50  ;;  %v22110_v58 = vld [vmem:[#allocation118_spill] sm:$0xff] }
 0x390   : > { %v17098_v2 = vpack.c.bf16 %v4970_v22, %v4970_v22  ;;  %v17104_v52 = vpack.c.bf16 %v4967_v61, %v16973_v42  ;;  %v4842_v39 = vadd.f32 %v16528_v60, %v4649_v54  ;;  %9001 = vmatpush2.bf16.msra.mxu0 %v12717_v33  ;;  %v12723_v60 = vld [vmem:[%s21097_s5 + $0x3c0] ss:$8 sps:$4 sm:$0xff]   ;;  %v5086_v54 = vunpack.c.h.b16 %v16673_v44 }
 0x391   : > { %v5287_v43 = vor.u32 %v22085_v13, %v5284_v28  ;;  %v5301_v59 = vor.u32 %v22086_v23, %v5298_v11  ;;  %v17086_v27 = vpop.f32.mrf.mxu1  ;;  %v12702_v28 = vld [vmem:[%s21097_s5 + $0x2f0] ss:$8 sps:$4 sm:$0xff]   ;;  %v21229_v30 = vshll.u32 %v17072_v21, 16  ;;  %v17096_v13 = vpack.c.bf16 %v4970_v22, %v4968_v4  ;;  %v12710_v11 = vld [vmem:[%s21097_s5 + $0x2e4] ss:$8 sps:$4 sm:$0xff]   ;;  %9002 = vmatprep.subr.bf16.mxu0 %v12725_v46 }
 0x392   : > { %22088 = vst [vmem:[#allocation100_spill] sm:$0xff] %v17104_v52  ;;  %v17106_v23 = vpack.c.bf16 %v4967_v61, %v4967_v61  ;;  %v21234_v50 = vshrl.u32 %v17072_v21, 16  ;;  %v5088_v33 = vunpack.c.l.b16 %v16802_v31  ;;  %8804 = vmatpush2.bf16.msra.mxu1 %v12702_v28  ;;  %v21238_v7 = vshrl.u32 %v17098_v2, 16 }
 0x393   : > { %22087 = vst [vmem:[#allocation134_spill] sm:$0xff] %v17096_v13  ;;  %v17111_v12 = vsel %vm13683_vm5, 0, %v5301_v59  ;;  %v17113_v4 = vpop.f32.mrf.mxu1  ;;  %v5820_v22 = vrot.slane %v21229_v30, 1  ;;  %v17121_v61 = vsel %vm13683_vm5, 0, %v5287_v43  ;;  %v17134_v59 = vsel %vm13683_vm5, 0, %v5294_v14  ;;  %v17138_v43 = vpop.f32.mrf.mxu0  ;;  %8805 = vmatprep.subr.bf16.mxu1 %v12710_v11 }
 0x394   : > { %22089 = vst [vmem:[#allocation25_spill] sm:$0xff] %v17111_v12  ;;  %22090 = vst [vmem:[#allocation46_spill] sm:$0xff] %v17121_v61  ;;  %v17128_v42 = vcombine.low %v17121_v61, %v17111_v12  ;;  %v22094_v12 = vshll.u32 %v17098_v2, 16  ;;  %v17150_v31 = vsel %vm13683_vm5, 0, %v17036_v5  ;;  %v12708_v14 = vld [vmem:[%s21097_s5 + $0x2e0] ss:$8 sps:$4 sm:$0xff]   ;;  %v17156_v28 = vpack.c.b16 %v5088_v33, %v5086_v54  ;;  %9003 = vmatpush2.bf16.msra.mxu0 %v12723_v60 }
 0x395   : > { %22092 = vst [vmem:[#allocation47_spill] sm:$0xff] %v17134_v59  ;;  %v17136_v30 = vpop.f32.mrf.mxu1  ;;  %v17142_v46 = vor.u32 %v5820_v22, %v21234_v50  ;;  %22095 = vst [vmem:[#allocation125_spill] sm:$0xff] %v17150_v31  ;;  %v17160_v22 = vcombine.low %v17150_v31, %v17134_v59  ;;  %v4657_v5 = vadd.f32 %v16890_v17, %v16395_v8  ;;  %v12716_v11 = vld [vmem:[%s21097_s5 + $0x2d4] ss:$8 sps:$4 sm:$0xff]   ;;  %v4969_v33 = vmax.f32 %v4842_v39, 0.0  ;;  %v22099_v17 = vld [vmem:[#allocation78_spill] sm:$0xff]  ;;  %v17198_v60 = vpop.f32.mrf.mxu0 }
 0x396   : > { %22091 = vst [vmem:[#allocation136_spill] sm:$0xff] %v17128_v42  ;;  %v5824_v44 = vrot.slane %v22094_v12, 1  ;;  %8463 = vmatprep.mubr.bf16.mxu1 %v17128_v42  ;;  %22096 = vst [vmem:[#allocation127_spill] sm:$0xff] %v17156_v28  ;;  %v4653_v12 = vadd.f32 %v16864_v63, %v16390_v19  ;;  %v12731_v54 = vld [vmem:[%s21097_s5 + $0x3b4] ss:$8 sps:$4 sm:$0xff]   ;;  %v11516_v19 = vcombine.low %v21987_v16, %v17104_v52  ;;  %8657 = vmatmul.mubr.bf16.gmra.mxu0 %v17156_v28 }
 0x397   : > { %22093 = vst [vmem:[#allocation122_spill] sm:$0xff] %v17142_v46  ;;  %22097 = vst [vmem:[#allocation130_spill] sm:$0xff] %v17160_v22  ;;  %v17166_v50 = vpop.f32.mrf.mxu1  ;;  %v4659_v8 = vadd.f32 %v16918_v53, %v16399_v26  ;;  %v12729_v63 = vld [vmem:[%s21097_s5 + $0x3b0] ss:$8 sps:$4 sm:$0xff]   ;;  %8464 = vmatmul.mubr.bf16.gmra.mxu1 %v17160_v22  ;;  %v22102_v61 = vshrl.u32 %v17041_v1, 16  ;;  %v22111_v15 = vshll.u32 %v17041_v1, 16  ;;  %9004 = vmatprep.subr.bf16.mxu0 %v12731_v54 }
 0x398   : > { %v17176_v42 = vor.u32 %v5824_v44, %v21238_v7  ;;  %v4846_v39 = vadd.f32 %v22099_v17, %v4653_v12  ;;  %v22100_v59 = vld [vmem:[#allocation132_spill] sm:$0xff]  ;;  %v22101_v7 = vld [vmem:[#allocation11_spill] sm:$0xff]  ;;  %8666 = vmatprep.mubr.bf16.mxu0 %v11516_v19  ;;  %8806 = vmatpush2.bf16.msra.mxu1 %v12708_v14  ;;  %v22103_v12 = vld [vmem:[#allocation21_spill] sm:$0xff]  ;;  %v22109_v19 = vshll.u32 %v16928_v62, 16 }
 0x399   : > { %v4850_v44 = vadd.f32 %v22100_v59, %v4657_v5  ;;  %v4661_v31 = vadd.f32 %v16938_v35, %v22101_v7  ;;  %v17193_v26 = vpop.f32.mrf.mxu1  ;;  %v12737_v53 = vld [vmem:[%s21097_s5 + $0x3a4] ss:$8 sps:$4 sm:$0xff]   ;;  %v12714_v59 = vld [vmem:[%s21097_s5 + $0x2d0] ss:$8 sps:$4 sm:$0xff]   ;;  %8807 = vmatprep.subr.bf16.mxu1 %v12716_v11  ;;  %9005 = vmatpush2.bf16.msra.mxu0 %v12729_v63  ;;  %v12743_v54 = vld [vmem:[%s21097_s5 + $0x394] ss:$8 sps:$4 sm:$0xff]  }
 0x39a   : > { %22098 = vst [vmem:[#allocation50_spill] sm:$0xff] %v17176_v42  ;;  %v5326_v42 = vrot.slane %v22102_v61, 7  ;;  %v22104_v5 = vld [vmem:[#allocation103_spill] sm:$0xff]  ;;  %v22105_v7 = vld [vmem:[#allocation37_spill] sm:$0xff]  ;;  %v22106_v61 = vld [vmem:[#allocation104_spill] sm:$0xff]  ;;  %v5322_v14 = vor.u32 %v22109_v19, %v17080_v24  ;;  %9006 = vmatprep.subr.bf16.mxu0 %v12737_v53  ;;  %v22115_v63 = vshrl.u32 %v17072_v21, 16  ;;  %v11515_v19 = vcombine.low %v21987_v16, %v16955_v47 }
 0x39b   : > { %v17205_v35 = vadd.f32 %v22104_v5, %v22103_v12  ;;  %v17209_v17 = vadd.f32 %v22106_v61, %v22105_v7  ;;  %v22107_v22 = vld [vmem:[#allocation92_spill] sm:$0xff]  ;;  %v22108_v28 = vld [vmem:[#allocation105_spill] sm:$0xff]  ;;  %v4972_v46 = vmax.f32 %v4850_v44, 0.0  ;;  %v4854_v6 = vadd.f32 %v22110_v58, %v4661_v31  ;;  %v12722_v12 = vld [vmem:[%s21097_s5 + $0x2c4] ss:$8 sps:$4 sm:$0xff]  }
 0x39c   : > { %v17213_v32 = vadd.f32 %v22108_v28, %v22107_v22  ;;  %v5329_v37 = vor.u32 %v22111_v15, %v5326_v42  ;;  %v22112_v28 = vshll.u32 %v16957_v18, 16  ;;  %v17229_v5 = vpack.c.bf16 %v4969_v33, %v4969_v33  ;;  %v22113_v62 = vld [vmem:[#allocation116_spill] sm:$0xff]  ;;  %v12735_v15 = vld [vmem:[%s21097_s5 + $0x3a0] ss:$8 sps:$4 sm:$0xff]   ;;  %8808 = vmatpush2.bf16.msra.mxu1 %v12714_v59 }
 0x39d   : > { %v4852_v24 = vadd.f32 %v22113_v62, %v4659_v8  ;;  %v22114_v44 = vld [vmem:[#allocation84_spill] sm:$0xff]  ;;  %v4971_v42 = vmax.f32 %v4846_v39, 0.0  ;;  %v17238_v11 = vpack.c.bf16 %v4972_v46, %v4972_v46  ;;  %v4974_v18 = vmax.f32 %v4854_v6, 0.0  ;;  %v17245_v8 = vpop.f32.mrf.mxu0  ;;  %v12720_v53 = vld [vmem:[%s21097_s5 + $0x2c0] ss:$8 sps:$4 sm:$0xff]   ;;  %8809 = vmatprep.subr.bf16.mxu1 %v12722_v12  ;;  %9007 = vmatpush2.bf16.msra.mxu0 %v12735_v15 }
 0x39e   : > { %v17227_v22 = vor.u32 %v22112_v28, %v17093_v41  ;;  %v4667_v31 = vadd.f32 %v16994_v55, %v22114_v44  ;;  %v17240_v41 = vpop.f32.mrf.mxu1  ;;  %v5347_v7 = vrot.slane %v22115_v63, 7  ;;  %v17252_v39 = vsel %vm13683_vm5, 0, %v5329_v37  ;;  %v22118_v62 = vld [vmem:[#allocation82_spill] sm:$0xff]  ;;  %8667 = vmatmul.mubr.bf16.gmra.mxu0 %v11515_v19  ;;  %9008 = vmatprep.subr.bf16.mxu0 %v12743_v54  ;;  %v12726_v19 = vld [vmem:[%s21097_s5 + $0x2b0] ss:$8 sps:$4 sm:$0xff]  }
 0x39f   : > { %22116 = vst [vmem:[#allocation2_spill] sm:$0xff] %v17252_v39  ;;  %v21251_v61 = vshll.u32 %v17238_v11, 16  ;;  %v17263_v28 = vsel %vm13683_vm5, 0, %v5322_v14  ;;  %v4663_v37 = vadd.f32 %v16965_v25, %v22118_v62  ;;  %v17271_v44 = vmax.f32 %v4852_v24, 0.0  ;;  %v12741_v14 = vld [vmem:[%s21097_s5 + $0x390] ss:$8 sps:$4 sm:$0xff]  }
 0x3a0   : > { %v4860_v6 = vadd.f32 %v16842_v38, %v4667_v31  ;;  %22117 = vst [vmem:[#allocation133_spill] sm:$0xff] %v17263_v28  ;;  %v12728_v38 = vld [vmem:[%s21097_s5 + $0x2b4] ss:$8 sps:$4 sm:$0xff]   ;;  %v17273_v31 = vpack.c.bf16 %v4974_v18, %v4972_v46  ;;  %v17275_v63 = vpack.c.bf16 %v4974_v18, %v4974_v18  ;;  %v17280_v55 = vpack.c.bf16 %v4971_v42, %v4969_v33  ;;  %v17287_v46 = vpop.f32.mrf.mxu1  ;;  %v12749_v15 = vld [vmem:[%s21097_s5 + $0x384] ss:$8 sps:$4 sm:$0xff]   ;;  %v17292_v18 = vpop.f32.mrf.mxu0 }
 0x3a1   : > { %v5828_v12 = vrot.slane %v21251_v61, 1  ;;  %v11490_v24 = vcombine.low %v21987_v16, %v17252_v39  ;;  %v11489_v61 = vcombine.low %v21987_v16, %v17263_v28  ;;  %8810 = vmatpush2.bf16.msra.mxu1 %v12720_v53  ;;  %v22121_v54 = vshll.u32 %v17072_v21, 16  ;;  %9009 = vmatpush2.bf16.msra.mxu0 %v12741_v14 }
 0x3a2   : > { %22119 = vst [vmem:[#allocation30_spill] sm:$0xff] %v17273_v31  ;;  %22120 = vst [vmem:[#allocation51_spill] sm:$0xff] %v17280_v55  ;;  %v4976_v59 = vmax.f32 %v4860_v6, 0.0  ;;  %v22122_v25 = vshrl.u32 %v17098_v2, 16  ;;  %v22123_v33 = vshrl.u32 %v17238_v11, 16  ;;  %v4856_v62 = vadd.f32 %v16785_v51, %v4663_v37  ;;  %8811 = vmatprep.subr.bf16.mxu1 %v12728_v38  ;;  %9010 = vmatprep.subr.bf16.mxu0 %v12749_v15 }
 0x3a3   : > { %v17303_v58 = vor.u32 %v22121_v54, %v5347_v7  ;;  %8473 = vmatprep.mubr.bf16.mxu1 %v11490_v24  ;;  %v12734_v6 = vld [vmem:[%s21097_s5 + $0x2a4] ss:$8 sps:$4 sm:$0xff]   ;;  %v17315_v53 = vpack.c.bf16 %v4971_v42, %v4971_v42  ;;  %v17319_v21 = vpack.c.bf16 %v17271_v44, %v17271_v44  ;;  %v12747_v51 = vld [vmem:[%s21097_s5 + $0x380] ss:$8 sps:$4 sm:$0xff]   ;;  %v5095_v42 = vunpack.c.h.b16 %v17104_v52  ;;  %v22127_v24 = vld [vmem:[#allocation88_spill] sm:$0xff]  ;;  %v17333_v54 = vpop.f32.mrf.mxu1  ;;  %v17335_v7 = vpop.f32.mrf.mxu0 }
 0x3a4   : > { %v5361_v39 = vrot.slane %v22122_v25, 7  ;;  %v17309_v1 = vor.u32 %v5828_v12, %v22123_v33  ;;  %v22126_v25 = vshll.u32 %v17275_v63, 16  ;;  %8474 = vmatmul.mubr.bf16.gmra.mxu1 %v11489_v61  ;;  %v17327_v37 = vpack.c.bf16 %v4976_v59, %v4976_v59 }
 0x3a5   : > { %22125 = vst [vmem:[#allocation55_spill] sm:$0xff] %v17315_v53  ;;  %v5097_v38 = vunpack.c.l.b16 %v17280_v55  ;;  %v4671_v33 = vadd.f32 %v17045_v34, %v22127_v24  ;;  %v22128_v61 = vshrl.u32 %v17275_v63, 16  ;;  %v22132_v10 = vshrl.u32 %v17229_v5, 16  ;;  %8812 = vmatpush2.bf16.msra.mxu1 %v12726_v19  ;;  %v12732_v34 = vld [vmem:[%s21097_s5 + $0x2a0] ss:$8 sps:$4 sm:$0xff]   ;;  %9011 = vmatpush2.bf16.msra.mxu0 %v12747_v51 }
 0x3a6   : > { %22124 = vst [vmem:[#allocation87_spill] sm:$0xff] %v17309_v1  ;;  %v5832_v12 = vrot.slane %v22126_v25, 1  ;;  %v22130_v25 = vld [vmem:[#allocation96_spill] sm:$0xff]  ;;  %v22131_v1 = vshrl.u32 %v17106_v23, 16  ;;  %v22133_v15 = vshll.u32 %v17098_v2, 16  ;;  %8813 = vmatprep.subr.bf16.mxu1 %v12734_v6  ;;  %v22135_v19 = vshll.u32 %v17106_v23, 16 }
 0x3a7   : > { %v4669_v28 = vadd.f32 %v17020_v49, %v22130_v25  ;;  %v5354_v45 = vrot.slane %v22132_v10, 7  ;;  %v12740_v49 = vld [vmem:[%s21097_s5 + $0x294] ss:$8 sps:$4 sm:$0xff]   ;;  %v22136_v2 = vshll.u32 %v17229_v5, 16 }
 0x3a8   : > { %v17339_v14 = vor.u32 %v5832_v12, %v22128_v61  ;;  %v5340_v52 = vrot.slane %v22131_v1, 7  ;;  %v17352_v24 = vor.u32 %v22133_v15, %v5361_v39  ;;  %v4975_v12 = vmax.f32 %v4856_v62, 0.0  ;;  %v12755_v62 = vld [vmem:[%s21097_s5 + $0x574] ss:$8 sps:$4 sm:$0xff]  }
 0x3a9   : > { %v21262_v61 = vshll.u32 %v17327_v37, 16  ;;  %v4864_v1 = vadd.f32 %v16943_v9, %v4671_v33  ;;  %v5357_v39 = vor.u32 %v22136_v2, %v5354_v45  ;;  %v5096_v9 = vunpack.c.l.b16 %v17096_v13  ;;  %v17377_v33 = vpop.f32.mrf.mxu0  ;;  %8814 = vmatpush2.bf16.msra.mxu1 %v12732_v34  ;;  %9366 = vmatprep.subr.bf16.mxu0 %v12755_v62 }
 0x3aa   : > { %22129 = vst [vmem:[#allocation135_spill] sm:$0xff] %v17339_v14  ;;  %v17355_v14 = vpack.c.b16 %v5097_v38, %v5095_v42  ;;  %v5343_v25 = vor.u32 %v22135_v19, %v5340_v52  ;;  %v21263_v42 = vshrl.u32 %v17327_v37, 16  ;;  %v17375_v52 = vpop.f32.mrf.mxu1  ;;  %v4862_v45 = vadd.f32 %v16895_v56, %v4669_v28  ;;  %v12738_v28 = vld [vmem:[%s21097_s5 + $0x290] ss:$8 sps:$4 sm:$0xff]   ;;  %8815 = vmatprep.subr.bf16.mxu1 %v12740_v49 }
 0x3ab   : > { %v5836_v38 = vrot.slane %v21262_v61, 1  ;;  %v4978_v51 = vmax.f32 %v4864_v1, 0.0  ;;  %v17382_v15 = vsel %vm13683_vm5, 0, %v5357_v39  ;;  %v5094_v19 = vunpack.c.h.b16 %v16955_v47  ;;  %v22146_v49 = vld [vmem:[#allocation93_spill] sm:$0xff] }
 0x3ac   : > { %22134 = vst [vmem:[#allocation139_spill] sm:$0xff] %v17355_v14  ;;  %8676 = vmatprep.mubr.bf16.mxu0 %v17355_v14  ;;  %22137 = vst [vmem:[#allocation102_spill] sm:$0xff] %v17382_v15  ;;  %v22138_v2 = vshrl.u32 %v17238_v11, 16  ;;  %v17388_v6 = vpack.c.bf16 %v4975_v12, %v17271_v44  ;;  %v17396_v56 = vsel %vm13683_vm5, 0, %v5343_v25  ;;  %v12746_v25 = vld [vmem:[%s21097_s5 + $0x284] ss:$8 sps:$4 sm:$0xff]  }
 0x3ad   : > { %v17392_v10 = vor.u32 %v5836_v38, %v21263_v42  ;;  %22140 = vst [vmem:[#allocation138_spill] sm:$0xff] %v17396_v56  ;;  %v17401_v34 = vpack.c.bf16 %v4978_v51, %v4976_v59  ;;  %v17403_v1 = vpack.c.bf16 %v4978_v51, %v4978_v51  ;;  %v17407_v44 = vcombine.low %v17396_v56, %v17382_v15  ;;  %v22147_v51 = vld [vmem:[#allocation40_spill] sm:$0xff]  ;;  %v22150_v47 = vld [vmem:[#allocation101_spill] sm:$0xff]  ;;  %v22176_v56 = vld [vmem:[#allocation66_spill] sm:$0xff] }
 0x3ae   : > { %v5375_v61 = vrot.slane %v22138_v2, 7  ;;  %22139 = vst [vmem:[#allocation86_spill] sm:$0xff] %v17388_v6  ;;  %v17409_v39 = vpack.c.b16 %v5096_v9, %v5094_v19  ;;  %v17417_v62 = vsel %vm13683_vm5, 0, %v17227_v22  ;;  %v17422_v59 = vsel %vm13683_vm5, 0, %v17303_v58  ;;  %v17428_v19 = vpop.f32.mrf.mxu1  ;;  %v17430_v2 = vpop.f32.mrf.mxu0  ;;  %8816 = vmatpush2.bf16.msra.mxu1 %v12738_v28 }
 0x3af   : > { %22141 = vst [vmem:[#allocation59_spill] sm:$0xff] %v17401_v34  ;;  %22142 = vst [vmem:[#allocation90_spill] sm:$0xff] %v17407_v44  ;;  %v4673_v38 = vadd.f32 %v17065_v36, %v22146_v49  ;;  %v4677_v9 = vadd.f32 %v17086_v27, %v22147_v51  ;;  %v17432_v42 = vpack.c.bf16 %v4975_v12, %v4975_v12  ;;  %v4977_v14 = vmax.f32 %v4862_v45, 0.0  ;;  %v22149_v27 = vld [vmem:[#allocation99_spill] sm:$0xff] }
 0x3b0   : > { %22143 = vst [vmem:[#allocation78_spill] sm:$0xff] %v17409_v39  ;;  %22144 = vst [vmem:[#allocation132_spill] sm:$0xff] %v17417_v62  ;;  %v21268_v22 = vshll.u32 %v17403_v1, 16  ;;  %8483 = vmatprep.mubr.bf16.mxu1 %v17407_v44  ;;  %8677 = vmatmul.mubr.bf16.gmra.mxu0 %v17409_v39  ;;  %v17439_v58 = vcombine.low %v17417_v62, %v17422_v59  ;;  %v4679_v49 = vadd.f32 %v17113_v4, %v22149_v27  ;;  %v12744_v4 = vld [vmem:[%s21097_s5 + $0x280] ss:$8 sps:$4 sm:$0xff]  }
 0x3b1   : > { %22145 = vst [vmem:[#allocation11_spill] sm:$0xff] %v17422_v59  ;;  %v4870_v36 = vadd.f32 %v17050_v0, %v4677_v9  ;;  %v5099_v51 = vunpack.c.h.b16 %v17280_v55  ;;  %v5101_v12 = vunpack.c.l.b16 %v17388_v6  ;;  %v4866_v39 = vadd.f32 %v16999_v57, %v4673_v38  ;;  %8817 = vmatprep.subr.bf16.mxu1 %v12746_v25  ;;  %v17461_v55 = vpop.f32.mrf.mxu1  ;;  %v12752_v57 = vld [vmem:[%s21097_s5 + $0x474] ss:$8 sps:$4 sm:$0xff]  }
 0x3b2   : > { %22148 = vst [vmem:[#allocation21_spill] sm:$0xff] %v17439_v58  ;;  %v5840_v44 = vrot.slane %v21268_v22, 1  ;;  %8484 = vmatmul.mubr.bf16.gmra.mxu1 %v17439_v58  ;;  %v4681_v0 = vadd.f32 %v17136_v30, %v22150_v47  ;;  %v22152_v45 = vshrl.u32 %v17315_v53, 16  ;;  %v17466_v47 = vpop.f32.mrf.mxu0  ;;  %v17469_v38 = vpack.c.bf16 %v4977_v14, %v4977_v14 }
 0x3b3   : > { %v4980_v28 = vmax.f32 %v4870_v36, 0.0  ;;  %v17457_v27 = vpack.c.b16 %v5101_v12, %v5099_v51  ;;  %v22154_v25 = vshrl.u32 %v17403_v1, 16  ;;  %v22156_v12 = vshll.u32 %v17238_v11, 16  ;;  %8818 = vmatpush2.bf16.msra.mxu1 %v12744_v4 }
 0x3b4   : > { %v5368_v22 = vrot.slane %v22152_v45, 7  ;;  %22153 = vst [vmem:[#allocation37_spill] sm:$0xff] %v17469_v38  ;;  %v4874_v51 = vadd.f32 %v17138_v43, %v4681_v0  ;;  %v22157_v9 = vshrl.u32 %v17275_v63, 16  ;;  %v17484_v30 = vmax.f32 %v4866_v39, 0.0  ;;  %9173 = vmatprep.subr.bf16.mxu1 %v12752_v57  ;;  %v17497_v39 = vpop.f32.mrf.mxu0 }
 0x3b5   : > { %22151 = vst [vmem:[#allocation103_spill] sm:$0xff] %v17457_v27  ;;  %v17473_v36 = vor.u32 %v5840_v44, %v22154_v25  ;;  %v5378_v45 = vor.u32 %v22156_v12, %v5375_v61  ;;  %v17481_v15 = vpack.c.bf16 %v4980_v28, %v4980_v28  ;;  %8686 = vmatprep.mubr.bf16.mxu0 %v17457_v27  ;;  %v22158_v25 = vshrl.u32 %v17319_v21, 16  ;;  %v17495_v27 = vpop.f32.mrf.mxu1 }
 0x3b6   : > { %v5389_v58 = vrot.slane %v22157_v9, 7  ;;  %v4872_v62 = vadd.f32 %v17091_v29, %v4679_v49  ;;  %v4982_v44 = vmax.f32 %v4874_v51, 0.0  ;;  %v22159_v61 = vshrl.u32 %v17327_v37, 16 }
 0x3b7   : > { %22155 = vst [vmem:[#allocation104_spill] sm:$0xff] %v17473_v36  ;;  %v5382_v43 = vrot.slane %v22158_v25, 7  ;;  %v21279_v9 = vshll.u32 %v17481_v15, 16  ;;  %v22160_v12 = vshll.u32 %v17315_v53, 16  ;;  %v5098_v51 = vunpack.c.h.b16 %v17096_v13  ;;  %v22175_v53 = vld [vmem:[#allocation65_spill] sm:$0xff] }
 0x3b8   : > { %v5403_v0 = vrot.slane %v22159_v61, 7  ;;  %v17500_v49 = vpack.c.bf16 %v4982_v44, %v4980_v28  ;;  %v17502_v4 = vpack.c.bf16 %v4982_v44, %v4982_v44  ;;  %v5429_v25 = vshrl.u32 %v17481_v15, 16 }
 0x3b9   : > { %v5371_v59 = vor.u32 %v22160_v12, %v5368_v22  ;;  %v5844_v61 = vrot.slane %v21279_v9, 1  ;;  %v22162_v22 = vshll.u32 %v17319_v21, 16  ;;  %v5100_v57 = vunpack.c.l.b16 %v17273_v31 }
 0x3ba   : > { %22161 = vst [vmem:[#allocation92_spill] sm:$0xff] %v17500_v49  ;;  %v17512_v11 = vpack.c.bf16 %v17484_v30, %v4977_v14  ;;  %v4981_v29 = vmax.f32 %v4872_v62, 0.0  ;;  %v17517_v44 = vsel %vm13683_vm5, 0, %v5378_v45  ;;  %v17531_v14 = vpop.f32.mrf.mxu1  ;;  %v17533_v62 = vpop.f32.mrf.mxu0  ;;  %v5443_v28 = vshrl.u32 %v17502_v4, 16 }
 0x3bb   : > { %v5385_v12 = vor.u32 %v22162_v22, %v5382_v43  ;;  %22164 = vst [vmem:[#allocation118_spill] sm:$0xff] %v17517_v44  ;;  %v17519_v13 = vor.u32 %v5844_v61, %v5429_v25  ;;  %v17523_v9 = vsel %vm13683_vm5, 0, %v5371_v59  ;;  %v17529_v22 = vpack.c.b16 %v5100_v57, %v5098_v51 }
 0x3bc   : > { %22163 = vst [vmem:[#allocation105_spill] sm:$0xff] %v17512_v11  ;;  %22166 = vst [vmem:[#allocation84_spill] sm:$0xff] %v17523_v9  ;;  %v22169_v45 = vshll.u32 %v17502_v4, 16  ;;  %v17545_v59 = vsel %vm13683_vm5, 0, %v17352_v24  ;;  %v5103_v24 = vunpack.c.h.b16 %v17388_v6 }
 0x3bd   : > { %22165 = vst [vmem:[#allocation116_spill] sm:$0xff] %v17519_v13  ;;  %v17527_v43 = vsel %vm13683_vm5, 0, %v5385_v12  ;;  %22168 = vst [vmem:[#allocation88_spill] sm:$0xff] %v17529_v22  ;;  %8687 = vmatmul.mubr.bf16.gmra.mxu0 %v17529_v22  ;;  %v17550_v51 = vcombine.low %v17545_v59, %v17517_v44  ;;  %v22173_v12 = vld [vmem:[#allocation62_spill] sm:$0xff]  ;;  %v22174_v13 = vld [vmem:[#allocation64_spill] sm:$0xff]  ;;  %v5105_v22 = vunpack.c.l.b16 %v17512_v11  ;;  %v4691_v44 = vadd.f32 %v17287_v46, %v22176_v56 }
 0x3be   : > { %22167 = vst [vmem:[#allocation82_spill] sm:$0xff] %v17527_v43  ;;  %v5848_v61 = vrot.slane %v22169_v45, 1  ;;  %v17540_v36 = vcombine.low %v17523_v9, %v17527_v43  ;;  %22171 = vst [vmem:[#allocation93_spill] sm:$0xff] %v17545_v59  ;;  %v4683_v57 = vadd.f32 %v17166_v50, %v22173_v12  ;;  %v4687_v45 = vadd.f32 %v17193_v26, %v22174_v13 }
 0x3bf   : > { %22172 = vst [vmem:[#allocation40_spill] sm:$0xff] %v17550_v51  ;;  %v4689_v43 = vadd.f32 %v17240_v41, %v22175_v53  ;;  %v17565_v59 = vpack.c.bf16 %v4981_v29, %v4981_v29  ;;  %v22178_v26 = vshrl.u32 %v17432_v42, 16  ;;  %v17572_v53 = vpop.f32.mrf.mxu1  ;;  %v4884_v46 = vadd.f32 %v17335_v7, %v4691_v44 }
 0x3c0   : > { %22170 = vst [vmem:[#allocation96_spill] sm:$0xff] %v17540_v36  ;;  %v17558_v9 = vor.u32 %v5848_v61, %v5443_v28  ;;  %8493 = vmatprep.mubr.bf16.mxu1 %v17540_v36  ;;  %v4876_v13 = vadd.f32 %v17198_v60, %v4683_v57  ;;  %v4880_v50 = vadd.f32 %v17245_v8, %v4687_v45  ;;  %v17574_v61 = vpop.f32.mrf.mxu0  ;;  %v22180_v56 = vshrl.u32 %v17469_v38, 16 }
 0x3c1   : > { %22177 = vst [vmem:[#allocation99_spill] sm:$0xff] %v17565_v59  ;;  %8494 = vmatmul.mubr.bf16.gmra.mxu1 %v17550_v51  ;;  %v5396_v41 = vrot.slane %v22178_v26, 7  ;;  %v17577_v36 = vpack.c.b16 %v5105_v22, %v5103_v24  ;;  %v22181_v60 = vshll.u32 %v17275_v63, 16  ;;  %v22182_v8 = vshll.u32 %v17327_v37, 16 }
 0x3c2   : > { %v5410_v51 = vrot.slane %v22180_v56, 7  ;;  %v4983_v26 = vmax.f32 %v4876_v13, 0.0  ;;  %v4984_v11 = vmax.f32 %v4880_v50, 0.0  ;;  %v4882_v6 = vadd.f32 %v17292_v18, %v4689_v43  ;;  %v17600_v18 = vpop.f32.mrf.mxu0 }
 0x3c3   : > { %22179 = vst [vmem:[#allocation101_spill] sm:$0xff] %v17577_v36  ;;  %v5392_v57 = vor.u32 %v22181_v60, %v5389_v58  ;;  %v5406_v45 = vor.u32 %v22182_v8, %v5403_v0  ;;  %8696 = vmatprep.mubr.bf16.mxu0 %v17577_v36  ;;  %v4986_v12 = vmax.f32 %v4884_v46, 0.0  ;;  %v22183_v22 = vshll.u32 %v17432_v42, 16  ;;  %v17598_v0 = vpop.f32.mrf.mxu1 }
 0x3c4   : > { %v22184_v7 = vshll.u32 %v17469_v38, 16  ;;  %v17593_v63 = vpack.c.bf16 %v4983_v26, %v4981_v29  ;;  %v17595_v58 = vpack.c.bf16 %v4984_v11, %v4984_v11  ;;  %v5104_v37 = vunpack.c.l.b16 %v17401_v34  ;;  %v17633_v43 = vpop.f32.mrf.mxu0 }
 0x3c5   : > { %v5399_v24 = vor.u32 %v22183_v22, %v5396_v41  ;;  %v17603_v13 = vpack.c.bf16 %v4986_v12, %v4984_v11  ;;  %v17605_v50 = vpack.c.bf16 %v4986_v12, %v4986_v12  ;;  %v5431_v29 = vrot.slane %v5429_v25, 7 }
 0x3c6   : > { %v5413_v44 = vor.u32 %v22184_v7, %v5410_v51  ;;  %22185 = vst [vmem:[#allocation62_spill] sm:$0xff] %v17593_v63  ;;  %v5445_v41 = vrot.slane %v5443_v28, 7  ;;  %v21298_v46 = vshll.u32 %v17595_v58, 16  ;;  %v5102_v60 = vunpack.c.h.b16 %v17273_v31 }
 0x3c7   : > { %22186 = vst [vmem:[#allocation64_spill] sm:$0xff] %v17603_v13  ;;  %v4985_v8 = vmax.f32 %v4882_v6, 0.0  ;;  %v21303_v22 = vshll.u32 %v17605_v50, 16  ;;  %v17616_v7 = vsel %vm13683_vm5, 0, %v5399_v24  ;;  %v17620_v11 = vsel %vm13683_vm5, 0, %v5392_v57 }
 0x3c8   : > { %v17609_v51 = vsel %vm13683_vm5, 0, %v5413_v44  ;;  %22188 = vst [vmem:[#allocation66_spill] sm:$0xff] %v17616_v7  ;;  %22189 = vst [vmem:[#allocation141_spill] sm:$0xff] %v17620_v11  ;;  %v5457_v12 = vshrl.u32 %v17595_v58, 16  ;;  %v5852_v25 = vrot.slane %v21298_v46, 1  ;;  %v17629_v6 = vpack.c.b16 %v5104_v37, %v5102_v60  ;;  %v17631_v44 = vpop.f32.mrf.mxu1  ;;  %v22193_v46 = vld [vmem:[#allocation67_spill] sm:$0xff] }
 0x3c9   : > { %22187 = vst [vmem:[#allocation65_spill] sm:$0xff] %v17609_v51  ;;  %v17627_v28 = vcombine.low %v17616_v7, %v17609_v51  ;;  %v5471_v24 = vshrl.u32 %v17605_v50, 16  ;;  %v5856_v57 = vrot.slane %v21303_v22, 1  ;;  %v17640_v56 = vsel %vm13683_vm5, 0, %v5406_v45 }
 0x3ca   : > { %22191 = vst [vmem:[#allocation143_spill] sm:$0xff] %v17629_v6  ;;  %22192 = vst [vmem:[#allocation144_spill] sm:$0xff] %v17640_v56  ;;  %v4693_v36 = vadd.f32 %v17333_v54, %v22193_v46  ;;  %v22194_v34 = vshll.u32 %v17481_v15, 16  ;;  %v17646_v60 = vor.u32 %v5852_v25, %v5457_v12  ;;  %8697 = vmatmul.mubr.bf16.gmra.mxu0 %v17629_v6  ;;  %v22197_v22 = vshrl.u32 %v17565_v59, 16  ;;  %v22201_v25 = vld [vmem:[#allocation20_spill] sm:$0xff] }
 0x3cb   : > { %22190 = vst [vmem:[#allocation142_spill] sm:$0xff] %v17627_v28  ;;  %8503 = vmatprep.mubr.bf16.mxu1 %v17627_v28  ;;  %v17652_v31 = vcombine.low %v17620_v11, %v17640_v56  ;;  %v22198_v51 = vshll.u32 %v17502_v4, 16  ;;  %v17660_v54 = vor.u32 %v5856_v57, %v5471_v24  ;;  %v11518_v46 = vcombine.low %v21987_v16, %v17593_v63  ;;  %v17674_v57 = vpop.f32.mrf.mxu1 }
 0x3cc   : > { %v5434_v37 = vor.u32 %v22194_v34, %v5431_v29  ;;  %22195 = vst [vmem:[#allocation67_spill] sm:$0xff] %v17646_v60  ;;  %v5438_v45 = vrot.slane %v22197_v22, 7  ;;  %v4886_v15 = vadd.f32 %v17377_v33, %v4693_v36  ;;  %v22200_v34 = vld [vmem:[#allocation69_spill] sm:$0xff]  ;;  %v4699_v6 = vadd.f32 %v17428_v19, %v22201_v25  ;;  %v22202_v22 = vld [vmem:[#allocation16_spill] sm:$0xff]  ;;  %v17676_v33 = vpop.f32.mrf.mxu0 }
 0x3cd   : > { %22196 = vst [vmem:[#allocation145_spill] sm:$0xff] %v17652_v31  ;;  %v17658_v7 = vor.u32 %v22198_v51, %v5445_v41  ;;  %22199 = vst [vmem:[#allocation146_spill] sm:$0xff] %v17660_v54  ;;  %v4697_v29 = vadd.f32 %v17375_v52, %v22200_v34  ;;  %8504 = vmatmul.mubr.bf16.gmra.mxu1 %v17652_v31  ;;  %v4701_v4 = vadd.f32 %v17461_v55, %v22202_v22 }
 0x3ce   : > { %v22203_v51 = vshll.u32 %v17565_v59, 16  ;;  %v17678_v36 = vpack.c.bf16 %v4983_v26, %v4983_v26  ;;  %v17680_v52 = vpack.c.bf16 %v4985_v8, %v4985_v8  ;;  %v4987_v34 = vmax.f32 %v4886_v15, 0.0  ;;  %8706 = vmatprep.mubr.bf16.mxu0 %v11518_v46  ;;  %v22208_v46 = vld [vmem:[#allocation34_spill] sm:$0xff] }
 0x3cf   : > { %v4890_v31 = vadd.f32 %v17430_v2, %v4697_v29  ;;  %v4892_v19 = vadd.f32 %v17466_v47, %v4699_v6  ;;  %v4894_v25 = vadd.f32 %v17497_v39, %v4701_v4  ;;  %v11517_v2 = vcombine.low %v21987_v16, %v17500_v49  ;;  %v22207_v39 = vld [vmem:[#allocation13_spill] sm:$0xff] }
 0x3d0   : > { %v5441_v41 = vor.u32 %v22203_v51, %v5438_v45  ;;  %v17691_v45 = vsel %vm13683_vm5, 0, %v5434_v37  ;;  %v17693_v26 = vpack.c.bf16 %v4987_v34, %v4985_v8  ;;  %v4703_v29 = vadd.f32 %v17495_v27, %v22207_v39  ;;  %v17703_v51 = vpop.f32.mrf.mxu1  ;;  %v17705_v37 = vpop.f32.mrf.mxu0  ;;  %v22210_v39 = vld [vmem:[#allocation29_spill] sm:$0xff] }
 0x3d1   : > { %22205 = vst [vmem:[#allocation20_spill] sm:$0xff] %v17691_v45  ;;  %v4988_v22 = vmax.f32 %v4890_v31, 0.0  ;;  %v4989_v47 = vmax.f32 %v4892_v19, 0.0  ;;  %v4990_v6 = vmax.f32 %v4894_v25, 0.0  ;;  %v4707_v4 = vadd.f32 %v17531_v14, %v22208_v46 }
 0x3d2   : > { %v17687_v55 = vsel %vm13683_vm5, 0, %v5441_v41  ;;  %22206 = vst [vmem:[#allocation16_spill] sm:$0xff] %v17693_v26  ;;  %v11497_v19 = vcombine.low %v21987_v16, %v17691_v45  ;;  %8707 = vmatmul.mubr.bf16.gmra.mxu0 %v11517_v2  ;;  %v4896_v14 = vadd.f32 %v17533_v62, %v4703_v29  ;;  %v4709_v46 = vadd.f32 %v17572_v53, %v22210_v39  ;;  %v17728_v2 = vpop.f32.mrf.mxu1  ;;  %v17730_v62 = vpop.f32.mrf.mxu0 }
 0x3d3   : > { %22204 = vst [vmem:[#allocation69_spill] sm:$0xff] %v17687_v55  ;;  %v11498_v15 = vcombine.low %v21987_v16, %v17687_v55  ;;  %v17709_v41 = vpack.c.bf16 %v4988_v22, %v4988_v22  ;;  %v17713_v25 = vpack.c.bf16 %v4990_v6, %v4988_v22  ;;  %v17715_v27 = vpack.c.bf16 %v4990_v6, %v4990_v6 }
 0x3d4   : > { %v5459_v28 = vrot.slane %v5457_v12, 7  ;;  %v5473_v31 = vrot.slane %v5471_v24, 7  ;;  %v4900_v55 = vadd.f32 %v17574_v61, %v4707_v4  ;;  %v17723_v56 = vpack.c.bf16 %v4987_v34, %v4987_v34 }
 0x3d5   : > { %8513 = vmatprep.mubr.bf16.mxu1 %v11498_v15  ;;  %22209 = vst [vmem:[#allocation13_spill] sm:$0xff] %v17713_v25  ;;  %v21316_v8 = vshll.u32 %v17709_v41, 16  ;;  %v17725_v22 = vpack.c.bf16 %v4989_v47, %v4989_v47  ;;  %v21317_v6 = vshll.u32 %v17715_v27, 16  ;;  %v5485_v53 = vshrl.u32 %v17709_v41, 16 }
 0x3d6   : > { %8514 = vmatmul.mubr.bf16.gmra.mxu1 %v11497_v19  ;;  %v4991_v24 = vmax.f32 %v4896_v14, 0.0  ;;  %v4992_v61 = vmax.f32 %v4900_v55, 0.0  ;;  %v5499_v34 = vshrl.u32 %v17715_v27, 16  ;;  %v4902_v19 = vadd.f32 %v17600_v18, %v4709_v46  ;;  %v17756_v18 = vpop.f32.mrf.mxu1 }
 0x3d7   : > { %v5860_v12 = vrot.slane %v21316_v8, 1  ;;  %v5864_v4 = vrot.slane %v21317_v6, 1  ;;  %v22211_v39 = vshll.u32 %v17595_v58, 16  ;;  %v22212_v45 = vshll.u32 %v17605_v50, 16  ;;  %v4913_v58 = vpop.f32.mrf.mxu0 }
 0x3d8   : > { %v17748_v14 = vpack.c.bf16 %v4991_v24, %v4989_v47  ;;  %v17754_v6 = vpack.c.bf16 %v4992_v61, %v4992_v61  ;;  %v5111_v50 = vunpack.c.h.b16 %v17593_v63  ;;  %v5487_v46 = vrot.slane %v5485_v53, 7 }
 0x3d9   : > { %v5462_v15 = vor.u32 %v22211_v39, %v5459_v28  ;;  %v17744_v11 = vor.u32 %v22212_v45, %v5473_v31  ;;  %v17746_v54 = vor.u32 %v5860_v12, %v5485_v53  ;;  %v17752_v29 = vor.u32 %v5864_v4, %v5499_v34  ;;  %v22216_v31 = vld [vmem:[#allocation36_spill] sm:$0xff] }
 0x3da   : > { %22214 = vst [vmem:[#allocation29_spill] sm:$0xff] %v17748_v14  ;;  %v5113_v45 = vunpack.c.l.b16 %v17693_v26  ;;  %v4711_v47 = vadd.f32 %v17598_v0, %v22216_v31  ;;  %v5501_v12 = vrot.slane %v5499_v34, 7  ;;  %v21321_v39 = vshll.u32 %v17754_v6, 16 }
 0x3db   : > { %22213 = vst [vmem:[#allocation34_spill] sm:$0xff] %v17746_v54  ;;  %22215 = vst [vmem:[#allocation147_spill] sm:$0xff] %v17752_v29  ;;  %v4993_v4 = vmax.f32 %v4902_v19, 0.0  ;;  %v22218_v29 = vshrl.u32 %v17678_v36, 16  ;;  %v22219_v28 = vshrl.u32 %v17680_v52, 16  ;;  %v5513_v59 = vshrl.u32 %v17754_v6, 16  ;;  %v17776_v19 = vpop.f32.mrf.mxu1 }
 0x3dc   : > { %v17764_v8 = vpack.c.b16 %v5113_v45, %v5111_v50  ;;  %v4904_v55 = vadd.f32 %v17633_v43, %v4711_v47  ;;  %v5868_v0 = vrot.slane %v21321_v39, 1  ;;  %v5110_v53 = vunpack.c.h.b16 %v17500_v49  ;;  %v17778_v50 = vpop.f32.mrf.mxu0 }
 0x3dd   : > { %v5452_v54 = vrot.slane %v22218_v29, 7  ;;  %v5466_v63 = vrot.slane %v22219_v28, 7  ;;  %v5112_v34 = vunpack.c.l.b16 %v17603_v13  ;;  %v17780_v43 = vpack.c.bf16 %v4991_v24, %v4991_v24 }
 0x3de   : > { %22217 = vst [vmem:[#allocation36_spill] sm:$0xff] %v17764_v8  ;;  %8716 = vmatprep.mubr.bf16.mxu0 %v17764_v8  ;;  %v4994_v29 = vmax.f32 %v4904_v55, 0.0  ;;  %v22220_v28 = vshll.u32 %v17678_v36, 16  ;;  %v22221_v31 = vshll.u32 %v17680_v52, 16  ;;  %v17787_v39 = vor.u32 %v5868_v0, %v5513_v59 }
 0x3df   : > { %v17789_v49 = vpack.c.bf16 %v4993_v4, %v4993_v4  ;;  %v17791_v38 = vpack.c.b16 %v5112_v34, %v5110_v53  ;;  %v17795_v60 = vsel %vm13683_vm5, 0, %v5462_v15  ;;  %v17817_v15 = vsel %vm13683_vm5, 0, %v17658_v7  ;;  %v22231_v53 = vld [vmem:[#allocation41_spill] sm:$0xff] }
 0x3e0   : > { %v5455_v45 = vor.u32 %v22220_v28, %v5452_v54  ;;  %v5469_v47 = vor.u32 %v22221_v31, %v5466_v63  ;;  %22223 = vst [vmem:[#allocation149_spill] sm:$0xff] %v17795_v60  ;;  %v17797_v24 = vpack.c.bf16 %v4994_v29, %v4992_v61  ;;  %v17799_v8 = vpack.c.bf16 %v4994_v29, %v4994_v29  ;;  %v22230_v61 = vld [vmem:[#allocation33_spill] sm:$0xff]  ;;  %v17823_v29 = vpop.f32.mrf.mxu1  ;;  %v17825_v28 = vpop.f32.mrf.mxu0 }
 0x3e1   : > { %22222 = vst [vmem:[#allocation148_spill] sm:$0xff] %v17791_v38  ;;  %8717 = vmatmul.mubr.bf16.gmra.mxu0 %v17791_v38  ;;  %22229 = vst [vmem:[#allocation155_spill] sm:$0xff] %v17817_v15  ;;  %v4713_v0 = vadd.f32 %v17631_v44, %v22230_v61  ;;  %v4717_v34 = vadd.f32 %v17674_v57, %v22231_v53  ;;  %v17830_v31 = vcombine.low %v17817_v15, %v17795_v60  ;;  %v22234_v53 = vld [vmem:[#allocation49_spill] sm:$0xff] }
 0x3e2   : > { %22224 = vst [vmem:[#allocation150_spill] sm:$0xff] %v17797_v24  ;;  %22225 = vst [vmem:[#allocation151_spill] sm:$0xff] %v17799_v8  ;;  %v17803_v54 = vsel %vm13683_vm5, 0, %v5455_v45  ;;  %v17807_v63 = vsel %vm13683_vm5, 0, %v5469_v47  ;;  %v22233_v47 = vld [vmem:[#allocation44_spill] sm:$0xff]  ;;  %v5115_v38 = vunpack.c.h.b16 %v17693_v26  ;;  %v5117_v61 = vunpack.c.l.b16 %v17748_v14  ;;  %v4730_v26 = vpop.f32.mrf.mxu1 }
 0x3e3   : > { %22226 = vst [vmem:[#allocation152_spill] sm:$0xff] %v17803_v54  ;;  %22227 = vst [vmem:[#allocation153_spill] sm:$0xff] %v17807_v63  ;;  %v17811_v55 = vcombine.low %v17803_v54, %v17807_v63  ;;  %v4719_v7 = vadd.f32 %v17703_v51, %v22233_v47  ;;  %v4906_v44 = vadd.f32 %v17676_v33, %v4713_v0  ;;  %v22235_v60 = vshll.u32 %v17799_v8, 16 }
 0x3e4   : > { %22232 = vst [vmem:[#allocation33_spill] sm:$0xff] %v17830_v31  ;;  %v4910_v57 = vadd.f32 %v17705_v37, %v4717_v34  ;;  %v4721_v45 = vadd.f32 %v17728_v2, %v22234_v53  ;;  %v22236_v47 = vshrl.u32 %v17723_v56, 16  ;;  %v17850_v0 = vpack.c.b16 %v5117_v61, %v5115_v38  ;;  %v4921_v2 = vpop.f32.mrf.mxu0 }
 0x3e5   : > { %22228 = vst [vmem:[#allocation154_spill] sm:$0xff] %v17811_v55  ;;  %8523 = vmatprep.mubr.bf16.mxu1 %v17811_v55  ;;  %v5872_v15 = vrot.slane %v22235_v60, 1  ;;  %v4912_v51 = vadd.f32 %v17730_v62, %v4719_v7  ;;  %v17848_v33 = vmax.f32 %v4906_v44, 0.0  ;;  %v22238_v53 = vshll.u32 %v17709_v41, 16 }
 0x3e6   : > { %8524 = vmatmul.mubr.bf16.gmra.mxu1 %v17830_v31  ;;  %v5480_v55 = vrot.slane %v22236_v47, 7  ;;  %v4996_v37 = vmax.f32 %v4910_v57, 0.0  ;;  %22237 = vst [vmem:[#allocation41_spill] sm:$0xff] %v17850_v0  ;;  %v4914_v34 = vadd.f32 %v4913_v58, %v4721_v45  ;;  %v21337_v60 = vshll.u32 %v17725_v22, 16  ;;  %8726 = vmatprep.mubr.bf16.mxu0 %v17850_v0  ;;  %v17883_v47 = vpop.f32.mrf.mxu1 }
 0x3e7   : > { %v5490_v63 = vor.u32 %v22238_v53, %v5487_v46  ;;  %v22239_v31 = vshrl.u32 %v17799_v8, 16  ;;  %v17859_v62 = vmax.f32 %v4912_v51, 0.0  ;;  %v22241_v7 = vshll.u32 %v17715_v27, 16 }
 0x3e8   : > { %v17866_v38 = vpack.c.bf16 %v17848_v33, %v4993_v4  ;;  %v17868_v58 = vpack.c.bf16 %v4996_v37, %v4996_v37  ;;  %v4998_v41 = vmax.f32 %v4914_v34, 0.0  ;;  %v5515_v45 = vrot.slane %v5513_v59, 7  ;;  %v4923_v34 = vpop.f32.mrf.mxu0 }
 0x3e9   : > { %v17857_v54 = vor.u32 %v5872_v15, %v22239_v31  ;;  %v17863_v44 = vor.u32 %v22241_v7, %v5501_v12  ;;  %v22243_v15 = vshll.u32 %v17723_v56, 16  ;;  %v22244_v57 = vshrl.u32 %v17725_v22, 16 }
 0x3ea   : > { %22242 = vst [vmem:[#allocation49_spill] sm:$0xff] %v17866_v38  ;;  %v5544_v4 = vshll.u32 %v17868_v58, 16  ;;  %v17881_v51 = vpack.c.bf16 %v17859_v62, %v17859_v62  ;;  %v17886_v53 = vpack.c.bf16 %v4998_v41, %v4996_v37  ;;  %v5114_v7 = vunpack.c.h.b16 %v17603_v13  ;;  %v22258_v13 = vld [vmem:[#allocation113_spill] sm:$0xff] }
 0x3eb   : > { %22240 = vst [vmem:[#allocation44_spill] sm:$0xff] %v17857_v54  ;;  %v5483_v31 = vor.u32 %v22243_v15, %v5480_v55  ;;  %v5494_v61 = vrot.slane %v22244_v57, 7  ;;  %v12055_v55 = vpack.c.bf16 %v4998_v41, %v4998_v41  ;;  %v5541_v15 = vshrl.u32 %v17868_v58, 16  ;;  %v22259_v54 = vld [vmem:[#allocation80_spill] sm:$0xff] }
 0x3ec   : > { %22245 = vst [vmem:[#allocation156_spill] sm:$0xff] %v17881_v51  ;;  %22246 = vst [vmem:[#allocation157_spill] sm:$0xff] %v17886_v53  ;;  %v5876_v57 = vrot.slane %v5544_v4, 1  ;;  %v5116_v12 = vunpack.c.l.b16 %v17713_v25  ;;  %v22247_v46 = vshll.u32 %v17754_v6, 16  ;;  %v17903_v41 = vsel %vm13683_vm5, 0, %v5490_v63 }
 0x3ed   : > { %v5497_v27 = vor.u32 %v21337_v60, %v5494_v61  ;;  %v5558_v8 = vshll.u32 %v12055_v55, 16  ;;  %v17899_v37 = vsel %vm13683_vm5, 0, %v5483_v31  ;;  %22249 = vst [vmem:[#allocation159_spill] sm:$0xff] %v17903_v41  ;;  %v5555_v31 = vshrl.u32 %v12055_v55, 16  ;;  %v22257_v55 = vld [vmem:[#allocation3_spill] sm:$0xff] }
 0x3ee   : > { %v17895_v0 = vor.u32 %v22247_v46, %v5515_v45  ;;  %22248 = vst [vmem:[#allocation158_spill] sm:$0xff] %v17899_v37  ;;  %v17905_v58 = vor.u32 %v5876_v57, %v5541_v15  ;;  %v17912_v6 = vpack.c.b16 %v5116_v12, %v5114_v7  ;;  %v17914_v46 = vpop.f32.mrf.mxu1  ;;  %v17916_v45 = vpop.f32.mrf.mxu0  ;;  %v17925_v57 = vsel %vm13683_vm5, 0, %v17744_v11  ;;  %v22256_v12 = vld [vmem:[#allocation73_spill] sm:$0xff] }
 0x3ef   : > { %v17910_v61 = vsel %vm13683_vm5, 0, %v5497_v27  ;;  %v5880_v60 = vrot.slane %v5558_v8, 1  ;;  %22254 = vst [vmem:[#allocation164_spill] sm:$0xff] %v17925_v57  ;;  %v17930_v27 = vcombine.low %v17925_v57, %v17903_v41  ;;  %v4723_v7 = vadd.f32 %v17756_v18, %v22256_v12 }
 0x3f0   : > { %22250 = vst [vmem:[#allocation160_spill] sm:$0xff] %v17905_v58  ;;  %22251 = vst [vmem:[#allocation161_spill] sm:$0xff] %v17910_v61  ;;  %v17920_v63 = vcombine.low %v17899_v37, %v17910_v61  ;;  %8727 = vmatmul.mubr.bf16.gmra.mxu0 %v17912_v6  ;;  %v4727_v59 = vadd.f32 %v17776_v19, %v22257_v55  ;;  %v4729_v61 = vadd.f32 %v17823_v29, %v22258_v13  ;;  %v4738_v29 = vpop.f32.mrf.mxu1 }
 0x3f1   : > { %22252 = vst [vmem:[#allocation162_spill] sm:$0xff] %v17912_v6  ;;  %22255 = vst [vmem:[#allocation165_spill] sm:$0xff] %v17930_v27  ;;  %v17938_v37 = vor.u32 %v5880_v60, %v5555_v31  ;;  %v5119_v11 = vunpack.c.h.b16 %v17748_v14  ;;  %v5121_v6 = vunpack.c.l.b16 %v17866_v38  ;;  %v4731_v41 = vadd.f32 %v4730_v26, %v22259_v54  ;;  %v4929_v60 = vpop.f32.mrf.mxu0 }
 0x3f2   : > { %22253 = vst [vmem:[#allocation163_spill] sm:$0xff] %v17920_v63  ;;  %8533 = vmatprep.mubr.bf16.mxu1 %v17920_v63  ;;  %v4916_v18 = vadd.f32 %v17778_v50, %v4723_v7  ;;  %v4920_v12 = vadd.f32 %v17825_v28, %v4727_v59  ;;  %v4922_v19 = vadd.f32 %v4921_v2, %v4729_v61  ;;  %v22260_v55 = vshrl.u32 %v17780_v43, 16 }
 0x3f3   : > { %8534 = vmatmul.mubr.bf16.gmra.mxu1 %v17930_v27  ;;  %v5543_v57 = vrot.slane %v5541_v15, 7  ;;  %v17949_v63 = vpack.c.b16 %v5121_v6, %v5119_v11  ;;  %v4924_v14 = vadd.f32 %v4923_v34, %v4731_v41  ;;  %v22262_v38 = vshrl.u32 %v17789_v49, 16  ;;  %v4931_v11 = vpop.f32.mrf.mxu0 }
 0x3f4   : > { %v5508_v13 = vrot.slane %v22260_v55, 7  ;;  %v5557_v54 = vrot.slane %v5555_v31, 7  ;;  %v4999_v27 = vmax.f32 %v4916_v18, 0.0  ;;  %v5000_v50 = vmax.f32 %v4920_v12, 0.0  ;;  %v4740_v31 = vpop.f32.mrf.mxu1 }
 0x3f5   : > { %22261 = vst [vmem:[#allocation73_spill] sm:$0xff] %v17949_v63  ;;  %v5522_v58 = vrot.slane %v22262_v38, 7  ;;  %v5001_v7 = vmax.f32 %v4922_v19, 0.0  ;;  %8736 = vmatprep.mubr.bf16.mxu0 %v17949_v63  ;;  %v5002_v28 = vmax.f32 %v4924_v14, 0.0  ;;  %v22263_v2 = vshll.u32 %v17780_v43, 16 }
 0x3f6   : > { %v22264_v15 = vshll.u32 %v17789_v49, 16  ;;  %v17960_v34 = vpack.c.bf16 %v4999_v27, %v17859_v62  ;;  %v17962_v41 = vpack.c.bf16 %v4999_v27, %v4999_v27  ;;  %v17964_v38 = vpack.c.bf16 %v5000_v50, %v5000_v50 }
 0x3f7   : > { %v5511_v59 = vor.u32 %v22263_v2, %v5508_v13  ;;  %v5120_v6 = vunpack.c.l.b16 %v17797_v24  ;;  %v5546_v18 = vor.u32 %v5544_v4, %v5543_v57  ;;  %v17967_v12 = vpack.c.bf16 %v5002_v28, %v5000_v50 }
 0x3f8   : > { %v5525_v61 = vor.u32 %v22264_v15, %v5522_v58  ;;  %22265 = vst [vmem:[#allocation3_spill] sm:$0xff] %v17960_v34  ;;  %v17969_v14 = vpack.c.bf16 %v5002_v28, %v5002_v28  ;;  %v17975_v58 = vor.u32 %v5558_v8, %v5557_v54  ;;  %v5572_v62 = vshll.u32 %v17964_v38, 16  ;;  %v4933_v15 = vpop.f32.mrf.mxu0 }
 0x3f9   : > { %22266 = vst [vmem:[#allocation113_spill] sm:$0xff] %v17967_v12  ;;  %v5118_v27 = vunpack.c.h.b16 %v17713_v25  ;;  %v17982_v55 = vsel %vm13683_vm5, 0, %v17863_v44  ;;  %v17985_v57 = vpack.c.bf16 %v5001_v7, %v5001_v7  ;;  %v17990_v50 = vsel %vm13683_vm5, 0, %v5511_v59  ;;  %v4742_v44 = vpop.f32.mrf.mxu1 }
 0x3fa   : > { %v17973_v19 = vsel %vm13683_vm5, 0, %v5525_v61  ;;  %22268 = vst [vmem:[#allocation166_spill] sm:$0xff] %v17982_v55  ;;  %v5586_v13 = vshll.u32 %v17969_v14, 16  ;;  %22269 = vst [vmem:[#allocation167_spill] sm:$0xff] %v17990_v50  ;;  %v5569_v8 = vshrl.u32 %v17964_v38, 16  ;;  %v5884_v54 = vrot.slane %v5572_v62, 1 }
 0x3fb   : > { %22267 = vst [vmem:[#allocation80_spill] sm:$0xff] %v17973_v19  ;;  %v17995_v28 = vcombine.low %v17990_v50, %v17973_v19  ;;  %v17997_v2 = vpack.c.b16 %v5120_v6, %v5118_v27  ;;  %v5583_v61 = vshrl.u32 %v17969_v14, 16  ;;  %v18003_v26 = vsel %vm13683_vm5, 0, %v17895_v0 }
 0x3fc   : > { %v5888_v4 = vrot.slane %v5586_v13, 1  ;;  %22272 = vst [vmem:[#allocation170_spill] sm:$0xff] %v18003_v26  ;;  %v4733_v59 = vadd.f32 %v17883_v47, %v17205_v35  ;;  %v18008_v63 = vor.u32 %v5884_v54, %v5569_v8  ;;  %v18014_v6 = vcombine.low %v17982_v55, %v18003_v26  ;;  %v4935_v26 = vpop.f32.mrf.mxu0 }
 0x3fd   : > { %22270 = vst [vmem:[#allocation168_spill] sm:$0xff] %v17995_v28  ;;  %22271 = vst [vmem:[#allocation169_spill] sm:$0xff] %v17997_v2  ;;  %8543 = vmatprep.mubr.bf16.mxu1 %v17995_v28  ;;  %8737 = vmatmul.mubr.bf16.gmra.mxu0 %v17997_v2  ;;  %v22274_v14 = vshrl.u32 %v17881_v51, 16  ;;  %v4737_v47 = vadd.f32 %v17914_v46, %v17209_v17  ;;  %v11520_v54 = vcombine.low %v21987_v16, %v17960_v34  ;;  %v22276_v2 = vld [vmem:[#allocation63_spill] sm:$0xff]  ;;  %v22277_v28 = vld [vmem:[#allocation106_spill] sm:$0xff] }
 0x3fe   : > { %22273 = vst [vmem:[#allocation171_spill] sm:$0xff] %v18014_v6  ;;  %v18019_v24 = vor.u32 %v5888_v4, %v5583_v61  ;;  %v4926_v35 = vadd.f32 %v17916_v45, %v4733_v59  ;;  %8544 = vmatmul.mubr.bf16.gmra.mxu1 %v18014_v6  ;;  %v4739_v38 = vadd.f32 %v4738_v29, %v17213_v32  ;;  %v4746_v4 = vpop.f32.mrf.mxu1  ;;  %v5571_v19 = vrot.slane %v5569_v8, 7 }
 0x3ff   : > { %v5550_v27 = vrot.slane %v22274_v14, 7  ;;  %v4548_v25 = vadd.f32 %v22277_v28, %v22276_v2  ;;  %v22278_v14 = vshll.u32 %v17881_v51, 16  ;;  %v5585_v45 = vrot.slane %v5583_v61, 7  ;;  %8746 = vmatprep.mubr.bf16.mxu0 %v11520_v54  ;;  %v22390_v51 = vld [vmem:[#allocation122_spill] sm:$0xff] }
 0x400   : > { %22275 = vst [vmem:[#allocation172_spill] sm:$0xff] %v18019_v24  ;;  %v5003_v59 = vmax.f32 %v4926_v35, 0.0  ;;  %v4930_v55 = vadd.f32 %v4929_v60, %v4737_v47  ;;  %v4932_v17 = vadd.f32 %v4931_v11, %v4739_v38  ;;  %v11519_v32 = vcombine.low %v21987_v16, %v17886_v53  ;;  %v22284_v38 = vld [vmem:[#allocation71_spill] sm:$0xff]  ;;  %v4748_v35 = vpop.f32.mrf.mxu1  ;;  %v4939_v47 = vpop.f32.mrf.mxu0 }
 0x401   : > { %v5553_v0 = vor.u32 %v22278_v14, %v5550_v27  ;;  %v4741_v46 = vadd.f32 %v4740_v31, %v4548_v25  ;;  %v18044_v8 = vsel %vm13683_vm5, 0, %v5546_v18  ;;  %v22282_v25 = vld [vmem:[#allocation39_spill] sm:$0xff]  ;;  %v22285_v27 = vld [vmem:[#allocation108_spill] sm:$0xff] }
 0x402   : > { %v18038_v29 = vpack.c.bf16 %v5003_v59, %v5001_v7  ;;  %v5004_v28 = vmax.f32 %v4930_v55, 0.0  ;;  %22281 = vst [vmem:[#allocation173_spill] sm:$0xff] %v18044_v8  ;;  %v5005_v60 = vmax.f32 %v4932_v17, 0.0  ;;  %v22283_v31 = vld [vmem:[#allocation107_spill] sm:$0xff]  ;;  %v18050_v7 = vor.u32 %v5572_v62, %v5571_v19 }
 0x403   : > { %v18034_v6 = vsel %vm13683_vm5, 0, %v5553_v0  ;;  %v4934_v11 = vadd.f32 %v4933_v15, %v4741_v46  ;;  %v4550_v61 = vadd.f32 %v22283_v31, %v22282_v25  ;;  %v4554_v0 = vadd.f32 %v22285_v27, %v22284_v38  ;;  %v22286_v14 = vld [vmem:[#allocation75_spill] sm:$0xff] }
 0x404   : > { %22279 = vst [vmem:[#allocation63_spill] sm:$0xff] %v18034_v6  ;;  %22280 = vst [vmem:[#allocation106_spill] sm:$0xff] %v18038_v29  ;;  %v11506_v2 = vcombine.low %v21987_v16, %v18034_v6  ;;  %v12061_v54 = vpack.c.bf16 %v5004_v28, %v5004_v28  ;;  %v22287_v6 = vld [vmem:[#allocation109_spill] sm:$0xff]  ;;  %v11505_v15 = vcombine.low %v21987_v16, %v18044_v8 }
 0x405   : > { %v4556_v18 = vadd.f32 %v22287_v6, %v22286_v14  ;;  %v5006_v50 = vmax.f32 %v4934_v11, 0.0  ;;  %8747 = vmatmul.mubr.bf16.gmra.mxu0 %v11519_v32  ;;  %v4743_v17 = vadd.f32 %v4742_v44, %v4550_v61  ;;  %v4747_v46 = vadd.f32 %v4746_v4, %v4554_v0  ;;  %v4941_v6 = vpop.f32.mrf.mxu0 }
 0x406   : > { %8553 = vmatprep.mubr.bf16.mxu1 %v11506_v2  ;;  %v18057_v25 = vor.u32 %v5586_v13, %v5585_v45  ;;  %v5597_v31 = vshrl.u32 %v12061_v54, 16  ;;  %v5600_v38 = vshll.u32 %v12061_v54, 16  ;;  %v18059_v62 = vpack.c.bf16 %v5003_v59, %v5003_v59 }
 0x407   : > { %v4749_v19 = vadd.f32 %v4748_v35, %v4556_v18  ;;  %v18061_v27 = vpack.c.bf16 %v5005_v60, %v5005_v60  ;;  %v18063_v2 = vpack.c.bf16 %v5006_v50, %v5004_v28  ;;  %v12063_v55 = vpack.c.bf16 %v5006_v50, %v5006_v50  ;;  %8554 = vmatmul.mubr.bf16.gmra.mxu1 %v11505_v15 }
 0x408   : > { %v5892_v32 = vrot.slane %v5600_v38, 1  ;;  %v4936_v11 = vadd.f32 %v4935_v26, %v4743_v17  ;;  %v4940_v14 = vadd.f32 %v4939_v47, %v4747_v46  ;;  %v5127_v44 = vunpack.c.h.b16 %v17960_v34  ;;  %v4750_v46 = vpop.f32.mrf.mxu1 }
 0x409   : > { %22288 = vst [vmem:[#allocation39_spill] sm:$0xff] %v18063_v2  ;;  %v5611_v4 = vshrl.u32 %v12063_v55, 16  ;;  %v5614_v13 = vshll.u32 %v12063_v55, 16  ;;  %v4942_v45 = vadd.f32 %v4941_v6, %v4749_v19  ;;  %v5129_v61 = vunpack.c.l.b16 %v18038_v29  ;;  %v22294_v6 = vld [vmem:[#allocation79_spill] sm:$0xff] }
 0x40a   : > { %v5599_v0 = vrot.slane %v5597_v31, 7  ;;  %v18067_v59 = vor.u32 %v5892_v32, %v5597_v31  ;;  %v5007_v35 = vmax.f32 %v4936_v11, 0.0  ;;  %v5008_v54 = vmax.f32 %v4940_v14, 0.0  ;;  %v22295_v32 = vld [vmem:[#allocation110_spill] sm:$0xff] }
 0x40b   : > { %v5613_v28 = vrot.slane %v5611_v4, 7  ;;  %v5896_v18 = vrot.slane %v5614_v13, 1  ;;  %v18069_v50 = vmax.f32 %v4942_v45, 0.0  ;;  %v18071_v15 = vpack.c.b16 %v5129_v61, %v5127_v44 }
 0x40c   : > { %22289 = vst [vmem:[#allocation107_spill] sm:$0xff] %v18067_v59  ;;  %v18074_v47 = vpack.c.bf16 %v5007_v35, %v5005_v60  ;;  %v18076_v17 = vpack.c.bf16 %v5007_v35, %v5007_v35  ;;  %v18078_v55 = vpack.c.bf16 %v5008_v54, %v5008_v54  ;;  %v4558_v11 = vadd.f32 %v22295_v32, %v22294_v6  ;;  %v4943_v32 = vpop.f32.mrf.mxu0  ;;  %v22395_v59 = vld [vmem:[#allocation126_spill] sm:$0xff] }
 0x40d   : > { %22290 = vst [vmem:[#allocation71_spill] sm:$0xff] %v18071_v15  ;;  %v18081_v19 = vor.u32 %v5896_v18, %v5611_v4  ;;  %8756 = vmatprep.mubr.bf16.mxu0 %v18071_v15  ;;  %v22296_v14 = vshrl.u32 %v17962_v41, 16  ;;  %v5602_v45 = vor.u32 %v5600_v38, %v5599_v0  ;;  %v18091_v26 = vor.u32 %v5614_v13, %v5613_v28 }
 0x40e   : > { %22291 = vst [vmem:[#allocation108_spill] sm:$0xff] %v18074_v47  ;;  %22292 = vst [vmem:[#allocation75_spill] sm:$0xff] %v18076_v17  ;;  %v5628_v35 = vshll.u32 %v18078_v55, 16  ;;  %v18095_v4 = vpack.c.bf16 %v18069_v50, %v18069_v50  ;;  %v4751_v18 = vadd.f32 %v4750_v46, %v4558_v11  ;;  %v22298_v31 = vshll.u32 %v17962_v41, 16 }
 0x40f   : > { %22293 = vst [vmem:[#allocation109_spill] sm:$0xff] %v18081_v19  ;;  %v5564_v44 = vrot.slane %v22296_v14, 7  ;;  %v5625_v38 = vshrl.u32 %v18078_v55, 16  ;;  %v22299_v61 = vshrl.u32 %v17985_v57, 16  ;;  %v5126_v28 = vunpack.c.h.b16 %v17886_v53  ;;  %v22307_v14 = vld [vmem:[#allocation70_spill] sm:$0xff] }
 0x410   : > { %22297 = vst [vmem:[#allocation79_spill] sm:$0xff] %v18095_v4  ;;  %v5900_v0 = vrot.slane %v5628_v35, 1  ;;  %v4944_v15 = vadd.f32 %v4943_v32, %v4751_v18  ;;  %v5128_v46 = vunpack.c.l.b16 %v17967_v12  ;;  %v18116_v55 = vsel %vm13683_vm5, 0, %v17975_v58  ;;  %v4752_v18 = vpop.f32.mrf.mxu1 }
 0x411   : > { %v5567_v6 = vor.u32 %v22298_v31, %v5564_v44  ;;  %v5578_v60 = vrot.slane %v22299_v61, 7  ;;  %v22302_v31 = vshll.u32 %v17985_v57, 16  ;;  %22303 = vst [vmem:[#allocation175_spill] sm:$0xff] %v18116_v55  ;;  %v18121_v61 = vsel %vm13683_vm5, 0, %v18050_v7 }
 0x412   : > { %v18109_v11 = vor.u32 %v5900_v0, %v5625_v38  ;;  %22304 = vst [vmem:[#allocation176_spill] sm:$0xff] %v18121_v61  ;;  %v18123_v32 = vpack.c.b16 %v5128_v46, %v5126_v28  ;;  %v18127_v0 = vcombine.low %v18116_v55, %v18121_v61  ;;  %v5131_v53 = vunpack.c.h.b16 %v18038_v29 }
 0x413   : > { %v18105_v13 = vsel %vm13683_vm5, 0, %v5567_v6  ;;  %v5581_v44 = vor.u32 %v22302_v31, %v5578_v60  ;;  %v5010_v6 = vmax.f32 %v4944_v15, 0.0  ;;  %v22308_v60 = vld [vmem:[#allocation111_spill] sm:$0xff]  ;;  %v5133_v7 = vunpack.c.l.b16 %v18074_v47 }
 0x414   : > { %22300 = vst [vmem:[#allocation110_spill] sm:$0xff] %v18105_v13  ;;  %22301 = vst [vmem:[#allocation174_spill] sm:$0xff] %v18109_v11  ;;  %v4560_v31 = vadd.f32 %v22308_v60, %v22307_v14  ;;  %v22310_v34 = vshrl.u32 %v18059_v62, 16  ;;  %8757 = vmatmul.mubr.bf16.gmra.mxu0 %v18123_v32  ;;  %v21371_v60 = vshll.u32 %v18076_v17, 16  ;;  %v5627_v29 = vrot.slane %v5625_v38, 7 }
 0x415   : > { %22305 = vst [vmem:[#allocation177_spill] sm:$0xff] %v18123_v32  ;;  %22306 = vst [vmem:[#allocation178_spill] sm:$0xff] %v18127_v0  ;;  %v18133_v58 = vsel %vm13683_vm5, 0, %v5581_v44  ;;  %v18139_v28 = vpack.c.bf16 %v5010_v6, %v5008_v54  ;;  %v18141_v46 = vpack.c.bf16 %v5010_v6, %v5010_v6  ;;  %v4945_v44 = vpop.f32.mrf.mxu0  ;;  %v18149_v55 = vpack.c.b16 %v5133_v7, %v5131_v53 }
 0x416   : > { %22309 = vst [vmem:[#allocation70_spill] sm:$0xff] %v18133_v58  ;;  %v5592_v15 = vrot.slane %v22310_v34, 7  ;;  %v18145_v8 = vcombine.low %v18105_v13, %v18133_v58  ;;  %v4753_v14 = vadd.f32 %v4752_v18, %v4560_v31  ;;  %v22314_v11 = vshrl.u32 %v18061_v27, 16  ;;  %v12815_v58 = vld [vmem:[%s21097_s5 + $0x5d4] ss:$8 sps:$4 sm:$0xff]  }
 0x417   : > { %22311 = vst [vmem:[#allocation111_spill] sm:$0xff] %v18139_v28  ;;  %22313 = vst [vmem:[#allocation180_spill] sm:$0xff] %v18149_v55  ;;  %v21369_v54 = vshll.u32 %v18141_v46, 16  ;;  %v22315_v13 = vshll.u32 %v18059_v62, 16  ;;  %v5132_v32 = vunpack.c.l.b16 %v18063_v2  ;;  %8766 = vmatprep.mubr.bf16.mxu0 %v18149_v55  ;;  %v22316_v53 = vshll.u32 %v18061_v27, 16 }
 0x418   : > { %22312 = vst [vmem:[#allocation179_spill] sm:$0xff] %v18145_v8  ;;  %v5606_v34 = vrot.slane %v22314_v11, 7  ;;  %8563 = vmatprep.mubr.bf16.mxu1 %v18145_v8  ;;  %v4946_v6 = vadd.f32 %v4945_v44, %v4753_v14  ;;  %v5130_v11 = vunpack.c.h.b16 %v17967_v12  ;;  %v18166_v31 = vsel %vm13683_vm5, 0, %v5602_v45  ;;  %v12837_v55 = vld [vmem:[%s21097_s5 + $0x590] ss:$8 sps:$4 sm:$0xff]  }
 0x419   : > { %v5595_v19 = vor.u32 %v22315_v13, %v5592_v15  ;;  %8564 = vmatmul.mubr.bf16.gmra.mxu1 %v18127_v0  ;;  %22317 = vst [vmem:[#allocation181_spill] sm:$0xff] %v18166_v31  ;;  %v21370_v7 = vshrl.u32 %v18141_v46, 16  ;;  %v5904_v13 = vrot.slane %v21369_v54, 1  ;;  %v18176_v14 = vsel %vm13683_vm5, 0, %v18057_v25 }
 0x41a   : > { %v5609_v38 = vor.u32 %v22316_v53, %v5606_v34  ;;  %v18171_v15 = vmax.f32 %v4946_v6, 0.0  ;;  %22318 = vst [vmem:[#allocation182_spill] sm:$0xff] %v18176_v14  ;;  %v5630_v44 = vor.u32 %v5628_v35, %v5627_v29  ;;  %v18184_v45 = vcombine.low %v18176_v14, %v18166_v31 }
 0x41b   : > { %v22321_v53 = vshrl.u32 %v18076_v17, 16  ;;  %v18190_v6 = vor.u32 %v5904_v13, %v21370_v7  ;;  %v18198_v29 = vsel %vm13683_vm5, 0, %v5595_v19  ;;  %v18200_v35 = vpack.c.b16 %v5132_v32, %v5130_v11  ;;  %v22388_v17 = vld [vmem:[#allocation68_spill] sm:$0xff] }
 0x41c   : > { %v18180_v34 = vsel %vm13683_vm5, 0, %v5609_v38  ;;  %22320 = vst [vmem:[#allocation184_spill] sm:$0xff] %v18184_v45  ;;  %v18194_v25 = vpack.c.bf16 %v18171_v15, %v18069_v50  ;;  %22324 = vst [vmem:[#allocation187_spill] sm:$0xff] %v18198_v29  ;;  %v21373_v38 = vshll.u32 %v18095_v4, 16  ;;  %v5135_v50 = vunpack.c.h.b16 %v18074_v47 }
 0x41d   : > { %22319 = vst [vmem:[#allocation183_spill] sm:$0xff] %v18180_v34  ;;  %v5620_v18 = vrot.slane %v22321_v53, 7  ;;  %22322 = vst [vmem:[#allocation185_spill] sm:$0xff] %v18190_v6  ;;  %v18205_v54 = vcombine.low %v18198_v29, %v18180_v34  ;;  %v22327_v53 = vshrl.u32 %v18095_v4, 16  ;;  %8767 = vmatmul.mubr.bf16.gmra.mxu0 %v18200_v35  ;;  %v18220_v11 = vsel %vm13683_vm5, 0, %v18091_v26 }
 0x41e   : > { %22323 = vst [vmem:[#allocation186_spill] sm:$0xff] %v18194_v25  ;;  %22325 = vst [vmem:[#allocation188_spill] sm:$0xff] %v18200_v35  ;;  %v5137_v19 = vunpack.c.l.b16 %v18194_v25  ;;  %v22360_v12 = vshrl.u32 %v17403_v1, 16  ;;  %v22396_v24 = vshll.u32 %v22395_v59, 16  ;;  %v22518_v14 = vshrl.u32 %v17789_v49, 16 }
 0x41f   : > { %22326 = vst [vmem:[#allocation189_spill] sm:$0xff] %v18205_v54  ;;  %v5623_v13 = vor.u32 %v21371_v60, %v5620_v18  ;;  %v5634_v7 = vrot.slane %v22327_v53, 7  ;;  %8573 = vmatprep.mubr.bf16.mxu1 %v18205_v54  ;;  %22328 = vst [vmem:[#allocation190_spill] sm:$0xff] %v18220_v11  ;;  %v18224_v18 = vsel %vm13683_vm5, 0, %v5630_v44  ;;  %v5136_v60 = vunpack.c.l.b16 %v18139_v28  ;;  %v22334_v44 = vld [vmem:[#allocation35_spill] sm:$0xff] }
 0x420   : > { %22329 = vst [vmem:[#allocation191_spill] sm:$0xff] %v18224_v18  ;;  %v18226_v53 = vpack.c.b16 %v5137_v19, %v5135_v50  ;;  %v18231_v35 = vcombine.low %v18220_v11, %v18224_v18  ;;  %v5134_v54 = vunpack.c.h.b16 %v18063_v2  ;;  %v22351_v2 = vld [vmem:[#allocation18_spill] sm:$0xff]  ;;  %v5802_v31 = vrot.slane %v22396_v24, 1 }
 0x421   : > { %v5637_v32 = vor.u32 %v21373_v38, %v5634_v7  ;;  %8574 = vmatmul.mubr.bf16.gmra.mxu1 %v18184_v45  ;;  %v18236_v7 = vsel %vm13683_vm5, 0, %v5623_v13  ;;  %v22335_v38 = vshll.u32 %v22334_v44, 16  ;;  %v22337_v45 = vshrl.u32 %v22334_v44, 16  ;;  %v22338_v13 = vld [vmem:[#allocation54_spill] sm:$0xff] }
 0x422   : > { %22330 = vst [vmem:[#allocation192_spill] sm:$0xff] %v18226_v53  ;;  %22331 = vst [vmem:[#allocation193_spill] sm:$0xff] %v18231_v35  ;;  %8776 = vmatprep.mubr.bf16.mxu0 %v18226_v53  ;;  %v18255_v8 = vsel %vm13718_vm6, %v22338_v13, 0  ;;  %v18263_v53 = vpack.c.b16 %v5136_v60, %v5134_v54  ;;  %v22347_v13 = vshll.u32 %v16663_v20, 16  ;;  %v22349_v60 = vld [vmem:[#allocation76_spill] sm:$0xff] }
 0x423   : > { %22332 = vst [vmem:[#allocation194_spill] sm:$0xff] %v18236_v7  ;;  %v18240_v26 = vsel %vm13683_vm5, 0, %v5637_v32  ;;  %v5782_v50 = vrot.slane %v22335_v38, 1  ;;  %22340 = vst [vmem:[#allocation54_spill] sm:$0xff] %v18255_v8  ;;  %v22341_v32 = vld [vmem:[#allocation72_spill] sm:$0xff]  ;;  %v22350_v54 = vshll.u32 %v22349_v60, 16 }
 0x424   : > { %22333 = vst [vmem:[#allocation195_spill] sm:$0xff] %v18240_v26  ;;  %v18247_v19 = vcombine.low %v18236_v7, %v18240_v26  ;;  %v18260_v38 = vsel %vm13718_vm6, %v22341_v32, 0  ;;  %22343 = vst [vmem:[#allocation72_spill] sm:$0xff] %v18263_v53  ;;  %v5790_v25 = vrot.slane %v22347_v13, 1  ;;  %v18279_v32 = vpack.c.bf16 %v16870_v3, %v16870_v3  ;;  %v22355_v13 = vld [vmem:[#allocation24_spill] sm:$0xff]  ;;  %v22363_v26 = vld [vmem:[#allocation119_spill] sm:$0xff] }
 0x425   : > { %v5783_v0 = vor.u32 %v5782_v50, %v22337_v45  ;;  %22342 = vst [vmem:[#allocation5_spill] sm:$0xff] %v18260_v38  ;;  %v18267_v28 = vcombine.low %v18255_v8, %v18260_v38  ;;  %v22345_v45 = vld [vmem:[#allocation114_spill] sm:$0xff]  ;;  %8777 = vmatmul.mubr.bf16.gmra.mxu0 %v18263_v53  ;;  %v18297_v3 = vsel %vm13718_vm6, %v22355_v13, 0  ;;  %v22357_v53 = vld [vmem:[#allocation17_spill] sm:$0xff]  ;;  %v5417_v8 = vrot.slane %v22360_v12, 7 }
 0x426   : > { %22336 = vst [vmem:[#allocation35_spill] sm:$0xff] %v18247_v19  ;;  %8583 = vmatprep.mubr.bf16.mxu1 %v18247_v19  ;;  %v11554_v44 = vcombine.low %v22345_v45, %v16831_v40  ;;  %22348 = vst [vmem:[#allocation197_spill] sm:$0xff] %v18279_v32  ;;  %v5786_v19 = vrot.slane %v22350_v54, 1  ;;  %v18287_v40 = vsel %vm13718_vm6, %v22351_v2, 0  ;;  %v12753_v38 = vld [vmem:[%s21097_s5 + $0x570] ss:$8 sps:$4 sm:$0xff]  }
 0x427   : > { %22344 = vst [vmem:[#allocation196_spill] sm:$0xff] %v18267_v28  ;;  %v18273_v50 = vsel %vm13718_vm6, %v5783_v0, 0  ;;  %22352 = vst [vmem:[#allocation76_spill] sm:$0xff] %v18287_v40  ;;  %v22353_v0 = vld [vmem:[#allocation8_spill] sm:$0xff]  ;;  %v18323_v12 = vsel %vm13718_vm6, %v22363_v26, 0 }
 0x428   : > { %22346 = vst [vmem:[#allocation114_spill] sm:$0xff] %v18273_v50  ;;  %9012 = vmatprep.mubr.bf16.mxu0 %v11554_v44  ;;  %v18292_v45 = vsel %vm13718_vm6, %v22353_v0, 0  ;;  %22356 = vst [vmem:[#allocation8_spill] sm:$0xff] %v18297_v3  ;;  %v22358_v44 = vshrl.u32 %v22357_v53, 16  ;;  %v11522_v54 = vcombine.low %v21987_v16, %v18273_v50  ;;  %v22361_v0 = vshrl.u32 %v16663_v20, 16  ;;  %v22365_v20 = vld [vmem:[#allocation7_spill] sm:$0xff] }
 0x429   : > { %22354 = vst [vmem:[#allocation18_spill] sm:$0xff] %v18292_v45  ;;  %v18305_v2 = vcombine.low %v18287_v40, %v18292_v45  ;;  %8584 = vmatmul.mubr.bf16.gmra.mxu1 %v18231_v35  ;;  %v22362_v45 = vshrl.u32 %v22349_v60, 16  ;;  %22364 = vst [vmem:[#allocation17_spill] sm:$0xff] %v18323_v12  ;;  %v18337_v60 = vpack.c.bf16 %v17484_v30, %v17484_v30  ;;  %v12761_v26 = vld [vmem:[%s21097_s5 + $0x564] ss:$8 sps:$4 sm:$0xff]   ;;  %v22375_v35 = vld [vmem:[#allocation112_spill] sm:$0xff] }
 0x42a   : > { %v5305_v47 = vrot.slane %v22358_v44, 7  ;;  %v5791_v6 = vor.u32 %v5790_v25, %v22361_v0  ;;  %8819 = vmatprep.mubr.bf16.mxu1 %v11522_v54  ;;  %v11521_v44 = vcombine.low %v21987_v16, %v18297_v3  ;;  %v18328_v25 = vsel %vm13718_vm6, %v22365_v20, 0 }
 0x42b   : > { %22359 = vst [vmem:[#allocation24_spill] sm:$0xff] %v18305_v2  ;;  %v5787_v40 = vor.u32 %v5786_v19, %v22362_v45  ;;  %22366 = vst [vmem:[#allocation119_spill] sm:$0xff] %v18328_v25  ;;  %v22367_v54 = vshll.u32 %v22357_v53, 16  ;;  %v18344_v19 = vcombine.low %v18323_v12, %v18328_v25  ;;  %v22370_v45 = vshll.u32 %v17403_v1, 16  ;;  %v22372_v53 = vld [vmem:[#allocation120_spill] sm:$0xff] }
 0x42c   : > { %22368 = vst [vmem:[#allocation7_spill] sm:$0xff] %v18337_v60  ;;  %v18357_v13 = vsel %vm13718_vm6, %v5791_v6, 0  ;;  %v22376_v3 = vshll.u32 %v22375_v35, 16  ;;  %v18363_v25 = vpack.c.bf16 %v17848_v33, %v17848_v33  ;;  %v22378_v1 = vshrl.u32 %v18141_v46, 16  ;;  %v22382_v6 = vld [vmem:[#allocation10_spill] sm:$0xff] }
 0x42d   : > { %v18332_v0 = vor.u32 %v22367_v54, %v5305_v47  ;;  %22369 = vst [vmem:[#allocation198_spill] sm:$0xff] %v18344_v19  ;;  %v18348_v20 = vor.u32 %v22370_v45, %v5417_v8  ;;  %v12750_v47 = vld [vmem:[%s21097_s5 + $0x470] ss:$8 sps:$4 sm:$0xff]   ;;  %v22373_v54 = vld [vmem:[#allocation123_spill] sm:$0xff]  ;;  %22374 = vst [vmem:[#allocation120_spill] sm:$0xff] %v18357_v13  ;;  %v18379_v33 = vsel %vm13718_vm6, %v5787_v40, 0 }
 0x42e   : > { %v11556_v30 = vcombine.low %v22373_v54, %v22372_v53  ;;  %v5798_v50 = vrot.slane %v22376_v3, 1  ;;  %22377 = vst [vmem:[#allocation123_spill] sm:$0xff] %v18363_v25  ;;  %v5641_v8 = vrot.slane %v22378_v1, 7  ;;  %v22379_v45 = vld [vmem:[#allocation74_spill] sm:$0xff]  ;;  %v22383_v54 = vshll.u32 %v22382_v6, 16  ;;  %22385 = vst [vmem:[#allocation112_spill] sm:$0xff] %v18379_v33 }
 0x42f   : > { %22371 = vst [vmem:[#allocation199_spill] sm:$0xff] %v18348_v20  ;;  %v22380_v20 = vld [vmem:[#allocation121_spill] sm:$0xff]  ;;  %v12758_v53 = vld [vmem:[%s21097_s5 + $0x464] ss:$8 sps:$4 sm:$0xff]   ;;  %v22384_v3 = vshrl.u32 %v18279_v32, 16  ;;  %v22394_v40 = vshrl.u32 %v22375_v35, 16 }
 0x430   : > { %v22381_v12 = vcombine.low %v22379_v45, %v22380_v20  ;;  %v5794_v18 = vrot.slane %v22383_v54, 1  ;;  %v22386_v20 = vld [vmem:[#allocation31_spill] sm:$0xff]  ;;  %v18389_v54 = vsel %vm13718_vm6, %v22388_v17, 0  ;;  %v12767_v17 = vld [vmem:[%s21097_s5 + $0x554] ss:$8 sps:$4 sm:$0xff]   ;;  %v22400_v35 = vshll.u32 %v18279_v32, 16 }
 0x431   : > { %v5312_v4 = vrot.slane %v22384_v3, 7  ;;  %v22387_v1 = vshll.u32 %v22386_v20, 16  ;;  %22389 = vst [vmem:[#allocation74_spill] sm:$0xff] %v18389_v54  ;;  %v18403_v3 = vcombine.low %v18379_v33, %v18357_v13  ;;  %8820 = vmatmul.mubr.bf16.vlgmr.msra.gmra.mxu1 %v11521_v44  ;;  %v22397_v13 = vld [vmem:[#allocation45_spill] sm:$0xff]  ;;  %v22399_v44 = vshrl.u32 %v22382_v6, 16  ;;  %v22438_v25 = vld [vmem:[#allocation2_spill] sm:$0xff] }
 0x432   : > { %9013 = vmatmul.mubr.bf16.vlgmr.msra.gmra.mxu0 %v22381_v12  ;;  %v12759_v12 = vld [vmem:[%s21097_s5 + $0x560] ss:$8 sps:$4 sm:$0xff]   ;;  %v22398_v33 = vshll.u32 %v22397_v13, 16  ;;  %9174 = vmatpush1.bf16.msra.mxu1 %v12750_v47  ;;  %v22403_v47 = vshll.u32 %v18141_v46, 16  ;;  %v22404_v6 = vshrl.u32 %v22386_v20, 16  ;;  %v22413_v46 = vshrl.u32 %v22395_v59, 16 }
 0x433   : > { %9022 = vmatprep.mubr.bf16.mxu0 %v11556_v30  ;;  %9367 = vmatpush1.bf16.msra.mxu0 %v12753_v38  ;;  %v5806_v45 = vrot.slane %v22387_v1, 1  ;;  %v18394_v38 = vsel %vm13718_vm6, %v22390_v51, 0  ;;  %v18399_v30 = vpack.c.bf16 %v18171_v15, %v18171_v15  ;;  %22392 = vst [vmem:[#allocation10_spill] sm:$0xff] %v18403_v3  ;;  %v5799_v15 = vor.u32 %v5798_v50, %v22394_v40  ;;  %v22401_v40 = vld [vmem:[#allocation87_spill] sm:$0xff]  ;;  %v12762_v59 = vld [vmem:[%s21097_s5 + $0x450] ss:$8 sps:$4 sm:$0xff]  }
 0x434   : > { %22391 = vst [vmem:[#allocation121_spill] sm:$0xff] %v18394_v38  ;;  %9368 = vmatprep.subr.bf16.mxu0 %v12761_v26  ;;  %v18410_v1 = vcombine.low %v18389_v54, %v18394_v38  ;;  %v5814_v26 = vrot.slane %v22398_v33, 1  ;;  %8829 = vmatprep.mubr.bf16.mxu1 %v18403_v3  ;;  %v5795_v51 = vor.u32 %v5794_v18, %v22399_v44  ;;  %v18431_v24 = vsel %vm13718_vm6, %v22401_v40, 0  ;;  %v12764_v18 = vld [vmem:[%s21097_s5 + $0x454] ss:$8 sps:$4 sm:$0xff]   ;;  %v22405_v44 = vld [vmem:[#allocation50_spill] sm:$0xff] }
 0x435   : > { %v5315_v50 = vor.u32 %v22400_v35, %v5312_v4  ;;  %22402 = vst [vmem:[#allocation68_spill] sm:$0xff] %v18431_v24  ;;  %v18436_v11 = vor.u32 %v22403_v47, %v5641_v8  ;;  %9175 = vmatprep.subr.bf16.mxu1 %v12758_v53  ;;  %v5807_v4 = vor.u32 %v5806_v45, %v22404_v6  ;;  %v18446_v35 = vsel %vm13718_vm6, %v22405_v44, 0  ;;  %v22407_v8 = vld [vmem:[#allocation129_spill] sm:$0xff]  ;;  %v22410_v45 = vld [vmem:[#allocation46_spill] sm:$0xff]  ;;  %v22411_v6 = vld [vmem:[#allocation140_spill] sm:$0xff] }
 0x436   : > { %22393 = vst [vmem:[#allocation31_spill] sm:$0xff] %v18410_v1  ;;  %v12756_v1 = vld [vmem:[%s21097_s5 + $0x460] ss:$8 sps:$4 sm:$0xff]   ;;  %22406 = vst [vmem:[#allocation122_spill] sm:$0xff] %v18446_v35  ;;  %v22408_v47 = vld [vmem:[#allocation137_spill] sm:$0xff]  ;;  %v18457_v20 = vcombine.low %v18446_v35, %v18431_v24  ;;  %v11558_v44 = vcombine.low %v22411_v6, %v22410_v45  ;;  %v18463_v33 = vsel %vm13718_vm6, %v5799_v15, 0  ;;  %v5803_v40 = vor.u32 %v5802_v31, %v22413_v46 }
 0x437   : > { %9369 = vmatpush1.bf16.msra.mxu0 %v12759_v12  ;;  %v11555_v53 = vcombine.low %v22408_v47, %v22407_v8  ;;  %v12765_v12 = vld [vmem:[%s21097_s5 + $0x550] ss:$8 sps:$4 sm:$0xff]   ;;  %22412 = vst [vmem:[#allocation45_spill] sm:$0xff] %v18463_v33  ;;  %v12773_v8 = vld [vmem:[%s21097_s5 + $0x544] ss:$8 sps:$4 sm:$0xff]   ;;  %9176 = vmatpush1.bf16.msra.mxu1 %v12756_v1  ;;  %v18474_v3 = vsel %vm13718_vm6, %v5795_v51, 0 }
 0x438   : > { %9370 = vmatprep.subr.bf16.mxu0 %v12767_v17  ;;  %22409 = vst [vmem:[#allocation126_spill] sm:$0xff] %v18457_v20  ;;  %v22414_v17 = vshrl.u32 %v22397_v13, 16  ;;  %22415 = vst [vmem:[#allocation87_spill] sm:$0xff] %v18474_v3  ;;  %v22416_v45 = vld [vmem:[#allocation125_spill] sm:$0xff]  ;;  %v22417_v6 = vld [vmem:[#allocation91_spill] sm:$0xff]  ;;  %v18483_v31 = vsel %vm13683_vm5, 0, %v5315_v50  ;;  %9177 = vmatprep.subr.bf16.mxu1 %v12764_v18  ;;  %v18509_v18 = vpop.f32.mrf.mxu0 }
 0x439   : > { %v11557_v15 = vcombine.low %v22417_v6, %v22416_v45  ;;  %22418 = vst [vmem:[#allocation50_spill] sm:$0xff] %v18483_v31  ;;  %v18488_v13 = vsel %vm13683_vm5, 0, %v18332_v0  ;;  %v18492_v1 = vsel %vm13718_vm6, %v5807_v4, 0  ;;  %v12770_v51 = vld [vmem:[%s21097_s5 + $0x444] ss:$8 sps:$4 sm:$0xff]   ;;  %v18507_v0 = vsel %vm13718_vm6, %v17392_v10, 0  ;;  %8830 = vmatmul.mubr.bf16.gmra.mxu1 %v18267_v28 }
 0x43a   : > { %v5815_v47 = vor.u32 %v5814_v26, %v22414_v17  ;;  %9023 = vmatmul.mubr.bf16.gmra.mxu0 %v11555_v53  ;;  %22419 = vst [vmem:[#allocation129_spill] sm:$0xff] %v18488_v13  ;;  %22420 = vst [vmem:[#allocation137_spill] sm:$0xff] %v18492_v1  ;;  %v22421_v26 = vshll.u32 %v17106_v23, 16  ;;  %v22422_v50 = vld [vmem:[#allocation135_spill] sm:$0xff]  ;;  %v18513_v4 = vcombine.low %v18474_v3, %v18463_v33  ;;  %v22429_v6 = vshll.u32 %v17229_v5, 16  ;;  %v18574_v32 = vpop.f32.mrf.mxu0 }
 0x43b   : > { %9032 = vmatprep.mubr.bf16.mxu0 %v11558_v44  ;;  %v18502_v53 = vsel %vm13718_vm6, %v22422_v50, 0  ;;  %22424 = vst [vmem:[#allocation140_spill] sm:$0xff] %v18507_v0  ;;  %22425 = vst [vmem:[#allocation125_spill] sm:$0xff] %v18509_v18  ;;  %9371 = vmatpush1.bf16.msra.mxu0 %v12765_v12  ;;  %v12771_v44 = vld [vmem:[%s21097_s5 + $0x540] ss:$8 sps:$4 sm:$0xff]   ;;  %v18532_v12 = vsel %vm13718_vm6, %v5803_v40, 0 }
 0x43c   : > { %v5818_v46 = vrot.slane %v22421_v26, 1  ;;  %22423 = vst [vmem:[#allocation46_spill] sm:$0xff] %v18502_v53  ;;  %22426 = vst [vmem:[#allocation91_spill] sm:$0xff] %v18513_v4  ;;  %v22427_v17 = vld [vmem:[#allocation131_spill] sm:$0xff]  ;;  %v5822_v10 = vrot.slane %v22429_v6, 1  ;;  %v18527_v26 = vcombine.low %v18502_v53, %v18507_v0  ;;  %9372 = vmatprep.subr.bf16.mxu0 %v12773_v8  ;;  %8839 = vmatprep.mubr.bf16.mxu1 %v18513_v4  ;;  %v22435_v40 = vld [vmem:[#allocation25_spill] sm:$0xff]  ;;  %v18559_v53 = vpop.f32.mrf.mxu1 }
 0x43d   : > { %v18521_v45 = vsel %vm13718_vm6, %v22427_v17, 0  ;;  %22431 = vst [vmem:[#allocation200_spill] sm:$0xff] %v18532_v12  ;;  %v22432_v50 = vld [vmem:[#allocation47_spill] sm:$0xff]  ;;  %v18538_v17 = vsel %vm13718_vm6, %v5815_v47, 0  ;;  %v12779_v6 = vld [vmem:[%s21097_s5 + $0x534] ss:$8 sps:$4 sm:$0xff]   ;;  %v11560_v28 = vcombine.low %v22435_v40, %v18483_v31  ;;  %9178 = vmatpush1.bf16.msra.mxu1 %v12762_v59  ;;  %v18550_v8 = vcombine.low %v18532_v12, %v18492_v1 }
 0x43e   : > { %22428 = vst [vmem:[#allocation135_spill] sm:$0xff] %v18521_v45  ;;  %22430 = vst [vmem:[#allocation131_spill] sm:$0xff] %v18527_v26  ;;  %v22434_v26 = vshll.u32 %v17319_v21, 16  ;;  %v12768_v47 = vld [vmem:[%s21097_s5 + $0x440] ss:$8 sps:$4 sm:$0xff]   ;;  %v22439_v24 = vshrl.u32 %v18337_v60, 16  ;;  %9179 = vmatprep.subr.bf16.mxu1 %v12770_v51  ;;  %v18568_v1 = vcombine.low %v21987_v16, %v18521_v45  ;;  %v18578_v51 = vcombine.low %v21987_v16, %v18538_v17  ;;  %v18589_v3 = vpop.f32.mrf.mxu1 }
 0x43f   : > { %22433 = vst [vmem:[#allocation47_spill] sm:$0xff] %v18538_v17  ;;  %22436 = vst [vmem:[#allocation25_spill] sm:$0xff] %v18550_v8  ;;  %v22437_v18 = vld [vmem:[#allocation138_spill] sm:$0xff]  ;;  %v22441_v4 = vld [vmem:[#allocation132_spill] sm:$0xff]  ;;  %v22444_v38 = vshrl.u32 %v17106_v23, 16  ;;  %9373 = vmatpush1.bf16.msra.mxu0 %v12771_v44  ;;  %v22450_v23 = vshrl.u32 %v17229_v5, 16 }
 0x440   : > { %v5830_v20 = vrot.slane %v22434_v26, 1  ;;  %v5424_v26 = vrot.slane %v22439_v24, 7  ;;  %22440 = vst [vmem:[#allocation138_spill] sm:$0xff] %v18559_v53  ;;  %v22442_v40 = vld [vmem:[#allocation133_spill] sm:$0xff]  ;;  %22443 = vst [vmem:[#allocation2_spill] sm:$0xff] %v18568_v1  ;;  %v22445_v35 = vld [vmem:[#allocation55_spill] sm:$0xff]  ;;  %9374 = vmatprep.subr.bf16.mxu0 %v12779_v6 }
 0x441   : > { %v12776_v31 = vld [vmem:[%s21097_s5 + $0x434] ss:$8 sps:$4 sm:$0xff]   ;;  %v5819_v0 = vor.u32 %v5818_v46, %v22444_v38  ;;  %v22446_v54 = vshll.u32 %v22445_v35, 16  ;;  %22447 = vst [vmem:[#allocation132_spill] sm:$0xff] %v18574_v32  ;;  %v12777_v59 = vld [vmem:[%s21097_s5 + $0x530] ss:$8 sps:$4 sm:$0xff]   ;;  %v5823_v38 = vor.u32 %v5822_v10, %v22450_v23  ;;  %9180 = vmatpush1.bf16.msra.mxu1 %v12768_v47 }
 0x442   : > { %v22448_v53 = vld [vmem:[#allocation84_spill] sm:$0xff]  ;;  %v22449_v45 = vld [vmem:[#allocation102_spill] sm:$0xff]  ;;  %v22452_v12 = vld [vmem:[#allocation11_spill] sm:$0xff]  ;;  %22453 = vst [vmem:[#allocation133_spill] sm:$0xff] %v18589_v3  ;;  %v22454_v32 = vshrl.u32 %v17319_v21, 16  ;;  %v22455_v17 = vshll.u32 %v17432_v42, 16  ;;  %9033 = vmatmul.mubr.bf16.gmra.mxu0 %v11557_v15  ;;  %9181 = vmatprep.subr.bf16.mxu1 %v12776_v31 }
 0x443   : > { %v5826_v24 = vrot.slane %v22446_v54, 1  ;;  %v12785_v44 = vld [vmem:[%s21097_s5 + $0x524] ss:$8 sps:$4 sm:$0xff]   ;;  %v18601_v5 = vsel %vm13718_vm6, %v17558_v9, 0  ;;  %v12774_v21 = vld [vmem:[%s21097_s5 + $0x430] ss:$8 sps:$4 sm:$0xff]   ;;  %9042 = vmatprep.mubr.bf16.mxu0 %v11560_v28  ;;  %9375 = vmatpush1.bf16.msra.mxu0 %v12777_v59 }
 0x444   : > { %v5831_v16 = vor.u32 %v5830_v20, %v22454_v32  ;;  %v5834_v1 = vrot.slane %v22455_v17, 1  ;;  %22456 = vst [vmem:[#allocation55_spill] sm:$0xff] %v18601_v5  ;;  %v22457_v10 = vld [vmem:[#allocation67_spill] sm:$0xff]  ;;  %v22459_v32 = vshll.u32 %v18337_v60, 16  ;;  %v22460_v17 = vld [vmem:[#allocation37_spill] sm:$0xff]  ;;  %v18623_v15 = vsel %vm13718_vm6, %v5819_v0, 0  ;;  %v18632_v60 = vpop.f32.mrf.mxu0  ;;  %8840 = vmatmul.mubr.bf16.gmra.mxu1 %v18305_v2  ;;  %9376 = vmatprep.subr.bf16.mxu0 %v12785_v44 }
 0x445   : > { %v18606_v23 = vsel %vm13718_vm6, %v22457_v10, 0  ;;  %v22461_v6 = vshll.u32 %v22460_v17, 16  ;;  %v22462_v33 = vld [vmem:[#allocation99_spill] sm:$0xff]  ;;  %22465 = vst [vmem:[#allocation11_spill] sm:$0xff] %v18623_v15  ;;  %v22467_v10 = vld [vmem:[#allocation82_spill] sm:$0xff]  ;;  %22469 = vst [vmem:[#allocation67_spill] sm:$0xff] %v18632_v60  ;;  %8849 = vmatprep.mubr.bf16.mxu1 %v18550_v8  ;;  %9182 = vmatpush1.bf16.msra.mxu1 %v12774_v21 }
 0x446   : > { %22458 = vst [vmem:[#allocation84_spill] sm:$0xff] %v18606_v23  ;;  %v5427_v20 = vor.u32 %v22459_v32, %v5424_v26  ;;  %v22463_v9 = vshll.u32 %v22462_v33, 16  ;;  %v18619_v46 = vcombine.low %v18601_v5, %v18606_v23  ;;  %v12782_v47 = vld [vmem:[%s21097_s5 + $0x424] ss:$8 sps:$4 sm:$0xff]   ;;  %v18638_v31 = vsel %vm13718_vm6, %v5823_v38, 0  ;;  %v18645_v5 = vpop.f32.mrf.mxu1 }
 0x447   : > { %v5838_v54 = vrot.slane %v22461_v6, 1  ;;  %v22466_v26 = vld [vmem:[#allocation66_spill] sm:$0xff]  ;;  %v22468_v6 = vshrl.u32 %v22445_v35, 16  ;;  %22471 = vst [vmem:[#allocation37_spill] sm:$0xff] %v18638_v31  ;;  %v22472_v23 = vshll.u32 %v17680_v52, 16  ;;  %22473 = vst [vmem:[#allocation99_spill] sm:$0xff] %v18645_v5  ;;  %v18689_v21 = vcombine.low %v18623_v15, %v18638_v31  ;;  %9183 = vmatprep.subr.bf16.mxu1 %v12782_v47 }
 0x448   : > { %v5846_v3 = vrot.slane %v22463_v9, 1  ;;  %22464 = vst [vmem:[#allocation102_spill] sm:$0xff] %v18619_v46  ;;  %v22470_v46 = vshll.u32 %v17678_v36, 16  ;;  %v12783_v0 = vld [vmem:[%s21097_s5 + $0x520] ss:$8 sps:$4 sm:$0xff]   ;;  %v18660_v38 = vsel %vm13718_vm6, %v5831_v16, 0 }
 0x449   : > { %v5827_v9 = vor.u32 %v5826_v24, %v22468_v6  ;;  %v5854_v32 = vrot.slane %v22472_v23, 1  ;;  %v22474_v35 = vld [vmem:[#allocation146_spill] sm:$0xff]  ;;  %v12791_v23 = vld [vmem:[%s21097_s5 + $0x514] ss:$8 sps:$4 sm:$0xff]   ;;  %v22479_v6 = vshrl.u32 %v17432_v42, 16  ;;  %v22480_v60 = vshll.u32 %v17723_v56, 16  ;;  %9377 = vmatpush1.bf16.msra.mxu0 %v12783_v0 }
 0x44a   : > { %v5850_v28 = vrot.slane %v22470_v46, 1  ;;  %v18650_v24 = vsel %vm13718_vm6, %v22474_v35, 0  ;;  %v22476_v46 = vld [vmem:[#allocation34_spill] sm:$0xff]  ;;  %22478 = vst [vmem:[#allocation146_spill] sm:$0xff] %v18660_v38  ;;  %v18679_v44 = vsel %vm13683_vm5, 0, %v5427_v20  ;;  %v22483_v42 = vshrl.u32 %v22460_v17, 16  ;;  %9378 = vmatprep.subr.bf16.mxu0 %v12791_v23 }
 0x44b   : > { %22475 = vst [vmem:[#allocation66_spill] sm:$0xff] %v18650_v24  ;;  %v18655_v59 = vsel %vm13718_vm6, %v22476_v46, 0  ;;  %v5835_v35 = vor.u32 %v5834_v1, %v22479_v6  ;;  %v5858_v5 = vrot.slane %v22480_v60, 1  ;;  %v12780_v16 = vld [vmem:[%s21097_s5 + $0x420] ss:$8 sps:$4 sm:$0xff]   ;;  %22482 = vst [vmem:[#allocation201_spill] sm:$0xff] %v18679_v44  ;;  %v22501_v23 = vcombine.low %v22432_v50, %v18488_v13 }
 0x44c   : > { %22477 = vst [vmem:[#allocation82_spill] sm:$0xff] %v18655_v59  ;;  %v18671_v46 = vcombine.low %v18650_v24, %v18655_v59  ;;  %v5839_v1 = vor.u32 %v5838_v54, %v22483_v42  ;;  %v22484_v60 = vshrl.u32 %v22462_v33, 16  ;;  %v22485_v2 = vshll.u32 %v17725_v22, 16  ;;  %22486 = vst [vmem:[#allocation202_spill] sm:$0xff] %v18689_v21  ;;  %v22488_v20 = vld [vmem:[#allocation141_spill] sm:$0xff]  ;;  %v22489_v59 = vld [vmem:[#allocation118_spill] sm:$0xff]  ;;  %9184 = vmatpush1.bf16.msra.mxu1 %v12780_v16 }
 0x44d   : > { %v18693_v8 = vsel %vm13718_vm6, %v5827_v9, 0  ;;  %v12788_v33 = vld [vmem:[%s21097_s5 + $0x414] ss:$8 sps:$4 sm:$0xff]   ;;  %v12789_v47 = vld [vmem:[%s21097_s5 + $0x510] ss:$8 sps:$4 sm:$0xff]   ;;  %v22493_v9 = vshrl.u32 %v17680_v52, 16  ;;  %9043 = vmatmul.mubr.bf16.gmra.mxu0 %v22501_v23  ;;  %v22504_v23 = vcombine.low %v22438_v25, %v22437_v18  ;;  %8850 = vmatmul.mubr.bf16.gmra.mxu1 %v18344_v19 }
 0x44e   : > { %22481 = vst [vmem:[#allocation34_spill] sm:$0xff] %v18671_v46  ;;  %v5847_v6 = vor.u32 %v5846_v3, %v22484_v60  ;;  %v5862_v46 = vrot.slane %v22485_v2, 1  ;;  %22487 = vst [vmem:[#allocation203_spill] sm:$0xff] %v18693_v8  ;;  %v22490_v3 = vshrl.u32 %v17678_v36, 16  ;;  %v18702_v2 = vpop.f32.mrf.mxu0  ;;  %v18706_v17 = vcombine.low %v18693_v8, %v18660_v38  ;;  %v18713_v60 = vpop.f32.mrf.mxu1  ;;  %v22495_v24 = vld [vmem:[#allocation147_spill] sm:$0xff]  ;;  %v22498_v0 = vld [vmem:[#allocation65_spill] sm:$0xff]  ;;  %9185 = vmatprep.subr.bf16.mxu1 %v12788_v33 }
 0x44f   : > { %22491 = vst [vmem:[#allocation141_spill] sm:$0xff] %v18702_v2  ;;  %v5855_v42 = vor.u32 %v5854_v32, %v22493_v9  ;;  %22494 = vst [vmem:[#allocation204_spill] sm:$0xff] %v18713_v60  ;;  %v18718_v36 = vsel %vm13718_vm6, %v22495_v24, 0  ;;  %v18729_v52 = vsel %vm13718_vm6, %v5835_v35, 0  ;;  %v12797_v32 = vld [vmem:[%s21097_s5 + $0x504] ss:$8 sps:$4 sm:$0xff]   ;;  %9052 = vmatprep.mubr.bf16.mxu0 %v22504_v23  ;;  %9379 = vmatpush1.bf16.msra.mxu0 %v12789_v47 }
 0x450   : > { %v5851_v54 = vor.u32 %v5850_v28, %v22490_v3  ;;  %22492 = vst [vmem:[#allocation118_spill] sm:$0xff] %v18706_v17  ;;  %22496 = vst [vmem:[#allocation147_spill] sm:$0xff] %v18718_v36  ;;  %v18723_v28 = vsel %vm13718_vm6, %v17787_v39, 0  ;;  %v18734_v9 = vpop.f32.mrf.mxu0  ;;  %v22499_v24 = vshrl.u32 %v17723_v56, 16  ;;  %v12786_v35 = vld [vmem:[%s21097_s5 + $0x410] ss:$8 sps:$4 sm:$0xff]   ;;  %9380 = vmatprep.subr.bf16.mxu0 %v12797_v32  ;;  %8859 = vmatprep.mubr.bf16.mxu1 %v18578_v51 }
 0x451   : > { %22497 = vst [vmem:[#allocation205_spill] sm:$0xff] %v18723_v28  ;;  %v18740_v39 = vcombine.low %v18718_v36, %v18723_v28  ;;  %v18750_v3 = vsel %vm13718_vm6, %v5839_v1, 0  ;;  %v18754_v56 = vsel %vm13718_vm6, %v5847_v6, 0  ;;  %v22503_v50 = vshrl.u32 %v17725_v22, 16  ;;  %v12794_v1 = vld [vmem:[%s21097_s5 + $0x404] ss:$8 sps:$4 sm:$0xff]   ;;  %9186 = vmatpush1.bf16.msra.mxu1 %v12786_v35 }
 0x452   : > { %v5859_v2 = vor.u32 %v5858_v5, %v22499_v24  ;;  %v22502_v5 = vld [vmem:[#allocation116_spill] sm:$0xff]  ;;  %v18771_v6 = vsel %vm13718_vm6, %v5851_v54, 0  ;;  %v18773_v13 = vpop.f32.mrf.mxu0  ;;  %v22506_v22 = vshll.u32 %v17789_v49, 16  ;;  %v22507_v25 = vshll.u32 %v17962_v41, 16  ;;  %v12795_v33 = vld [vmem:[%s21097_s5 + $0x500] ss:$8 sps:$4 sm:$0xff]   ;;  %9187 = vmatprep.subr.bf16.mxu1 %v12794_v1 }
 0x453   : > { %22500 = vst [vmem:[#allocation65_spill] sm:$0xff] %v18740_v39  ;;  %v18759_v24 = vsel %vm13718_vm6, %v22502_v5, 0  ;;  %v5863_v16 = vor.u32 %v5862_v46, %v22503_v50  ;;  %v22505_v5 = vshll.u32 %v17780_v43, 16  ;;  %v18786_v54 = vsel %vm13718_vm6, %v5855_v42, 0  ;;  %v18788_v50 = vpop.f32.mrf.mxu1  ;;  %v12803_v47 = vld [vmem:[%s21097_s5 + $0x5f4] ss:$8 sps:$4 sm:$0xff]   ;;  %9381 = vmatpush1.bf16.msra.mxu0 %v12795_v33 }
 0x454   : > { %v5870_v46 = vrot.slane %v22506_v22, 1  ;;  %v5882_v18 = vrot.slane %v22507_v25, 1  ;;  %v18802_v42 = vsel %vm13718_vm6, %v5859_v2, 0  ;;  %v18804_v39 = vpop.f32.mrf.mxu0  ;;  %v22510_v23 = vshrl.u32 %v17962_v41, 16  ;;  %v12792_v2 = vld [vmem:[%s21097_s5 + $0x400] ss:$8 sps:$4 sm:$0xff]   ;;  %9382 = vmatprep.subr.bf16.mxu0 %v12803_v47 }
 0x455   : > { %v5866_v60 = vrot.slane %v22505_v5, 1  ;;  %v22508_v5 = vshll.u32 %v17985_v57, 16  ;;  %22509 = vst [vmem:[#allocation116_spill] sm:$0xff] %v18804_v39  ;;  %v18816_v32 = vsel %vm13718_vm6, %v18008_v63, 0  ;;  %v18824_v41 = vsel %vm13718_vm6, %v5863_v16, 0  ;;  %9188 = vmatpush1.bf16.msra.mxu1 %v12792_v2  ;;  %v22586_v8 = vld [vmem:[#allocation119_spill] sm:$0xff] }
 0x456   : > { %v5883_v29 = vor.u32 %v5882_v18, %v22510_v23  ;;  %22512 = vst [vmem:[#allocation207_spill] sm:$0xff] %v18816_v32  ;;  %22513 = vst [vmem:[#allocation208_spill] sm:$0xff] %v18824_v41  ;;  %v18826_v18 = vpop.f32.mrf.mxu1  ;;  %v22516_v51 = vshll.u32 %v18059_v62, 16  ;;  %v12800_v25 = vld [vmem:[%s21097_s5 + $0x4f4] ss:$8 sps:$4 sm:$0xff]   ;;  %v22517_v16 = vshrl.u32 %v17780_v43, 16  ;;  %v18856_v43 = vpop.f32.mrf.mxu0  ;;  %v22616_v38 = vcombine.low %v22489_v59, %v22488_v20 }
 0x457   : > { %v5886_v22 = vrot.slane %v22508_v5, 1  ;;  %v18811_v5 = vsel %vm13718_vm6, %v17938_v37, 0  ;;  %v22514_v37 = vshrl.u32 %v17985_v57, 16  ;;  %v18845_v57 = vor.u32 %v5870_v46, %v22518_v14  ;;  %v12801_v1 = vld [vmem:[%s21097_s5 + $0x5f0] ss:$8 sps:$4 sm:$0xff]   ;;  %22520 = vst [vmem:[#allocation210_spill] sm:$0xff] %v18856_v43  ;;  %9189 = vmatprep.subr.bf16.mxu1 %v12800_v25 }
 0x458   : > { %22511 = vst [vmem:[#allocation206_spill] sm:$0xff] %v18811_v5  ;;  %v18832_v63 = vcombine.low %v18811_v5, %v18816_v32  ;;  %v5890_v35 = vrot.slane %v22516_v51, 1  ;;  %v18841_v19 = vor.u32 %v5866_v60, %v22517_v16  ;;  %v18854_v51 = vpop.f32.mrf.mxu1  ;;  %v18860_v49 = vsel %vm13718_vm6, %v5883_v29, 0  ;;  %v22537_v16 = vld [vmem:[#allocation75_spill] sm:$0xff]  ;;  %9383 = vmatpush2.bf16.msra.mxu0 %v12801_v1  ;;  %v18931_v25 = vpop.f32.mrf.mxu0  ;;  %v22551_v1 = vld [vmem:[#allocation2_spill] sm:$0xff]  ;;  %v22638_v32 = vld [vmem:[#allocation20_spill] sm:$0xff] }
 0x459   : > { %v5887_v23 = vor.u32 %v5886_v22, %v22514_v37  ;;  %v22519_v37 = vshll.u32 %v18061_v27, 16  ;;  %22521 = vst [vmem:[#allocation211_spill] sm:$0xff] %v18860_v49  ;;  %v22523_v60 = vshrl.u32 %v18059_v62, 16  ;;  %v12809_v22 = vld [vmem:[%s21097_s5 + $0x5e4] ss:$8 sps:$4 sm:$0xff]   ;;  %v22527_v29 = vshrl.u32 %v18061_v27, 16  ;;  %8860 = vmatmul.mubr.bf16.gmra.mxu1 %v22551_v1 }
 0x45a   : > { %22515 = vst [vmem:[#allocation209_spill] sm:$0xff] %v18832_v63  ;;  %v12798_v27 = vld [vmem:[%s21097_s5 + $0x4f0] ss:$8 sps:$4 sm:$0xff]   ;;  %v22536_v33 = vshrl.u32 %v18399_v30, 16  ;;  %v22538_v34 = vshll.u32 %v22537_v16, 16  ;;  %v18911_v2 = vpop.f32.mrf.mxu1  ;;  %22546 = vst [vmem:[#allocation216_spill] sm:$0xff] %v18931_v25  ;;  %9384 = vmatprep.subr.bf16.mxu0 %v12809_v22  ;;  %8869 = vmatprep.mubr.bf16.mxu1 %v18689_v21  ;;  %v18997_v1 = vpop.f32.mrf.mxu0 }
 0x45b   : > { %v5894_v63 = vrot.slane %v22519_v37, 1  ;;  %v18864_v14 = vsel %vm13718_vm6, %v5887_v23, 0  ;;  %v5891_v46 = vor.u32 %v5890_v35, %v22523_v60  ;;  %v22528_v23 = vld [vmem:[#allocation172_spill] sm:$0xff]  ;;  %v22530_v35 = vld [vmem:[#allocation107_spill] sm:$0xff]  ;;  %v22532_v60 = vcombine.low %v22442_v40, %v22441_v4  ;;  %22540 = vst [vmem:[#allocation75_spill] sm:$0xff] %v18911_v2  ;;  %9190 = vmatpush2.bf16.msra.mxu1 %v12798_v27  ;;  %22570 = vst [vmem:[#allocation221_spill] sm:$0xff] %v18997_v1 }
 0x45c   : > { %22522 = vst [vmem:[#allocation212_spill] sm:$0xff] %v18864_v14  ;;  %v18875_v43 = vcombine.low %v18860_v49, %v18864_v14  ;;  %v18882_v62 = vsel %vm13718_vm6, %v22528_v23, 0  ;;  %v18887_v47 = vsel %vm13718_vm6, %v22530_v35, 0  ;;  %v5648_v35 = vrot.slane %v22536_v33, 7  ;;  %v12806_v40 = vld [vmem:[%s21097_s5 + $0x4e4] ss:$8 sps:$4 sm:$0xff]  }
 0x45d   : > { %v5895_v7 = vor.u32 %v5894_v63, %v22527_v29  ;;  %22529 = vst [vmem:[#allocation172_spill] sm:$0xff] %v18882_v62  ;;  %22531 = vst [vmem:[#allocation107_spill] sm:$0xff] %v18887_v47  ;;  %9053 = vmatmul.mubr.bf16.gmra.mxu0 %v22532_v60  ;;  %v22533_v63 = vld [vmem:[#allocation156_spill] sm:$0xff]  ;;  %v18899_v23 = vcombine.low %v18882_v62, %v18887_v47  ;;  %v5898_v61 = vrot.slane %v22538_v34, 1  ;;  %v18915_v60 = vsel %vm13718_vm6, %v5891_v46, 0  ;;  %v22543_v34 = vld [vmem:[#allocation79_spill] sm:$0xff] }
 0x45e   : > { %22526 = vst [vmem:[#allocation213_spill] sm:$0xff] %v18875_v43  ;;  %v22534_v29 = vshll.u32 %v22533_v63, 16  ;;  %v22539_v4 = vcombine.low %v22449_v45, %v22448_v53  ;;  %22541 = vst [vmem:[#allocation214_spill] sm:$0xff] %v18915_v60  ;;  %v18926_v53 = vsel %vm13683_vm5, 0, %v18436_v11  ;;  %v12807_v45 = vld [vmem:[%s21097_s5 + $0x5e0] ss:$8 sps:$4 sm:$0xff]   ;;  %9191 = vmatprep.subr.bf16.mxu1 %v12806_v40  ;;  %v18982_v43 = vpop.f32.mrf.mxu1 }
 0x45f   : > { %22535 = vst [vmem:[#allocation156_spill] sm:$0xff] %v18899_v23  ;;  %v18919_v33 = vsel %vm13718_vm6, %v5895_v7, 0  ;;  %22545 = vst [vmem:[#allocation79_spill] sm:$0xff] %v18926_v53  ;;  %v22548_v7 = vshll.u32 %v18399_v30, 16  ;;  %v22552_v25 = vshrl.u32 %v22543_v34, 16  ;;  %9385 = vmatpush2.bf16.msra.mxu0 %v12807_v45  ;;  %v19002_v21 = vsel %vm13718_vm6, %v18841_v19, 0 }
 0x460   : > { %v5878_v37 = vrot.slane %v22534_v29, 1  ;;  %9062 = vmatprep.mubr.bf16.mxu0 %v22539_v4  ;;  %22542 = vst [vmem:[#allocation215_spill] sm:$0xff] %v18919_v33  ;;  %v22544_v29 = vshll.u32 %v22543_v34, 16  ;;  %v18935_v46 = vcombine.low %v18915_v60, %v18919_v33  ;;  %v12812_v27 = vld [vmem:[%s21097_s5 + $0x4d4] ss:$8 sps:$4 sm:$0xff]   ;;  %9386 = vmatprep.subr.bf16.mxu0 %v12815_v58  ;;  %v19012_v11 = vpop.f32.mrf.mxu1  ;;  %v22640_v60 = vld [vmem:[#allocation158_spill] sm:$0xff] }
 0x461   : > { %v5651_v4 = vor.u32 %v22548_v7, %v5648_v35  ;;  %v12813_v40 = vld [vmem:[%s21097_s5 + $0x5d0] ss:$8 sps:$4 sm:$0xff]   ;;  %v12830_v20 = vld [vmem:[%s21097_s5 + $0x4a4] ss:$8 sps:$4 sm:$0xff]   ;;  %v6949_v47 = vld [vmem:[%s21098_s6] sm:$0x3] }
 0x462   : > { %v5902_v23 = vrot.slane %v22544_v29, 1  ;;  %22547 = vst [vmem:[#allocation217_spill] sm:$0xff] %v18935_v46  ;;  %v22549_v29 = vshrl.u32 %v22537_v16, 16  ;;  %v22553_v46 = vld [vmem:[#allocation109_spill] sm:$0xff]  ;;  %v22555_v16 = vld [vmem:[#allocation174_spill] sm:$0xff] }
 0x463   : > { %v18952_v35 = vsel %vm13718_vm6, %v22553_v46, 0  ;;  %v18967_v34 = vsel %vm13683_vm5, 0, %v5651_v4  ;;  %v22574_v22 = vld [vmem:[#allocation197_spill] sm:$0xff]  ;;  %v22584_v4 = vshrl.u32 %v22533_v63, 16  ;;  %9387 = vmatpush2.bf16.msra.mxu0 %v12813_v40  ;;  %v22599_v63 = vld [vmem:[#allocation31_spill] sm:$0xff] }
 0x464   : > { %v5899_v2 = vor.u32 %v5898_v61, %v22549_v29  ;;  %v5903_v39 = vor.u32 %v5902_v23, %v22552_v25  ;;  %22554 = vst [vmem:[#allocation2_spill] sm:$0xff] %v18952_v35  ;;  %v18957_v61 = vsel %vm13718_vm6, %v22555_v16, 0  ;;  %v12804_v23 = vld [vmem:[%s21097_s5 + $0x4e0] ss:$8 sps:$4 sm:$0xff]   ;;  %22559 = vst [vmem:[#allocation174_spill] sm:$0xff] %v18967_v34  ;;  %v22575_v45 = vshll.u32 %v22574_v22, 16  ;;  %8870 = vmatmul.mubr.bf16.gmra.mxu1 %v22599_v63 }
 0x465   : > { %22556 = vst [vmem:[#allocation109_spill] sm:$0xff] %v18957_v61  ;;  %v18975_v46 = vcombine.low %v18952_v35, %v18957_v61  ;;  %22576 = vst [vmem:[#allocation197_spill] sm:$0xff] %v19012_v11  ;;  %v12821_v16 = vld [vmem:[%s21097_s5 + $0x5c4] ss:$8 sps:$4 sm:$0xff]   ;;  %v22577_v34 = vld [vmem:[#allocation124_spill] sm:$0xff]  ;;  %9192 = vmatpush2.bf16.msra.mxu1 %v12804_v23  ;;  %v22585_v1 = vshrl.u32 %v22574_v22, 16  ;;  %8879 = vmatprep.mubr.bf16.mxu1 %v18706_v17 }
 0x466   : > { %v18971_v25 = vsel %vm13718_vm6, %v5899_v2, 0  ;;  %v18988_v2 = vsel %vm13718_vm6, %v5903_v39, 0  ;;  %v5810_v53 = vrot.slane %v22575_v45, 1  ;;  %v19020_v19 = vsel %vm13718_vm6, %v22577_v34, 0  ;;  %v22582_v45 = vld [vmem:[#allocation93_spill] sm:$0xff]  ;;  %9193 = vmatprep.subr.bf16.mxu1 %v12812_v27  ;;  %9388 = vmatprep.subr.bf16.mxu0 %v12821_v16  ;;  %v22603_v29 = vld [vmem:[#allocation123_spill] sm:$0xff] }
 0x467   : > { %22560 = vst [vmem:[#allocation218_spill] sm:$0xff] %v18971_v25  ;;  %22561 = vst [vmem:[#allocation219_spill] sm:$0xff] %v18975_v46  ;;  %v19006_v39 = vcombine.low %v18971_v25, %v18988_v2  ;;  %v22583_v7 = vcombine.low %v22452_v12, %v22582_v45  ;;  %v12810_v11 = vld [vmem:[%s21097_s5 + $0x4d0] ss:$8 sps:$4 sm:$0xff]   ;;  %v19037_v34 = vsel %vm13718_vm6, %v18845_v57, 0  ;;  %v5879_v46 = vor.u32 %v5878_v37, %v22584_v4 }
 0x468   : > { %22565 = vst [vmem:[#allocation220_spill] sm:$0xff] %v18988_v2  ;;  %22578 = vst [vmem:[#allocation124_spill] sm:$0xff] %v19020_v19  ;;  %v5811_v58 = vor.u32 %v5810_v53, %v22585_v1  ;;  %v12818_v23 = vld [vmem:[%s21097_s5 + $0x4c4] ss:$8 sps:$4 sm:$0xff]   ;;  %v12819_v27 = vld [vmem:[%s21097_s5 + $0x5c0] ss:$8 sps:$4 sm:$0xff]  }
 0x469   : > { %22571 = vst [vmem:[#allocation222_spill] sm:$0xff] %v19006_v39  ;;  %9063 = vmatmul.mubr.bf16.gmra.mxu0 %v22583_v7  ;;  %v22587_v7 = vcombine.low %v22467_v10, %v22466_v26  ;;  %v22592_v1 = vld [vmem:[#allocation7_spill] sm:$0xff]  ;;  %v19059_v26 = vpop.f32.mrf.mxu0  ;;  %v19061_v10 = vpop.f32.mrf.mxu1  ;;  %v22597_v37 = vld [vmem:[#allocation104_spill] sm:$0xff]  ;;  %v22600_v53 = vld [vmem:[#allocation137_spill] sm:$0xff]  ;;  %v22604_v15 = vshll.u32 %v22603_v29, 16  ;;  %9194 = vmatpush2.bf16.msra.mxu1 %v12810_v11 }
 0x46a   : > { %v22593_v4 = vshll.u32 %v22592_v1, 16  ;;  %v19073_v22 = vsel %vm13718_vm6, %v5811_v58, 0  ;;  %v19078_v40 = vsel %vm13718_vm6, %v22597_v37, 0  ;;  %v22601_v58 = vshrl.u32 %v22592_v1, 16  ;;  %v22602_v45 = vld [vmem:[#allocation140_spill] sm:$0xff]  ;;  %9195 = vmatprep.subr.bf16.mxu1 %v12818_v23  ;;  %9389 = vmatpush2.bf16.msra.mxu0 %v12819_v27  ;;  %v22636_v25 = vld [vmem:[#allocation97_spill] sm:$0xff] }
 0x46b   : > { %9072 = vmatprep.mubr.bf16.mxu0 %v22587_v7  ;;  %v22594_v7 = vld [vmem:[#allocation160_spill] sm:$0xff]  ;;  %22596 = vst [vmem:[#allocation119_spill] sm:$0xff] %v19073_v22  ;;  %22598 = vst [vmem:[#allocation7_spill] sm:$0xff] %v19078_v40  ;;  %v5874_v39 = vrot.slane %v22604_v15, 1  ;;  %v12816_v16 = vld [vmem:[%s21097_s5 + $0x4c0] ss:$8 sps:$4 sm:$0xff]   ;;  %v19126_v23 = vpop.f32.mrf.mxu1  ;;  %v19260_v33 = vrot.slane %v6949_v47, %v22636_v25 }
 0x46c   : > { %v5842_v12 = vrot.slane %v22593_v4, 1  ;;  %v19069_v31 = vsel %vm13718_vm6, %v22594_v7, 0  ;;  %v12827_v7 = vld [vmem:[%s21097_s5 + $0x5b4] ss:$8 sps:$4 sm:$0xff]   ;;  %v19100_v4 = vsel %vm13718_vm6, %v5879_v46, 0  ;;  %22614 = vst [vmem:[#allocation123_spill] sm:$0xff] %v19126_v23 }
 0x46d   : > { %22595 = vst [vmem:[#allocation93_spill] sm:$0xff] %v19069_v31  ;;  %22605 = vst [vmem:[#allocation160_spill] sm:$0xff] %v19100_v4  ;;  %v12824_v11 = vld [vmem:[%s21097_s5 + $0x4b4] ss:$8 sps:$4 sm:$0xff]   ;;  %v12825_v40 = vld [vmem:[%s21097_s5 + $0x5b0] ss:$8 sps:$4 sm:$0xff]   ;;  %9390 = vmatprep.subr.bf16.mxu0 %v12827_v7  ;;  %9196 = vmatpush2.bf16.msra.mxu1 %v12816_v16 }
 0x46e   : > { %v5843_v57 = vor.u32 %v5842_v12, %v22601_v58  ;;  %v22607_v58 = vld [vmem:[#allocation44_spill] sm:$0xff]  ;;  %v22615_v12 = vshrl.u32 %v22603_v29, 16  ;;  %v12833_v27 = vld [vmem:[%s21097_s5 + $0x5a4] ss:$8 sps:$4 sm:$0xff]   ;;  %9197 = vmatprep.subr.bf16.mxu1 %v12824_v11  ;;  %9391 = vmatpush2.bf16.msra.mxu0 %v12825_v40  ;;  %v22623_v11 = vshrl.u32 %v18399_v30, 16  ;;  %v22649_v28 = vld [vmem:[#allocation149_spill] sm:$0xff] }
 0x46f   : > { %v19109_v15 = vsel %vm13718_vm6, %v22607_v58, 0  ;;  %v19124_v58 = vpop.f32.mrf.mxu0  ;;  %v12822_v7 = vld [vmem:[%s21097_s5 + $0x4b0] ss:$8 sps:$4 sm:$0xff]   ;;  %9392 = vmatprep.subr.bf16.mxu0 %v12833_v27 }
 0x470   : > { %22608 = vst [vmem:[#allocation104_spill] sm:$0xff] %v19109_v15  ;;  %v19116_v46 = vsel %vm13718_vm6, %v5843_v57, 0  ;;  %22613 = vst [vmem:[#allocation140_spill] sm:$0xff] %v19124_v58  ;;  %v5875_v37 = vor.u32 %v5874_v39, %v22615_v12  ;;  %v22618_v39 = vshll.u32 %v18399_v30, 16  ;;  %v22619_v12 = vld [vmem:[#allocation185_spill] sm:$0xff]  ;;  %v19185_v57 = vpop.f32.mrf.mxu1  ;;  %v22648_v15 = vld [vmem:[#allocation164_spill] sm:$0xff] }
 0x471   : > { %22609 = vst [vmem:[#allocation137_spill] sm:$0xff] %v19116_v46  ;;  %9073 = vmatmul.mubr.bf16.gmra.mxu0 %v22616_v38  ;;  %v19167_v59 = vsel %vm13718_vm6, %v22619_v12, 0  ;;  %v22621_v38 = vcombine.low %v22498_v0, %v18679_v44  ;;  %v19183_v12 = vpop.f32.mrf.mxu0  ;;  %v12831_v0 = vld [vmem:[%s21097_s5 + $0x5a0] ss:$8 sps:$4 sm:$0xff]   ;;  %9198 = vmatpush2.bf16.msra.mxu1 %v12822_v7  ;;  %v11571_v23 = vcombine.low %v22649_v28, %v22648_v15  ;;  %v22663_v63 = vld [vmem:[#allocation116_spill] sm:$0xff] }
 0x472   : > { %v19158_v58 = vsel %vm13718_vm6, %v5875_v37, 0  ;;  %v5906_v1 = vrot.slane %v22618_v39, 1  ;;  %22620 = vst [vmem:[#allocation185_spill] sm:$0xff] %v19167_v59  ;;  %v19181_v39 = vcombine.low %v18729_v52, %v18750_v3  ;;  %v22624_v37 = vld [vmem:[#allocation126_spill] sm:$0xff]  ;;  %v22625_v44 = vld [vmem:[#allocation199_spill] sm:$0xff]  ;;  %v19204_v61 = vpop.f32.mrf.mxu1  ;;  %9199 = vmatprep.subr.bf16.mxu1 %v12830_v20  ;;  %9393 = vmatpush2.bf16.msra.mxu0 %v12831_v0  ;;  %v22629_v20 = vld [vmem:[#allocation152_spill] sm:$0xff] }
 0x473   : > { %22617 = vst [vmem:[#allocation44_spill] sm:$0xff] %v19158_v58  ;;  %9082 = vmatprep.mubr.bf16.mxu0 %v22621_v38  ;;  %8880 = vmatmul.mubr.bf16.gmra.mxu1 %v22624_v37  ;;  %v19196_v16 = vsel %vm13683_vm5, 0, %v22625_v44  ;;  %v12839_v59 = vld [vmem:[%s21097_s5 + $0x594] ss:$8 sps:$4 sm:$0xff]   ;;  %v19202_v40 = vpop.f32.mrf.mxu0  ;;  %v12828_v30 = vld [vmem:[%s21097_s5 + $0x4a0] ss:$8 sps:$4 sm:$0xff]  }
 0x474   : > { %22622 = vst [vmem:[#allocation223_spill] sm:$0xff] %v19181_v39  ;;  %v5907_v38 = vor.u32 %v5906_v1, %v22623_v11  ;;  %22626 = vst [vmem:[#allocation199_spill] sm:$0xff] %v19196_v16  ;;  %8889 = vmatprep.mubr.bf16.mxu1 %v19181_v39  ;;  %v12836_v1 = vld [vmem:[%s21097_s5 + $0x494] ss:$8 sps:$4 sm:$0xff]   ;;  %v19222_v37 = vpop.f32.mrf.mxu1  ;;  %9394 = vmatprep.subr.bf16.mxu0 %v12839_v59  ;;  %v12834_v0 = vld [vmem:[%s21097_s5 + $0x490] ss:$8 sps:$4 sm:$0xff]  }
 0x475   : > { %v22628_v11 = vld [vmem:[#allocation144_spill] sm:$0xff]  ;;  %v19220_v7 = vpop.f32.mrf.mxu0  ;;  %9200 = vmatpush2.bf16.msra.mxu1 %v12828_v30  ;;  %v12842_v59 = vld [vmem:[%s21097_s5 + $0x484] ss:$8 sps:$4 sm:$0xff]   ;;  %v22652_v58 = vld [vmem:[#allocation161_spill] sm:$0xff] }
 0x476   : > { %v19211_v44 = vsel %vm13718_vm6, %v5907_v38, 0  ;;  %v11567_v39 = vcombine.low %v22628_v11, %v19196_v16  ;;  %v22630_v38 = vld [vmem:[#allocation69_spill] sm:$0xff]  ;;  %v12845_v11 = vld [vmem:[%s21097_s5 + $0x584] ss:$8 sps:$4 sm:$0xff]   ;;  %v19240_v16 = vpop.f32.mrf.mxu1  ;;  %9201 = vmatprep.subr.bf16.mxu1 %v12836_v1  ;;  %9395 = vmatpush2.bf16.msra.mxu0 %v12837_v55  ;;  %v12840_v55 = vld [vmem:[%s21097_s5 + $0x480] ss:$8 sps:$4 sm:$0xff]  }
 0x477   : > { %22627 = vst [vmem:[#allocation224_spill] sm:$0xff] %v19211_v44  ;;  %v11570_v35 = vcombine.low %v22630_v38, %v22629_v20  ;;  %v19235_v27 = vpop.f32.mrf.mxu0  ;;  %22632 = vst [vmem:[#allocation152_spill] sm:$0xff] %v19240_v16  ;;  %v22633_v20 = vmov 0   ;;  %v22634_v44 = vld [vmem:[#allocation94_spill] sm:$0xff]  ;;  %v22635_v30 = vld [vmem:[#allocation131_spill] sm:$0xff]  ;;  %9396 = vmatprep.subr.bf16.mxu0 %v12845_v11 }
 0x478   : > { %22631 = vst [vmem:[#allocation144_spill] sm:$0xff] %v19235_v27  ;;  %v11538_v38 = vcombine.low %v22633_v20, %v18754_v56  ;;  %v12851_v1 = vld [vmem:[%s21097_s5 + $0x774] ss:$8 sps:$4 sm:$0xff]   ;;  %v19267_v62 = vpop.f32.mrf.mxu1 }
 0x479   : > { %9083 = vmatmul.mubr.bf16.gmra.mxu0 %v11567_v39  ;;  %v19248_v39 = vrot.slane %v6949_v47, %v22634_v44  ;;  %v19250_v2 = vpop.f32.mrf.mxu0  ;;  %9202 = vmatpush2.bf16.msra.mxu1 %v12834_v0  ;;  %v12848_v11 = vld [vmem:[%s21097_s5 + $0x674] ss:$8 sps:$4 sm:$0xff]   ;;  %v22639_v47 = vld [vmem:[#allocation138_spill] sm:$0xff] }
 0x47a   : > { %9092 = vmatprep.mubr.bf16.mxu0 %v11570_v35  ;;  %v12843_v35 = vld [vmem:[%s21097_s5 + $0x580] ss:$8 sps:$4 sm:$0xff]   ;;  %9203 = vmatprep.subr.bf16.mxu1 %v12842_v59  ;;  %v22641_v0 = vld [vmem:[#allocation153_spill] sm:$0xff]  ;;  %v19278_v5 = vpop.f32.mrf.mxu1 }
 0x47b   : > { %8890 = vmatmul.mubr.bf16.gmra.mxu1 %v22635_v30  ;;  %v19262_v44 = vpop.f32.mrf.mxu0  ;;  %v22637_v30 = vld [vmem:[#allocation155_spill] sm:$0xff]  ;;  %v8436_v25 = vadd.f32 %v22639_v47, %v19248_v39  ;;  %9397 = vmatpush2.bf16.msra.mxu0 %v12843_v35  ;;  %v11572_v14 = vcombine.low %v22641_v0, %v22640_v60  ;;  %v22642_v59 = vld [vmem:[#allocation133_spill] sm:$0xff]  ;;  %v19290_v60 = vcombine.low %v18771_v6, %v18786_v54 }
 0x47c   : > { %8899 = vmatprep.mubr.bf16.mxu1 %v11538_v38  ;;  %v11569_v38 = vcombine.low %v22638_v32, %v22637_v30  ;;  %9752 = vmatprep.subr.bf16.mxu0 %v12851_v1  ;;  %v8438_v16 = vadd.f32 %v22642_v59, %v19260_v33  ;;  %v11537_v32 = vcombine.low %v22633_v20, %v18759_v24  ;;  %v19286_v30 = vpop.f32.mrf.mxu1  ;;  %v22644_v35 = vld [vmem:[#allocation99_spill] sm:$0xff]  ;;  %v22645_v1 = vld [vmem:[#allocation125_spill] sm:$0xff]  ;;  %v22647_v59 = vld [vmem:[#allocation132_spill] sm:$0xff] }
 0x47d   : > { %v19280_v27 = vpop.f32.mrf.mxu0  ;;  %9204 = vmatpush2.bf16.msra.mxu1 %v12840_v55  ;;  %22643 = vst [vmem:[#allocation69_spill] sm:$0xff] %v19290_v60  ;;  %v8440_v47 = vadd.f32 %v22644_v35, %v19248_v39  ;;  %v22650_v35 = vld [vmem:[#allocation67_spill] sm:$0xff] }
 0x47e   : > { %9559 = vmatprep.subr.bf16.mxu1 %v12848_v11  ;;  %v19303_v11 = vadd.f32 %v22647_v59, %v8438_v16  ;;  %v19305_v49 = vpop.f32.mrf.mxu1  ;;  %v8448_v16 = vadd.f32 %v18826_v18, %v19260_v33 }
 0x47f   : > { %v19297_v0 = vpop.f32.mrf.mxu0 }
 0x480   : > { %v19322_v28 = vpop.f32.mrf.mxu1 }
 0x481   : > { %9093 = vmatmul.mubr.bf16.gmra.mxu0 %v11569_v38  ;;  %v19295_v38 = vadd.f32 %v22645_v1, %v8436_v25  ;;  %v8446_v25 = vadd.f32 %v18788_v50, %v19248_v39  ;;  %v22651_v1 = vld [vmem:[#allocation167_spill] sm:$0xff]  ;;  %v19316_v36 = vpop.f32.mrf.mxu0  ;;  %v19328_v50 = vcombine.low %v18802_v42, %v18824_v41  ;;  %v22665_v41 = vld [vmem:[#allocation80_spill] sm:$0xff] }
 0x482   : > { %9102 = vmatprep.mubr.bf16.mxu0 %v11572_v14  ;;  %v22646_v14 = vshrl.u32 %v22603_v29, 16 }
 0x483   : > { %8900 = vmatmul.mubr.bf16.gmra.mxu1 %v11537_v32  ;;  %v19312_v32 = vadd.f32 %v22650_v35, %v8440_v47  ;;  %v19324_v15 = vpop.f32.mrf.mxu0  ;;  %22654 = vst [vmem:[#allocation155_spill] sm:$0xff] %v19328_v50  ;;  %v22656_v47 = vld [vmem:[#allocation151_spill] sm:$0xff] }
 0x484   : > { %8909 = vmatprep.mubr.bf16.mxu1 %v19290_v60  ;;  %v5536_v55 = vrot.slane %v22646_v14, 7  ;;  %v11574_v60 = vcombine.low %v22652_v58, %v22651_v1  ;;  %v22653_v14 = vshll.u32 %v22603_v29, 16  ;;  %v8450_v58 = vadd.f32 %v18854_v51, %v19248_v39  ;;  %v22658_v29 = vld [vmem:[#allocation102_spill] sm:$0xff] }
 0x485   : > { %v22657_v18 = vshrl.u32 %v22656_v47, 16  ;;  %v19345_v1 = vpop.f32.mrf.mxu0  ;;  %v19348_v51 = vadd.f32 %v18773_v13, %v8448_v16  ;;  %v22666_v13 = vld [vmem:[#allocation197_spill] sm:$0xff] }
 0x486   : > { %v5539_v59 = vor.u32 %v22653_v14, %v5536_v55  ;;  %v8458_v16 = vadd.f32 %v22666_v13, %v19260_v33 }
 0x487   : > { %v5529_v35 = vrot.slane %v22657_v18, 7  ;;  %22660 = vst [vmem:[#allocation158_spill] sm:$0xff] %v19348_v51  ;;  %v8456_v18 = vadd.f32 %v18982_v43, %v19248_v39  ;;  %v19365_v51 = vpop.f32.mrf.mxu0  ;;  %v19369_v43 = vcombine.low %v19002_v21, %v19037_v34 }
 0x488   : > { %v19343_v55 = vsel %vm13683_vm5, 0, %v5539_v59 }
 0x489   : > { %9103 = vmatmul.mubr.bf16.gmra.mxu0 %v11571_v23  ;;  %v19333_v23 = vadd.f32 %v18734_v9, %v8446_v25  ;;  %22659 = vst [vmem:[#allocation138_spill] sm:$0xff] %v19343_v55  ;;  %v22661_v9 = vld [vmem:[#allocation166_spill] sm:$0xff]  ;;  %v22662_v25 = vld [vmem:[#allocation159_spill] sm:$0xff]  ;;  %v11576_v17 = vcombine.low %v22665_v41, %v19343_v55  ;;  %22667 = vst [vmem:[#allocation153_spill] sm:$0xff] %v19369_v43 }
 0x48a   : > { %9112 = vmatprep.mubr.bf16.mxu0 %v11574_v60  ;;  %v19338_v60 = vpop.f32.mrf.mxu1  ;;  %v11573_v14 = vcombine.low %v22662_v25, %v22661_v9  ;;  %v22671_v9 = vld [vmem:[#allocation221_spill] sm:$0xff] }
 0x48b   : > { %22655 = vst [vmem:[#allocation20_spill] sm:$0xff] %v19333_v23  ;;  %8910 = vmatmul.mubr.bf16.gmra.mxu1 %v22658_v29  ;;  %v19357_v23 = vadd.f32 %v22663_v63, %v8450_v58  ;;  %v8460_v63 = vadd.f32 %v19061_v10, %v19248_v39  ;;  %v19385_v25 = vadd.f32 %v22671_v9, %v8458_v16 }
 0x48c   : > { %8919 = vmatprep.mubr.bf16.mxu1 %v19328_v50  ;;  %v19354_v29 = vpop.f32.mrf.mxu1  ;;  %v22664_v50 = vshll.u32 %v22656_v47, 16  ;;  %v22668_v47 = vld [vmem:[#allocation216_spill] sm:$0xff]  ;;  %v8468_v16 = vadd.f32 %v19204_v61, %v19260_v33 }
 0x48d   : > { %v19394_v48 = vadd.f32 %v19059_v26, %v8460_v63  ;;  %v22676_v63 = vld [vmem:[#allocation65_spill] sm:$0xff] }
 0x48e   : > { %v5532_v59 = vor.u32 %v22664_v50, %v5529_v35  ;;  %v8491_v58 = vpop.f32.mrf.mxu1  ;;  %v19374_v50 = vadd.f32 %v22668_v47, %v8456_v18  ;;  %v22669_v35 = vld [vmem:[#allocation34_spill] sm:$0xff]  ;;  %v8466_v18 = vadd.f32 %v19185_v57, %v19248_v39  ;;  %v11546_v57 = vcombine.low %v22633_v20, %v19100_v4 }
 0x48f   : > { %22673 = vst [vmem:[#allocation99_spill] sm:$0xff] %v19394_v48  ;;  %v19411_v61 = vadd.f32 %v19202_v40, %v8468_v16  ;;  %v8476_v4 = vadd.f32 %v19267_v62, %v19248_v39  ;;  %v22679_v40 = vld [vmem:[#allocation70_spill] sm:$0xff]  ;;  %v22680_v16 = vld [vmem:[#allocation187_spill] sm:$0xff] }
 0x490   : > { %v19379_v41 = vsel %vm13683_vm5, 0, %v5532_v59  ;;  %v8495_v13 = vpop.f32.mrf.mxu1  ;;  %v22674_v59 = vld [vmem:[#allocation110_spill] sm:$0xff]  ;;  %v19407_v26 = vadd.f32 %v19183_v12, %v8466_v18  ;;  %v8478_v12 = vadd.f32 %v19278_v5, %v19260_v33  ;;  %v8482_v5 = vadd.f32 %v19305_v49, %v19260_v33 }
 0x491   : > { %9113 = vmatmul.mubr.bf16.gmra.mxu0 %v11573_v14  ;;  %22670 = vst [vmem:[#allocation133_spill] sm:$0xff] %v19379_v41  ;;  %v22672_v14 = vld [vmem:[#allocation170_spill] sm:$0xff]  ;;  %v8488_v49 = vadd.f32 %v19338_v60, %v19260_v33  ;;  %v22693_v60 = vld [vmem:[#allocation209_spill] sm:$0xff] }
 0x492   : > { %9122 = vmatprep.mubr.bf16.mxu0 %v11576_v17  ;;  %v19382_v17 = vpop.f32.mrf.mxu0  ;;  %v11575_v10 = vcombine.low %v22672_v14, %v19379_v41  ;;  %v8497_v9 = vpop.f32.mrf.mxu1  ;;  %v8470_v14 = vadd.f32 %v19222_v37, %v19248_v39 }
 0x493   : > { %8920 = vmatmul.mubr.bf16.gmra.mxu1 %v22669_v35  ;;  %v22675_v35 = vld [vmem:[#allocation63_spill] sm:$0xff] }
 0x494   : > { %8929 = vmatprep.mubr.bf16.mxu1 %v19369_v43  ;;  %v19391_v47 = vpop.f32.mrf.mxu0  ;;  %v11578_v43 = vcombine.low %v22675_v35, %v22674_v59  ;;  %v8499_v41 = vpop.f32.mrf.mxu1  ;;  %v22678_v59 = vld [vmem:[#allocation173_spill] sm:$0xff]  ;;  %v19418_v37 = vadd.f32 %v19220_v7, %v8470_v14  ;;  %v19430_v7 = vadd.f32 %v19250_v2, %v8476_v4  ;;  %v22686_v2 = vld [vmem:[#allocation176_spill] sm:$0xff]  ;;  %v22687_v4 = vld [vmem:[#allocation182_spill] sm:$0xff] }
 0x495   : > { %v22683_v14 = vld [vmem:[#allocation213_spill] sm:$0xff] }
 0x496   : > { %v19400_v55 = vpop.f32.mrf.mxu0  ;;  %v8501_v48 = vpop.f32.mrf.mxu1  ;;  %22682 = vst [vmem:[#allocation125_spill] sm:$0xff] %v19430_v7 }
 0x498   : > { %v8694_v35 = vpop.f32.mrf.mxu0  ;;  %v8505_v62 = vpop.f32.mrf.mxu1 }
 0x499   : > { %9123 = vmatmul.mubr.bf16.gmra.mxu0 %v11575_v10  ;;  %v22677_v10 = vld [vmem:[#allocation175_spill] sm:$0xff] }
 0x49a   : > { %9132 = vmatprep.mubr.bf16.mxu0 %v11578_v43  ;;  %v11577_v43 = vcombine.low %v22678_v59, %v22677_v10  ;;  %v8698_v18 = vpop.f32.mrf.mxu0  ;;  %v8480_v10 = vadd.f32 %v19286_v30, %v19248_v39 }
 0x49b   : > { %8930 = vmatmul.mubr.bf16.gmra.mxu1 %v22676_v63  ;;  %v22681_v63 = vcombine.low %v22679_v40, %v22680_v16 }
 0x49c   : > { %8939 = vmatprep.mubr.bf16.mxu1 %v11546_v57  ;;  %v11545_v57 = vcombine.low %v22633_v20, %v19069_v31  ;;  %v8700_v59 = vpop.f32.mrf.mxu0  ;;  %v19436_v31 = vadd.f32 %v19262_v44, %v8478_v12  ;;  %v19441_v16 = vadd.f32 %v19280_v27, %v8480_v10  ;;  %v19451_v44 = vadd.f32 %v19297_v0, %v8482_v5  ;;  %v22689_v12 = vld [vmem:[#allocation183_spill] sm:$0xff] }
 0x49d   : > { %v8490_v27 = vadd.f32 %v19354_v29, %v19248_v39  ;;  %v8492_v0 = vadd.f32 %v8491_v58, %v19260_v33  ;;  %v19467_v5 = vadd.f32 %v19324_v15, %v8488_v49  ;;  %v22699_v58 = vld [vmem:[#allocation195_spill] sm:$0xff]  ;;  %v22700_v15 = vld [vmem:[#allocation174_spill] sm:$0xff] }
 0x49e   : > { %v8702_v20 = vpop.f32.mrf.mxu0  ;;  %22684 = vst [vmem:[#allocation132_spill] sm:$0xff] %v19436_v31  ;;  %22685 = vst [vmem:[#allocation164_spill] sm:$0xff] %v19441_v16  ;;  %v22701_v49 = vcombine.low %v22699_v58, %v22700_v15  ;;  %v22705_v58 = vld [vmem:[#allocation191_spill] sm:$0xff] }
 0x49f   : > { %22695 = vst [vmem:[#allocation67_spill] sm:$0xff] %v19467_v5  ;;  %v19473_v29 = vadd.f32 %v19345_v1, %v8490_v27  ;;  %v22702_v27 = vld [vmem:[#allocation156_spill] sm:$0xff] }
 0x4a0   : > { %v8704_v40 = vpop.f32.mrf.mxu0 }
 0x4a1   : > { %9133 = vmatmul.mubr.bf16.gmra.mxu0 %v11577_v43  ;;  %v8507_v43 = vpop.f32.mrf.mxu1 }
 0x4a2   : > { %9142 = vmatprep.mubr.bf16.mxu0 %v22681_v63  ;;  %v8486_v63 = vadd.f32 %v19322_v28, %v19248_v39  ;;  %v19448_v7 = vpop.f32.mrf.mxu0  ;;  %v22690_v28 = vld [vmem:[#allocation194_spill] sm:$0xff] }
 0x4a3   : > { %8940 = vmatmul.mubr.bf16.gmra.mxu1 %v11545_v57  ;;  %v8509_v30 = vpop.f32.mrf.mxu1  ;;  %v22688_v57 = vcombine.low %v22686_v2, %v22687_v4  ;;  %v22691_v31 = vcombine.low %v22689_v12, %v22690_v28  ;;  %v22694_v4 = vld [vmem:[#allocation217_spill] sm:$0xff] }
 0x4a4   : > { %8949 = vmatprep.mubr.bf16.mxu1 %v22683_v14  ;;  %v19458_v16 = vpop.f32.mrf.mxu0  ;;  %v19461_v2 = vadd.f32 %v19316_v36, %v8486_v63  ;;  %v22696_v28 = vld [vmem:[#allocation181_spill] sm:$0xff]  ;;  %v22697_v36 = vld [vmem:[#allocation190_spill] sm:$0xff]  ;;  %v8510_v15 = vadd.f32 %v8509_v30, %v19248_v39 }
 0x4a5   : > { %v8511_v14 = vpop.f32.mrf.mxu1  ;;  %v22698_v63 = vcombine.low %v22696_v28, %v22697_v36  ;;  %v22703_v28 = vld [vmem:[#allocation222_spill] sm:$0xff]  ;;  %v8506_v36 = vadd.f32 %v8505_v62, %v19248_v39 }
 0x4a6   : > { %22692 = vst [vmem:[#allocation149_spill] sm:$0xff] %v19461_v2  ;;  %v19470_v12 = vpop.f32.mrf.mxu0 }
 0x4a7   : > { %v8515_v10 = vpop.f32.mrf.mxu1 }
 0x4a8   : > { %v19486_v2 = vpop.f32.mrf.mxu0 }
 0x4a9   : > { %9143 = vmatmul.mubr.bf16.gmra.mxu0 %v22688_v57  ;;  %v8517_v57 = vpop.f32.mrf.mxu1 }
 0x4aa   : > { %9152 = vmatprep.mubr.bf16.mxu0 %v22691_v31  ;;  %v8496_v31 = vadd.f32 %v8495_v13, %v19248_v39  ;;  %v8500_v13 = vadd.f32 %v8499_v41, %v19248_v39 }
 0x4ab   : > { %8950 = vmatmul.mubr.bf16.gmra.mxu1 %v22693_v60  ;;  %v8498_v60 = vadd.f32 %v8497_v9, %v19260_v33  ;;  %v8519_v5 = vpop.f32.mrf.mxu1  ;;  %v8502_v9 = vadd.f32 %v8501_v48, %v19260_v33 }
 0x4ac   : > { %8959 = vmatprep.mubr.bf16.mxu1 %v22694_v4  ;;  %v19480_v4 = vadd.f32 %v19365_v51, %v8492_v0  ;;  %v19489_v1 = vadd.f32 %v19382_v17, %v8496_v31  ;;  %v19501_v41 = vadd.f32 %v19400_v55, %v8500_v13  ;;  %v22706_v17 = vld [vmem:[#allocation79_spill] sm:$0xff] }
 0x4ad   : > { %v19495_v51 = vadd.f32 %v19391_v47, %v8498_v60  ;;  %v8521_v0 = vpop.f32.mrf.mxu1  ;;  %v22707_v31 = vcombine.low %v22705_v58, %v22706_v17  ;;  %v19509_v48 = vadd.f32 %v8694_v35, %v8502_v9  ;;  %v22708_v47 = vld [vmem:[#allocation114_spill] sm:$0xff]  ;;  %v22709_v60 = vld [vmem:[#allocation112_spill] sm:$0xff]  ;;  %v22711_v55 = vld [vmem:[#allocation219_spill] sm:$0xff] }
 0x4ae   : > { %v22712_v58 = vld [vmem:[#allocation27_spill] sm:$0xff]  ;;  %v22713_v9 = vld [vmem:[#allocation54_spill] sm:$0xff] }
 0x4af   : > { %22704 = vst [vmem:[#allocation167_spill] sm:$0xff] %v19495_v51  ;;  %v8525_v62 = vpop.f32.mrf.mxu1  ;;  %v19515_v51 = vadd.f32 %v8698_v18, %v8506_v36  ;;  %v8516_v18 = vadd.f32 %v8515_v10, %v19248_v39  ;;  %v12857_v36 = vld [vmem:[%s21097_s5 + $0x764] ss:$8 sps:$4 sm:$0xff]  }
 0x4b0   : > { %v22716_v10 = vld [vmem:[#allocation87_spill] sm:$0xff] }
 0x4b1   : > { %9153 = vmatmul.mubr.bf16.gmra.mxu0 %v22698_v63  ;;  %v19498_v63 = vpop.f32.mrf.mxu0  ;;  %v8527_v13 = vpop.f32.mrf.mxu1 }
 0x4b2   : > { %9162 = vmatprep.mubr.bf16.mxu0 %v22701_v49  ;;  %v8508_v49 = vadd.f32 %v8507_v43, %v19260_v33  ;;  %v8512_v43 = vadd.f32 %v8511_v14, %v19260_v33  ;;  %v8518_v14 = vadd.f32 %v8517_v57, %v19260_v33 }
 0x4b3   : > { %8960 = vmatmul.mubr.bf16.gmra.mxu1 %v22702_v27  ;;  %v22710_v27 = vcombine.low %v22708_v47, %v22709_v60  ;;  %v22714_v47 = vld [vmem:[#allocation8_spill] sm:$0xff]  ;;  %v8529_v60 = vpop.f32.mrf.mxu1 }
 0x4b4   : > { %8969 = vmatprep.mubr.bf16.mxu1 %v22703_v28  ;;  %v19507_v28 = vpop.f32.mrf.mxu0  ;;  %v19522_v35 = vadd.f32 %v8700_v59, %v8508_v49  ;;  %v11585_v30 = vcombine.low %v22714_v47, %v22713_v9  ;;  %v12846_v59 = vld [vmem:[%s21097_s5 + $0x670] ss:$8 sps:$4 sm:$0xff]  }
 0x4b5   : > { %v22715_v9 = vld [vmem:[#allocation120_spill] sm:$0xff]  ;;  %v8531_v57 = vpop.f32.mrf.mxu1 }
 0x4b6   : > { %v22717_v47 = vcombine.low %v22715_v9, %v22716_v10  ;;  %v22720_v9 = vld [vmem:[#allocation77_spill] sm:$0xff]  ;;  %v8522_v10 = vadd.f32 %v8521_v0, %v19260_v33 }
 0x4b7   : > { %v12861_v0 = vld [vmem:[%s21097_s5 + $0x750] ss:$8 sps:$4 sm:$0xff]  }
 0x4b9   : > { %9163 = vmatmul.mubr.bf16.gmra.mxu0 %v22707_v31  ;;  %v19520_v31 = vpop.f32.mrf.mxu0 }
 0x4ba   : > { %9398 = vmatprep.mubr.bf16.mxu0 %v22710_v27  ;;  %v12849_v27 = vld [vmem:[%s21097_s5 + $0x770] ss:$8 sps:$4 sm:$0xff]  }
 0x4bb   : > { %8970 = vmatmul.mubr.bf16.gmra.mxu1 %v22711_v55  ;;  %v19539_v49 = vpop.f32.mrf.mxu0  ;;  %v19541_v55 = vadd.f32 %v8704_v40, %v8512_v43  ;;  %v12863_v40 = vld [vmem:[%s21097_s5 + $0x754] ss:$8 sps:$4 sm:$0xff]   ;;  %v19557_v43 = vadd.f32 %v19448_v7, %v8516_v18  ;;  %v8526_v18 = vadd.f32 %v8525_v62, %v19248_v39  ;;  %v8528_v62 = vadd.f32 %v8527_v13, %v19260_v33 }
 0x4bc   : > { %9205 = vmatprep.mubr.bf16.mxu1 %v22712_v58  ;;  %v19533_v58 = vadd.f32 %v8702_v20, %v8510_v15  ;;  %v12854_v20 = vld [vmem:[%s21097_s5 + $0x664] ss:$8 sps:$4 sm:$0xff]   ;;  %v12855_v15 = vld [vmem:[%s21097_s5 + $0x760] ss:$8 sps:$4 sm:$0xff]   ;;  %v12860_v7 = vld [vmem:[%s21097_s5 + $0x654] ss:$8 sps:$4 sm:$0xff]   ;;  %v8530_v13 = vadd.f32 %v8529_v60, %v19248_v39  ;;  %v8532_v60 = vadd.f32 %v8531_v57, %v19260_v33 }
 0x4bd   : > { %22718 = vst [vmem:[#allocation161_spill] sm:$0xff] %v19557_v43  ;;  %v12873_v57 = vld [vmem:[%s21097_s5 + $0x730] ss:$8 sps:$4 sm:$0xff]  }
 0x4c1   : > { %9399 = vmatmul.mubr.bf16.vlgmr.msra.gmra.mxu0 %v11585_v30  ;;  %v8520_v30 = vadd.f32 %v8519_v5, %v19248_v39  ;;  %v12852_v5 = vld [vmem:[%s21097_s5 + $0x660] ss:$8 sps:$4 sm:$0xff]  }
 0x4c2   : > { %9408 = vmatprep.mubr.bf16.mxu0 %v22717_v47  ;;  %9753 = vmatpush1.bf16.msra.mxu0 %v12849_v27  ;;  %v22719_v27 = vld [vmem:[#allocation28_spill] sm:$0xff]  ;;  %v19566_v47 = vadd.f32 %v19458_v16, %v8518_v14  ;;  %v12869_v16 = vld [vmem:[%s21097_s5 + $0x744] ss:$8 sps:$4 sm:$0xff]   ;;  %v22723_v14 = vld [vmem:[#allocation5_spill] sm:$0xff] }
 0x4c3   : > { %9754 = vmatprep.subr.bf16.mxu0 %v12857_v36  ;;  %9206 = vmatmul.mubr.bf16.vlgmr.msra.gmra.mxu1 %v22719_v27  ;;  %v8728_v36 = vpop.f32.mrf.mxu0 }
 0x4c4   : > { %9560 = vmatpush1.bf16.msra.mxu1 %v12846_v59  ;;  %9215 = vmatprep.mubr.bf16.mxu1 %v22720_v9  ;;  %22721 = vst [vmem:[#allocation151_spill] sm:$0xff] %v19566_v47  ;;  %v8535_v59 = vpop.f32.mrf.mxu1  ;;  %v19576_v9 = vadd.f32 %v19470_v12, %v8520_v30  ;;  %v19589_v12 = vadd.f32 %v19486_v2, %v8522_v10  ;;  %v22726_v30 = vld [vmem:[#allocation45_spill] sm:$0xff] }
 0x4c5   : > { %9561 = vmatprep.subr.bf16.mxu1 %v12854_v20  ;;  %v8730_v27 = vpop.f32.mrf.mxu0  ;;  %v22724_v20 = vld [vmem:[#allocation76_spill] sm:$0xff]  ;;  %v19602_v2 = vadd.f32 %v19498_v63, %v8526_v18  ;;  %v22729_v10 = vld [vmem:[#allocation53_spill] sm:$0xff]  ;;  %v19614_v63 = vadd.f32 %v19507_v28, %v8528_v62  ;;  %v12881_v28 = vld [vmem:[%s21097_s5 + $0x724] ss:$8 sps:$4 sm:$0xff]  }
 0x4c6   : > { %9755 = vmatpush1.bf16.msra.mxu0 %v12855_v15  ;;  %22722 = vst [vmem:[#allocation166_spill] sm:$0xff] %v19576_v9  ;;  %v22725_v15 = vcombine.low %v22723_v14, %v22724_v20  ;;  %v8537_v17 = vpop.f32.mrf.mxu1  ;;  %v22727_v9 = vld [vmem:[#allocation200_spill] sm:$0xff]  ;;  %v12867_v20 = vld [vmem:[%s21097_s5 + $0x740] ss:$8 sps:$4 sm:$0xff]  }
 0x4c7   : > { %9756 = vmatprep.subr.bf16.mxu0 %v12863_v40  ;;  %v12858_v40 = vld [vmem:[%s21097_s5 + $0x650] ss:$8 sps:$4 sm:$0xff]   ;;  %v8732_v47 = vpop.f32.mrf.mxu0  ;;  %v22728_v43 = vcombine.low %v22726_v30, %v22727_v9  ;;  %v12864_v9 = vld [vmem:[%s21097_s5 + $0x640] ss:$8 sps:$4 sm:$0xff]   ;;  %v12872_v18 = vld [vmem:[%s21097_s5 + $0x634] ss:$8 sps:$4 sm:$0xff]  }
 0x4c8   : > { %9562 = vmatpush1.bf16.msra.mxu1 %v12852_v5  ;;  %v12866_v5 = vld [vmem:[%s21097_s5 + $0x644] ss:$8 sps:$4 sm:$0xff]   ;;  %v8539_v14 = vpop.f32.mrf.mxu1  ;;  %v22732_v30 = vld [vmem:[#allocation17_spill] sm:$0xff] }
 0x4c9   : > { %9409 = vmatmul.mubr.bf16.gmra.mxu0 %v22725_v15  ;;  %9563 = vmatprep.subr.bf16.mxu1 %v12860_v7  ;;  %v22730_v7 = vld [vmem:[#allocation115_spill] sm:$0xff]  ;;  %v22731_v62 = vld [vmem:[#allocation18_spill] sm:$0xff] }
 0x4ca   : > { %9418 = vmatprep.mubr.bf16.mxu0 %v22728_v43  ;;  %9757 = vmatpush1.bf16.msra.mxu0 %v12861_v0  ;;  %v12875_v43 = vld [vmem:[%s21097_s5 + $0x734] ss:$8 sps:$4 sm:$0xff]   ;;  %v8734_v0 = vpop.f32.mrf.mxu0  ;;  %v8541_v15 = vpop.f32.mrf.mxu1 }
 0x4cb   : > { %9216 = vmatmul.mubr.bf16.gmra.mxu1 %v22729_v10  ;;  %9758 = vmatprep.subr.bf16.mxu0 %v12869_v16  ;;  %v8536_v16 = vadd.f32 %v8535_v59, %v19248_v39  ;;  %v8538_v59 = vadd.f32 %v8537_v17, %v19260_v33  ;;  %v8540_v17 = vadd.f32 %v8539_v14, %v19248_v39 }
 0x4cc   : > { %9225 = vmatprep.mubr.bf16.mxu1 %v22730_v7  ;;  %9564 = vmatpush1.bf16.msra.mxu1 %v12858_v40  ;;  %v19624_v40 = vadd.f32 %v19520_v31, %v8530_v13  ;;  %v8738_v10 = vpop.f32.mrf.mxu0  ;;  %v19637_v31 = vadd.f32 %v19539_v49, %v8532_v60  ;;  %v22734_v13 = vcombine.low %v22600_v53, %v19073_v22  ;;  %v8545_v7 = vpop.f32.mrf.mxu1  ;;  %v22735_v60 = vld [vmem:[#allocation6_spill] sm:$0xff]  ;;  %v12887_v53 = vld [vmem:[%s21097_s5 + $0x714] ss:$8 sps:$4 sm:$0xff]  }
 0x4cd   : > { %9565 = vmatprep.subr.bf16.mxu1 %v12866_v5  ;;  %v22733_v5 = vcombine.low %v22731_v62, %v22732_v30  ;;  %v12879_v62 = vld [vmem:[%s21097_s5 + $0x720] ss:$8 sps:$4 sm:$0xff]   ;;  %v19649_v49 = vadd.f32 %v8728_v36, %v8536_v16  ;;  %v8542_v14 = vadd.f32 %v8541_v15, %v19260_v33  ;;  %v19660_v36 = vadd.f32 %v8730_v27, %v8538_v59  ;;  %v12884_v16 = vld [vmem:[%s21097_s5 + $0x614] ss:$8 sps:$4 sm:$0xff]   ;;  %v12885_v15 = vld [vmem:[%s21097_s5 + $0x710] ss:$8 sps:$4 sm:$0xff]  }
 0x4ce   : > { %9759 = vmatpush1.bf16.msra.mxu0 %v12867_v20  ;;  %v12870_v20 = vld [vmem:[%s21097_s5 + $0x630] ss:$8 sps:$4 sm:$0xff]   ;;  %v8547_v30 = vpop.f32.mrf.mxu1  ;;  %v12893_v27 = vld [vmem:[%s21097_s5 + $0x704] ss:$8 sps:$4 sm:$0xff]   ;;  %v22738_v59 = vcombine.low %v22586_v8, %v19020_v19 }
 0x4cf   : > { %9760 = vmatprep.subr.bf16.mxu0 %v12875_v43  ;;  %v12878_v43 = vld [vmem:[%s21097_s5 + $0x624] ss:$8 sps:$4 sm:$0xff]  }
 0x4d0   : > { %9566 = vmatpush1.bf16.msra.mxu1 %v12864_v9  ;;  %v8740_v9 = vpop.f32.mrf.mxu0  ;;  %v12890_v8 = vld [vmem:[%s21097_s5 + $0x604] ss:$8 sps:$4 sm:$0xff]  }
 0x4d1   : > { %9419 = vmatmul.mubr.bf16.gmra.mxu0 %v22733_v5  ;;  %9567 = vmatprep.subr.bf16.mxu1 %v12872_v18  ;;  %v22736_v18 = vld [vmem:[#allocation85_spill] sm:$0xff] }
 0x4d2   : > { %9428 = vmatprep.mubr.bf16.mxu0 %v22734_v13  ;;  %9761 = vmatpush1.bf16.msra.mxu0 %v12873_v57  ;;  %v8742_v5 = vpop.f32.mrf.mxu0  ;;  %v12876_v57 = vld [vmem:[%s21097_s5 + $0x620] ss:$8 sps:$4 sm:$0xff]   ;;  %v8549_v13 = vpop.f32.mrf.mxu1 }
 0x4d3   : > { %9226 = vmatmul.mubr.bf16.gmra.mxu1 %v22735_v60  ;;  %9762 = vmatprep.subr.bf16.mxu0 %v12881_v28  ;;  %v8546_v28 = vadd.f32 %v8545_v7, %v19248_v39 }
 0x4d4   : > { %9235 = vmatprep.mubr.bf16.mxu1 %v22736_v18  ;;  %9568 = vmatpush1.bf16.msra.mxu1 %v12870_v20  ;;  %v8744_v60 = vpop.f32.mrf.mxu0  ;;  %v19669_v20 = vadd.f32 %v8732_v47, %v8540_v17  ;;  %v8551_v7 = vpop.f32.mrf.mxu1  ;;  %v19681_v47 = vadd.f32 %v8734_v0, %v8542_v14  ;;  %v22739_v17 = vld [vmem:[#allocation47_spill] sm:$0xff]  ;;  %v12899_v14 = vld [vmem:[%s21097_s5 + $0x7f4] ss:$8 sps:$4 sm:$0xff]  }
 0x4d5   : > { %9569 = vmatprep.subr.bf16.mxu1 %v12878_v43  ;;  %v8548_v43 = vadd.f32 %v8547_v30, %v19260_v33  ;;  %v8550_v30 = vadd.f32 %v8549_v13, %v19248_v39  ;;  %v19693_v19 = vadd.f32 %v8738_v10, %v8546_v28  ;;  %v22743_v0 = vld [vmem:[#allocation15_spill] sm:$0xff]  ;;  %v12896_v28 = vld [vmem:[%s21097_s5 + $0x6f4] ss:$8 sps:$4 sm:$0xff]  }
 0x4d6   : > { %9763 = vmatpush1.bf16.msra.mxu0 %v12879_v62  ;;  %22737 = vst [vmem:[#allocation159_spill] sm:$0xff] %v19669_v20  ;;  %v8748_v22 = vpop.f32.mrf.mxu0  ;;  %v12882_v62 = vld [vmem:[%s21097_s5 + $0x610] ss:$8 sps:$4 sm:$0xff]  }
 0x4d7   : > { %9764 = vmatprep.subr.bf16.mxu0 %v12887_v53  ;;  %v22740_v53 = vld [vmem:[#allocation11_spill] sm:$0xff]  ;;  %22742 = vst [vmem:[#allocation116_spill] sm:$0xff] %v19693_v19  ;;  %v19704_v10 = vadd.f32 %v8740_v9, %v8548_v43 }
 0x4d8   : > { %9570 = vmatpush1.bf16.msra.mxu1 %v12876_v57  ;;  %v22741_v20 = vcombine.low %v22739_v17, %v22740_v53  ;;  %v12891_v57 = vld [vmem:[%s21097_s5 + $0x700] ss:$8 sps:$4 sm:$0xff]   ;;  %v8750_v13 = vpop.f32.mrf.mxu0  ;;  %v12905_v9 = vld [vmem:[%s21097_s5 + $0x7e4] ss:$8 sps:$4 sm:$0xff]  }
 0x4d9   : > { %9429 = vmatmul.mubr.bf16.gmra.mxu0 %v22738_v59  ;;  %9571 = vmatprep.subr.bf16.mxu1 %v12884_v16  ;;  %v8555_v59 = vpop.f32.mrf.mxu1  ;;  %v22744_v16 = vld [vmem:[#allocation100_spill] sm:$0xff]  ;;  %22745 = vst [vmem:[#allocation80_spill] sm:$0xff] %v19704_v10  ;;  %v22747_v43 = vld [vmem:[#allocation135_spill] sm:$0xff] }
 0x4da   : > { %9438 = vmatprep.mubr.bf16.mxu0 %v22741_v20  ;;  %9765 = vmatpush1.bf16.msra.mxu0 %v12885_v15  ;;  %v8552_v20 = vadd.f32 %v8551_v7, %v19260_v33  ;;  %v12888_v15 = vld [vmem:[%s21097_s5 + $0x600] ss:$8 sps:$4 sm:$0xff]   ;;  %v12897_v7 = vld [vmem:[%s21097_s5 + $0x7f0] ss:$8 sps:$4 sm:$0xff]  }
 0x4db   : > { %9236 = vmatmul.mubr.bf16.gmra.mxu1 %v22743_v0  ;;  %9766 = vmatprep.subr.bf16.mxu0 %v12893_v27  ;;  %v8557_v17 = vpop.f32.mrf.mxu1  ;;  %v8556_v27 = vadd.f32 %v8555_v59, %v19248_v39  ;;  %v8752_v59 = vpop.f32.mrf.mxu0 }
 0x4dc   : > { %9245 = vmatprep.mubr.bf16.mxu1 %v22744_v16  ;;  %9572 = vmatpush1.bf16.msra.mxu1 %v12882_v62  ;;  %v19713_v62 = vadd.f32 %v8742_v5, %v8550_v30  ;;  %v8558_v10 = vadd.f32 %v8557_v17, %v19260_v33  ;;  %v19725_v19 = vadd.f32 %v8744_v60, %v8552_v20  ;;  %v22750_v5 = vld [vmem:[#allocation37_spill] sm:$0xff]  ;;  %v22751_v30 = vld [vmem:[#allocation203_spill] sm:$0xff] }
 0x4dd   : > { %9573 = vmatprep.subr.bf16.mxu1 %v12890_v8  ;;  %v8559_v53 = vpop.f32.mrf.mxu1  ;;  %v22748_v8 = vld [vmem:[#allocation74_spill] sm:$0xff]  ;;  %v22753_v60 = vld [vmem:[#allocation43_spill] sm:$0xff]  ;;  %v12911_v20 = vld [vmem:[%s21097_s5 + $0x7d4] ss:$8 sps:$4 sm:$0xff]  }
 0x4de   : > { %9767 = vmatpush1.bf16.msra.mxu0 %v12891_v57  ;;  %22746 = vst [vmem:[#allocation197_spill] sm:$0xff] %v19713_v62  ;;  %v22749_v16 = vcombine.low %v22747_v43, %v22748_v8  ;;  %v12894_v57 = vld [vmem:[%s21097_s5 + $0x6f0] ss:$8 sps:$4 sm:$0xff]   ;;  %v12902_v43 = vld [vmem:[%s21097_s5 + $0x6e4] ss:$8 sps:$4 sm:$0xff]   ;;  %v8560_v17 = vadd.f32 %v8559_v53, %v19248_v39  ;;  %v19737_v8 = vadd.f32 %v8748_v22, %v8556_v27 }
 0x4df   : > { %9768 = vmatprep.subr.bf16.mxu0 %v12899_v14  ;;  %v22752_v14 = vcombine.low %v22750_v5, %v22751_v30  ;;  %v8561_v62 = vpop.f32.mrf.mxu1  ;;  %v12900_v53 = vld [vmem:[%s21097_s5 + $0x6e0] ss:$8 sps:$4 sm:$0xff]   ;;  %v12908_v22 = vld [vmem:[%s21097_s5 + $0x6d4] ss:$8 sps:$4 sm:$0xff]   ;;  %v12909_v27 = vld [vmem:[%s21097_s5 + $0x7d0] ss:$8 sps:$4 sm:$0xff]  }
 0x4e0   : > { %9574 = vmatpush1.bf16.msra.mxu1 %v12888_v15  ;;  %v12903_v15 = vld [vmem:[%s21097_s5 + $0x7e0] ss:$8 sps:$4 sm:$0xff]   ;;  %v8562_v5 = vadd.f32 %v8561_v62, %v19260_v33  ;;  %v12917_v62 = vld [vmem:[%s21097_s5 + $0x7c4] ss:$8 sps:$4 sm:$0xff]  }
 0x4e1   : > { %9439 = vmatmul.mubr.bf16.gmra.mxu0 %v22749_v16  ;;  %9575 = vmatprep.subr.bf16.mxu1 %v12896_v28  ;;  %v22754_v28 = vld [vmem:[#allocation51_spill] sm:$0xff]  ;;  %v8754_v16 = vpop.f32.mrf.mxu0 }
 0x4e2   : > { %9448 = vmatprep.mubr.bf16.mxu0 %v22752_v14  ;;  %9769 = vmatpush2.bf16.msra.mxu0 %v12897_v7  ;;  %v19748_v7 = vadd.f32 %v8750_v13, %v8558_v10  ;;  %v22755_v13 = vld [vmem:[#allocation121_spill] sm:$0xff]  ;;  %v22756_v10 = vld [vmem:[#allocation122_spill] sm:$0xff] }
 0x4e3   : > { %9246 = vmatmul.mubr.bf16.gmra.mxu1 %v22753_v60  ;;  %9770 = vmatprep.subr.bf16.mxu0 %v12905_v9  ;;  %v19756_v9 = vadd.f32 %v8752_v59, %v8560_v17  ;;  %v22757_v30 = vcombine.low %v22755_v13, %v22756_v10  ;;  %v12906_v14 = vld [vmem:[%s21097_s5 + $0x6d0] ss:$8 sps:$4 sm:$0xff]   ;;  %v12914_v17 = vld [vmem:[%s21097_s5 + $0x6c4] ss:$8 sps:$4 sm:$0xff]  }
 0x4e4   : > { %9255 = vmatprep.mubr.bf16.mxu1 %v22754_v28  ;;  %9576 = vmatpush2.bf16.msra.mxu1 %v12894_v57  ;;  %v8758_v57 = vpop.f32.mrf.mxu0  ;;  %v8565_v28 = vpop.f32.mrf.mxu1 }
 0x4e5   : > { %9577 = vmatprep.subr.bf16.mxu1 %v12902_v43  ;;  %v19767_v43 = vadd.f32 %v8754_v16, %v8562_v5  ;;  %v8566_v16 = vadd.f32 %v8565_v28, %v19248_v39  ;;  %v22762_v5 = vld [vmem:[#allocation86_spill] sm:$0xff] }
 0x4e6   : > { %9771 = vmatpush2.bf16.msra.mxu0 %v12903_v15  ;;  %v22759_v15 = vld [vmem:[#allocation146_spill] sm:$0xff]  ;;  %v8760_v60 = vpop.f32.mrf.mxu0  ;;  %v8567_v13 = vpop.f32.mrf.mxu1 }
 0x4e7   : > { %9772 = vmatprep.subr.bf16.mxu0 %v12911_v20  ;;  %22758 = vst [vmem:[#allocation216_spill] sm:$0xff] %v19767_v43  ;;  %v22760_v59 = vcombine.low %v22759_v15, %v18729_v52  ;;  %v12915_v20 = vld [vmem:[%s21097_s5 + $0x7c0] ss:$8 sps:$4 sm:$0xff]   ;;  %v12923_v52 = vld [vmem:[%s21097_s5 + $0x7b4] ss:$8 sps:$4 sm:$0xff]   ;;  %v8568_v10 = vadd.f32 %v8567_v13, %v19260_v33 }
 0x4e8   : > { %9578 = vmatpush2.bf16.msra.mxu1 %v12900_v53  ;;  %v22761_v53 = vld [vmem:[#allocation134_spill] sm:$0xff]  ;;  %v12921_v15 = vld [vmem:[%s21097_s5 + $0x7b0] ss:$8 sps:$4 sm:$0xff]  }
 0x4e9   : > { %9449 = vmatmul.mubr.bf16.gmra.mxu0 %v22757_v30  ;;  %9579 = vmatprep.subr.bf16.mxu1 %v12908_v22  ;;  %v8762_v22 = vpop.f32.mrf.mxu0  ;;  %v22764_v43 = vld [vmem:[#allocation46_spill] sm:$0xff] }
 0x4ea   : > { %9458 = vmatprep.mubr.bf16.mxu0 %v22760_v59  ;;  %9773 = vmatpush2.bf16.msra.mxu0 %v12909_v27  ;;  %v12912_v27 = vld [vmem:[%s21097_s5 + $0x6c0] ss:$8 sps:$4 sm:$0xff]   ;;  %v19794_v59 = vadd.f32 %v8758_v57, %v8566_v16  ;;  %v19806_v57 = vadd.f32 %v8760_v60, %v8568_v10 }
 0x4eb   : > { %9256 = vmatmul.mubr.bf16.gmra.mxu1 %v22761_v53  ;;  %9774 = vmatprep.subr.bf16.mxu0 %v12917_v62  ;;  %v12920_v62 = vld [vmem:[%s21097_s5 + $0x6b4] ss:$8 sps:$4 sm:$0xff]   ;;  %v8764_v30 = vpop.f32.mrf.mxu0 }
 0x4ec   : > { %9265 = vmatprep.mubr.bf16.mxu1 %v22762_v5  ;;  %9580 = vmatpush2.bf16.msra.mxu1 %v12906_v14  ;;  %v8569_v14 = vpop.f32.mrf.mxu1  ;;  %v22763_v5 = vld [vmem:[#allocation68_spill] sm:$0xff] }
 0x4ed   : > { %9581 = vmatprep.subr.bf16.mxu1 %v12914_v17  ;;  %v12929_v17 = vld [vmem:[%s21097_s5 + $0x7a4] ss:$8 sps:$4 sm:$0xff]   ;;  %v8570_v28 = vadd.f32 %v8569_v14, %v19248_v39  ;;  %v8768_v53 = vpop.f32.mrf.mxu0  ;;  %v22765_v13 = vcombine.low %v22763_v5, %v22764_v43 }
 0x4ee   : > { %9775 = vmatpush2.bf16.msra.mxu0 %v12915_v20  ;;  %v12918_v20 = vld [vmem:[%s21097_s5 + $0x6b0] ss:$8 sps:$4 sm:$0xff]   ;;  %v8571_v16 = vpop.f32.mrf.mxu1  ;;  %v12926_v14 = vld [vmem:[%s21097_s5 + $0x6a4] ss:$8 sps:$4 sm:$0xff]  }
 0x4ef   : > { %9776 = vmatprep.subr.bf16.mxu0 %v12923_v52  ;;  %v22766_v52 = vcombine.low %v18750_v3, %v19116_v46  ;;  %v8572_v43 = vadd.f32 %v8571_v16, %v19260_v33  ;;  %v8770_v5 = vpop.f32.mrf.mxu0  ;;  %v19818_v60 = vadd.f32 %v8762_v22, %v8570_v28  ;;  %v12935_v3 = vld [vmem:[%s21097_s5 + $0x794] ss:$8 sps:$4 sm:$0xff]  }
 0x4f0   : > { %9582 = vmatpush2.bf16.msra.mxu1 %v12912_v27  ;;  %v12927_v27 = vld [vmem:[%s21097_s5 + $0x7a0] ss:$8 sps:$4 sm:$0xff]   ;;  %v8575_v10 = vpop.f32.mrf.mxu1 }
 0x4f1   : > { %9459 = vmatmul.mubr.bf16.gmra.mxu0 %v22765_v13  ;;  %9583 = vmatprep.subr.bf16.mxu1 %v12920_v62  ;;  %22767 = vst [vmem:[#allocation221_spill] sm:$0xff] %v19818_v60  ;;  %v22768_v13 = vld [vmem:[#allocation30_spill] sm:$0xff]  ;;  %v8576_v62 = vadd.f32 %v8575_v10, %v19248_v39  ;;  %v8772_v16 = vpop.f32.mrf.mxu0  ;;  %v19829_v22 = vadd.f32 %v8764_v30, %v8572_v43 }
 0x4f2   : > { %9468 = vmatprep.mubr.bf16.mxu0 %v22766_v52  ;;  %9777 = vmatpush2.bf16.msra.mxu0 %v12921_v15  ;;  %v22769_v52 = vld [vmem:[#allocation105_spill] sm:$0xff]  ;;  %v12924_v15 = vld [vmem:[%s21097_s5 + $0x6a0] ss:$8 sps:$4 sm:$0xff]   ;;  %v8577_v28 = vpop.f32.mrf.mxu1  ;;  %v12941_v30 = vld [vmem:[%s21097_s5 + $0x784] ss:$8 sps:$4 sm:$0xff]  }
 0x4f3   : > { %9266 = vmatmul.mubr.bf16.gmra.mxu1 %v22768_v13  ;;  %9778 = vmatprep.subr.bf16.mxu0 %v12929_v17  ;;  %22770 = vst [vmem:[#allocation170_spill] sm:$0xff] %v19829_v22  ;;  %v12932_v17 = vld [vmem:[%s21097_s5 + $0x694] ss:$8 sps:$4 sm:$0xff]   ;;  %v8578_v13 = vadd.f32 %v8577_v28, %v19260_v33  ;;  %v8774_v46 = vpop.f32.mrf.mxu0  ;;  %v19838_v10 = vadd.f32 %v8768_v53, %v8576_v62  ;;  %v22771_v22 = vld [vmem:[#allocation7_spill] sm:$0xff] }
 0x4f4   : > { %9275 = vmatprep.mubr.bf16.mxu1 %v22769_v52  ;;  %9584 = vmatpush2.bf16.msra.mxu1 %v12918_v20  ;;  %v12933_v20 = vld [vmem:[%s21097_s5 + $0x790] ss:$8 sps:$4 sm:$0xff]   ;;  %v8579_v60 = vpop.f32.mrf.mxu1  ;;  %v22772_v28 = vcombine.low %v22602_v45, %v22771_v22  ;;  %v22776_v22 = vld [vmem:[#allocation59_spill] sm:$0xff] }
 0x4f5   : > { %9585 = vmatprep.subr.bf16.mxu1 %v12926_v14  ;;  %v8580_v14 = vadd.f32 %v8579_v60, %v19248_v39  ;;  %v8778_v43 = vpop.f32.mrf.mxu0  ;;  %v19850_v53 = vadd.f32 %v8770_v5, %v8578_v13  ;;  %v12938_v60 = vld [vmem:[%s21097_s5 + $0x684] ss:$8 sps:$4 sm:$0xff]  }
 0x4f6   : > { %9779 = vmatpush2.bf16.msra.mxu0 %v12927_v27  ;;  %v12930_v27 = vld [vmem:[%s21097_s5 + $0x690] ss:$8 sps:$4 sm:$0xff]   ;;  %v8581_v62 = vpop.f32.mrf.mxu1 }
 0x4f7   : > { %9780 = vmatprep.subr.bf16.mxu0 %v12935_v3  ;;  %22773 = vst [vmem:[#allocation110_spill] sm:$0xff] %v19850_v53  ;;  %v22774_v3 = vcombine.low %v18754_v56, %v18771_v6  ;;  %v8582_v45 = vadd.f32 %v8581_v62, %v19260_v33  ;;  %v19862_v5 = vadd.f32 %v8772_v16, %v8580_v14  ;;  %v12947_v56 = vld [vmem:[%s21099_s7 + $0x74] ss:$8 sps:$4 sm:$0xff]  }
 0x4f8   : > { %9586 = vmatpush2.bf16.msra.mxu1 %v12924_v15  ;;  %v12939_v15 = vld [vmem:[%s21097_s5 + $0x780] ss:$8 sps:$4 sm:$0xff]   ;;  %v8585_v13 = vpop.f32.mrf.mxu1 }
 0x4f9   : > { %9469 = vmatmul.mubr.bf16.gmra.mxu0 %v22772_v28  ;;  %9587 = vmatprep.subr.bf16.mxu1 %v12932_v17  ;;  %v8780_v28 = vpop.f32.mrf.mxu0  ;;  %22775 = vst [vmem:[#allocation63_spill] sm:$0xff] %v19862_v5  ;;  %v8586_v6 = vadd.f32 %v8585_v13, %v19248_v39  ;;  %v22777_v17 = vld [vmem:[#allocation62_spill] sm:$0xff]  ;;  %v19873_v16 = vadd.f32 %v8774_v46, %v8582_v45  ;;  %v22779_v46 = vld [vmem:[#allocation55_spill] sm:$0xff] }
 0x4fa   : > { %9478 = vmatprep.mubr.bf16.mxu0 %v22774_v3  ;;  %9781 = vmatpush2.bf16.msra.mxu0 %v12933_v20  ;;  %v12936_v20 = vld [vmem:[%s21097_s5 + $0x680] ss:$8 sps:$4 sm:$0xff]   ;;  %v8587_v14 = vpop.f32.mrf.mxu1  ;;  %v22780_v45 = vcombine.low %v18759_v24, %v22779_v46  ;;  %v22784_v24 = vld [vmem:[#allocation204_spill] sm:$0xff] }
 0x4fb   : > { %9276 = vmatmul.mubr.bf16.gmra.mxu1 %v22776_v22  ;;  %9782 = vmatprep.subr.bf16.mxu0 %v12941_v30  ;;  %v8782_v62 = vpop.f32.mrf.mxu0  ;;  %22778 = vst [vmem:[#allocation175_spill] sm:$0xff] %v19873_v16  ;;  %v12944_v30 = vld [vmem:[%s21097_s5 + $0x874] ss:$8 sps:$4 sm:$0xff]   ;;  %v8588_v3 = vadd.f32 %v8587_v14, %v19260_v33  ;;  %v19879_v13 = vadd.f32 %v8778_v43, %v8586_v6 }
 0x4fc   : > { %9285 = vmatprep.mubr.bf16.mxu1 %v22777_v17  ;;  %9588 = vmatpush2.bf16.msra.mxu1 %v12930_v27  ;;  %v8589_v17 = vpop.f32.mrf.mxu1  ;;  %v22781_v14 = vcombine.low %v18786_v54, %v18802_v42  ;;  %v22783_v6 = vld [vmem:[#allocation92_spill] sm:$0xff] }
 0x4fd   : > { %9589 = vmatprep.subr.bf16.mxu1 %v12938_v60  ;;  %v8784_v5 = vpop.f32.mrf.mxu0  ;;  %v8590_v27 = vadd.f32 %v8589_v17, %v19248_v39  ;;  %v19885_v60 = vadd.f32 %v8780_v28, %v8588_v3  ;;  %v8442_v17 = vadd.f32 %v22784_v24, %v19260_v33  ;;  %v22787_v24 = vld [vmem:[#allocation84_spill] sm:$0xff] }
 0x4fe   : > { %9783 = vmatpush2.bf16.msra.mxu0 %v12939_v15  ;;  %v8591_v16 = vpop.f32.mrf.mxu1 }
 0x4ff   : > { %10246 = vmatprep.subr.bf16.mxu0 %v12947_v56  ;;  %v9014_v53 = vpop.f32.mrf.mxu0  ;;  %v8592_v43 = vadd.f32 %v8591_v16, %v19260_v33  ;;  %v19891_v56 = vadd.f32 %v8782_v62, %v8590_v27 }
 0x500   : > { %9590 = vmatpush2.bf16.msra.mxu1 %v12936_v20  ;;  %v8821_v39 = vpop.f32.mrf.mxu1  ;;  %v22785_v20 = vld [vmem:[#allocation16_spill] sm:$0xff] }
 0x501   : > { %9479 = vmatmul.mubr.bf16.gmra.mxu0 %v22780_v45  ;;  %9945 = vmatprep.subr.bf16.mxu1 %v12944_v30  ;;  %v9016_v15 = vpop.f32.mrf.mxu0  ;;  %22782 = vst [vmem:[#allocation173_spill] sm:$0xff] %v19891_v56  ;;  %v8822_v28 = vadd.f32 %v8821_v39, %v19295_v38  ;;  %v19898_v46 = vadd.f32 %v8784_v5, %v8592_v43  ;;  %v22786_v45 = vld [vmem:[#allocation141_spill] sm:$0xff]  ;;  %v22788_v56 = vld [vmem:[#allocation66_spill] sm:$0xff]  ;;  %v22791_v43 = vld [vmem:[#allocation208_spill] sm:$0xff] }
 0x502   : > { %9488 = vmatprep.mubr.bf16.mxu0 %v22781_v14  ;;  %v8823_v54 = vpop.f32.mrf.mxu1  ;;  %v8635_v14 = vadd.f32 %v22786_v45, %v8442_v17  ;;  %v22789_v38 = vcombine.low %v22787_v24, %v22788_v56  ;;  %v22795_v17 = vld [vmem:[#allocation75_spill] sm:$0xff]  ;;  %v22796_v45 = vld [vmem:[#allocation20_spill] sm:$0xff]  ;;  %v22797_v24 = vld [vmem:[#allocation29_spill] sm:$0xff] }
 0x503   : > { %9286 = vmatmul.mubr.bf16.gmra.mxu1 %v22783_v6  ;;  %v9018_v3 = vpop.f32.mrf.mxu0  ;;  %v8824_v42 = vadd.f32 %v8823_v54, %v19303_v11  ;;  %v19901_v30 = vadd.f32 %v9014_v53, %v8822_v28 }
 0x504   : > { %9295 = vmatprep.mubr.bf16.mxu1 %v22785_v20  ;;  %v8825_v62 = vpop.f32.mrf.mxu1  ;;  %v22792_v20 = vcombine.low %v22791_v43, %v19002_v21  ;;  %v22798_v21 = vld [vmem:[#allocation158_spill] sm:$0xff] }
 0x505   : > { %v9020_v16 = vpop.f32.mrf.mxu0  ;;  %v8826_v27 = vadd.f32 %v8825_v62, %v19312_v32  ;;  %v19908_v39 = vadd.f32 %v9016_v15, %v8824_v42  ;;  %v22794_v32 = vld [vmem:[#allocation64_spill] sm:$0xff]  ;;  %v8452_v62 = vadd.f32 %v22795_v17, %v19260_v33  ;;  %v22800_v17 = vld [vmem:[#allocation82_spill] sm:$0xff] }
 0x506   : > { %v8827_v5 = vpop.f32.mrf.mxu1 }
 0x507   : > { %v9024_v6 = vpop.f32.mrf.mxu0  ;;  %22790 = vst [vmem:[#allocation70_spill] sm:$0xff] %v19908_v39  ;;  %v8828_v11 = vadd.f32 %v8827_v5, %v8635_v14  ;;  %v19913_v28 = vadd.f32 %v9018_v3, %v8826_v27  ;;  %v22801_v39 = vld [vmem:[#allocation147_spill] sm:$0xff] }
 0x508   : > { %v8831_v54 = vpop.f32.mrf.mxu1 }
 0x509   : > { %9489 = vmatmul.mubr.bf16.gmra.mxu0 %v22789_v38  ;;  %v9026_v53 = vpop.f32.mrf.mxu0  ;;  %22793 = vst [vmem:[#allocation187_spill] sm:$0xff] %v19913_v28  ;;  %v8832_v56 = vadd.f32 %v8831_v54, %v22796_v45  ;;  %v19920_v42 = vadd.f32 %v9020_v16, %v8828_v11  ;;  %v22802_v54 = vcombine.low %v22800_v17, %v22801_v39  ;;  %v22803_v11 = vld [vmem:[#allocation44_spill] sm:$0xff] }
 0x50a   : > { %9498 = vmatprep.mubr.bf16.mxu0 %v22792_v20  ;;  %v8833_v38 = vpop.f32.mrf.mxu1  ;;  %v22799_v20 = vld [vmem:[#allocation210_spill] sm:$0xff] }
 0x50b   : > { %9296 = vmatmul.mubr.bf16.gmra.mxu1 %v22794_v32  ;;  %v9028_v15 = vpop.f32.mrf.mxu0  ;;  %v8834_v43 = vadd.f32 %v8833_v38, %v22798_v21  ;;  %v19923_v5 = vadd.f32 %v9024_v6, %v8832_v56  ;;  %v8645_v32 = vadd.f32 %v22799_v20, %v8452_v62  ;;  %v22807_v62 = vld [vmem:[#allocation123_spill] sm:$0xff]  ;;  %v22808_v20 = vld [vmem:[#allocation49_spill] sm:$0xff] }
 0x50c   : > { %9305 = vmatprep.mubr.bf16.mxu1 %v22797_v24  ;;  %v8835_v3 = vpop.f32.mrf.mxu1  ;;  %v22804_v24 = vcombine.low %v19037_v34, %v22803_v11 }
 0x50d   : > { %v9030_v14 = vpop.f32.mrf.mxu0  ;;  %v8836_v27 = vadd.f32 %v8835_v3, %v19357_v23  ;;  %v19930_v45 = vadd.f32 %v9026_v53, %v8834_v43  ;;  %v22806_v23 = vld [vmem:[#allocation13_spill] sm:$0xff]  ;;  %v8462_v3 = vadd.f32 %v22807_v62, %v19260_v33 }
 0x50e   : > { %v8837_v16 = vpop.f32.mrf.mxu1  ;;  %v22812_v62 = vld [vmem:[#allocation205_spill] sm:$0xff] }
 0x50f   : > { %v9034_v28 = vpop.f32.mrf.mxu0  ;;  %v8838_v38 = vadd.f32 %v8837_v16, %v8645_v32  ;;  %v19935_v56 = vadd.f32 %v9028_v15, %v8836_v27  ;;  %v22810_v27 = vld [vmem:[#allocation99_spill] sm:$0xff] }
 0x510   : > { %v8841_v21 = vpop.f32.mrf.mxu1 }
 0x511   : > { %9499 = vmatmul.mubr.bf16.gmra.mxu0 %v22802_v54  ;;  %v9036_v6 = vpop.f32.mrf.mxu0  ;;  %22805 = vst [vmem:[#allocation176_spill] sm:$0xff] %v19935_v56  ;;  %v8842_v39 = vadd.f32 %v8841_v21, %v19374_v50  ;;  %v19942_v43 = vadd.f32 %v9030_v14, %v8838_v38  ;;  %v22813_v56 = vld [vmem:[#allocation104_spill] sm:$0xff] }
 0x512   : > { %9508 = vmatprep.mubr.bf16.mxu0 %v22804_v24  ;;  %v8843_v17 = vpop.f32.mrf.mxu1  ;;  %v22811_v24 = vld [vmem:[#allocation140_spill] sm:$0xff]  ;;  %v22814_v50 = vcombine.low %v22812_v62, %v22813_v56  ;;  %v22820_v62 = vld [vmem:[#allocation3_spill] sm:$0xff] }
 0x513   : > { %9306 = vmatmul.mubr.bf16.gmra.mxu1 %v22806_v23  ;;  %v9038_v53 = vpop.f32.mrf.mxu0  ;;  %22809 = vst [vmem:[#allocation182_spill] sm:$0xff] %v19942_v43  ;;  %v8844_v34 = vadd.f32 %v8843_v17, %v19385_v25  ;;  %v19945_v54 = vadd.f32 %v9034_v28, %v8842_v39  ;;  %v8655_v23 = vadd.f32 %v22811_v24, %v8462_v3  ;;  %v22815_v38 = vld [vmem:[#allocation160_spill] sm:$0xff]  ;;  %v22816_v43 = vld [vmem:[#allocation211_spill] sm:$0xff] }
 0x514   : > { %9315 = vmatprep.mubr.bf16.mxu1 %v22808_v20  ;;  %v8845_v15 = vpop.f32.mrf.mxu1  ;;  %v22817_v20 = vcombine.low %v22815_v38, %v22816_v43  ;;  %v22819_v3 = vld [vmem:[#allocation152_spill] sm:$0xff] }
 0x515   : > { %v9040_v32 = vpop.f32.mrf.mxu0  ;;  %v8846_v16 = vadd.f32 %v8845_v15, %v22810_v27  ;;  %v19952_v21 = vadd.f32 %v9036_v6, %v8844_v34  ;;  %v22818_v15 = vld [vmem:[#allocation150_spill] sm:$0xff]  ;;  %v8472_v27 = vadd.f32 %v22819_v3, %v19260_v33  ;;  %v22823_v33 = vld [vmem:[#allocation93_spill] sm:$0xff] }
 0x516   : > { %v8847_v14 = vpop.f32.mrf.mxu1  ;;  %v22824_v3 = vld [vmem:[#allocation206_spill] sm:$0xff] }
 0x517   : > { %v9044_v11 = vpop.f32.mrf.mxu0  ;;  %v8848_v25 = vadd.f32 %v8847_v14, %v8655_v23  ;;  %v19957_v39 = vadd.f32 %v9038_v53, %v8846_v16  ;;  %v22822_v14 = vld [vmem:[#allocation144_spill] sm:$0xff] }
 0x518   : > { %v8851_v17 = vpop.f32.mrf.mxu1  ;;  %v8665_v38 = vadd.f32 %v22822_v14, %v8472_v27  ;;  %v22831_v27 = vld [vmem:[#allocation125_spill] sm:$0xff]  ;;  %v22832_v14 = vld [vmem:[#allocation106_spill] sm:$0xff] }
 0x519   : > { %9509 = vmatmul.mubr.bf16.gmra.mxu0 %v22814_v50  ;;  %v9046_v28 = vpop.f32.mrf.mxu0  ;;  %v8852_v24 = vadd.f32 %v8851_v17, %v19407_v26  ;;  %v19964_v34 = vadd.f32 %v9040_v32, %v8848_v25  ;;  %v22825_v26 = vcombine.low %v22823_v33, %v22824_v3  ;;  %v22827_v25 = vld [vmem:[#allocation212_spill] sm:$0xff] }
 0x51a   : > { %9518 = vmatprep.mubr.bf16.mxu0 %v22817_v20  ;;  %v8853_v50 = vpop.f32.mrf.mxu1 }
 0x51b   : > { %9316 = vmatmul.mubr.bf16.gmra.mxu1 %v22818_v15  ;;  %v9048_v6 = vpop.f32.mrf.mxu0  ;;  %22821 = vst [vmem:[#allocation183_spill] sm:$0xff] %v19964_v34  ;;  %v8854_v20 = vadd.f32 %v8853_v50, %v19411_v61  ;;  %v19967_v23 = vadd.f32 %v9044_v11, %v8852_v24 }
 0x51c   : > { %9325 = vmatprep.mubr.bf16.mxu1 %v22820_v62  ;;  %v8855_v53 = vpop.f32.mrf.mxu1  ;;  %v22828_v62 = vld [vmem:[#allocation214_spill] sm:$0xff] }
 0x51d   : > { %v9050_v43 = vpop.f32.mrf.mxu0  ;;  %v8856_v16 = vadd.f32 %v8855_v53, %v19418_v37  ;;  %v19974_v17 = vadd.f32 %v9046_v28, %v8854_v20  ;;  %v22829_v34 = vcombine.low %v22827_v25, %v22828_v62  ;;  %v22830_v37 = vld [vmem:[#allocation157_spill] sm:$0xff]  ;;  %v22834_v20 = vld [vmem:[#allocation132_spill] sm:$0xff] }
 0x51e   : > { %v8857_v32 = vpop.f32.mrf.mxu1  ;;  %v22838_v62 = vld [vmem:[#allocation172_spill] sm:$0xff] }
 0x51f   : > { %v9054_v56 = vpop.f32.mrf.mxu0  ;;  %22826 = vst [vmem:[#allocation194_spill] sm:$0xff] %v19974_v17  ;;  %v8858_v61 = vadd.f32 %v8857_v32, %v8665_v38  ;;  %v19979_v24 = vadd.f32 %v9048_v6, %v8856_v16  ;;  %v22836_v38 = vld [vmem:[#allocation164_spill] sm:$0xff]  ;;  %v22837_v32 = vld [vmem:[#allocation207_spill] sm:$0xff] }
 0x520   : > { %v8861_v50 = vpop.f32.mrf.mxu1 }
 0x521   : > { %9519 = vmatmul.mubr.bf16.gmra.mxu0 %v22825_v26  ;;  %v9056_v11 = vpop.f32.mrf.mxu0  ;;  %v8862_v53 = vadd.f32 %v8861_v50, %v22831_v27  ;;  %v19984_v3 = vadd.f32 %v9050_v43, %v8858_v61  ;;  %v22841_v43 = vld [vmem:[#allocation218_spill] sm:$0xff] }
 0x522   : > { %9528 = vmatprep.mubr.bf16.mxu0 %v22829_v34  ;;  %v8863_v28 = vpop.f32.mrf.mxu1 }
 0x523   : > { %9326 = vmatmul.mubr.bf16.gmra.mxu1 %v22830_v37  ;;  %v9058_v33 = vpop.f32.mrf.mxu0  ;;  %22833 = vst [vmem:[#allocation181_spill] sm:$0xff] %v19984_v3  ;;  %v8864_v26 = vadd.f32 %v8863_v28, %v22834_v20  ;;  %v19987_v25 = vadd.f32 %v9054_v56, %v8862_v53  ;;  %v22839_v37 = vcombine.low %v22837_v32, %v22838_v62  ;;  %v22845_v3 = vld [vmem:[#allocation108_spill] sm:$0xff]  ;;  %v22846_v62 = vld [vmem:[#allocation67_spill] sm:$0xff] }
 0x524   : > { %9335 = vmatprep.mubr.bf16.mxu1 %v22832_v14  ;;  %v8865_v34 = vpop.f32.mrf.mxu1  ;;  %v22840_v14 = vld [vmem:[#allocation215_spill] sm:$0xff] }
 0x525   : > { %v9060_v17 = vpop.f32.mrf.mxu0  ;;  %22835 = vst [vmem:[#allocation190_spill] sm:$0xff] %v19987_v25  ;;  %v8866_v6 = vadd.f32 %v8865_v34, %v22836_v38  ;;  %v19993_v50 = vadd.f32 %v9056_v11, %v8864_v26  ;;  %v22842_v61 = vcombine.low %v22840_v14, %v22841_v43  ;;  %v22843_v25 = vld [vmem:[#allocation113_spill] sm:$0xff] }
 0x526   : > { %v8867_v27 = vpop.f32.mrf.mxu1  ;;  %v22844_v34 = vld [vmem:[#allocation149_spill] sm:$0xff] }
 0x527   : > { %v8868_v28 = vadd.f32 %v8867_v27, %v19451_v44  ;;  %v19999_v56 = vadd.f32 %v9058_v33, %v8866_v6  ;;  %v22848_v27 = vld [vmem:[#allocation107_spill] sm:$0xff] }
 0x528   : > { %v8871_v53 = vpop.f32.mrf.mxu1 }
 0x529   : > { %v9064_v16 = vpop.f32.mrf.mxu0  ;;  %9529 = vmatmul.mubr.bf16.gmra.mxu0 %v22839_v37  ;;  %v8872_v38 = vadd.f32 %v8871_v53, %v22844_v34  ;;  %v20004_v11 = vadd.f32 %v9060_v17, %v8868_v28  ;;  %v22851_v34 = vld [vmem:[#allocation220_spill] sm:$0xff] }
 0x52a   : > { %9538 = vmatprep.mubr.bf16.mxu0 %v22842_v61  ;;  %v8873_v26 = vpop.f32.mrf.mxu1  ;;  %v22849_v61 = vld [vmem:[#allocation2_spill] sm:$0xff]  ;;  %v22852_v17 = vld [vmem:[#allocation224_spill] sm:$0xff] }
 0x52b   : > { %v9066_v20 = vpop.f32.mrf.mxu0  ;;  %9336 = vmatmul.mubr.bf16.gmra.mxu1 %v22843_v25  ;;  %v8874_v37 = vadd.f32 %v8873_v26, %v22846_v62  ;;  %v20007_v43 = vadd.f32 %v9064_v16, %v8872_v38  ;;  %v22850_v25 = vcombine.low %v22848_v27, %v22849_v61  ;;  %v22853_v28 = vcombine.low %v22851_v34, %v22852_v17  ;;  %v22857_v61 = vld [vmem:[#allocation167_spill] sm:$0xff]  ;;  %v22859_v17 = vld [vmem:[#allocation185_spill] sm:$0xff] }
 0x52c   : > { %9345 = vmatprep.mubr.bf16.mxu1 %v22845_v3  ;;  %v8875_v44 = vpop.f32.mrf.mxu1 }
 0x52d   : > { %v9068_v32 = vpop.f32.mrf.mxu0  ;;  %22847 = vst [vmem:[#allocation195_spill] sm:$0xff] %v20007_v43  ;;  %v8876_v33 = vadd.f32 %v8875_v44, %v19473_v29  ;;  %v20013_v53 = vadd.f32 %v9066_v20, %v8874_v37  ;;  %v22855_v43 = vld [vmem:[#allocation39_spill] sm:$0xff]  ;;  %v22856_v44 = vld [vmem:[#allocation186_spill] sm:$0xff] }
 0x52e   : > { %v8877_v3 = vpop.f32.mrf.mxu1 }
 0x52f   : > { %v9070_v14 = vpop.f32.mrf.mxu0  ;;  %v8878_v26 = vadd.f32 %v8877_v3, %v19480_v4  ;;  %v20019_v16 = vadd.f32 %v9068_v32, %v8876_v33  ;;  %v22858_v3 = vld [vmem:[#allocation109_spill] sm:$0xff] }
 0x531   : > { %v9074_v6 = vpop.f32.mrf.mxu0  ;;  %9539 = vmatmul.mubr.bf16.gmra.mxu0 %v22850_v25  ;;  %22854 = vst [vmem:[#allocation191_spill] sm:$0xff] %v20019_v16  ;;  %v20024_v20 = vadd.f32 %v9070_v14, %v8878_v26  ;;  %v22861_v16 = vld [vmem:[#allocation81_spill] sm:$0xff] }
 0x532   : > { %9548 = vmatprep.mubr.bf16.mxu0 %v22853_v28 }
 0x533   : > { %v9076_v62 = vpop.f32.mrf.mxu0  ;;  %v8881_v38 = vpop.f32.mrf.mxu1  ;;  %9346 = vmatmul.mubr.bf16.gmra.mxu1 %v22855_v43  ;;  %v22860_v43 = vcombine.low %v22858_v3, %v22859_v17  ;;  %v22870_v17 = vld [vmem:[#allocation89_spill] sm:$0xff] }
 0x534   : > { %v8882_v29 = vadd.f32 %v8881_v38, %v19489_v1  ;;  %9355 = vmatprep.mubr.bf16.mxu1 %v22856_v44 }
 0x535   : > { %v9078_v27 = vpop.f32.mrf.mxu0  ;;  %v8883_v37 = vpop.f32.mrf.mxu1 }
 0x536   : > { %v8884_v25 = vadd.f32 %v8883_v37, %v22857_v61  ;;  %v20027_v28 = vadd.f32 %v9074_v6, %v8882_v29  ;;  %v22862_v29 = vld [vmem:[#allocation111_spill] sm:$0xff] }
 0x537   : > { %v9080_v34 = vpop.f32.mrf.mxu0  ;;  %v8885_v4 = vpop.f32.mrf.mxu1  ;;  %v22863_v61 = vld [vmem:[#allocation83_spill] sm:$0xff] }
 0x538   : > { %v8886_v32 = vadd.f32 %v8885_v4, %v19501_v41  ;;  %v20033_v1 = vadd.f32 %v9076_v62, %v8884_v25 }
 0x539   : > { %v9084_v33 = vpop.f32.mrf.mxu0  ;;  %9549 = vmatmul.mubr.bf16.gmra.mxu0 %v22860_v43  ;;  %v8887_v38 = vpop.f32.mrf.mxu1 }
 0x53a   : > { %9784 = vmatprep.mubr.bf16.mxu0 %v22861_v16  ;;  %v8888_v14 = vadd.f32 %v8887_v38, %v19509_v48  ;;  %v20037_v37 = vadd.f32 %v9078_v27, %v8886_v32  ;;  %v12945_v16 = vld [vmem:[%s21099_s7 + $0x70] ss:$8 sps:$4 sm:$0xff]   ;;  %v12956_v27 = vld [vmem:[%s21099_s7 + $0x64] ss:$8 sps:$4 sm:$0xff]  }
 0x53b   : > { %v9086_v26 = vpop.f32.mrf.mxu0  ;;  %v8891_v6 = vpop.f32.mrf.mxu1  ;;  %9356 = vmatmul.mubr.bf16.gmra.mxu1 %v22862_v29 }
 0x53c   : > { %v8892_v41 = vadd.f32 %v8891_v6, %v19515_v51  ;;  %9591 = vmatprep.mubr.bf16.mxu1 %v22863_v61  ;;  %v20042_v3 = vadd.f32 %v9080_v34, %v8888_v14  ;;  %v22864_v34 = vld [vmem:[#allocation22_spill] sm:$0xff]  ;;  %v12942_v14 = vld [vmem:[%s21097_s5 + $0x870] ss:$8 sps:$4 sm:$0xff]   ;;  %v22866_v61 = vld [vmem:[#allocation23_spill] sm:$0xff] }
 0x53d   : > { %v9088_v4 = vpop.f32.mrf.mxu0  ;;  %v8893_v62 = vpop.f32.mrf.mxu1 }
 0x53e   : > { %v8894_v48 = vadd.f32 %v8893_v62, %v19522_v35  ;;  %v20051_v32 = vadd.f32 %v9084_v33, %v8892_v41  ;;  %v12950_v33 = vld [vmem:[%s21097_s5 + $0x864] ss:$8 sps:$4 sm:$0xff]  }
 0x53f   : > { %v9090_v25 = vpop.f32.mrf.mxu0  ;;  %v8895_v51 = vpop.f32.mrf.mxu1 }
 0x540   : > { %v8896_v43 = vadd.f32 %v8895_v51, %v19533_v58  ;;  %v20058_v6 = vadd.f32 %v9086_v26, %v8894_v48  ;;  %v12954_v58 = vld [vmem:[%s21099_s7 + $0x60] ss:$8 sps:$4 sm:$0xff]   ;;  %v12965_v26 = vld [vmem:[%s21099_s7 + $0x54] ss:$8 sps:$4 sm:$0xff]  }
 0x541   : > { %v9094_v38 = vpop.f32.mrf.mxu0  ;;  %9785 = vmatmul.mubr.bf16.vlgmr.msra.gmra.mxu0 %v22864_v34  ;;  %v8897_v35 = vpop.f32.mrf.mxu1  ;;  %v22869_v34 = vld [vmem:[#allocation161_spill] sm:$0xff] }
 0x542   : > { %22865 = vst [vmem:[#allocation114_spill] sm:$0xff] %v20058_v6  ;;  %9794 = vmatprep.mubr.bf16.mxu0 %v22866_v61  ;;  %10247 = vmatpush1.bf16.msra.mxu0 %v12945_v16  ;;  %v8898_v41 = vadd.f32 %v8897_v35, %v19541_v55  ;;  %v20071_v48 = vadd.f32 %v9088_v4, %v8896_v43  ;;  %v22868_v16 = vld [vmem:[#allocation117_spill] sm:$0xff]  ;;  %v12948_v55 = vld [vmem:[%s21097_s5 + $0x860] ss:$8 sps:$4 sm:$0xff]  }
 0x543   : > { %v9096_v62 = vpop.f32.mrf.mxu0  ;;  %10248 = vmatprep.subr.bf16.mxu0 %v12956_v27  ;;  %v8901_v51 = vpop.f32.mrf.mxu1  ;;  %9592 = vmatmul.mubr.bf16.vlgmr.msra.gmra.mxu1 %v22868_v16  ;;  %v12953_v4 = vld [vmem:[%s21097_s5 + $0x854] ss:$8 sps:$4 sm:$0xff]   ;;  %v22872_v43 = vld [vmem:[#allocation151_spill] sm:$0xff] }
 0x544   : > { %22867 = vst [vmem:[#allocation112_spill] sm:$0xff] %v20071_v48  ;;  %v8902_v61 = vadd.f32 %v8901_v51, %v22869_v34  ;;  %9946 = vmatpush1.bf16.msra.mxu1 %v12942_v14  ;;  %9601 = vmatprep.mubr.bf16.mxu1 %v22870_v17  ;;  %v20079_v27 = vadd.f32 %v9090_v25, %v8898_v41  ;;  %v12963_v17 = vld [vmem:[%s21099_s7 + $0x50] ss:$8 sps:$4 sm:$0xff]   ;;  %v12974_v25 = vld [vmem:[%s21099_s7 + $0x44] ss:$8 sps:$4 sm:$0xff]  }
 0x545   : > { %v9098_v6 = vpop.f32.mrf.mxu0  ;;  %v8903_v35 = vpop.f32.mrf.mxu1  ;;  %9947 = vmatprep.subr.bf16.mxu1 %v12950_v33  ;;  %v22873_v33 = vld [vmem:[#allocation166_spill] sm:$0xff]  ;;  %v22874_v48 = vld [vmem:[#allocation128_spill] sm:$0xff] }
 0x546   : > { %22871 = vst [vmem:[#allocation27_spill] sm:$0xff] %v20079_v27  ;;  %10249 = vmatpush1.bf16.msra.mxu0 %v12954_v58  ;;  %v8904_v16 = vadd.f32 %v8903_v35, %v22872_v43  ;;  %v20088_v14 = vadd.f32 %v9094_v38, %v8902_v61  ;;  %v12951_v58 = vld [vmem:[%s21097_s5 + $0x850] ss:$8 sps:$4 sm:$0xff]   ;;  %v22875_v38 = vld [vmem:[#allocation98_spill] sm:$0xff] }
 0x547   : > { %v9100_v51 = vpop.f32.mrf.mxu0  ;;  %10250 = vmatprep.subr.bf16.mxu0 %v12965_v26  ;;  %v8905_v34 = vpop.f32.mrf.mxu1  ;;  %v12959_v61 = vld [vmem:[%s21097_s5 + $0x844] ss:$8 sps:$4 sm:$0xff]  }
 0x548   : > { %v8906_v41 = vadd.f32 %v8905_v34, %v22873_v33  ;;  %9948 = vmatpush1.bf16.msra.mxu1 %v12948_v55  ;;  %v20098_v35 = vadd.f32 %v9096_v62, %v8904_v16  ;;  %v22876_v16 = vld [vmem:[#allocation95_spill] sm:$0xff] }
 0x549   : > { %v9104_v27 = vpop.f32.mrf.mxu0  ;;  %9795 = vmatmul.mubr.bf16.gmra.mxu0 %v22874_v48  ;;  %v8907_v26 = vpop.f32.mrf.mxu1  ;;  %9949 = vmatprep.subr.bf16.mxu1 %v12953_v4  ;;  %v12972_v48 = vld [vmem:[%s21099_s7 + $0x40] ss:$8 sps:$4 sm:$0xff]   ;;  %v12983_v4 = vld [vmem:[%s21099_s7 + $0x34] ss:$8 sps:$4 sm:$0xff]  }
 0x54a   : > { %9804 = vmatprep.mubr.bf16.mxu0 %v22875_v38  ;;  %v8908_v43 = vadd.f32 %v8907_v26, %v19589_v12  ;;  %10251 = vmatpush1.bf16.msra.mxu0 %v12963_v17  ;;  %v20108_v55 = vadd.f32 %v9098_v6, %v8906_v41  ;;  %v22877_v38 = vld [vmem:[#allocation136_spill] sm:$0xff]  ;;  %v12957_v17 = vld [vmem:[%s21097_s5 + $0x840] ss:$8 sps:$4 sm:$0xff]  }
 0x54b   : > { %v9106_v34 = vpop.f32.mrf.mxu0  ;;  %v8911_v62 = vpop.f32.mrf.mxu1  ;;  %9602 = vmatmul.mubr.bf16.gmra.mxu1 %v22876_v16  ;;  %10252 = vmatprep.subr.bf16.mxu0 %v12974_v25  ;;  %v12962_v25 = vld [vmem:[%s21097_s5 + $0x834] ss:$8 sps:$4 sm:$0xff]  }
 0x54c   : > { %v8912_v33 = vadd.f32 %v8911_v62, %v19602_v2  ;;  %9611 = vmatprep.mubr.bf16.mxu1 %v22877_v38  ;;  %9950 = vmatpush1.bf16.msra.mxu1 %v12951_v58  ;;  %v20119_v6 = vadd.f32 %v9100_v51, %v8908_v43  ;;  %v12981_v2 = vld [vmem:[%s21099_s7 + $0x30] ss:$8 sps:$4 sm:$0xff]   ;;  %v22879_v38 = vmov 0  }
 0x54d   : > { %v9108_v12 = vpop.f32.mrf.mxu0  ;;  %v8913_v41 = vpop.f32.mrf.mxu1  ;;  %9951 = vmatprep.subr.bf16.mxu1 %v12959_v61  ;;  %v11625_v51 = vcombine.high %v22736_v18, %v22879_v38  ;;  %v12992_v61 = vld [vmem:[%s21099_s7 + $0x24] ss:$8 sps:$4 sm:$0xff]   ;;  %v20143_v18 = vunpack.c.l.b16 %v22879_v38 }
 0x54e   : > { %v8914_v26 = vadd.f32 %v8913_v41, %v19614_v63  ;;  %10253 = vmatpush1.bf16.msra.mxu0 %v12972_v48  ;;  %v20128_v58 = vadd.f32 %v9104_v27, %v8912_v33  ;;  %v22880_v41 = vld [vmem:[#allocation127_spill] sm:$0xff]  ;;  %v12960_v27 = vld [vmem:[%s21097_s5 + $0x830] ss:$8 sps:$4 sm:$0xff]  }
 0x54f   : > { %v9110_v16 = vpop.f32.mrf.mxu0  ;;  %v8915_v62 = vpop.f32.mrf.mxu1  ;;  %10254 = vmatprep.subr.bf16.mxu0 %v12983_v4 }
 0x550   : > { %22878 = vst [vmem:[#allocation54_spill] sm:$0xff] %v20128_v58  ;;  %v8916_v43 = vadd.f32 %v8915_v62, %v19624_v40  ;;  %9952 = vmatpush1.bf16.msra.mxu1 %v12957_v17  ;;  %v20140_v48 = vadd.f32 %v9106_v34, %v8914_v26  ;;  %v12968_v40 = vld [vmem:[%s21097_s5 + $0x824] ss:$8 sps:$4 sm:$0xff]   ;;  %v5090_v58 = vunpack.c.h.b16 %v22743_v0  ;;  %v12990_v34 = vld [vmem:[%s21099_s7 + $0x20] ss:$8 sps:$4 sm:$0xff]  }
 0x551   : > { %v9114_v63 = vpop.f32.mrf.mxu0  ;;  %9805 = vmatmul.mubr.bf16.gmra.mxu0 %v22880_v41  ;;  %v8917_v33 = vpop.f32.mrf.mxu1  ;;  %9953 = vmatprep.subr.bf16.mxu1 %v12962_v25  ;;  %v22881_v17 = vld [vmem:[#allocation50_spill] sm:$0xff] }
 0x552   : > { %9814 = vmatprep.mubr.bf16.mxu0 %v11625_v51  ;;  %v8918_v4 = vadd.f32 %v8917_v33, %v19637_v31  ;;  %v11618_v41 = vcombine.low %v22881_v17, %v22879_v38  ;;  %10255 = vmatpush1.bf16.msra.mxu0 %v12981_v2  ;;  %v20155_v26 = vadd.f32 %v9108_v12, %v8916_v43  ;;  %v22882_v51 = vld [vmem:[#allocation130_spill] sm:$0xff]  ;;  %v13001_v31 = vld [vmem:[%s21099_s7 + $0x14] ss:$8 sps:$4 sm:$0xff]  }
 0x553   : > { %v9116_v62 = vpop.f32.mrf.mxu0  ;;  %v8921_v25 = vpop.f32.mrf.mxu1  ;;  %9612 = vmatmul.mubr.bf16.gmra.mxu1 %v22882_v51  ;;  %10256 = vmatprep.subr.bf16.mxu0 %v12992_v61  ;;  %v12966_v0 = vld [vmem:[%s21097_s5 + $0x820] ss:$8 sps:$4 sm:$0xff]   ;;  %v12971_v61 = vld [vmem:[%s21097_s5 + $0x814] ss:$8 sps:$4 sm:$0xff]  }
 0x554   : > { %v8922_v33 = vadd.f32 %v8921_v25, %v19649_v49  ;;  %9621 = vmatprep.mubr.bf16.mxu1 %v11618_v41  ;;  %9954 = vmatpush1.bf16.msra.mxu1 %v12960_v27  ;;  %v20165_v2 = vadd.f32 %v9110_v16, %v8918_v4  ;;  %v6629_v49 = vpack.c.b16 %v20143_v18, %v5090_v58  ;;  %v12999_v27 = vld [vmem:[%s21099_s7 + $0x10] ss:$8 sps:$4 sm:$0xff]   ;;  %v22884_v4 = vld [vmem:[#allocation159_spill] sm:$0xff] }
 0x555   : > { %v9118_v17 = vpop.f32.mrf.mxu0  ;;  %v8923_v12 = vpop.f32.mrf.mxu1  ;;  %9955 = vmatprep.subr.bf16.mxu1 %v12968_v40  ;;  %v13010_v40 = vld [vmem:[%s21099_s7 + $0x4] ss:$8 sps:$4 sm:$0xff]  }
 0x556   : > { %22883 = vst [vmem:[#allocation8_spill] sm:$0xff] %v20165_v2  ;;  %v8924_v43 = vadd.f32 %v8923_v12, %v19660_v36  ;;  %10257 = vmatpush1.bf16.msra.mxu0 %v12990_v34  ;;  %v20175_v41 = vadd.f32 %v9114_v63, %v8922_v33  ;;  %v12969_v36 = vld [vmem:[%s21097_s5 + $0x810] ss:$8 sps:$4 sm:$0xff]   ;;  %v12977_v12 = vld [vmem:[%s21097_s5 + $0x804] ss:$8 sps:$4 sm:$0xff]  }
 0x557   : > { %v9120_v51 = vpop.f32.mrf.mxu0  ;;  %v8925_v16 = vpop.f32.mrf.mxu1  ;;  %10258 = vmatprep.subr.bf16.mxu0 %v13001_v31  ;;  %v22886_v63 = vld [vmem:[#allocation129_spill] sm:$0xff]  ;;  %v22887_v31 = vld [vmem:[#allocation139_spill] sm:$0xff] }
 0x558   : > { %v8926_v25 = vadd.f32 %v8925_v16, %v22884_v4  ;;  %9956 = vmatpush1.bf16.msra.mxu1 %v12966_v0  ;;  %v20184_v58 = vadd.f32 %v9116_v62, %v8924_v43  ;;  %v11617_v33 = vcombine.low %v22886_v63, %v22879_v38  ;;  %v13008_v62 = vld [vmem:[%s21099_s7] ss:$8 sps:$4 sm:$0xff]   ;;  %v22889_v4 = vld [vmem:[#allocation116_spill] sm:$0xff] }
 0x559   : > { %v9124_v2 = vpop.f32.mrf.mxu0  ;;  %9815 = vmatmul.mubr.bf16.gmra.mxu0 %v6629_v49  ;;  %v8927_v34 = vpop.f32.mrf.mxu1  ;;  %9957 = vmatprep.subr.bf16.mxu1 %v12971_v61  ;;  %v22890_v61 = vld [vmem:[#allocation90_spill] sm:$0xff] }
 0x55a   : > { %22885 = vst [vmem:[#allocation120_spill] sm:$0xff] %v20184_v58  ;;  %9824 = vmatprep.mubr.bf16.mxu0 %v22887_v31  ;;  %v8928_v49 = vadd.f32 %v8927_v34, %v19681_v47  ;;  %10259 = vmatpush1.bf16.msra.mxu0 %v12999_v27  ;;  %v20196_v43 = vadd.f32 %v9118_v17, %v8926_v25  ;;  %v12975_v47 = vld [vmem:[%s21097_s5 + $0x800] ss:$8 sps:$4 sm:$0xff]   ;;  %v12980_v17 = vld [vmem:[%s21097_s5 + $0x8f4] ss:$8 sps:$4 sm:$0xff]  }
 0x55b   : > { %v9126_v0 = vpop.f32.mrf.mxu0  ;;  %v8931_v16 = vpop.f32.mrf.mxu1  ;;  %9622 = vmatmul.mubr.bf16.gmra.mxu1 %v11617_v33  ;;  %10260 = vmatprep.subr.bf16.mxu0 %v13010_v40  ;;  %v22892_v25 = vld [vmem:[#allocation80_spill] sm:$0xff]  ;;  %v22894_v58 = vld [vmem:[#allocation78_spill] sm:$0xff] }
 0x55c   : > { %22888 = vst [vmem:[#allocation87_spill] sm:$0xff] %v20196_v43  ;;  %v8932_v63 = vadd.f32 %v8931_v16, %v22889_v4  ;;  %9631 = vmatprep.mubr.bf16.mxu1 %v22890_v61  ;;  %9958 = vmatpush1.bf16.msra.mxu1 %v12969_v36  ;;  %v20203_v27 = vadd.f32 %v9120_v51, %v8928_v49  ;;  %v22893_v36 = vld [vmem:[#allocation197_spill] sm:$0xff] }
 0x55d   : > { %v9128_v31 = vpop.f32.mrf.mxu0  ;;  %v8933_v34 = vpop.f32.mrf.mxu1  ;;  %9959 = vmatprep.subr.bf16.mxu1 %v12977_v12  ;;  %v12978_v51 = vld [vmem:[%s21097_s5 + $0x8f0] ss:$8 sps:$4 sm:$0xff]  }
 0x55e   : > { %22891 = vst [vmem:[#allocation28_spill] sm:$0xff] %v20203_v27  ;;  %v8934_v40 = vadd.f32 %v8933_v34, %v22892_v25  ;;  %10261 = vmatpush1.bf16.msra.mxu0 %v13008_v62  ;;  %v20209_v16 = vadd.f32 %v9124_v2, %v8932_v63  ;;  %v22895_v27 = vld [vmem:[#allocation103_spill] sm:$0xff] }
 0x55f   : > { %v9130_v33 = vpop.f32.mrf.mxu0  ;;  %v8935_v4 = vpop.f32.mrf.mxu1  ;;  %v12986_v2 = vld [vmem:[%s21097_s5 + $0x8e4] ss:$8 sps:$4 sm:$0xff]  }
 0x560   : > { %v8936_v61 = vadd.f32 %v8935_v4, %v22893_v36  ;;  %9960 = vmatpush1.bf16.msra.mxu1 %v12975_v47  ;;  %v20216_v12 = vadd.f32 %v9126_v0, %v8934_v40  ;;  %v22896_v47 = vld [vmem:[#allocation21_spill] sm:$0xff]  ;;  %v22897_v0 = vld [vmem:[#allocation96_spill] sm:$0xff] }
 0x561   : > { %v9134_v43 = vpop.f32.mrf.mxu0  ;;  %9825 = vmatmul.mubr.bf16.gmra.mxu0 %v22894_v58  ;;  %v8937_v49 = vpop.f32.mrf.mxu1  ;;  %9961 = vmatprep.subr.bf16.mxu1 %v12980_v17 }
 0x562   : > { %9834 = vmatprep.mubr.bf16.mxu0 %v22895_v27  ;;  %v8938_v62 = vadd.f32 %v8937_v49, %v19725_v19  ;;  %v20223_v34 = vadd.f32 %v9128_v31, %v8936_v61  ;;  %v12984_v27 = vld [vmem:[%s21097_s5 + $0x8e0] ss:$8 sps:$4 sm:$0xff]   ;;  %v12989_v19 = vld [vmem:[%s21097_s5 + $0x8d4] ss:$8 sps:$4 sm:$0xff]  }
 0x563   : > { %v9136_v63 = vpop.f32.mrf.mxu0  ;;  %v8941_v58 = vpop.f32.mrf.mxu1  ;;  %9632 = vmatmul.mubr.bf16.gmra.mxu1 %v22896_v47  ;;  %v22899_v47 = vld [vmem:[#allocation101_spill] sm:$0xff] }
 0x564   : > { %v8942_v25 = vadd.f32 %v8941_v58, %v19737_v8  ;;  %9641 = vmatprep.mubr.bf16.mxu1 %v22897_v0  ;;  %9962 = vmatpush2.bf16.msra.mxu1 %v12978_v51  ;;  %v20231_v17 = vadd.f32 %v9130_v33, %v8938_v62  ;;  %v22898_v58 = vld [vmem:[#allocation88_spill] sm:$0xff] }
 0x565   : > { %v9138_v40 = vpop.f32.mrf.mxu0  ;;  %v8943_v4 = vpop.f32.mrf.mxu1  ;;  %9963 = vmatprep.subr.bf16.mxu1 %v12986_v2  ;;  %v12987_v33 = vld [vmem:[%s21097_s5 + $0x8d0] ss:$8 sps:$4 sm:$0xff]  }
 0x566   : > { %v8944_v31 = vadd.f32 %v8943_v4, %v19748_v7  ;;  %v20237_v8 = vadd.f32 %v9134_v43, %v8942_v25  ;;  %v12995_v7 = vld [vmem:[%s21097_s5 + $0x8c4] ss:$8 sps:$4 sm:$0xff]   ;;  %v22900_v43 = vld [vmem:[#allocation216_spill] sm:$0xff] }
 0x567   : > { %v9140_v36 = vpop.f32.mrf.mxu0  ;;  %v8945_v61 = vpop.f32.mrf.mxu1  ;;  %v22901_v4 = vld [vmem:[#allocation40_spill] sm:$0xff] }
 0x568   : > { %v8946_v51 = vadd.f32 %v8945_v61, %v19756_v9  ;;  %9964 = vmatpush2.bf16.msra.mxu1 %v12984_v27  ;;  %v20244_v2 = vadd.f32 %v9136_v63, %v8944_v31  ;;  %v22902_v63 = vld [vmem:[#allocation142_spill] sm:$0xff] }
 0x569   : > { %v9144_v49 = vpop.f32.mrf.mxu0  ;;  %9835 = vmatmul.mubr.bf16.gmra.mxu0 %v22898_v58  ;;  %v8947_v62 = vpop.f32.mrf.mxu1  ;;  %9965 = vmatprep.subr.bf16.mxu1 %v12989_v19  ;;  %v12993_v19 = vld [vmem:[%s21097_s5 + $0x8c0] ss:$8 sps:$4 sm:$0xff]  }
 0x56a   : > { %9844 = vmatprep.mubr.bf16.mxu0 %v22899_v47  ;;  %v8948_v9 = vadd.f32 %v8947_v62, %v22900_v43  ;;  %v20251_v0 = vadd.f32 %v9138_v40, %v8946_v51  ;;  %v12998_v40 = vld [vmem:[%s21097_s5 + $0x8b4] ss:$8 sps:$4 sm:$0xff]  }
 0x56b   : > { %v9146_v25 = vpop.f32.mrf.mxu0  ;;  %v8951_v27 = vpop.f32.mrf.mxu1  ;;  %9642 = vmatmul.mubr.bf16.gmra.mxu1 %v22901_v4 }
 0x56c   : > { %v8952_v61 = vadd.f32 %v8951_v27, %v19794_v59  ;;  %9651 = vmatprep.mubr.bf16.mxu1 %v22902_v63  ;;  %9966 = vmatpush2.bf16.msra.mxu1 %v12987_v33  ;;  %v20259_v58 = vadd.f32 %v9140_v36, %v8948_v9  ;;  %v11626_v33 = vcombine.high %v22769_v52, %v22879_v38  ;;  %v22904_v27 = vld [vmem:[#allocation221_spill] sm:$0xff]  ;;  %v22905_v36 = vld [vmem:[#allocation143_spill] sm:$0xff]  ;;  %v22906_v52 = vld [vmem:[#allocation170_spill] sm:$0xff] }
 0x56d   : > { %v9148_v31 = vpop.f32.mrf.mxu0  ;;  %v8953_v47 = vpop.f32.mrf.mxu1  ;;  %9967 = vmatprep.subr.bf16.mxu1 %v12995_v7  ;;  %v12996_v7 = vld [vmem:[%s21097_s5 + $0x8b0] ss:$8 sps:$4 sm:$0xff]  }
 0x56e   : > { %v8954_v51 = vadd.f32 %v8953_v47, %v19806_v57  ;;  %v20265_v59 = vadd.f32 %v9144_v49, %v8952_v61  ;;  %v13004_v49 = vld [vmem:[%s21097_s5 + $0x8a4] ss:$8 sps:$4 sm:$0xff]  }
 0x56f   : > { %v9150_v62 = vpop.f32.mrf.mxu0  ;;  %v8955_v43 = vpop.f32.mrf.mxu1 }
 0x570   : > { %22903 = vst [vmem:[#allocation77_spill] sm:$0xff] %v20265_v59  ;;  %v8956_v4 = vadd.f32 %v8955_v43, %v22904_v27  ;;  %9968 = vmatpush2.bf16.msra.mxu1 %v12993_v19  ;;  %v20274_v9 = vadd.f32 %v9146_v25, %v8954_v51  ;;  %v22907_v43 = vld [vmem:[#allocation201_spill] sm:$0xff]  ;;  %v5106_v19 = vunpack.c.h.b16 %v22776_v22 }
 0x571   : > { %v9154_v63 = vpop.f32.mrf.mxu0  ;;  %9845 = vmatmul.mubr.bf16.gmra.mxu0 %v22905_v36  ;;  %v8957_v57 = vpop.f32.mrf.mxu1  ;;  %9969 = vmatprep.subr.bf16.mxu1 %v12998_v40  ;;  %v11620_v27 = vcombine.low %v22907_v43, %v22879_v38  ;;  %v22909_v25 = vld [vmem:[#allocation145_spill] sm:$0xff] }
 0x572   : > { %9854 = vmatprep.mubr.bf16.mxu0 %v11626_v33  ;;  %v8958_v61 = vadd.f32 %v8957_v57, %v22906_v52  ;;  %v20283_v36 = vadd.f32 %v9148_v31, %v8956_v4  ;;  %v13002_v33 = vld [vmem:[%s21097_s5 + $0x8a0] ss:$8 sps:$4 sm:$0xff]   ;;  %v13007_v22 = vld [vmem:[%s21097_s5 + $0x894] ss:$8 sps:$4 sm:$0xff]  }
 0x573   : > { %v9156_v47 = vpop.f32.mrf.mxu0  ;;  %v8961_v59 = vpop.f32.mrf.mxu1  ;;  %9652 = vmatmul.mubr.bf16.gmra.mxu1 %v22909_v25  ;;  %v22911_v31 = vld [vmem:[#allocation110_spill] sm:$0xff] }
 0x574   : > { %22908 = vst [vmem:[#allocation5_spill] sm:$0xff] %v20283_v36  ;;  %v8962_v51 = vadd.f32 %v8961_v59, %v19838_v10  ;;  %9661 = vmatprep.mubr.bf16.mxu1 %v11620_v27  ;;  %9970 = vmatpush2.bf16.msra.mxu1 %v12996_v7  ;;  %v20290_v57 = vadd.f32 %v9150_v62, %v8958_v61  ;;  %v22912_v27 = vld [vmem:[#allocation63_spill] sm:$0xff]  ;;  %v13005_v62 = vld [vmem:[%s21097_s5 + $0x890] ss:$8 sps:$4 sm:$0xff]  }
 0x575   : > { %v9158_v40 = vpop.f32.mrf.mxu0  ;;  %v8963_v52 = vpop.f32.mrf.mxu1  ;;  %9971 = vmatprep.subr.bf16.mxu1 %v13004_v49  ;;  %v6631_v10 = vpack.c.b16 %v20143_v18, %v5106_v19  ;;  %v22916_v19 = vld [vmem:[#allocation175_spill] sm:$0xff] }
 0x576   : > { %22910 = vst [vmem:[#allocation76_spill] sm:$0xff] %v20290_v57  ;;  %v8964_v4 = vadd.f32 %v8963_v52, %v22911_v31  ;;  %v20297_v59 = vadd.f32 %v9154_v63, %v8962_v51  ;;  %v22914_v52 = vld [vmem:[#allocation199_spill] sm:$0xff]  ;;  %v22915_v57 = vld [vmem:[#allocation36_spill] sm:$0xff] }
 0x577   : > { %v9160_v43 = vpop.f32.mrf.mxu0  ;;  %v8965_v7 = vpop.f32.mrf.mxu1  ;;  %v11619_v31 = vcombine.low %v22914_v52, %v22879_v38  ;;  %v13013_v63 = vld [vmem:[%s21097_s5 + $0x884] ss:$8 sps:$4 sm:$0xff]  }
 0x578   : > { %v8966_v25 = vadd.f32 %v8965_v7, %v22912_v27  ;;  %9972 = vmatpush2.bf16.msra.mxu1 %v13002_v33  ;;  %v20303_v49 = vadd.f32 %v9156_v47, %v8964_v4  ;;  %v22918_v4 = vld [vmem:[#allocation154_spill] sm:$0xff] }
 0x579   : > { %v9164_v36 = vpop.f32.mrf.mxu0  ;;  %9855 = vmatmul.mubr.bf16.gmra.mxu0 %v6631_v10  ;;  %v8967_v61 = vpop.f32.mrf.mxu1  ;;  %9973 = vmatprep.subr.bf16.mxu1 %v13007_v22 }
 0x57a   : > { %22913 = vst [vmem:[#allocation45_spill] sm:$0xff] %v20303_v49  ;;  %9864 = vmatprep.mubr.bf16.mxu0 %v22915_v57  ;;  %v8968_v51 = vadd.f32 %v8967_v61, %v22916_v19  ;;  %v20312_v10 = vadd.f32 %v9158_v40, %v8966_v25  ;;  %v13011_v57 = vld [vmem:[%s21097_s5 + $0x880] ss:$8 sps:$4 sm:$0xff]   ;;  %v22919_v19 = vld [vmem:[#allocation173_spill] sm:$0xff] }
 0x57b   : > { %v9166_v33 = vpop.f32.mrf.mxu0  ;;  %v8971_v7 = vpop.f32.mrf.mxu1  ;;  %9662 = vmatmul.mubr.bf16.gmra.mxu1 %v11619_v31  ;;  %v22921_v49 = vld [vmem:[#allocation41_spill] sm:$0xff] }
 0x57c   : > { %22917 = vst [vmem:[#allocation200_spill] sm:$0xff] %v20312_v10  ;;  %v8972_v47 = vadd.f32 %v8971_v7, %v19879_v13  ;;  %9671 = vmatprep.mubr.bf16.mxu1 %v22918_v4  ;;  %9974 = vmatpush2.bf16.msra.mxu1 %v13005_v62  ;;  %v20319_v22 = vadd.f32 %v9160_v43, %v8968_v51  ;;  %v22920_v4 = vld [vmem:[#allocation148_spill] sm:$0xff] }
 0x57d   : > { %v9168_v27 = vpop.f32.mrf.mxu0  ;;  %v8973_v52 = vpop.f32.mrf.mxu1  ;;  %9975 = vmatprep.subr.bf16.mxu1 %v13013_v63 }
 0x57e   : > { %v8974_v61 = vadd.f32 %v8973_v52, %v19885_v60  ;;  %v20322_v25 = vadd.f32 %v9164_v36, %v8972_v47  ;;  %v22923_v36 = vld [vmem:[#allocation33_spill] sm:$0xff]  ;;  %v22924_v52 = vld [vmem:[#allocation163_spill] sm:$0xff] }
 0x57f   : > { %v9170_v40 = vpop.f32.mrf.mxu0  ;;  %v8975_v31 = vpop.f32.mrf.mxu1 }
 0x580   : > { %v8976_v13 = vadd.f32 %v8975_v31, %v22919_v19  ;;  %9976 = vmatpush2.bf16.msra.mxu1 %v13011_v57  ;;  %v20326_v62 = vadd.f32 %v9166_v33, %v8974_v61  ;;  %v22925_v57 = vld [vmem:[#allocation70_spill] sm:$0xff] }
 0x581   : > { %v9400_v7 = vpop.f32.mrf.mxu0  ;;  %9865 = vmatmul.mubr.bf16.gmra.mxu0 %v22920_v4  ;;  %v8977_v10 = vpop.f32.mrf.mxu1 }
 0x582   : > { %9874 = vmatprep.mubr.bf16.mxu0 %v22921_v49  ;;  %v8978_v43 = vadd.f32 %v8977_v10, %v19898_v46  ;;  %v20330_v51 = vadd.f32 %v9168_v27, %v8976_v13  ;;  %v22926_v10 = vld [vmem:[#allocation187_spill] sm:$0xff] }
 0x583   : > { %v9402_v63 = vpop.f32.mrf.mxu0  ;;  %v9207_v60 = vpop.f32.mrf.mxu1  ;;  %9672 = vmatmul.mubr.bf16.gmra.mxu1 %v22923_v36 }
 0x584   : > { %22922 = vst [vmem:[#allocation53_spill] sm:$0xff] %v20330_v51  ;;  %v9208_v47 = vadd.f32 %v9207_v60, %v19901_v30  ;;  %9681 = vmatprep.mubr.bf16.mxu1 %v22924_v52  ;;  %v20335_v19 = vadd.f32 %v9170_v40, %v8978_v43  ;;  %v22927_v51 = vld [vmem:[#allocation162_spill] sm:$0xff]  ;;  %v22929_v60 = vld [vmem:[#allocation73_spill] sm:$0xff] }
 0x585   : > { %v9404_v31 = vpop.f32.mrf.mxu0  ;;  %v9209_v33 = vpop.f32.mrf.mxu1 }
 0x586   : > { %v9210_v61 = vadd.f32 %v9209_v33, %v22925_v57  ;;  %v20338_v49 = vadd.f32 %v9400_v7, %v9208_v47  ;;  %v22931_v57 = vld [vmem:[#allocation165_spill] sm:$0xff]  ;;  %v22932_v47 = vld [vmem:[#allocation168_spill] sm:$0xff] }
 0x587   : > { %v9406_v4 = vpop.f32.mrf.mxu0  ;;  %v9211_v46 = vpop.f32.mrf.mxu1 }
 0x588   : > { %v9212_v27 = vadd.f32 %v9211_v46, %v22926_v10  ;;  %v20342_v36 = vadd.f32 %v9402_v63, %v9210_v61 }
 0x589   : > { %v9410_v13 = vpop.f32.mrf.mxu0  ;;  %9875 = vmatmul.mubr.bf16.gmra.mxu0 %v22927_v51  ;;  %v9213_v30 = vpop.f32.mrf.mxu1 }
 0x58a   : > { %22928 = vst [vmem:[#allocation115_spill] sm:$0xff] %v20342_v36  ;;  %9884 = vmatprep.mubr.bf16.mxu0 %v22929_v60  ;;  %v9214_v40 = vadd.f32 %v9213_v30, %v19920_v42  ;;  %v20346_v52 = vadd.f32 %v9404_v31, %v9212_v27  ;;  %v22934_v31 = vld [vmem:[#allocation49_spill] sm:$0xff]  ;;  %v22935_v30 = vld [vmem:[#allocation176_spill] sm:$0xff] }
 0x58b   : > { %v9412_v43 = vpop.f32.mrf.mxu0  ;;  %v9217_v33 = vpop.f32.mrf.mxu1  ;;  %9682 = vmatmul.mubr.bf16.gmra.mxu1 %v22931_v57  ;;  %v11627_v27 = vcombine.high %v22934_v31, %v22879_v38  ;;  %v22936_v36 = vld [vmem:[#allocation169_spill] sm:$0xff] }
 0x58c   : > { %22930 = vst [vmem:[#allocation18_spill] sm:$0xff] %v20346_v52  ;;  %v9218_v7 = vadd.f32 %v9217_v33, %v19923_v5  ;;  %9691 = vmatprep.mubr.bf16.mxu1 %v22932_v47  ;;  %v20351_v10 = vadd.f32 %v9406_v4, %v9214_v40  ;;  %v22937_v4 = vld [vmem:[#allocation182_spill] sm:$0xff] }
 0x58d   : > { %v9414_v46 = vpop.f32.mrf.mxu0  ;;  %v9219_v63 = vpop.f32.mrf.mxu1 }
 0x58e   : > { %v9220_v51 = vadd.f32 %v9219_v63, %v19930_v45  ;;  %v20354_v60 = vadd.f32 %v9410_v13, %v9218_v7  ;;  %v22938_v45 = vld [vmem:[#allocation138_spill] sm:$0xff]  ;;  %v5122_v7 = vunpack.c.h.b16 %v22818_v15 }
 0x58f   : > { %v9416_v61 = vpop.f32.mrf.mxu0  ;;  %v9221_v42 = vpop.f32.mrf.mxu1  ;;  %v11622_v13 = vcombine.low %v22938_v45, %v22879_v38  ;;  %v22941_v45 = vld [vmem:[#allocation133_spill] sm:$0xff] }
 0x590   : > { %22933 = vst [vmem:[#allocation17_spill] sm:$0xff] %v20354_v60  ;;  %v9222_v52 = vadd.f32 %v9221_v42, %v22935_v30  ;;  %v20360_v5 = vadd.f32 %v9412_v43, %v9220_v51  ;;  %v22939_v60 = vld [vmem:[#allocation171_spill] sm:$0xff] }
 0x591   : > { %v9420_v57 = vpop.f32.mrf.mxu0  ;;  %9885 = vmatmul.mubr.bf16.gmra.mxu0 %v22936_v36  ;;  %v9223_v33 = vpop.f32.mrf.mxu1 }
 0x592   : > { %9894 = vmatprep.mubr.bf16.mxu0 %v11627_v27  ;;  %v9224_v40 = vadd.f32 %v9223_v33, %v22937_v4  ;;  %v20366_v63 = vadd.f32 %v9414_v46, %v9222_v52  ;;  %v6633_v33 = vpack.c.b16 %v20143_v18, %v5122_v7 }
 0x593   : > { %v9422_v47 = vpop.f32.mrf.mxu0  ;;  %v9227_v31 = vpop.f32.mrf.mxu1  ;;  %9692 = vmatmul.mubr.bf16.gmra.mxu1 %v22939_v60 }
 0x594   : > { %v9228_v42 = vadd.f32 %v9227_v31, %v19945_v54  ;;  %9701 = vmatprep.mubr.bf16.mxu1 %v11622_v13  ;;  %v20370_v43 = vadd.f32 %v9416_v61, %v9224_v40  ;;  %v11621_v61 = vcombine.low %v22941_v45, %v22879_v38  ;;  %v22942_v40 = vld [vmem:[#allocation71_spill] sm:$0xff] }
 0x595   : > { %v9424_v36 = vpop.f32.mrf.mxu0  ;;  %v9229_v51 = vpop.f32.mrf.mxu1  ;;  %v22943_v13 = vld [vmem:[#allocation183_spill] sm:$0xff] }
 0x596   : > { %v9230_v27 = vadd.f32 %v9229_v51, %v19952_v21  ;;  %v20374_v4 = vadd.f32 %v9420_v57, %v9228_v42 }
 0x597   : > { %v9426_v30 = vpop.f32.mrf.mxu0  ;;  %v9231_v15 = vpop.f32.mrf.mxu1 }
 0x598   : > { %v9232_v52 = vadd.f32 %v9231_v15, %v19957_v39  ;;  %v20377_v60 = vadd.f32 %v9422_v47, %v9230_v27  ;;  %v22944_v39 = vld [vmem:[#allocation179_spill] sm:$0xff] }
 0x599   : > { %v9430_v46 = vpop.f32.mrf.mxu0  ;;  %9895 = vmatmul.mubr.bf16.gmra.mxu0 %v6633_v33  ;;  %v9233_v54 = vpop.f32.mrf.mxu1  ;;  %v22945_v33 = vld [vmem:[#allocation194_spill] sm:$0xff] }
 0x59a   : > { %22940 = vst [vmem:[#allocation6_spill] sm:$0xff] %v20377_v60  ;;  %9904 = vmatprep.mubr.bf16.mxu0 %v22942_v40  ;;  %v9234_v21 = vadd.f32 %v9233_v54, %v22943_v13  ;;  %v20383_v51 = vadd.f32 %v9424_v36, %v9232_v52  ;;  %v22947_v52 = vld [vmem:[#allocation177_spill] sm:$0xff]  ;;  %v22948_v13 = vld [vmem:[#allocation180_spill] sm:$0xff] }
 0x59b   : > { %v9432_v31 = vpop.f32.mrf.mxu0  ;;  %v9237_v57 = vpop.f32.mrf.mxu1  ;;  %9702 = vmatmul.mubr.bf16.gmra.mxu1 %v11621_v61 }
 0x59c   : > { %v9238_v7 = vadd.f32 %v9237_v57, %v19967_v23  ;;  %9711 = vmatprep.mubr.bf16.mxu1 %v22944_v39  ;;  %v20387_v47 = vadd.f32 %v9426_v30, %v9234_v21  ;;  %v22949_v57 = vld [vmem:[#allocation181_spill] sm:$0xff] }
 0x59d   : > { %v9434_v42 = vpop.f32.mrf.mxu0  ;;  %v9239_v27 = vpop.f32.mrf.mxu1 }
 0x59e   : > { %v9240_v15 = vadd.f32 %v9239_v27, %v22945_v33  ;;  %v20390_v60 = vadd.f32 %v9430_v46, %v9238_v7  ;;  %v22950_v33 = vld [vmem:[#allocation178_spill] sm:$0xff] }
 0x59f   : > { %v9436_v45 = vpop.f32.mrf.mxu0  ;;  %v9241_v40 = vpop.f32.mrf.mxu1  ;;  %v22951_v46 = vld [vmem:[#allocation190_spill] sm:$0xff] }
 0x5a0   : > { %22946 = vst [vmem:[#allocation85_spill] sm:$0xff] %v20390_v60  ;;  %v9242_v54 = vadd.f32 %v9241_v40, %v19979_v24  ;;  %v20394_v61 = vadd.f32 %v9432_v31, %v9240_v15  ;;  %v22952_v60 = vld [vmem:[#allocation189_spill] sm:$0xff] }
 0x5a1   : > { %v9440_v36 = vpop.f32.mrf.mxu0  ;;  %9905 = vmatmul.mubr.bf16.gmra.mxu0 %v22947_v52  ;;  %v9243_v23 = vpop.f32.mrf.mxu1 }
 0x5a2   : > { %9914 = vmatprep.mubr.bf16.mxu0 %v22948_v13  ;;  %v9244_v30 = vadd.f32 %v9243_v23, %v22949_v57  ;;  %v20398_v39 = vadd.f32 %v9434_v42, %v9242_v54  ;;  %v22954_v57 = vld [vmem:[#allocation188_spill] sm:$0xff] }
 0x5a3   : > { %v9442_v21 = vpop.f32.mrf.mxu0  ;;  %v9247_v27 = vpop.f32.mrf.mxu1  ;;  %9712 = vmatmul.mubr.bf16.gmra.mxu1 %v22950_v33 }
 0x5a4   : > { %v9248_v7 = vadd.f32 %v9247_v27, %v22951_v46  ;;  %9721 = vmatprep.mubr.bf16.mxu1 %v22952_v60  ;;  %v20403_v40 = vadd.f32 %v9436_v45, %v9244_v30  ;;  %v22955_v46 = vld [vmem:[#allocation192_spill] sm:$0xff] }
 0x5a5   : > { %v9444_v24 = vpop.f32.mrf.mxu0  ;;  %v9249_v31 = vpop.f32.mrf.mxu1 }
 0x5a6   : > { %v9250_v15 = vadd.f32 %v9249_v31, %v19993_v50  ;;  %v20406_v13 = vadd.f32 %v9440_v36, %v9248_v7  ;;  %v22957_v31 = vld [vmem:[#allocation184_spill] sm:$0xff]  ;;  %v22958_v36 = vld [vmem:[#allocation195_spill] sm:$0xff] }
 0x5a7   : > { %v9446_v52 = vpop.f32.mrf.mxu0  ;;  %v9251_v23 = vpop.f32.mrf.mxu1 }
 0x5a8   : > { %22953 = vst [vmem:[#allocation47_spill] sm:$0xff] %v20406_v13  ;;  %v9252_v42 = vadd.f32 %v9251_v23, %v19999_v56  ;;  %v20410_v33 = vadd.f32 %v9442_v21, %v9250_v15  ;;  %v22959_v13 = vld [vmem:[#allocation35_spill] sm:$0xff] }
 0x5a9   : > { %v9450_v54 = vpop.f32.mrf.mxu0  ;;  %9915 = vmatmul.mubr.bf16.gmra.mxu0 %v22954_v57  ;;  %v9253_v27 = vpop.f32.mrf.mxu1 }
 0x5aa   : > { %9924 = vmatprep.mubr.bf16.mxu0 %v22955_v46  ;;  %v9254_v60 = vadd.f32 %v9253_v27, %v20004_v11  ;;  %v20414_v30 = vadd.f32 %v9444_v24, %v9252_v42  ;;  %v11628_v24 = vcombine.high %v22856_v44, %v22879_v38  ;;  %v22960_v42 = vld [vmem:[#allocation191_spill] sm:$0xff] }
 0x5ab   : > { %v9452_v45 = vpop.f32.mrf.mxu0  ;;  %v9257_v50 = vpop.f32.mrf.mxu1  ;;  %9722 = vmatmul.mubr.bf16.gmra.mxu1 %v22957_v31 }
 0x5ac   : > { %22956 = vst [vmem:[#allocation11_spill] sm:$0xff] %v20414_v30  ;;  %v9258_v7 = vadd.f32 %v9257_v50, %v22958_v36  ;;  %9731 = vmatprep.mubr.bf16.mxu1 %v22959_v13  ;;  %v20419_v23 = vadd.f32 %v9446_v52, %v9254_v60  ;;  %v22961_v30 = vld [vmem:[#allocation72_spill] sm:$0xff]  ;;  %v5138_v36 = vunpack.c.h.b16 %v22862_v29 }
 0x5ad   : > { %v9454_v56 = vpop.f32.mrf.mxu0  ;;  %v9259_v21 = vpop.f32.mrf.mxu1 }
 0x5ae   : > { %v9260_v15 = vadd.f32 %v9259_v21, %v20013_v53  ;;  %v20422_v46 = vadd.f32 %v9450_v54, %v9258_v7  ;;  %v22962_v53 = vld [vmem:[#allocation174_spill] sm:$0xff]  ;;  %v22963_v21 = vld [vmem:[#allocation193_spill] sm:$0xff] }
 0x5af   : > { %v9456_v57 = vpop.f32.mrf.mxu0  ;;  %v9261_v11 = vpop.f32.mrf.mxu1  ;;  %v11624_v54 = vcombine.low %v22962_v53, %v22879_v38 }
 0x5b0   : > { %v9262_v27 = vadd.f32 %v9261_v11, %v22960_v42  ;;  %v20428_v50 = vadd.f32 %v9452_v45, %v9260_v15  ;;  %v6635_v42 = vpack.c.b16 %v20143_v18, %v5138_v36 }
 0x5b1   : > { %v9460_v31 = vpop.f32.mrf.mxu0  ;;  %9925 = vmatmul.mubr.bf16.gmra.mxu0 %v22961_v30  ;;  %v9263_v13 = vpop.f32.mrf.mxu1 }
 0x5b2   : > { %9934 = vmatprep.mubr.bf16.mxu0 %v11628_v24  ;;  %v9264_v52 = vadd.f32 %v9263_v13, %v20024_v20  ;;  %v20434_v7 = vadd.f32 %v9454_v56, %v9262_v27 }
 0x5b3   : > { %v9462_v60 = vpop.f32.mrf.mxu0  ;;  %v9267_v44 = vpop.f32.mrf.mxu1  ;;  %9732 = vmatmul.mubr.bf16.gmra.mxu1 %v22963_v21 }
 0x5b4   : > { %v9268_v11 = vadd.f32 %v9267_v44, %v20027_v28  ;;  %9741 = vmatprep.mubr.bf16.mxu1 %v11624_v54  ;;  %v20438_v30 = vadd.f32 %v9456_v57, %v9264_v52  ;;  %v22964_v54 = vld [vmem:[#allocation79_spill] sm:$0xff] }
 0x5b5   : > { %v9464_v45 = vpop.f32.mrf.mxu0  ;;  %v9269_v15 = vpop.f32.mrf.mxu1  ;;  %v11623_v57 = vcombine.low %v22964_v54, %v22879_v38 }
 0x5b6   : > { %v9270_v20 = vadd.f32 %v9269_v15, %v20033_v1  ;;  %v20442_v13 = vadd.f32 %v9460_v31, %v9268_v11  ;;  %v22966_v11 = vld [vmem:[#allocation114_spill] sm:$0xff] }
 0x5b7   : > { %v9466_v24 = vpop.f32.mrf.mxu0  ;;  %v9271_v29 = vpop.f32.mrf.mxu1 }
 0x5b8   : > { %v9272_v56 = vadd.f32 %v9271_v29, %v20037_v37  ;;  %v20445_v53 = vadd.f32 %v9462_v60, %v9270_v20  ;;  %v22965_v37 = vld [vmem:[#allocation10_spill] sm:$0xff] }
 0x5b9   : > { %v9470_v27 = vpop.f32.mrf.mxu0  ;;  %9935 = vmatmul.mubr.bf16.gmra.mxu0 %v6635_v42  ;;  %v9273_v28 = vpop.f32.mrf.mxu1 }
 0x5ba   : > { %10278 = vmatprep.mubr.bf16.mxu0 %v22879_v38  ;;  %v9274_v1 = vadd.f32 %v9273_v28, %v20042_v3  ;;  %v20451_v44 = vadd.f32 %v9464_v45, %v9272_v56  ;;  %v22967_v3 = vld [vmem:[#allocation112_spill] sm:$0xff] }
 0x5bb   : > { %v9472_v52 = vpop.f32.mrf.mxu0  ;;  %v9277_v18 = vpop.f32.mrf.mxu1  ;;  %9742 = vmatmul.mubr.bf16.gmra.mxu1 %v11623_v57  ;;  %v22968_v56 = vld [vmem:[#allocation4_spill] sm:$0xff]  ;;  %v22969_v57 = vld [vmem:[#allocation27_spill] sm:$0xff] }
 0x5bc   : > { %v9278_v31 = vadd.f32 %v9277_v18, %v20051_v32  ;;  %9977 = vmatprep.mubr.bf16.mxu1 %v22965_v37  ;;  %v20455_v60 = vadd.f32 %v9466_v24, %v9274_v1 }
 0x5bd   : > { %v9474_v36 = vpop.f32.mrf.mxu0  ;;  %v9279_v21 = vpop.f32.mrf.mxu1 }
 0x5be   : > { %v9280_v15 = vadd.f32 %v9279_v21, %v22966_v11  ;;  %v20458_v42 = vadd.f32 %v9470_v27, %v9278_v31  ;;  %v22970_v21 = vld [vmem:[#allocation196_spill] sm:$0xff]  ;;  %v22971_v31 = vld [vmem:[#allocation91_spill] sm:$0xff] }
 0x5bf   : > { %v9476_v20 = vpop.f32.mrf.mxu0  ;;  %v9281_v29 = vpop.f32.mrf.mxu1 }
 0x5c0   : > { %v9282_v28 = vadd.f32 %v9281_v29, %v22967_v3  ;;  %v20462_v54 = vadd.f32 %v9472_v52, %v9280_v15 }
 0x5c1   : > { %v9480_v45 = vpop.f32.mrf.mxu0  ;;  %10279 = vmatmul.mubr.bf16.vlgmr.msra.gmra.mxu0 %v22968_v56  ;;  %v9283_v32 = vpop.f32.mrf.mxu1 }
 0x5c2   : > { %10288 = vmatprep.mubr.bf16.mxu0 %v22879_v38  ;;  %v9284_v24 = vadd.f32 %v9283_v32, %v22969_v57  ;;  %v20466_v18 = vadd.f32 %v9474_v36, %v9282_v28  ;;  %v22972_v57 = vld [vmem:[#allocation9_spill] sm:$0xff] }
 0x5c3   : > { %v9482_v1 = vpop.f32.mrf.mxu0  ;;  %v9287_v37 = vpop.f32.mrf.mxu1  ;;  %9978 = vmatmul.mubr.bf16.vlgmr.msra.gmra.mxu1 %v22970_v21 }
 0x5c4   : > { %v9288_v27 = vadd.f32 %v9287_v37, %v20088_v14  ;;  %9987 = vmatprep.mubr.bf16.mxu1 %v22971_v31  ;;  %v20471_v29 = vadd.f32 %v9476_v20, %v9284_v24  ;;  %v22974_v31 = vld [vmem:[#allocation24_spill] sm:$0xff] }
 0x5c5   : > { %v9484_v11 = vpop.f32.mrf.mxu0  ;;  %v9289_v52 = vpop.f32.mrf.mxu1 }
 0x5c6   : > { %v9290_v15 = vadd.f32 %v9289_v52, %v20098_v35  ;;  %v20474_v56 = vadd.f32 %v9480_v45, %v9288_v27  ;;  %v22975_v45 = vld [vmem:[#allocation54_spill] sm:$0xff]  ;;  %v22976_v52 = vld [vmem:[#allocation25_spill] sm:$0xff] }
 0x5c7   : > { %v9486_v3 = vpop.f32.mrf.mxu0  ;;  %v9291_v32 = vpop.f32.mrf.mxu1 }
 0x5c8   : > { %v9292_v36 = vadd.f32 %v9291_v32, %v20108_v55  ;;  %v20478_v21 = vadd.f32 %v9482_v1, %v9290_v15 }
 0x5c9   : > { %v9490_v28 = vpop.f32.mrf.mxu0  ;;  %10289 = vmatmul.mubr.bf16.gmra.mxu0 %v22972_v57  ;;  %v9293_v14 = vpop.f32.mrf.mxu1 }
 0x5ca   : > { %22973 = vst [vmem:[#allocation15_spill] sm:$0xff] %v20478_v21  ;;  %10298 = vmatprep.mubr.bf16.mxu0 %v22879_v38  ;;  %v9294_v20 = vadd.f32 %v9293_v14, %v20119_v6  ;;  %v20482_v37 = vadd.f32 %v9484_v11, %v9292_v36  ;;  %v22979_v14 = vld [vmem:[#allocation12_spill] sm:$0xff] }
 0x5cb   : > { %v9492_v24 = vpop.f32.mrf.mxu0  ;;  %v9297_v35 = vpop.f32.mrf.mxu1  ;;  %9988 = vmatmul.mubr.bf16.gmra.mxu1 %v22974_v31 }
 0x5cc   : > { %v9298_v27 = vadd.f32 %v9297_v35, %v22975_v45  ;;  %9997 = vmatprep.mubr.bf16.mxu1 %v22976_v52  ;;  %v20487_v32 = vadd.f32 %v9486_v3, %v9294_v20  ;;  %v22981_v45 = vld [vmem:[#allocation8_spill] sm:$0xff]  ;;  %v22982_v52 = vld [vmem:[#allocation119_spill] sm:$0xff] }
 0x5cd   : > { %v9494_v55 = vpop.f32.mrf.mxu0  ;;  %v9299_v1 = vpop.f32.mrf.mxu1 }
 0x5ce   : > { %22977 = vst [vmem:[#allocation100_spill] sm:$0xff] %v20487_v32  ;;  %v9300_v15 = vadd.f32 %v9299_v1, %v20140_v48  ;;  %v20490_v21 = vadd.f32 %v9490_v28, %v9298_v27  ;;  %v11630_v48 = vcombine.low %v22982_v52, %v22879_v38  ;;  %v22984_v27 = vld [vmem:[#allocation198_spill] sm:$0xff]  ;;  %v22986_v32 = vld [vmem:[#allocation87_spill] sm:$0xff] }
 0x5cf   : > { %v9496_v57 = vpop.f32.mrf.mxu0  ;;  %v9301_v6 = vpop.f32.mrf.mxu1 }
 0x5d0   : > { %22978 = vst [vmem:[#allocation135_spill] sm:$0xff] %v20490_v21  ;;  %v9302_v11 = vadd.f32 %v9301_v6, %v20155_v26  ;;  %v20494_v31 = vadd.f32 %v9492_v24, %v9300_v15 }
 0x5d1   : > { %v9500_v36 = vpop.f32.mrf.mxu0  ;;  %10299 = vmatmul.mubr.bf16.gmra.mxu0 %v22979_v14  ;;  %v9303_v35 = vpop.f32.mrf.mxu1  ;;  %v22985_v14 = vld [vmem:[#allocation120_spill] sm:$0xff] }
 0x5d2   : > { %22980 = vst [vmem:[#allocation74_spill] sm:$0xff] %v20494_v31  ;;  %10308 = vmatprep.mubr.bf16.mxu0 %v22879_v38  ;;  %v9304_v3 = vadd.f32 %v9303_v35, %v22981_v45  ;;  %v20500_v1 = vadd.f32 %v9494_v55, %v9302_v11  ;;  %v22987_v11 = vld [vmem:[#allocation14_spill] sm:$0xff] }
 0x5d3   : > { %v9502_v20 = vpop.f32.mrf.mxu0  ;;  %v9307_v28 = vpop.f32.mrf.mxu1  ;;  %9998 = vmatmul.mubr.bf16.gmra.mxu1 %v22984_v27 }
 0x5d4   : > { %22983 = vst [vmem:[#allocation37_spill] sm:$0xff] %v20500_v1  ;;  %v9308_v26 = vadd.f32 %v9307_v28, %v20175_v41  ;;  %10007 = vmatprep.mubr.bf16.mxu1 %v11630_v48  ;;  %v20504_v24 = vadd.f32 %v9496_v57, %v9304_v3  ;;  %v22989_v41 = vld [vmem:[#allocation124_spill] sm:$0xff] }
 0x5d5   : > { %v9504_v6 = vpop.f32.mrf.mxu0  ;;  %v9309_v15 = vpop.f32.mrf.mxu1  ;;  %v11629_v48 = vcombine.low %v22989_v41, %v22879_v38  ;;  %v22990_v57 = vld [vmem:[#allocation28_spill] sm:$0xff] }
 0x5d6   : > { %v9310_v31 = vadd.f32 %v9309_v15, %v22985_v14  ;;  %v20507_v35 = vadd.f32 %v9500_v36, %v9308_v26  ;;  %v22991_v26 = vld [vmem:[#allocation202_spill] sm:$0xff] }
 0x5d7   : > { %v9506_v21 = vpop.f32.mrf.mxu0  ;;  %v9311_v45 = vpop.f32.mrf.mxu1 }
 0x5d8   : > { %v9312_v52 = vadd.f32 %v9311_v45, %v22986_v32  ;;  %v20511_v1 = vadd.f32 %v9502_v20, %v9310_v31 }
 0x5d9   : > { %v9510_v55 = vpop.f32.mrf.mxu0  ;;  %10309 = vmatmul.mubr.bf16.gmra.mxu0 %v22987_v11  ;;  %v9313_v27 = vpop.f32.mrf.mxu1 }
 0x5da   : > { %22988 = vst [vmem:[#allocation203_spill] sm:$0xff] %v20511_v1  ;;  %10318 = vmatprep.mubr.bf16.mxu0 %v22879_v38  ;;  %v9314_v3 = vadd.f32 %v9313_v27, %v22990_v57  ;;  %v20517_v15 = vadd.f32 %v9504_v6, %v9312_v52  ;;  %v22992_v52 = vld [vmem:[#allocation19_spill] sm:$0xff] }
 0x5db   : > { %v9512_v28 = vpop.f32.mrf.mxu0  ;;  %v9317_v36 = vpop.f32.mrf.mxu1  ;;  %10008 = vmatmul.mubr.bf16.gmra.mxu1 %v11629_v48 }
 0x5dc   : > { %v9318_v32 = vadd.f32 %v9317_v36, %v20209_v16  ;;  %10017 = vmatprep.mubr.bf16.mxu1 %v22991_v26  ;;  %v20521_v31 = vadd.f32 %v9506_v21, %v9314_v3  ;;  %v22993_v36 = vld [vmem:[#allocation31_spill] sm:$0xff] }
 0x5dd   : > { %v9514_v14 = vpop.f32.mrf.mxu0  ;;  %v9319_v20 = vpop.f32.mrf.mxu1 }
 0x5de   : > { %v9320_v45 = vadd.f32 %v9319_v20, %v20216_v12  ;;  %v20524_v41 = vadd.f32 %v9510_v55, %v9318_v32  ;;  %v22994_v32 = vld [vmem:[#allocation118_spill] sm:$0xff] }
 0x5df   : > { %v9516_v11 = vpop.f32.mrf.mxu0  ;;  %v9321_v1 = vpop.f32.mrf.mxu1 }
 0x5e0   : > { %v9322_v27 = vadd.f32 %v9321_v1, %v20223_v34  ;;  %v20528_v48 = vadd.f32 %v9512_v28, %v9320_v45 }
 0x5e1   : > { %v9520_v6 = vpop.f32.mrf.mxu0  ;;  %10319 = vmatmul.mubr.bf16.gmra.mxu0 %v22992_v52  ;;  %v9323_v16 = vpop.f32.mrf.mxu1  ;;  %v22995_v52 = vld [vmem:[#allocation26_spill] sm:$0xff] }
 0x5e2   : > { %10328 = vmatprep.mubr.bf16.mxu0 %v22879_v38  ;;  %v9324_v21 = vadd.f32 %v9323_v16, %v20231_v17  ;;  %v20532_v3 = vadd.f32 %v9514_v14, %v9322_v27 }
 0x5e3   : > { %v9522_v57 = vpop.f32.mrf.mxu0  ;;  %v9327_v12 = vpop.f32.mrf.mxu1  ;;  %10018 = vmatmul.mubr.bf16.gmra.mxu1 %v22993_v36  ;;  %v22997_v36 = vld [vmem:[#allocation126_spill] sm:$0xff] }
 0x5e4   : > { %v9328_v55 = vadd.f32 %v9327_v12, %v20237_v8  ;;  %10027 = vmatprep.mubr.bf16.mxu1 %v22994_v32  ;;  %v20537_v1 = vadd.f32 %v9516_v11, %v9324_v21  ;;  %v22999_v32 = vld [vmem:[#allocation223_spill] sm:$0xff] }
 0x5e5   : > { %v9524_v34 = vpop.f32.mrf.mxu0  ;;  %v9329_v28 = vpop.f32.mrf.mxu1 }
 0x5e6   : > { %v9330_v26 = vadd.f32 %v9329_v28, %v20244_v2  ;;  %v20540_v45 = vadd.f32 %v9520_v6, %v9328_v55  ;;  %v22998_v6 = vld [vmem:[#allocation77_spill] sm:$0xff] }
 0x5e7   : > { %v9526_v20 = vpop.f32.mrf.mxu0  ;;  %v9331_v17 = vpop.f32.mrf.mxu1 }
 0x5e8   : > { %v9332_v14 = vadd.f32 %v9331_v17, %v20251_v0  ;;  %v20544_v16 = vadd.f32 %v9522_v57, %v9330_v26 }
 0x5e9   : > { %v9530_v27 = vpop.f32.mrf.mxu0  ;;  %10329 = vmatmul.mubr.bf16.gmra.mxu0 %v22995_v52  ;;  %v9333_v8 = vpop.f32.mrf.mxu1 }
 0x5ea   : > { %10338 = vmatprep.mubr.bf16.mxu0 %v22879_v38  ;;  %v9334_v11 = vadd.f32 %v9333_v8, %v20259_v58  ;;  %v20548_v12 = vadd.f32 %v9524_v34, %v9332_v14  ;;  %v23002_v8 = vld [vmem:[#allocation5_spill] sm:$0xff] }
 0x5eb   : > { %v9532_v21 = vpop.f32.mrf.mxu0  ;;  %v9337_v2 = vpop.f32.mrf.mxu1  ;;  %10028 = vmatmul.mubr.bf16.gmra.mxu1 %v22997_v36 }
 0x5ec   : > { %22996 = vst [vmem:[#allocation43_spill] sm:$0xff] %v20548_v12  ;;  %v9338_v55 = vadd.f32 %v9337_v2, %v22998_v6  ;;  %10037 = vmatprep.mubr.bf16.mxu1 %v22999_v32  ;;  %v20553_v28 = vadd.f32 %v9526_v20, %v9334_v11  ;;  %v23003_v12 = vld [vmem:[#allocation32_spill] sm:$0xff]  ;;  %v23006_v32 = vld [vmem:[#allocation137_spill] sm:$0xff] }
 0x5ed   : > { %v9534_v0 = vpop.f32.mrf.mxu0  ;;  %v9339_v57 = vpop.f32.mrf.mxu1  ;;  %v23005_v6 = vld [vmem:[#allocation76_spill] sm:$0xff] }
 0x5ee   : > { %23000 = vst [vmem:[#allocation51_spill] sm:$0xff] %v20553_v28  ;;  %v9340_v26 = vadd.f32 %v9339_v57, %v20274_v9  ;;  %v20556_v52 = vadd.f32 %v9530_v27, %v9338_v55  ;;  %v11632_v9 = vcombine.low %v23006_v32, %v22879_v38  ;;  %v23008_v55 = vld [vmem:[#allocation131_spill] sm:$0xff]  ;;  %v23010_v28 = vld [vmem:[#allocation200_spill] sm:$0xff] }
 0x5ef   : > { %v9536_v17 = vpop.f32.mrf.mxu0  ;;  %v9341_v58 = vpop.f32.mrf.mxu1 }
 0x5f0   : > { %23001 = vst [vmem:[#allocation121_spill] sm:$0xff] %v20556_v52  ;;  %v9342_v34 = vadd.f32 %v9341_v58, %v23002_v8  ;;  %v20560_v36 = vadd.f32 %v9532_v21, %v9340_v26  ;;  %v23009_v8 = vld [vmem:[#allocation45_spill] sm:$0xff] }
 0x5f1   : > { %v9540_v14 = vpop.f32.mrf.mxu0  ;;  %10339 = vmatmul.mubr.bf16.gmra.mxu0 %v23003_v12  ;;  %v9343_v2 = vpop.f32.mrf.mxu1 }
 0x5f2   : > { %23004 = vst [vmem:[#allocation122_spill] sm:$0xff] %v20560_v36  ;;  %10348 = vmatprep.mubr.bf16.mxu0 %v22879_v38  ;;  %v9344_v20 = vadd.f32 %v9343_v2, %v23005_v6  ;;  %v20566_v57 = vadd.f32 %v9534_v0, %v9342_v34  ;;  %v23011_v34 = vld [vmem:[#allocation38_spill] sm:$0xff] }
 0x5f3   : > { %v9542_v11 = vpop.f32.mrf.mxu0  ;;  %v9347_v27 = vpop.f32.mrf.mxu1  ;;  %10038 = vmatmul.mubr.bf16.gmra.mxu1 %v23008_v55 }
 0x5f4   : > { %23007 = vst [vmem:[#allocation146_spill] sm:$0xff] %v20566_v57  ;;  %v9348_v58 = vadd.f32 %v9347_v27, %v20297_v59  ;;  %10047 = vmatprep.mubr.bf16.mxu1 %v11632_v9  ;;  %v20570_v21 = vadd.f32 %v9536_v17, %v9344_v20  ;;  %v23012_v59 = vld [vmem:[#allocation7_spill] sm:$0xff] }
 0x5f5   : > { %v9544_v12 = vpop.f32.mrf.mxu0  ;;  %v9349_v26 = vpop.f32.mrf.mxu1  ;;  %v11631_v9 = vcombine.low %v23012_v59, %v22879_v38 }
 0x5f6   : > { %v9350_v36 = vadd.f32 %v9349_v26, %v23009_v8  ;;  %v20573_v2 = vadd.f32 %v9540_v14, %v9348_v58  ;;  %v23013_v58 = vld [vmem:[#allocation69_spill] sm:$0xff] }
 0x5f7   : > { %v9546_v52 = vpop.f32.mrf.mxu0  ;;  %v9351_v6 = vpop.f32.mrf.mxu1 }
 0x5f8   : > { %v9352_v32 = vadd.f32 %v9351_v6, %v23010_v28  ;;  %v20577_v57 = vadd.f32 %v9542_v11, %v9350_v36 }
 0x5f9   : > { %v9550_v0 = vpop.f32.mrf.mxu0  ;;  %10349 = vmatmul.mubr.bf16.gmra.mxu0 %v23011_v34  ;;  %v9353_v55 = vpop.f32.mrf.mxu1 }
 0x5fa   : > { %10358 = vmatprep.mubr.bf16.mxu0 %v22879_v38  ;;  %v9354_v17 = vadd.f32 %v9353_v55, %v20319_v22  ;;  %v20583_v27 = vadd.f32 %v9544_v12, %v9352_v32  ;;  %v23014_v22 = vld [vmem:[#allocation53_spill] sm:$0xff]  ;;  %v23015_v32 = vld [vmem:[#allocation42_spill] sm:$0xff] }
 0x5fb   : > { %v9552_v20 = vpop.f32.mrf.mxu0  ;;  %v9357_v14 = vpop.f32.mrf.mxu1  ;;  %10048 = vmatmul.mubr.bf16.gmra.mxu1 %v11631_v9 }
 0x5fc   : > { %v9358_v28 = vadd.f32 %v9357_v14, %v20322_v25  ;;  %10057 = vmatprep.mubr.bf16.mxu1 %v23013_v58  ;;  %v20587_v36 = vadd.f32 %v9546_v52, %v9354_v17  ;;  %v23018_v58 = vld [vmem:[#allocation102_spill] sm:$0xff] }
 0x5fd   : > { %v9554_v26 = vpop.f32.mrf.mxu0  ;;  %v9359_v11 = vpop.f32.mrf.mxu1 }
 0x5fe   : > { %v9360_v8 = vadd.f32 %v9359_v11, %v20326_v62  ;;  %v20590_v34 = vadd.f32 %v9550_v0, %v9358_v28  ;;  %v23019_v28 = vld [vmem:[#allocation155_spill] sm:$0xff] }
 0x5ff   : > { %v9556_v6 = vpop.f32.mrf.mxu0  ;;  %v9361_v59 = vpop.f32.mrf.mxu1 }
 0x600   : > { %v9362_v55 = vadd.f32 %v9361_v59, %v23014_v22  ;;  %v20594_v9 = vadd.f32 %v9552_v20, %v9360_v8  ;;  %v23020_v8 = vld [vmem:[#allocation115_spill] sm:$0xff] }
 0x601   : > { %v9786_v12 = vpop.f32.mrf.mxu0  ;;  %10359 = vmatmul.mubr.bf16.gmra.mxu0 %v23015_v32  ;;  %v9363_v25 = vpop.f32.mrf.mxu1 }
 0x602   : > { %23016 = vst [vmem:[#allocation134_spill] sm:$0xff] %v20594_v9  ;;  %10368 = vmatprep.mubr.bf16.mxu0 %v22879_v38  ;;  %v9364_v52 = vadd.f32 %v9363_v25, %v20335_v19  ;;  %v20598_v14 = vadd.f32 %v9554_v26, %v9362_v55  ;;  %v23021_v25 = vld [vmem:[#allocation18_spill] sm:$0xff] }
 0x603   : > { %v9788_v17 = vpop.f32.mrf.mxu0  ;;  %v9593_v62 = vpop.f32.mrf.mxu1  ;;  %10058 = vmatmul.mubr.bf16.gmra.mxu1 %v23018_v58 }
 0x604   : > { %23017 = vst [vmem:[#allocation86_spill] sm:$0xff] %v20598_v14  ;;  %v9594_v0 = vadd.f32 %v9593_v62, %v20338_v49  ;;  %10067 = vmatprep.mubr.bf16.mxu1 %v23019_v28  ;;  %v20603_v59 = vadd.f32 %v9556_v6, %v9364_v52  ;;  %v23022_v14 = vld [vmem:[#allocation48_spill] sm:$0xff] }
 0x605   : > { %v9790_v11 = vpop.f32.mrf.mxu0  ;;  %v9595_v20 = vpop.f32.mrf.mxu1 }
 0x606   : > { %v9596_v22 = vadd.f32 %v9595_v20, %v23020_v8  ;;  %v20606_v9 = vadd.f32 %v9786_v12, %v9594_v0  ;;  %v23025_v20 = vld [vmem:[#allocation34_spill] sm:$0xff]  ;;  %v23026_v12 = vld [vmem:[#allocation17_spill] sm:$0xff] }
 0x607   : > { %v9792_v32 = vpop.f32.mrf.mxu0  ;;  %v9597_v19 = vpop.f32.mrf.mxu1  ;;  %v23027_v8 = vld [vmem:[#allocation153_spill] sm:$0xff] }
 0x608   : > { %v9598_v26 = vadd.f32 %v9597_v19, %v23021_v25  ;;  %v20610_v58 = vadd.f32 %v9788_v17, %v9596_v22 }
 0x609   : > { %v9796_v55 = vpop.f32.mrf.mxu0  ;;  %10369 = vmatmul.mubr.bf16.gmra.mxu0 %v23022_v14  ;;  %v9599_v49 = vpop.f32.mrf.mxu1 }
 0x60a   : > { %23023 = vst [vmem:[#allocation68_spill] sm:$0xff] %v20610_v58  ;;  %10378 = vmatprep.mubr.bf16.mxu0 %v22879_v38  ;;  %v9600_v6 = vadd.f32 %v9599_v49, %v20351_v10  ;;  %v20614_v62 = vadd.f32 %v9790_v11, %v9598_v26  ;;  %v23029_v11 = vld [vmem:[#allocation52_spill] sm:$0xff] }
 0x60b   : > { %v9798_v52 = vpop.f32.mrf.mxu0  ;;  %v9603_v28 = vpop.f32.mrf.mxu1  ;;  %10068 = vmatmul.mubr.bf16.gmra.mxu1 %v23025_v20 }
 0x60c   : > { %23024 = vst [vmem:[#allocation46_spill] sm:$0xff] %v20614_v62  ;;  %v9604_v0 = vadd.f32 %v9603_v28, %v23026_v12  ;;  %10077 = vmatprep.mubr.bf16.mxu1 %v23027_v8  ;;  %v20620_v22 = vadd.f32 %v9792_v32, %v9600_v6  ;;  %v23031_v8 = vld [vmem:[#allocation44_spill] sm:$0xff]  ;;  %v23033_v6 = vld [vmem:[#allocation65_spill] sm:$0xff] }
 0x60d   : > { %v9800_v19 = vpop.f32.mrf.mxu0  ;;  %v9605_v25 = vpop.f32.mrf.mxu1  ;;  %v23059_v62 = vld [vmem:[#allocation61_spill] sm:$0xff] }
 0x60e   : > { %v9606_v17 = vadd.f32 %v9605_v25, %v20360_v5  ;;  %23028 = vst [vmem:[#allocation30_spill] sm:$0xff] %v20620_v22  ;;  %v20624_v26 = vadd.f32 %v9796_v55, %v9604_v0  ;;  %v11634_v5 = vcombine.low %v23031_v8, %v22879_v38 }
 0x60f   : > { %v9802_v14 = vpop.f32.mrf.mxu0  ;;  %v9607_v58 = vpop.f32.mrf.mxu1 }
 0x610   : > { %v9608_v10 = vadd.f32 %v9607_v58, %v20366_v63  ;;  %23030 = vst [vmem:[#allocation105_spill] sm:$0xff] %v20624_v26  ;;  %v20630_v25 = vadd.f32 %v9798_v52, %v9606_v17  ;;  %v23037_v17 = vld [vmem:[#allocation56_spill] sm:$0xff] }
 0x611   : > { %v9806_v49 = vpop.f32.mrf.mxu0  ;;  %10379 = vmatmul.mubr.bf16.gmra.mxu0 %v23029_v11  ;;  %v9609_v20 = vpop.f32.mrf.mxu1  ;;  %v23035_v11 = vld [vmem:[#allocation6_spill] sm:$0xff] }
 0x612   : > { %10388 = vmatprep.mubr.bf16.mxu0 %v22879_v38  ;;  %v9610_v28 = vadd.f32 %v9609_v20, %v20370_v43  ;;  %23032 = vst [vmem:[#allocation59_spill] sm:$0xff] %v20630_v25  ;;  %v20634_v55 = vadd.f32 %v9800_v19, %v9608_v10 }
 0x613   : > { %v9808_v12 = vpop.f32.mrf.mxu0  ;;  %v9613_v32 = vpop.f32.mrf.mxu1  ;;  %10078 = vmatmul.mubr.bf16.gmra.mxu1 %v23033_v6 }
 0x614   : > { %v9614_v63 = vadd.f32 %v9613_v32, %v20374_v4  ;;  %10087 = vmatprep.mubr.bf16.mxu1 %v11634_v5  ;;  %23034 = vst [vmem:[#allocation62_spill] sm:$0xff] %v20634_v55  ;;  %v20637_v43 = vadd.f32 %v9802_v14, %v9610_v28  ;;  %v23039_v4 = vld [vmem:[#allocation104_spill] sm:$0xff]  ;;  %v23041_v28 = vld [vmem:[#allocation85_spill] sm:$0xff] }
 0x615   : > { %v9810_v58 = vpop.f32.mrf.mxu0  ;;  %v9615_v0 = vpop.f32.mrf.mxu1  ;;  %v11633_v5 = vcombine.low %v23039_v4, %v22879_v38 }
 0x616   : > { %v9616_v26 = vadd.f32 %v9615_v0, %v23035_v11  ;;  %23036 = vst [vmem:[#allocation55_spill] sm:$0xff] %v20637_v43  ;;  %v20641_v25 = vadd.f32 %v9806_v49, %v9614_v63  ;;  %v23042_v0 = vld [vmem:[#allocation213_spill] sm:$0xff] }
 0x617   : > { %v9812_v22 = vpop.f32.mrf.mxu0  ;;  %v9617_v20 = vpop.f32.mrf.mxu1 }
 0x618   : > { %v9618_v8 = vadd.f32 %v9617_v20, %v20383_v51  ;;  %23038 = vst [vmem:[#allocation92_spill] sm:$0xff] %v20641_v25  ;;  %v20647_v32 = vadd.f32 %v9808_v12, %v9616_v26  ;;  %v23045_v12 = vld [vmem:[#allocation57_spill] sm:$0xff] }
 0x619   : > { %v9816_v52 = vpop.f32.mrf.mxu0  ;;  %10389 = vmatmul.mubr.bf16.gmra.mxu0 %v23037_v17  ;;  %v9619_v6 = vpop.f32.mrf.mxu1 }
 0x61a   : > { %10398 = vmatprep.mubr.bf16.mxu0 %v22879_v38  ;;  %v9620_v19 = vadd.f32 %v9619_v6, %v20387_v47  ;;  %23040 = vst [vmem:[#allocation204_spill] sm:$0xff] %v20647_v32  ;;  %v20651_v49 = vadd.f32 %v9810_v58, %v9618_v8  ;;  %v23058_v32 = vld [vmem:[#allocation219_spill] sm:$0xff] }
 0x61b   : > { %v9818_v10 = vpop.f32.mrf.mxu0  ;;  %v9623_v14 = vpop.f32.mrf.mxu1  ;;  %10088 = vmatmul.mubr.bf16.gmra.mxu1 %v11633_v5 }
 0x61c   : > { %v9624_v51 = vadd.f32 %v9623_v14, %v23041_v28  ;;  %10097 = vmatprep.mubr.bf16.mxu1 %v23042_v0  ;;  %23043 = vst [vmem:[#allocation16_spill] sm:$0xff] %v20651_v49  ;;  %v20654_v4 = vadd.f32 %v9812_v22, %v9620_v19  ;;  %v23048_v28 = vld [vmem:[#allocation209_spill] sm:$0xff]  ;;  %v23049_v22 = vld [vmem:[#allocation47_spill] sm:$0xff] }
 0x61d   : > { %v9820_v11 = vpop.f32.mrf.mxu0  ;;  %v9625_v63 = vpop.f32.mrf.mxu1  ;;  %v23050_v0 = vld [vmem:[#allocation217_spill] sm:$0xff] }
 0x61e   : > { %v9626_v20 = vadd.f32 %v9625_v63, %v20394_v61  ;;  %23044 = vst [vmem:[#allocation141_spill] sm:$0xff] %v20654_v4  ;;  %v20658_v6 = vadd.f32 %v9816_v52, %v9624_v51 }
 0x61f   : > { %v9822_v17 = vpop.f32.mrf.mxu0  ;;  %v9627_v25 = vpop.f32.mrf.mxu1 }
 0x620   : > { %v9628_v47 = vadd.f32 %v9627_v25, %v20398_v39  ;;  %23046 = vst [vmem:[#allocation84_spill] sm:$0xff] %v20658_v6  ;;  %v20662_v14 = vadd.f32 %v9818_v10, %v9626_v20  ;;  %v23052_v6 = vld [vmem:[#allocation11_spill] sm:$0xff]  ;;  %v23053_v10 = vld [vmem:[#allocation58_spill] sm:$0xff] }
 0x621   : > { %v9826_v26 = vpop.f32.mrf.mxu0  ;;  %10399 = vmatmul.mubr.bf16.gmra.mxu0 %v23045_v12  ;;  %v9629_v5 = vpop.f32.mrf.mxu1 }
 0x622   : > { %10408 = vmatprep.mubr.bf16.mxu0 %v22879_v38  ;;  %v9630_v58 = vadd.f32 %v9629_v5, %v20403_v40  ;;  %23047 = vst [vmem:[#allocation66_spill] sm:$0xff] %v20662_v14  ;;  %v20667_v25 = vadd.f32 %v9820_v11, %v9628_v47  ;;  %v23055_v47 = vld [vmem:[#allocation222_spill] sm:$0xff]  ;;  %v23056_v14 = vld [vmem:[#allocation60_spill] sm:$0xff] }
 0x623   : > { %v9828_v8 = vpop.f32.mrf.mxu0  ;;  %v9633_v61 = vpop.f32.mrf.mxu1  ;;  %10098 = vmatmul.mubr.bf16.gmra.mxu1 %v23048_v28 }
 0x624   : > { %v9634_v19 = vadd.f32 %v9633_v61, %v23049_v22  ;;  %10107 = vmatprep.mubr.bf16.mxu1 %v23050_v0  ;;  %23051 = vst [vmem:[#allocation208_spill] sm:$0xff] %v20667_v25  ;;  %v23054_v22 = vld [vmem:[#allocation156_spill] sm:$0xff] }
 0x625   : > { %v9830_v39 = vpop.f32.mrf.mxu0  ;;  %v9635_v52 = vpop.f32.mrf.mxu1 }
 0x626   : > { %v9636_v51 = vadd.f32 %v9635_v52, %v20410_v33 }
 0x627   : > { %v9832_v63 = vpop.f32.mrf.mxu0  ;;  %v9637_v12 = vpop.f32.mrf.mxu1 }
 0x628   : > { %v9638_v40 = vadd.f32 %v9637_v12, %v23052_v6 }
 0x629   : > { %v9836_v5 = vpop.f32.mrf.mxu0  ;;  %10409 = vmatmul.mubr.bf16.gmra.mxu0 %v23053_v10  ;;  %v9639_v20 = vpop.f32.mrf.mxu1 }
 0x62a   : > { %10418 = vmatprep.mubr.bf16.mxu0 %v22879_v38  ;;  %v9640_v43 = vadd.f32 %v9639_v20, %v20419_v23 }
 0x62b   : > { %v9838_v28 = vpop.f32.mrf.mxu0  ;;  %v9643_v61 = vpop.f32.mrf.mxu1  ;;  %10108 = vmatmul.mubr.bf16.gmra.mxu1 %v23054_v22 }
 0x62c   : > { %v9644_v11 = vadd.f32 %v9643_v61, %v20422_v46  ;;  %10117 = vmatprep.mubr.bf16.mxu1 %v23055_v47  ;;  %v23057_v46 = vld [vmem:[#allocation224_spill] sm:$0xff] }
 0x62d   : > { %v9840_v0 = vpop.f32.mrf.mxu0  ;;  %v9645_v33 = vpop.f32.mrf.mxu1  ;;  %v11636_v61 = vcombine.low %v23057_v46, %v22879_v38  ;;  %v20695_v46 = vadd.f32 %v9822_v17, %v9630_v58  ;;  %v20709_v58 = vadd.f32 %v9832_v63, %v9640_v43 }
 0x62e   : > { %v9646_v52 = vadd.f32 %v9645_v33, %v20428_v50 }
 0x62f   : > { %v9842_v25 = vpop.f32.mrf.mxu0  ;;  %v9647_v6 = vpop.f32.mrf.mxu1  ;;  %23060 = vst [vmem:[#allocation64_spill] sm:$0xff] %v20695_v46  ;;  %v20711_v46 = vadd.f32 %v9836_v5, %v9644_v11 }
 0x630   : > { %v9648_v12 = vadd.f32 %v9647_v6, %v20434_v7 }
 0x631   : > { %v9846_v10 = vpop.f32.mrf.mxu0  ;;  %10419 = vmatmul.mubr.bf16.gmra.mxu0 %v23056_v14  ;;  %v9649_v4 = vpop.f32.mrf.mxu1 }
 0x632   : > { %10428 = vmatprep.mubr.bf16.mxu0 %v22879_v38  ;;  %v9650_v22 = vadd.f32 %v9649_v4, %v20438_v30 }
 0x633   : > { %v9848_v49 = vpop.f32.mrf.mxu0  ;;  %v9653_v47 = vpop.f32.mrf.mxu1  ;;  %10118 = vmatmul.mubr.bf16.gmra.mxu1 %v23058_v32  ;;  %v13014_v32 = vld [vmem:[%s21101_s9 + $0x70] ss:$8 sps:$4 sm:$0xff]  }
 0x634   : > { %v9654_v50 = vadd.f32 %v9653_v47, %v20442_v13  ;;  %10127 = vmatprep.mubr.bf16.mxu1 %v11636_v61  ;;  %v13016_v13 = vld [vmem:[%s21101_s9 + $0x74] ss:$8 sps:$4 sm:$0xff]   ;;  %v20704_v47 = vadd.f32 %v9830_v39, %v9638_v40  ;;  %v20721_v39 = vadd.f32 %v9842_v25, %v9650_v22 }
 0x635   : > { %v9850_v33 = vpop.f32.mrf.mxu0  ;;  %v9655_v7 = vpop.f32.mrf.mxu1  ;;  %v23061_v61 = vld [vmem:[#allocation185_spill] sm:$0xff]  ;;  %10921 = vmatprep.subr.bf16.mxu1 %v13016_v13  ;;  %v23065_v13 = vld [vmem:[#allocation15_spill] sm:$0xff] }
 0x636   : > { %v9656_v6 = vadd.f32 %v9655_v7, %v20445_v53  ;;  %v11635_v23 = vcombine.low %v23061_v61, %v22879_v38  ;;  %v13019_v7 = vld [vmem:[%s21101_s9 + $0x64] ss:$8 sps:$4 sm:$0xff]   ;;  %v20713_v38 = vadd.f32 %v9838_v28, %v9646_v52  ;;  %10922 = vmatpush1.bf16.msra.mxu1 %v13014_v32  ;;  %v13022_v40 = vld [vmem:[%s21101_s9 + $0x54] ss:$8 sps:$4 sm:$0xff]  }
 0x637   : > { %v9852_v14 = vpop.f32.mrf.mxu0  ;;  %v9657_v55 = vpop.f32.mrf.mxu1  ;;  %10923 = vmatprep.subr.bf16.mxu1 %v13019_v7 }
 0x638   : > { %v9658_v30 = vadd.f32 %v9657_v55, %v20451_v44  ;;  %v20700_v55 = vadd.f32 %v9826_v26, %v9634_v19  ;;  %v13017_v19 = vld [vmem:[%s21101_s9 + $0x60] ss:$8 sps:$4 sm:$0xff]   ;;  %v20725_v43 = vadd.f32 %v9848_v49, %v9656_v6  ;;  %v13020_v49 = vld [vmem:[%s21101_s9 + $0x50] ss:$8 sps:$4 sm:$0xff]  }
 0x639   : > { %v9856_v4 = vpop.f32.mrf.mxu0  ;;  %10429 = vmatmul.mubr.bf16.gmra.mxu0 %v23059_v62  ;;  %v9659_v53 = vpop.f32.mrf.mxu1  ;;  %v20702_v62 = vadd.f32 %v9828_v8, %v9636_v51  ;;  %v20723_v51 = vadd.f32 %v9846_v10, %v9654_v50 }
 0x63a   : > { %v9660_v20 = vadd.f32 %v9659_v53, %v20455_v60  ;;  %v20715_v60 = vadd.f32 %v9840_v0, %v9648_v12  ;;  %v20730_v5 = vadd.f32 %v9850_v33, %v9658_v30  ;;  %10924 = vmatpush1.bf16.msra.mxu1 %v13017_v19  ;;  %v13023_v30 = vld [vmem:[%s21101_s9 + $0x40] ss:$8 sps:$4 sm:$0xff]  }
 0x63b   : > { %v9858_v44 = vpop.f32.mrf.mxu0  ;;  %v9663_v17 = vpop.f32.mrf.mxu1  ;;  %10128 = vmatmul.mubr.bf16.gmra.mxu1 %v11635_v23  ;;  %10925 = vmatprep.subr.bf16.mxu1 %v13022_v40  ;;  %v23067_v19 = vld [vmem:[#allocation135_spill] sm:$0xff] }
 0x63c   : > { %v9664_v26 = vadd.f32 %v9663_v17, %v20458_v42  ;;  %v20733_v0 = vadd.f32 %v9852_v14, %v9660_v20 }
 0x63d   : > { %v9860_v8 = vpop.f32.mrf.mxu0  ;;  %v9665_v63 = vpop.f32.mrf.mxu1 }
 0x63e   : > { %v9666_v42 = vadd.f32 %v9665_v63, %v20462_v54  ;;  %v20739_v12 = vadd.f32 %v9856_v4, %v9664_v26  ;;  %v13025_v54 = vld [vmem:[%s21101_s9 + $0x44] ss:$8 sps:$4 sm:$0xff]   ;;  %10926 = vmatpush1.bf16.msra.mxu1 %v13020_v49 }
 0x63f   : > { %v9862_v28 = vpop.f32.mrf.mxu0  ;;  %v9667_v11 = vpop.f32.mrf.mxu1  ;;  %10927 = vmatprep.subr.bf16.mxu1 %v13025_v54 }
 0x640   : > { %v9668_v25 = vadd.f32 %v9667_v11, %v20466_v18  ;;  %23062 = vst [vmem:[#allocation75_spill] sm:$0xff] %v20739_v12  ;;  %v20745_v33 = vadd.f32 %v9858_v44, %v9666_v42  ;;  %v23068_v42 = vld [vmem:[#allocation74_spill] sm:$0xff] }
 0x641   : > { %v9866_v52 = vpop.f32.mrf.mxu0  ;;  %v9669_v10 = vpop.f32.mrf.mxu1 }
 0x642   : > { %v9670_v22 = vadd.f32 %v9669_v10, %v20471_v29  ;;  %23063 = vst [vmem:[#allocation20_spill] sm:$0xff] %v20745_v33  ;;  %v20751_v4 = vadd.f32 %v9860_v8, %v9668_v25  ;;  %10928 = vmatpush1.bf16.msra.mxu1 %v13023_v30  ;;  %v23069_v10 = vld [vmem:[#allocation37_spill] sm:$0xff] }
 0x643   : > { %v9868_v50 = vpop.f32.mrf.mxu0  ;;  %v9673_v18 = vpop.f32.mrf.mxu1 }
 0x644   : > { %v9674_v6 = vadd.f32 %v9673_v18, %v20474_v56  ;;  %23064 = vst [vmem:[#allocation29_spill] sm:$0xff] %v20751_v4  ;;  %v23066_v56 = vld [vmem:[#allocation100_spill] sm:$0xff]  ;;  %v23070_v4 = vld [vmem:[#allocation203_spill] sm:$0xff] }
 0x645   : > { %v9870_v14 = vpop.f32.mrf.mxu0  ;;  %v9675_v32 = vpop.f32.mrf.mxu1 }
 0x646   : > { %v9676_v53 = vadd.f32 %v9675_v32, %v23065_v13 }
 0x647   : > { %v9872_v61 = vpop.f32.mrf.mxu0  ;;  %v9677_v29 = vpop.f32.mrf.mxu1 }
 0x648   : > { %v9678_v23 = vadd.f32 %v9677_v29, %v20482_v37 }
 0x649   : > { %v9876_v20 = vpop.f32.mrf.mxu0  ;;  %v9679_v44 = vpop.f32.mrf.mxu1 }
 0x64a   : > { %v9680_v7 = vadd.f32 %v9679_v44, %v23066_v56 }
 0x64b   : > { %v9878_v17 = vpop.f32.mrf.mxu0  ;;  %v9683_v26 = vpop.f32.mrf.mxu1 }
 0x64c   : > { %v9684_v63 = vadd.f32 %v9683_v26, %v23067_v19 }
 0x64d   : > { %v9880_v40 = vpop.f32.mrf.mxu0  ;;  %v9685_v8 = vpop.f32.mrf.mxu1 }
 0x64e   : > { %v9686_v11 = vadd.f32 %v9685_v8, %v23068_v42 }
 0x64f   : > { %v9882_v25 = vpop.f32.mrf.mxu0  ;;  %v9687_v49 = vpop.f32.mrf.mxu1 }
 0x650   : > { %v9688_v54 = vadd.f32 %v9687_v49, %v23069_v10  ;;  %v13026_v49 = vld [vmem:[%s21101_s9 + $0x30] ss:$8 sps:$4 sm:$0xff]   ;;  %v20769_v10 = vadd.f32 %v9862_v28, %v9670_v22  ;;  %v13029_v28 = vld [vmem:[%s21101_s9 + $0x20] ss:$8 sps:$4 sm:$0xff]   ;;  %v20784_v22 = vadd.f32 %v9872_v61, %v9680_v7 }
 0x651   : > { %v9886_v18 = vpop.f32.mrf.mxu0  ;;  %v9689_v32 = vpop.f32.mrf.mxu1 }
 0x652   : > { %v9690_v37 = vadd.f32 %v9689_v32, %v20504_v24  ;;  %v13028_v24 = vld [vmem:[%s21101_s9 + $0x34] ss:$8 sps:$4 sm:$0xff]  }
 0x653   : > { %v9888_v30 = vpop.f32.mrf.mxu0  ;;  %v9693_v13 = vpop.f32.mrf.mxu1  ;;  %10929 = vmatprep.subr.bf16.mxu1 %v13028_v24 }
 0x654   : > { %v9694_v29 = vadd.f32 %v9693_v13, %v20507_v35  ;;  %10930 = vmatpush1.bf16.msra.mxu1 %v13026_v49 }
 0x655   : > { %v9890_v44 = vpop.f32.mrf.mxu0  ;;  %v9695_v56 = vpop.f32.mrf.mxu1 }
 0x656   : > { %v9696_v26 = vadd.f32 %v9695_v56, %v23070_v4  ;;  %v20772_v4 = vadd.f32 %v9866_v52, %v9674_v6  ;;  %v20774_v56 = vadd.f32 %v9868_v50, %v9676_v53  ;;  %v20788_v52 = vadd.f32 %v9878_v17, %v9686_v11  ;;  %v13034_v53 = vld [vmem:[%s21101_s9 + $0x14] ss:$8 sps:$4 sm:$0xff]  }
 0x657   : > { %v9892_v19 = vpop.f32.mrf.mxu0  ;;  %v9697_v33 = vpop.f32.mrf.mxu1  ;;  %v20790_v50 = vadd.f32 %v9880_v40, %v9688_v54  ;;  %v20798_v49 = vadd.f32 %v9886_v18, %v9694_v29  ;;  %v13037_v54 = vld [vmem:[%s21101_s9 + $0x4] ss:$8 sps:$4 sm:$0xff]  }
 0x658   : > { %v9698_v8 = vadd.f32 %v9697_v33, %v20517_v15  ;;  %v20776_v15 = vadd.f32 %v9870_v14, %v9678_v23  ;;  %v13031_v33 = vld [vmem:[%s21101_s9 + $0x24] ss:$8 sps:$4 sm:$0xff]   ;;  %v20796_v23 = vadd.f32 %v9882_v25, %v9690_v37  ;;  %v20800_v61 = vadd.f32 %v9888_v30, %v9696_v26 }
 0x659   : > { %v9896_v42 = vpop.f32.mrf.mxu0  ;;  %v9699_v35 = vpop.f32.mrf.mxu1  ;;  %10931 = vmatprep.subr.bf16.mxu1 %v13031_v33 }
 0x65a   : > { %v9700_v32 = vadd.f32 %v9699_v35, %v20521_v31  ;;  %v20786_v31 = vadd.f32 %v9876_v20, %v9684_v63  ;;  %v20802_v7 = vadd.f32 %v9890_v44, %v9698_v8  ;;  %10932 = vmatpush1.bf16.msra.mxu1 %v13029_v28 }
 0x65b   : > { %v9898_v13 = vpop.f32.mrf.mxu0  ;;  %v9703_v12 = vpop.f32.mrf.mxu1  ;;  %10933 = vmatprep.subr.bf16.mxu1 %v13034_v53 }
 0x65c   : > { %v9704_v6 = vadd.f32 %v9703_v12, %v20524_v41  ;;  %23071 = vst [vmem:[#allocation158_spill] sm:$0xff] %v20802_v7  ;;  %v13032_v41 = vld [vmem:[%s21101_s9 + $0x10] ss:$8 sps:$4 sm:$0xff]   ;;  %v20808_v12 = vadd.f32 %v9892_v19, %v9700_v32  ;;  %v23076_v32 = vld [vmem:[#allocation43_spill] sm:$0xff] }
 0x65d   : > { %v9900_v14 = vpop.f32.mrf.mxu0  ;;  %v9705_v20 = vpop.f32.mrf.mxu1 }
 0x65e   : > { %v9706_v17 = vadd.f32 %v9705_v20, %v20528_v48  ;;  %23072 = vst [vmem:[#allocation210_spill] sm:$0xff] %v20808_v12  ;;  %v20814_v18 = vadd.f32 %v9896_v42, %v9704_v6  ;;  %10934 = vmatpush1.bf16.msra.mxu1 %v13032_v41  ;;  %v23077_v6 = vld [vmem:[#allocation51_spill] sm:$0xff] }
 0x65f   : > { %v9902_v63 = vpop.f32.mrf.mxu0  ;;  %v9707_v40 = vpop.f32.mrf.mxu1  ;;  %10935 = vmatprep.subr.bf16.mxu1 %v13037_v54 }
 0x660   : > { %v9708_v11 = vadd.f32 %v9707_v40, %v20532_v3  ;;  %23073 = vst [vmem:[#allocation82_spill] sm:$0xff] %v20814_v18  ;;  %v20817_v29 = vadd.f32 %v9898_v13, %v9706_v17  ;;  %v13035_v3 = vld [vmem:[%s21101_s9] ss:$8 sps:$4 sm:$0xff]   ;;  %v23078_v40 = vld [vmem:[#allocation121_spill] sm:$0xff] }
 0x661   : > { %v9906_v25 = vpop.f32.mrf.mxu0  ;;  %v9709_v48 = vpop.f32.mrf.mxu1 }
 0x662   : > { %v9710_v37 = vadd.f32 %v9709_v48, %v20537_v1  ;;  %23074 = vst [vmem:[#allocation147_spill] sm:$0xff] %v20817_v29  ;;  %v20823_v8 = vadd.f32 %v9900_v14, %v9708_v11  ;;  %10936 = vmatpush1.bf16.msra.mxu1 %v13035_v3  ;;  %v23079_v14 = vld [vmem:[#allocation122_spill] sm:$0xff] }
 0x663   : > { %v9908_v30 = vpop.f32.mrf.mxu0  ;;  %v9713_v44 = vpop.f32.mrf.mxu1 }
 0x664   : > { %v9714_v26 = vadd.f32 %v9713_v44, %v20540_v45  ;;  %23075 = vst [vmem:[#allocation13_spill] sm:$0xff] %v20823_v8 }
 0x665   : > { %v9910_v19 = vpop.f32.mrf.mxu0  ;;  %v9715_v42 = vpop.f32.mrf.mxu1 }
 0x666   : > { %v9716_v24 = vadd.f32 %v9715_v42, %v20544_v16  ;;  %v23080_v16 = vld [vmem:[#allocation146_spill] sm:$0xff] }
 0x667   : > { %v9912_v35 = vpop.f32.mrf.mxu0  ;;  %v9717_v1 = vpop.f32.mrf.mxu1 }
 0x668   : > { %v9718_v13 = vadd.f32 %v9717_v1, %v23076_v32 }
 0x669   : > { %v9916_v33 = vpop.f32.mrf.mxu0  ;;  %v9719_v28 = vpop.f32.mrf.mxu1 }
 0x66a   : > { %v9720_v53 = vadd.f32 %v9719_v28, %v23077_v6 }
 0x66b   : > { %v9918_v20 = vpop.f32.mrf.mxu0  ;;  %v9723_v17 = vpop.f32.mrf.mxu1 }
 0x66c   : > { %v9724_v45 = vadd.f32 %v9723_v17, %v23078_v40 }
 0x66d   : > { %v9920_v41 = vpop.f32.mrf.mxu0  ;;  %v9725_v54 = vpop.f32.mrf.mxu1 }
 0x66e   : > { %v9726_v11 = vadd.f32 %v9725_v54, %v23079_v14 }
 0x66f   : > { %v9922_v48 = vpop.f32.mrf.mxu0  ;;  %v9727_v44 = vpop.f32.mrf.mxu1 }
 0x670   : > { %v9728_v42 = vadd.f32 %v9727_v44, %v23080_v16  ;;  %v13038_v44 = vld [vmem:[%s21101_s9 + $0xf0] ss:$8 sps:$4 sm:$0xff]   ;;  %v20841_v16 = vadd.f32 %v9902_v63, %v9710_v37  ;;  %v20856_v7 = vadd.f32 %v9918_v20, %v9726_v11 }
 0x671   : > { %v9926_v8 = vpop.f32.mrf.mxu0  ;;  %v9729_v3 = vpop.f32.mrf.mxu1 }
 0x672   : > { %v9730_v1 = vadd.f32 %v9729_v3, %v20570_v21  ;;  %v13040_v21 = vld [vmem:[%s21101_s9 + $0xf4] ss:$8 sps:$4 sm:$0xff]   ;;  %v20854_v3 = vadd.f32 %v9916_v33, %v9724_v45  ;;  %v23083_v45 = vld [vmem:[#allocation134_spill] sm:$0xff] }
 0x673   : > { %v9928_v32 = vpop.f32.mrf.mxu0  ;;  %v9733_v29 = vpop.f32.mrf.mxu1  ;;  %10937 = vmatprep.subr.bf16.mxu1 %v13040_v21  ;;  %v13049_v21 = vld [vmem:[%s21101_s9 + $0xc4] ss:$8 sps:$4 sm:$0xff]  }
 0x674   : > { %v9734_v28 = vadd.f32 %v9733_v29, %v20573_v2  ;;  %v20843_v2 = vadd.f32 %v9906_v25, %v9714_v26  ;;  %v20845_v29 = vadd.f32 %v9908_v30, %v9716_v24  ;;  %v20859_v25 = vadd.f32 %v9920_v41, %v9728_v42  ;;  %v10154_v24 = vld [vmem:[%s21100_s8] sm:$0x3]  ;;  %10938 = vmatpush2.bf16.msra.mxu1 %v13038_v44 }
 0x675   : > { %v9930_v6 = vpop.f32.mrf.mxu0  ;;  %v9735_v18 = vpop.f32.mrf.mxu1  ;;  %v20861_v30 = vadd.f32 %v9922_v48, %v9730_v1  ;;  %v23084_v48 = vld [vmem:[#allocation94_spill] sm:$0xff] }
 0x676   : > { %v9736_v17 = vadd.f32 %v9735_v18, %v20577_v57  ;;  %v20847_v18 = vadd.f32 %v9910_v19, %v9718_v13  ;;  %v20863_v26 = vadd.f32 %v9926_v8, %v9734_v28  ;;  %v13046_v8 = vld [vmem:[%s21101_s9 + $0xd4] ss:$8 sps:$4 sm:$0xff]   ;;  %v20883_v42 = vrot.slane %v10154_v24, %v23084_v48  ;;  %v23086_v28 = vld [vmem:[#allocation86_spill] sm:$0xff] }
 0x677   : > { %v9932_v40 = vpop.f32.mrf.mxu0  ;;  %v9737_v12 = vpop.f32.mrf.mxu1 }
 0x678   : > { %v9738_v54 = vadd.f32 %v9737_v12, %v20583_v27  ;;  %v13043_v27 = vld [vmem:[%s21101_s9 + $0xe4] ss:$8 sps:$4 sm:$0xff]   ;;  %v20852_v12 = vadd.f32 %v9912_v35, %v9720_v53  ;;  %v13041_v35 = vld [vmem:[%s21101_s9 + $0xe0] ss:$8 sps:$4 sm:$0xff]   ;;  %v20871_v13 = vadd.f32 %v9928_v32, %v9736_v17 }
 0x679   : > { %v9936_v14 = vpop.f32.mrf.mxu0  ;;  %v9739_v57 = vpop.f32.mrf.mxu1  ;;  %10939 = vmatprep.subr.bf16.mxu1 %v13043_v27 }
 0x67a   : > { %v9740_v63 = vadd.f32 %v9739_v57, %v20587_v36  ;;  %23081 = vst [vmem:[#allocation123_spill] sm:$0xff] %v20871_v13  ;;  %v20877_v20 = vadd.f32 %v9930_v6, %v9738_v54  ;;  %10940 = vmatpush2.bf16.msra.mxu1 %v13041_v35  ;;  %v23087_v6 = vld [vmem:[#allocation97_spill] sm:$0xff] }
 0x67b   : > { %v9938_v37 = vpop.f32.mrf.mxu0  ;;  %v9743_v19 = vpop.f32.mrf.mxu1  ;;  %v20892_v54 = vrot.slane %v10154_v24, %v23087_v6  ;;  %10941 = vmatprep.subr.bf16.mxu1 %v13046_v8  ;;  %v13047_v24 = vld [vmem:[%s21101_s9 + $0xc0] ss:$8 sps:$4 sm:$0xff]  }
 0x67c   : > { %v9744_v36 = vadd.f32 %v9743_v19, %v20590_v34  ;;  %23082 = vst [vmem:[#allocation99_spill] sm:$0xff] %v20877_v20  ;;  %v20885_v1 = vadd.f32 %v9932_v40, %v9740_v63  ;;  %v13044_v34 = vld [vmem:[%s21101_s9 + $0xd0] ss:$8 sps:$4 sm:$0xff]   ;;  %v23092_v6 = vld [vmem:[#allocation46_spill] sm:$0xff] }
 0x67d   : > { %v9940_v33 = vpop.f32.mrf.mxu0  ;;  %v9745_v53 = vpop.f32.mrf.mxu1 }
 0x67e   : > { %v9746_v41 = vadd.f32 %v9745_v53, %v23083_v45  ;;  %23085 = vst [vmem:[#allocation140_spill] sm:$0xff] %v20885_v1  ;;  %v20897_v57 = vadd.f32 %v9936_v14, %v9744_v36  ;;  %10942 = vmatpush2.bf16.msra.mxu1 %v13044_v34 }
 0x67f   : > { %v20880_v11 = vpop.f32.mrf.mxu0  ;;  %v9747_v32 = vpop.f32.mrf.mxu1  ;;  %10943 = vmatprep.subr.bf16.mxu1 %v13049_v21  ;;  %v23093_v21 = vld [vmem:[#allocation30_spill] sm:$0xff] }
 0x680   : > { %v9748_v17 = vadd.f32 %v9747_v32, %v23086_v28  ;;  %23088 = vst [vmem:[#allocation205_spill] sm:$0xff] %v20897_v57  ;;  %v20903_v35 = vadd.f32 %v9938_v37, %v9746_v41  ;;  %v23091_v28 = vld [vmem:[#allocation68_spill] sm:$0xff] }
 0x681   : > { %v10280_v44 = vpop.f32.mrf.mxu0  ;;  %v9749_v40 = vpop.f32.mrf.mxu1 }
 0x682   : > { %v20900_v27 = vadd.f32 %v9749_v40, %v20603_v59  ;;  %v10281_v63 = vadd.f32 %v10280_v44, %v20883_v42  ;;  %23089 = vst [vmem:[#allocation160_spill] sm:$0xff] %v20903_v35  ;;  %v20910_v45 = vadd.f32 %v9940_v33, %v9748_v17  ;;  %10944 = vmatpush2.bf16.msra.mxu1 %v13047_v24 }
 0x683   : > { %v10282_v19 = vpop.f32.mrf.mxu0  ;;  %v9979_v53 = vpop.f32.mrf.mxu1 }
 0x684   : > { %v9980_v8 = vadd.f32 %v9979_v53, %v20606_v9  ;;  %v10283_v14 = vadd.f32 %v10282_v19, %v20892_v54  ;;  %23090 = vst [vmem:[#allocation211_spill] sm:$0xff] %v20910_v45  ;;  %v23094_v45 = vld [vmem:[#allocation105_spill] sm:$0xff] }
 0x685   : > { %v10284_v36 = vpop.f32.mrf.mxu0  ;;  %v9981_v59 = vpop.f32.mrf.mxu1 }
 0x686   : > { %v10439_v32 = vadd.f32 %v10281_v63, %v9980_v8  ;;  %v9982_v44 = vadd.f32 %v9981_v59, %v23091_v28  ;;  %v10285_v37 = vadd.f32 %v10284_v36, %v20883_v42 }
 0x687   : > { %v10286_v41 = vpop.f32.mrf.mxu0  ;;  %v9983_v34 = vpop.f32.mrf.mxu1 }
 0x688   : > { %v10440_v40 = vadd.f32 %v10283_v14, %v9982_v44  ;;  %v9984_v48 = vadd.f32 %v9983_v34, %v23092_v6  ;;  %v10287_v9 = vadd.f32 %v10286_v41, %v20892_v54  ;;  %v10503_v8 = vmax.f32 %v10439_v32, 0.0 }
 0x689   : > { %v10290_v53 = vpop.f32.mrf.mxu0  ;;  %v9985_v19 = vpop.f32.mrf.mxu1 }
 0x68a   : > { %v10441_v35 = vadd.f32 %v10285_v37, %v9984_v48  ;;  %v9986_v33 = vadd.f32 %v9985_v19, %v23093_v21  ;;  %v10291_v17 = vadd.f32 %v10290_v53, %v20883_v42  ;;  %v10504_v6 = vmax.f32 %v10440_v40, 0.0  ;;  %v23095_v19 = vld [vmem:[#allocation59_spill] sm:$0xff] }
 0x68b   : > { %v10292_v63 = vpop.f32.mrf.mxu0  ;;  %v9989_v59 = vpop.f32.mrf.mxu1 }
 0x68c   : > { %v10505_v28 = vmax.f32 %v10441_v35, 0.0  ;;  %v10442_v36 = vadd.f32 %v10287_v9, %v9986_v33  ;;  %v9990_v57 = vadd.f32 %v9989_v59, %v23094_v45  ;;  %v10293_v24 = vadd.f32 %v10292_v63, %v20892_v54  ;;  %v23096_v45 = vld [vmem:[#allocation62_spill] sm:$0xff] }
 0x68d   : > { %v10294_v14 = vpop.f32.mrf.mxu0  ;;  %v9991_v44 = vpop.f32.mrf.mxu1 }
 0x68e   : > { %v10295_v41 = vadd.f32 %v10294_v14, %v20883_v42  ;;  %v10567_v34 = vadd.f32 %v10505_v28, %v10503_v8  ;;  %v10506_v48 = vmax.f32 %v10442_v36, 0.0  ;;  %v10443_v37 = vadd.f32 %v10291_v17, %v9990_v57  ;;  %v23097_v28 = vld [vmem:[#allocation55_spill] sm:$0xff] }
 0x68f   : > { %v9992_v21 = vadd.f32 %v9991_v44, %v23095_v19  ;;  %v10296_v53 = vpop.f32.mrf.mxu0  ;;  %v9993_v1 = vpop.f32.mrf.mxu1 }
 0x690   : > { %v10297_v32 = vadd.f32 %v10296_v53, %v20892_v54  ;;  %v10580_v35 = vadd.f32 %v10506_v48, %v10504_v6  ;;  %v10507_v9 = vmax.f32 %v10443_v37, 0.0  ;;  %v9994_v59 = vadd.f32 %v9993_v1, %v23096_v45  ;;  %v23098_v48 = vld [vmem:[#allocation92_spill] sm:$0xff] }
 0x691   : > { %v10444_v33 = vadd.f32 %v10293_v24, %v9992_v21  ;;  %v10300_v63 = vpop.f32.mrf.mxu0  ;;  %v9995_v20 = vpop.f32.mrf.mxu1 }
 0x692   : > { %v10301_v40 = vadd.f32 %v10300_v63, %v20883_v42  ;;  %v10568_v13 = vadd.f32 %v10567_v34, %v10507_v9  ;;  %v10445_v8 = vadd.f32 %v10295_v41, %v9994_v59  ;;  %v9996_v57 = vadd.f32 %v9995_v20, %v23097_v28  ;;  %v23099_v9 = vld [vmem:[#allocation204_spill] sm:$0xff] }
 0x693   : > { %v10508_v14 = vmax.f32 %v10444_v33, 0.0  ;;  %v10302_v17 = vpop.f32.mrf.mxu0  ;;  %v9999_v36 = vpop.f32.mrf.mxu1 }
 0x694   : > { %v10303_v44 = vadd.f32 %v10302_v17, %v20892_v54  ;;  %v10509_v53 = vmax.f32 %v10445_v8, 0.0  ;;  %v10446_v6 = vadd.f32 %v10297_v32, %v9996_v57  ;;  %v10000_v24 = vadd.f32 %v9999_v36, %v23098_v48  ;;  %v13050_v57 = vld [vmem:[%s21101_s9 + $0xb0] ss:$8 sps:$4 sm:$0xff]  }
 0x695   : > { %v10581_v19 = vadd.f32 %v10580_v35, %v10508_v14  ;;  %v10304_v37 = vpop.f32.mrf.mxu0  ;;  %v10001_v1 = vpop.f32.mrf.mxu1  ;;  %v23100_v14 = vld [vmem:[#allocation16_spill] sm:$0xff] }
 0x696   : > { %v10305_v21 = vadd.f32 %v10304_v37, %v20883_v42  ;;  %v10569_v45 = vadd.f32 %v10568_v13, %v10509_v53  ;;  %v10510_v63 = vmax.f32 %v10446_v6, 0.0  ;;  %v10447_v34 = vadd.f32 %v10301_v40, %v10000_v24  ;;  %v13052_v13 = vld [vmem:[%s21101_s9 + $0xb4] ss:$8 sps:$4 sm:$0xff]  }
 0x697   : > { %v10002_v41 = vadd.f32 %v10001_v1, %v23099_v9  ;;  %v10306_v33 = vpop.f32.mrf.mxu0  ;;  %v10003_v20 = vpop.f32.mrf.mxu1  ;;  %v20941_v53 = vadd.f32 %v20880_v11, %v20900_v27  ;;  %v23101_v24 = vld [vmem:[#allocation141_spill] sm:$0xff]  ;;  %10945 = vmatprep.subr.bf16.mxu1 %v13052_v13  ;;  %v13053_v11 = vld [vmem:[%s21101_s9 + $0xa0] ss:$8 sps:$4 sm:$0xff]  }
 0x698   : > { %v10307_v59 = vadd.f32 %v10306_v33, %v20892_v54  ;;  %v10582_v28 = vadd.f32 %v10581_v19, %v10510_v63  ;;  %v10511_v17 = vmax.f32 %v10447_v34, 0.0  ;;  %v10004_v32 = vadd.f32 %v10003_v20, %v23100_v14  ;;  %10946 = vmatpush2.bf16.msra.mxu1 %v13050_v57  ;;  %v23102_v33 = vld [vmem:[#allocation84_spill] sm:$0xff]  ;;  %v23103_v57 = vld [vmem:[#allocation66_spill] sm:$0xff] }
 0x699   : > { %v10448_v35 = vadd.f32 %v10303_v44, %v10002_v41  ;;  %v10310_v8 = vpop.f32.mrf.mxu0  ;;  %v10005_v40 = vpop.f32.mrf.mxu1  ;;  %v13055_v44 = vld [vmem:[%s21101_s9 + $0xa4] ss:$8 sps:$4 sm:$0xff]  }
 0x69a   : > { %v10311_v36 = vadd.f32 %v10310_v8, %v20883_v42  ;;  %v10570_v19 = vadd.f32 %v10569_v45, %v10511_v17  ;;  %v10449_v48 = vadd.f32 %v10305_v21, %v10004_v32  ;;  %v10006_v37 = vadd.f32 %v10005_v40, %v23101_v24  ;;  %10947 = vmatprep.subr.bf16.mxu1 %v13055_v44  ;;  %v13058_v21 = vld [vmem:[%s21101_s9 + $0x94] ss:$8 sps:$4 sm:$0xff]   ;;  %v13056_v44 = vld [vmem:[%s21101_s9 + $0x90] ss:$8 sps:$4 sm:$0xff]  }
 0x69b   : > { %v10512_v6 = vmax.f32 %v10448_v35, 0.0  ;;  %v10312_v1 = vpop.f32.mrf.mxu0  ;;  %v10009_v63 = vpop.f32.mrf.mxu1 }
 0x69c   : > { %v10313_v34 = vadd.f32 %v10312_v1, %v20892_v54  ;;  %v10513_v9 = vmax.f32 %v10449_v48, 0.0  ;;  %v10450_v41 = vadd.f32 %v10307_v59, %v10006_v37  ;;  %v10010_v20 = vadd.f32 %v10009_v63, %v23102_v33  ;;  %10948 = vmatpush2.bf16.msra.mxu1 %v13053_v11  ;;  %v23104_v37 = vld [vmem:[#allocation208_spill] sm:$0xff] }
 0x69d   : > { %v10583_v27 = vadd.f32 %v10582_v28, %v10512_v6  ;;  %v10314_v45 = vpop.f32.mrf.mxu0  ;;  %v10011_v17 = vpop.f32.mrf.mxu1  ;;  %10949 = vmatprep.subr.bf16.mxu1 %v13058_v21  ;;  %v13059_v21 = vld [vmem:[%s21101_s9 + $0x80] ss:$8 sps:$4 sm:$0xff]  }
 0x69e   : > { %v10315_v35 = vadd.f32 %v10314_v45, %v20883_v42  ;;  %v10571_v14 = vadd.f32 %v10570_v19, %v10513_v9  ;;  %v10514_v32 = vmax.f32 %v10450_v41, 0.0  ;;  %v10451_v8 = vadd.f32 %v10311_v36, %v10010_v20  ;;  %v13061_v36 = vld [vmem:[%s21101_s9 + $0x84] ss:$8 sps:$4 sm:$0xff]   ;;  %v23105_v20 = vld [vmem:[#allocation64_spill] sm:$0xff] }
 0x69f   : > { %v10012_v13 = vadd.f32 %v10011_v17, %v23103_v57  ;;  %v10316_v40 = vpop.f32.mrf.mxu0  ;;  %v10013_v28 = vpop.f32.mrf.mxu1 }
 0x6a0   : > { %v10317_v59 = vadd.f32 %v10316_v40, %v20892_v54  ;;  %v10584_v6 = vadd.f32 %v10583_v27, %v10514_v32  ;;  %v10515_v48 = vmax.f32 %v10451_v8, 0.0  ;;  %v10014_v1 = vadd.f32 %v10013_v28, %v23104_v37  ;;  %10950 = vmatpush2.bf16.msra.mxu1 %v13056_v44 }
 0x6a1   : > { %v10452_v24 = vadd.f32 %v10313_v34, %v10012_v13  ;;  %v10320_v63 = vpop.f32.mrf.mxu0  ;;  %v10015_v19 = vpop.f32.mrf.mxu1  ;;  %10951 = vmatprep.subr.bf16.mxu1 %v13061_v36 }
 0x6a2   : > { %v10321_v9 = vadd.f32 %v10320_v63, %v20883_v42  ;;  %v10572_v41 = vadd.f32 %v10571_v14, %v10515_v48  ;;  %v10453_v33 = vadd.f32 %v10315_v35, %v10014_v1  ;;  %v10016_v45 = vadd.f32 %v10015_v19, %v23105_v20 }
 0x6a3   : > { %v10516_v11 = vmax.f32 %v10452_v24, 0.0  ;;  %v10322_v17 = vpop.f32.mrf.mxu0  ;;  %v10019_v27 = vpop.f32.mrf.mxu1 }
 0x6a4   : > { %v10323_v34 = vadd.f32 %v10322_v17, %v20892_v54  ;;  %v10517_v8 = vmax.f32 %v10453_v33, 0.0  ;;  %v10454_v57 = vadd.f32 %v10317_v59, %v10016_v45  ;;  %v10020_v13 = vadd.f32 %v10019_v27, %v20700_v55  ;;  %10952 = vmatpush2.bf16.msra.mxu1 %v13059_v21 }
 0x6a5   : > { %v10585_v32 = vadd.f32 %v10584_v6, %v10516_v11  ;;  %v10324_v40 = vpop.f32.mrf.mxu0  ;;  %v10021_v14 = vpop.f32.mrf.mxu1 }
 0x6a6   : > { %v10573_v35 = vadd.f32 %v10572_v41, %v10517_v8  ;;  %v10518_v28 = vmax.f32 %v10454_v57, 0.0  ;;  %v10455_v48 = vadd.f32 %v10321_v9, %v10020_v13  ;;  %v10022_v24 = vadd.f32 %v10021_v14, %v20702_v62 }
 0x6a7   : > { %v10326_v37 = vpop.f32.mrf.mxu0  ;;  %v10325_v44 = vadd.f32 %v10324_v40, %v20883_v42  ;;  %v10023_v1 = vpop.f32.mrf.mxu1 }
 0x6a8   : > { %v20974_v63 = vadd.f32 %v10585_v32, %v10518_v28  ;;  %v10456_v6 = vadd.f32 %v10323_v34, %v10022_v24  ;;  %v10327_v59 = vadd.f32 %v10326_v37, %v20892_v54  ;;  %v10024_v55 = vadd.f32 %v10023_v1, %v20704_v47 }
 0x6a9   : > { %v10330_v19 = vpop.f32.mrf.mxu0  ;;  %v10025_v36 = vpop.f32.mrf.mxu1  ;;  %v10519_v27 = vmax.f32 %v10455_v48, 0.0  ;;  %v10574_v40 = vrot.slane %v10573_v35, 4 }
 0x6aa   : > { %v10026_v41 = vadd.f32 %v10025_v36, %v20709_v58  ;;  %v10331_v9 = vadd.f32 %v10330_v19, %v20883_v42  ;;  %v10457_v62 = vadd.f32 %v10325_v44, %v10024_v55  ;;  %v10520_v8 = vmax.f32 %v10456_v6, 0.0 }
 0x6ab   : > { %v10332_v11 = vpop.f32.mrf.mxu0  ;;  %v10029_v33 = vpop.f32.mrf.mxu1 }
 0x6ac   : > { %v10458_v20 = vadd.f32 %v10327_v59, %v10026_v41  ;;  %v10030_v45 = vadd.f32 %v10029_v33, %v20711_v46  ;;  %v10521_v21 = vmax.f32 %v10457_v62, 0.0  ;;  %v10333_v34 = vadd.f32 %v10332_v11, %v20892_v54 }
 0x6ad   : > { %v10334_v17 = vpop.f32.mrf.mxu0  ;;  %v10031_v32 = vpop.f32.mrf.mxu1 }
 0x6ae   : > { %v10522_v57 = vmax.f32 %v10458_v20, 0.0  ;;  %v10459_v47 = vadd.f32 %v10331_v9, %v10030_v45  ;;  %v10593_v58 = vadd.f32 %v10521_v21, %v10519_v27  ;;  %v10032_v14 = vadd.f32 %v10031_v32, %v20713_v38 }
 0x6af   : > { %v10336_v13 = vpop.f32.mrf.mxu0  ;;  %v10335_v28 = vadd.f32 %v10334_v17, %v20883_v42  ;;  %v10033_v24 = vpop.f32.mrf.mxu1  ;;  %v10575_v9 = vadd.f32 %v10574_v40, %v10573_v35 }
 0x6b0   : > { %v10606_v37 = vadd.f32 %v10522_v57, %v10520_v8  ;;  %v10523_v44 = vmax.f32 %v10459_v47, 0.0  ;;  %v10337_v46 = vadd.f32 %v10336_v13, %v20892_v54  ;;  %v10460_v1 = vadd.f32 %v10333_v34, %v10032_v14 }
 0x6b1   : > { %v10340_v48 = vpop.f32.mrf.mxu0  ;;  %v10034_v59 = vadd.f32 %v10033_v24, %v20715_v60  ;;  %v10035_v19 = vpop.f32.mrf.mxu1  ;;  %v10587_v34 = vrot.slane %v20974_v63, 4  ;;  %v10576_v57 = vrot.slane %v10575_v9, 2 }
 0x6b2   : > { %v10594_v6 = vadd.f32 %v10593_v58, %v10523_v44  ;;  %v10036_v55 = vadd.f32 %v10035_v19, %v20721_v39  ;;  %v10341_v36 = vadd.f32 %v10340_v48, %v20883_v42  ;;  %v10524_v38 = vmax.f32 %v10460_v1, 0.0 }
 0x6b3   : > { %v10342_v41 = vpop.f32.mrf.mxu0  ;;  %v10461_v11 = vadd.f32 %v10335_v28, %v10034_v59  ;;  %v10039_v62 = vpop.f32.mrf.mxu1  ;;  %v10577_v19 = vadd.f32 %v10576_v57, %v10575_v9 }
 0x6b4   : > { %v10462_v33 = vadd.f32 %v10337_v46, %v10036_v55  ;;  %v10040_v20 = vadd.f32 %v10039_v62, %v20723_v51  ;;  %v10607_v17 = vadd.f32 %v10606_v37, %v10524_v38  ;;  %v10343_v21 = vadd.f32 %v10342_v41, %v20892_v54  ;;  %v23106_v38 = vld [vmem:[#allocation75_spill] sm:$0xff] }
 0x6b5   : > { %v10344_v45 = vpop.f32.mrf.mxu0  ;;  %v10525_v27 = vmax.f32 %v10461_v11, 0.0  ;;  %v10041_v60 = vpop.f32.mrf.mxu1 }
 0x6b6   : > { %v10526_v32 = vmax.f32 %v10462_v33, 0.0  ;;  %v10463_v39 = vadd.f32 %v10341_v36, %v10040_v20  ;;  %v10042_v35 = vadd.f32 %v10041_v60, %v20725_v43  ;;  %v10345_v13 = vadd.f32 %v10344_v45, %v20883_v42 }
 0x6b7   : > { %v10346_v8 = vpop.f32.mrf.mxu0  ;;  %v10595_v47 = vadd.f32 %v10594_v6, %v10525_v27  ;;  %v10043_v40 = vpop.f32.mrf.mxu1  ;;  %v10588_v43 = vadd.f32 %v10587_v34, %v20974_v63  ;;  %v23107_v27 = vld [vmem:[#allocation20_spill] sm:$0xff]  ;;  %v10578_v63 = vrot.slane %v10577_v19, 1 }
 0x6b8   : > { %v10608_v58 = vadd.f32 %v10607_v17, %v10526_v32  ;;  %v10527_v51 = vmax.f32 %v10463_v39, 0.0  ;;  %v10347_v14 = vadd.f32 %v10346_v8, %v20892_v54  ;;  %v10464_v24 = vadd.f32 %v10343_v21, %v10042_v35 }
 0x6b9   : > { %v10350_v28 = vpop.f32.mrf.mxu0  ;;  %v10044_v37 = vadd.f32 %v10043_v40, %v20730_v5  ;;  %v10045_v44 = vpop.f32.mrf.mxu1  ;;  %v10589_v34 = vrot.slane %v10588_v43, 2 }
 0x6ba   : > { %v10596_v46 = vadd.f32 %v10595_v47, %v10527_v51  ;;  %v10046_v48 = vadd.f32 %v10045_v44, %v20733_v0  ;;  %v10351_v1 = vadd.f32 %v10350_v28, %v20883_v42  ;;  %v10528_v6 = vmax.f32 %v10464_v24, 0.0 }
 0x6bb   : > { %v10352_v59 = vpop.f32.mrf.mxu0  ;;  %v10465_v55 = vadd.f32 %v10345_v13, %v10044_v37  ;;  %v10049_v36 = vpop.f32.mrf.mxu1  ;;  %v23108_v13 = vld [vmem:[#allocation29_spill] sm:$0xff] }
 0x6bc   : > { %v10466_v41 = vadd.f32 %v10347_v14, %v10046_v48  ;;  %v10050_v11 = vadd.f32 %v10049_v36, %v23106_v38  ;;  %v10353_v62 = vadd.f32 %v10352_v59, %v20892_v54  ;;  %v10609_v5 = vadd.f32 %v10608_v58, %v10528_v6 }
 0x6bd   : > { %v10354_v33 = vpop.f32.mrf.mxu0  ;;  %v10529_v20 = vmax.f32 %v10465_v55, 0.0  ;;  %v10051_v45 = vpop.f32.mrf.mxu1  ;;  %v10579_v48 = vadd.f32 %v10578_v63, %v10577_v19 }
 0x6be   : > { %v10530_v17 = vmax.f32 %v10466_v41, 0.0  ;;  %v10467_v0 = vadd.f32 %v10351_v1, %v10050_v11  ;;  %v10052_v21 = vadd.f32 %v10051_v45, %v23107_v27  ;;  %v10355_v9 = vadd.f32 %v10354_v33, %v20883_v42 }
 0x6bf   : > { %v10356_v60 = vpop.f32.mrf.mxu0  ;;  %v10597_v32 = vadd.f32 %v10596_v46, %v10529_v20  ;;  %v10053_v39 = vpop.f32.mrf.mxu1  ;;  %v10590_v1 = vadd.f32 %v10589_v34, %v10588_v43  ;;  %v10672_v45 = vmul.f32 0.015625, %v10579_v48 }
 0x6c0   : > { %v10357_v8 = vadd.f32 %v10356_v60, %v20892_v54  ;;  %v10610_v57 = vadd.f32 %v10609_v5, %v10530_v17  ;;  %v10531_v47 = vmax.f32 %v10467_v0, 0.0  ;;  %v10468_v35 = vadd.f32 %v10353_v62, %v10052_v21 }
 0x6c1   : > { %v10054_v40 = vadd.f32 %v10053_v39, %v23108_v13  ;;  %v10360_v58 = vpop.f32.mrf.mxu0  ;;  %v10055_v51 = vpop.f32.mrf.mxu1  ;;  %v10591_v19 = vrot.slane %v10590_v1, 1 }
 0x6c2   : > { %v10598_v14 = vadd.f32 %v10597_v32, %v10531_v47  ;;  %v10532_v28 = vmax.f32 %v10468_v35, 0.0  ;;  %v10056_v37 = vadd.f32 %v10055_v51, %v20769_v10  ;;  %v10361_v41 = vadd.f32 %v10360_v58, %v20883_v42 }
 0x6c3   : > { %v10469_v24 = vadd.f32 %v10355_v9, %v10054_v40  ;;  %v10362_v44 = vpop.f32.mrf.mxu0  ;;  %v10059_v59 = vpop.f32.mrf.mxu1  ;;  %v10680_v47 = vpack.c.bf16 %v10672_v45, %v10672_v45  ;;  %v10592_v35 = vadd.f32 %v10591_v19, %v10590_v1 }
 0x6c4   : > { %v10611_v46 = vadd.f32 %v10610_v57, %v10532_v28  ;;  %v10470_v55 = vadd.f32 %v10357_v8, %v10056_v37  ;;  %v10060_v38 = vadd.f32 %v10059_v59, %v20772_v4  ;;  %v10363_v11 = vadd.f32 %v10362_v44, %v20892_v54 }
 0x6c5   : > { %v10533_v6 = vmax.f32 %v10469_v24, 0.0  ;;  %v10364_v36 = vpop.f32.mrf.mxu0  ;;  %v10061_v62 = vpop.f32.mrf.mxu1  ;;  %v10673_v45 = vmul.f32 0.015625, %v10592_v35 }
 0x6c6   : > { %v10534_v5 = vmax.f32 %v10470_v55, 0.0  ;;  %v10062_v20 = vadd.f32 %v10061_v62, %v20774_v56  ;;  %v10365_v43 = vadd.f32 %v10364_v36, %v20883_v42  ;;  %v10471_v60 = vadd.f32 %v10361_v41, %v10060_v38 }
 0x6c7   : > { %v10599_v33 = vadd.f32 %v10598_v14, %v10533_v6  ;;  %v10366_v10 = vpop.f32.mrf.mxu0  ;;  %v10063_v17 = vpop.f32.mrf.mxu1  ;;  %v10681_v35 = vpack.c.bf16 %v10673_v45, %v10673_v45 }
 0x6c8   : > { %v10612_v27 = vadd.f32 %v10611_v46, %v10534_v5  ;;  %v10367_v21 = vadd.f32 %v10366_v10, %v20892_v54  ;;  %v10472_v4 = vadd.f32 %v10363_v11, %v10062_v20  ;;  %v10064_v63 = vadd.f32 %v10063_v17, %v20776_v15 }
 0x6c9   : > { %v10600_v0 = vrot.slane %v10599_v33, 4  ;;  %v10370_v9 = vpop.f32.mrf.mxu0  ;;  %v10065_v34 = vpop.f32.mrf.mxu1  ;;  %v10535_v37 = vmax.f32 %v10471_v60, 0.0 }
 0x6ca   : > { %v10613_v39 = vrot.slane %v10612_v27, 4  ;;  %v10066_v56 = vadd.f32 %v10065_v34, %v20784_v22  ;;  %v10371_v8 = vadd.f32 %v10370_v9, %v20883_v42  ;;  %v10473_v13 = vadd.f32 %v10365_v43, %v10064_v63 }
 0x6cb   : > { %v10601_v32 = vadd.f32 %v10600_v0, %v10599_v33  ;;  %v10372_v57 = vpop.f32.mrf.mxu0  ;;  %v10069_v40 = vpop.f32.mrf.mxu1  ;;  %v10536_v15 = vmax.f32 %v10472_v4, 0.0  ;;  %v10740_v4 = vunpack.c.l.b16 %v10680_v47 }
 0x6cc   : > { %v10614_v51 = vadd.f32 %v10613_v39, %v10612_v27  ;;  %v10474_v14 = vadd.f32 %v10367_v21, %v10066_v56  ;;  %v10070_v28 = vadd.f32 %v10069_v40, %v20786_v31  ;;  %v10537_v44 = vmax.f32 %v10473_v13, 0.0 }
 0x6cd   : > { %v10602_v58 = vrot.slane %v10601_v32, 2  ;;  %v10374_v24 = vpop.f32.mrf.mxu0  ;;  %v10373_v48 = vadd.f32 %v10372_v57, %v20892_v54  ;;  %v10071_v59 = vpop.f32.mrf.mxu1 }
 0x6ce   : > { %v10615_v46 = vrot.slane %v10614_v51, 2  ;;  %v10538_v6 = vmax.f32 %v10474_v14, 0.0  ;;  %v10475_v55 = vadd.f32 %v10371_v8, %v10070_v28  ;;  %v10619_v1 = vadd.f32 %v10537_v44, %v10535_v37 }
 0x6cf   : > { %v10603_v22 = vadd.f32 %v10602_v58, %v10601_v32  ;;  %v10376_v36 = vpop.f32.mrf.mxu0  ;;  %v10072_v41 = vadd.f32 %v10071_v59, %v20788_v52  ;;  %v10375_v38 = vadd.f32 %v10374_v24, %v20883_v42  ;;  %v10073_v11 = vpop.f32.mrf.mxu1 }
 0x6d0   : > { %v10377_v31 = vadd.f32 %v10376_v36, %v20892_v54  ;;  %v10616_v33 = vadd.f32 %v10615_v46, %v10614_v51  ;;  %v10632_v5 = vadd.f32 %v10538_v6, %v10536_v15  ;;  %v10539_v20 = vmax.f32 %v10475_v55, 0.0 }
 0x6d1   : > { %v10604_v62 = vrot.slane %v10603_v22, 1  ;;  %v10380_v10 = vpop.f32.mrf.mxu0  ;;  %v10476_v19 = vadd.f32 %v10373_v48, %v10072_v41  ;;  %v10074_v43 = vadd.f32 %v10073_v11, %v20790_v50  ;;  %v10075_v17 = vpop.f32.mrf.mxu1  ;;  %v10741_v36 = vunpack.c.l.b16 %v10681_v35  ;;  %v23109_v41 = vld [vmem:[#allocation158_spill] sm:$0xff] }
 0x6d2   : > { %v10381_v0 = vadd.f32 %v10380_v10, %v20883_v42  ;;  %v10617_v21 = vrot.slane %v10616_v33, 1  ;;  %v10620_v52 = vadd.f32 %v10619_v1, %v10539_v20  ;;  %v10076_v9 = vadd.f32 %v10075_v17, %v20796_v23 }
 0x6d3   : > { %v10605_v27 = vadd.f32 %v10604_v62, %v10603_v22  ;;  %v10382_v60 = vpop.f32.mrf.mxu0  ;;  %v10540_v63 = vmax.f32 %v10476_v19, 0.0  ;;  %v10477_v34 = vadd.f32 %v10375_v38, %v10074_v43  ;;  %v10079_v32 = vpop.f32.mrf.mxu1 }
 0x6d4   : > { %v10618_v56 = vadd.f32 %v10617_v21, %v10616_v33  ;;  %v10478_v8 = vadd.f32 %v10377_v31, %v10076_v9  ;;  %v10080_v57 = vadd.f32 %v10079_v32, %v20798_v49  ;;  %v10383_v58 = vadd.f32 %v10382_v60, %v20892_v54 }
 0x6d5   : > { %v10674_v39 = vmul.f32 0.015625, %v10605_v27  ;;  %v10384_v50 = vpop.f32.mrf.mxu0  ;;  %v10633_v13 = vadd.f32 %v10632_v5, %v10540_v63  ;;  %v10541_v40 = vmax.f32 %v10477_v34, 0.0  ;;  %v10081_v51 = vpop.f32.mrf.mxu1 }
 0x6d6   : > { %v10675_v23 = vmul.f32 0.015625, %v10618_v56  ;;  %v10542_v28 = vmax.f32 %v10478_v8, 0.0  ;;  %v10479_v47 = vadd.f32 %v10381_v0, %v10080_v57  ;;  %v10082_v15 = vadd.f32 %v10081_v51, %v20800_v61  ;;  %v23110_v61 = vld [vmem:[#allocation210_spill] sm:$0xff]  ;;  %v23112_v56 = vld [vmem:[#allocation147_spill] sm:$0xff] }
 0x6d7   : > { %v10682_v14 = vpack.c.bf16 %v10674_v39, %v10674_v39  ;;  %v10386_v24 = vpop.f32.mrf.mxu0  ;;  %v10621_v37 = vadd.f32 %v10620_v52, %v10541_v40  ;;  %v10385_v44 = vadd.f32 %v10384_v50, %v20883_v42  ;;  %v10083_v48 = vpop.f32.mrf.mxu1  ;;  %v23111_v0 = vld [vmem:[#allocation82_spill] sm:$0xff] }
 0x6d8   : > { %v10387_v49 = vadd.f32 %v10386_v24, %v20892_v54  ;;  %v10683_v22 = vpack.c.bf16 %v10675_v23, %v10675_v23  ;;  %v10634_v46 = vadd.f32 %v10633_v13, %v10542_v28  ;;  %v10543_v6 = vmax.f32 %v10479_v47, 0.0 }
 0x6d9   : > { %v10742_v59 = vunpack.c.l.b16 %v10682_v14  ;;  %v10390_v55 = vpop.f32.mrf.mxu0  ;;  %v10480_v1 = vadd.f32 %v10383_v58, %v10082_v15  ;;  %v10084_v38 = vadd.f32 %v10083_v48, %v23109_v41  ;;  %v10085_v11 = vpop.f32.mrf.mxu1  ;;  %v23113_v14 = vld [vmem:[#allocation13_spill] sm:$0xff] }
 0x6da   : > { %v10391_v31 = vadd.f32 %v10390_v55, %v20883_v42  ;;  %v10743_v62 = vunpack.c.l.b16 %v10683_v22  ;;  %v10622_v33 = vadd.f32 %v10621_v37, %v10543_v6  ;;  %v10086_v5 = vadd.f32 %v10085_v11, %v23110_v61 }
 0x6db   : > { %v10392_v20 = vpop.f32.mrf.mxu0  ;;  %v21031_v10 = vsel %vm10748_vm7, %v10742_v59, %v10740_v4  ;;  %v10544_v45 = vmax.f32 %v10480_v1, 0.0  ;;  %v10481_v19 = vadd.f32 %v10385_v44, %v10084_v38  ;;  %v10089_v43 = vpop.f32.mrf.mxu1 }
 0x6dc   : > { %v10482_v17 = vadd.f32 %v10387_v49, %v10086_v5  ;;  %v10090_v27 = vadd.f32 %v10089_v43, %v23111_v0  ;;  %v10393_v21 = vadd.f32 %v10392_v20, %v20892_v54  ;;  %v21036_v9 = vsel %vm10748_vm7, %v10743_v62, %v10741_v36 }
 0x6dd   : > { %v10394_v52 = vpop.f32.mrf.mxu0  ;;  %v10635_v60 = vadd.f32 %v10634_v46, %v10544_v45  ;;  %v10545_v63 = vmax.f32 %v10481_v19, 0.0  ;;  %v10091_v34 = vpop.f32.mrf.mxu1 }
 0x6de   : > { %v10546_v32 = vmax.f32 %v10482_v17, 0.0  ;;  %v10483_v39 = vadd.f32 %v10391_v31, %v10090_v27  ;;  %v10092_v4 = vadd.f32 %v10091_v34, %v23112_v56  ;;  %v10395_v8 = vadd.f32 %v10394_v52, %v20883_v42 }
 0x6df   : > { %v10396_v57 = vpop.f32.mrf.mxu0  ;;  %v10623_v50 = vadd.f32 %v10622_v33, %v10545_v63  ;;  %v10093_v35 = vpop.f32.mrf.mxu1 }
 0x6e0   : > { %v10397_v13 = vadd.f32 %v10396_v57, %v20892_v54  ;;  %v10636_v40 = vadd.f32 %v10635_v60, %v10546_v32  ;;  %v10547_v58 = vmax.f32 %v10483_v39, 0.0  ;;  %v10484_v51 = vadd.f32 %v10393_v21, %v10092_v4 }
 0x6e1   : > { %v10094_v23 = vadd.f32 %v10093_v35, %v23113_v14  ;;  %v10400_v28 = vpop.f32.mrf.mxu0  ;;  %v10095_v47 = vpop.f32.mrf.mxu1 }
 0x6e2   : > { %v10624_v24 = vadd.f32 %v10623_v50, %v10547_v58  ;;  %v10548_v37 = vmax.f32 %v10484_v51, 0.0  ;;  %v10096_v44 = vadd.f32 %v10095_v47, %v20841_v16  ;;  %v10401_v55 = vadd.f32 %v10400_v28, %v20883_v42 }
 0x6e3   : > { %v10485_v15 = vadd.f32 %v10395_v8, %v10094_v23  ;;  %v10402_v48 = vpop.f32.mrf.mxu0  ;;  %v10099_v49 = vpop.f32.mrf.mxu1 }
 0x6e4   : > { %v10637_v59 = vadd.f32 %v10636_v40, %v10548_v37  ;;  %v10486_v46 = vadd.f32 %v10397_v13, %v10096_v44  ;;  %v10100_v36 = vadd.f32 %v10099_v49, %v20843_v2  ;;  %v10403_v1 = vadd.f32 %v10402_v48, %v20892_v54 }
 0x6e5   : > { %v10549_v22 = vmax.f32 %v10485_v15, 0.0  ;;  %v10404_v6 = vpop.f32.mrf.mxu0  ;;  %v10101_v41 = vpop.f32.mrf.mxu1 }
 0x6e6   : > { %v10550_v11 = vmax.f32 %v10486_v46, 0.0  ;;  %v10102_v31 = vadd.f32 %v10101_v41, %v20845_v29  ;;  %v10405_v16 = vadd.f32 %v10404_v6, %v20883_v42  ;;  %v10487_v19 = vadd.f32 %v10401_v55, %v10100_v36 }
 0x6e7   : > { %v10625_v38 = vadd.f32 %v10624_v24, %v10549_v22  ;;  %v10406_v62 = vpop.f32.mrf.mxu0  ;;  %v10103_v33 = vpop.f32.mrf.mxu1 }
 0x6e8   : > { %v10638_v5 = vadd.f32 %v10637_v59, %v10550_v11  ;;  %v10407_v20 = vadd.f32 %v10406_v62, %v20892_v54  ;;  %v10488_v43 = vadd.f32 %v10403_v1, %v10102_v31  ;;  %v10104_v2 = vadd.f32 %v10103_v33, %v20847_v18 }
 0x6e9   : > { %v10626_v61 = vrot.slane %v10625_v38, 4  ;;  %v10410_v45 = vpop.f32.mrf.mxu0  ;;  %v10105_v17 = vpop.f32.mrf.mxu1  ;;  %v10551_v8 = vmax.f32 %v10487_v19, 0.0 }
 0x6ea   : > { %v10639_v27 = vrot.slane %v10638_v5, 4  ;;  %v10106_v21 = vadd.f32 %v10105_v17, %v20852_v12  ;;  %v10411_v29 = vadd.f32 %v10410_v45, %v20883_v42  ;;  %v10489_v60 = vadd.f32 %v10405_v16, %v10104_v2 }
 0x6eb   : > { %v10627_v0 = vadd.f32 %v10626_v61, %v10625_v38  ;;  %v10412_v52 = vpop.f32.mrf.mxu0  ;;  %v10109_v63 = vpop.f32.mrf.mxu1  ;;  %v10552_v57 = vmax.f32 %v10488_v43, 0.0 }
 0x6ec   : > { %v10640_v32 = vadd.f32 %v10639_v27, %v10638_v5  ;;  %v10490_v39 = vadd.f32 %v10407_v20, %v10106_v21  ;;  %v10110_v56 = vadd.f32 %v10109_v63, %v20854_v3  ;;  %v10553_v50 = vmax.f32 %v10489_v60, 0.0  ;;  %v23114_v21 = vld [vmem:[#allocation123_spill] sm:$0xff] }
 0x6ed   : > { %v10628_v34 = vrot.slane %v10627_v0, 2  ;;  %v10414_v4 = vpop.f32.mrf.mxu0  ;;  %v10413_v18 = vadd.f32 %v10412_v52, %v20892_v54  ;;  %v10111_v35 = vpop.f32.mrf.mxu1 }
 0x6ee   : > { %v10641_v40 = vrot.slane %v10640_v32, 2  ;;  %v10554_v12 = vmax.f32 %v10490_v39, 0.0  ;;  %v10491_v58 = vadd.f32 %v10411_v29, %v10110_v56  ;;  %v10645_v14 = vadd.f32 %v10553_v50, %v10551_v8 }
 0x6ef   : > { %v10629_v13 = vadd.f32 %v10628_v34, %v10627_v0  ;;  %v10416_v51 = vpop.f32.mrf.mxu0  ;;  %v10112_v23 = vadd.f32 %v10111_v35, %v20856_v7  ;;  %v10415_v28 = vadd.f32 %v10414_v4, %v20883_v42  ;;  %v10113_v47 = vpop.f32.mrf.mxu1 }
 0x6f0   : > { %v10417_v3 = vadd.f32 %v10416_v51, %v20892_v54  ;;  %v10642_v37 = vadd.f32 %v10641_v40, %v10640_v32  ;;  %v10658_v15 = vadd.f32 %v10554_v12, %v10552_v57  ;;  %v10555_v44 = vmax.f32 %v10491_v58, 0.0  ;;  %v23115_v32 = vld [vmem:[#allocation99_spill] sm:$0xff] }
 0x6f1   : > { %v10630_v24 = vrot.slane %v10629_v13, 1  ;;  %v10420_v48 = vpop.f32.mrf.mxu0  ;;  %v10492_v49 = vadd.f32 %v10413_v18, %v10112_v23  ;;  %v10114_v59 = vadd.f32 %v10113_v47, %v20859_v25  ;;  %v10115_v22 = vpop.f32.mrf.mxu1 }
 0x6f2   : > { %v10421_v46 = vadd.f32 %v10420_v48, %v20883_v42  ;;  %v10643_v55 = vrot.slane %v10642_v37, 1  ;;  %v10646_v36 = vadd.f32 %v10645_v14, %v10555_v44  ;;  %v10116_v7 = vadd.f32 %v10115_v22, %v20861_v30 }
 0x6f3   : > { %v10631_v6 = vadd.f32 %v10630_v24, %v10629_v13  ;;  %v10422_v1 = vpop.f32.mrf.mxu0  ;;  %v10556_v41 = vmax.f32 %v10492_v49, 0.0  ;;  %v10493_v38 = vadd.f32 %v10415_v28, %v10114_v59  ;;  %v10119_v11 = vpop.f32.mrf.mxu1  ;;  %v23116_v13 = vld [vmem:[#allocation140_spill] sm:$0xff] }
 0x6f4   : > { %v10644_v62 = vadd.f32 %v10643_v55, %v10642_v37  ;;  %v10494_v16 = vadd.f32 %v10417_v3, %v10116_v7  ;;  %v10120_v33 = vadd.f32 %v10119_v11, %v20863_v26  ;;  %v10423_v20 = vadd.f32 %v10422_v1, %v20892_v54  ;;  %v23117_v3 = vld [vmem:[#allocation205_spill] sm:$0xff] }
 0x6f5   : > { %v10676_v31 = vmul.f32 0.015625, %v10631_v6  ;;  %v10424_v61 = vpop.f32.mrf.mxu0  ;;  %v10659_v5 = vadd.f32 %v10658_v15, %v10556_v41  ;;  %v10557_v25 = vmax.f32 %v10493_v38, 0.0  ;;  %v10121_v45 = vpop.f32.mrf.mxu1  ;;  %v23118_v6 = vld [vmem:[#allocation160_spill] sm:$0xff] }
 0x6f6   : > { %v10425_v19 = vadd.f32 %v10424_v61, %v20883_v42  ;;  %v10677_v2 = vmul.f32 0.015625, %v10644_v62  ;;  %v10558_v30 = vmax.f32 %v10494_v16, 0.0  ;;  %v10495_v17 = vadd.f32 %v10421_v46, %v10120_v33 }
 0x6f7   : > { %v10684_v43 = vpack.c.bf16 %v10676_v31, %v10676_v31  ;;  %v10426_v0 = vpop.f32.mrf.mxu0  ;;  %v10647_v27 = vadd.f32 %v10646_v36, %v10557_v25  ;;  %v10122_v29 = vadd.f32 %v10121_v45, %v23114_v21  ;;  %v10123_v52 = vpop.f32.mrf.mxu1  ;;  %v23119_v31 = vld [vmem:[#allocation211_spill] sm:$0xff] }
 0x6f8   : > { %v10427_v60 = vadd.f32 %v10426_v0, %v20892_v54  ;;  %v10660_v63 = vadd.f32 %v10659_v5, %v10558_v30  ;;  %v10559_v34 = vmax.f32 %v10495_v17, 0.0  ;;  %v10124_v39 = vadd.f32 %v10123_v52, %v23115_v32 }
 0x6f9   : > { %v10744_v26 = vunpack.c.l.b16 %v10684_v43  ;;  %v10430_v56 = vpop.f32.mrf.mxu0  ;;  %v10496_v4 = vadd.f32 %v10423_v20, %v10122_v29  ;;  %v10125_v8 = vpop.f32.mrf.mxu1  ;;  %v10685_v50 = vpack.c.bf16 %v10677_v2, %v10677_v2 }
 0x6fa   : > { %v10431_v57 = vadd.f32 %v10430_v56, %v20883_v42  ;;  %v10648_v18 = vadd.f32 %v10647_v27, %v10559_v34  ;;  %v10497_v35 = vadd.f32 %v10425_v19, %v10124_v39  ;;  %v10126_v40 = vadd.f32 %v10125_v8, %v23116_v13  ;;  %v23120_v13 = vld [vmem:[#allocation94_spill] sm:$0xff] }
 0x6fb   : > { %v10432_v12 = vpop.f32.mrf.mxu0  ;;  %v10751_v58 = vsel %vm10750_vm8, %v10744_v26, %v21031_v10  ;;  %v10560_v51 = vmax.f32 %v10496_v4, 0.0  ;;  %v10129_v14 = vpop.f32.mrf.mxu1  ;;  %v10745_v23 = vunpack.c.l.b16 %v10685_v50 }
 0x6fc   : > { %v10561_v28 = vmax.f32 %v10497_v35, 0.0  ;;  %v10498_v47 = vadd.f32 %v10427_v60, %v10126_v40  ;;  %v10130_v24 = vadd.f32 %v10129_v14, %v23117_v3  ;;  %v10433_v37 = vadd.f32 %v10432_v12, %v20892_v54  ;;  %v10720_v35 = vld [vmem:[%s21102_s10] sm:$0x3]  ;;  %v23121_v12 = vld [vmem:[#allocation97_spill] sm:$0xff] }
 0x6fd   : > { %v10434_v15 = vpop.f32.mrf.mxu0  ;;  %v10661_v44 = vadd.f32 %v10660_v63, %v10560_v51  ;;  %v10131_v48 = vpop.f32.mrf.mxu1  ;;  %v10755_v59 = vsel %vm10750_vm8, %v10745_v23, %v21036_v9  ;;  %v10725_v40 = vrot.slane %v10720_v35, %v23120_v13  ;;  %v10729_v51 = vrot.slane %v10720_v35, %v23121_v12 }
 0x6fe   : > { %v10435_v49 = vadd.f32 %v10434_v15, %v20883_v42  ;;  %v10649_v22 = vadd.f32 %v10648_v18, %v10561_v28  ;;  %v10562_v46 = vmax.f32 %v10498_v47, 0.0  ;;  %v10499_v10 = vadd.f32 %v10431_v57, %v10130_v24 }
 0x6ff   : > { %v10132_v55 = vadd.f32 %v10131_v48, %v23118_v6  ;;  %v10436_v36 = vpop.f32.mrf.mxu0  ;;  %v10133_v7 = vpop.f32.mrf.mxu1 }
 0x700   : > { %v10437_v1 = vadd.f32 %v10436_v36, %v20892_v54  ;;  %v10662_v41 = vadd.f32 %v10661_v44, %v10562_v46  ;;  %v10563_v38 = vmax.f32 %v10499_v10, 0.0  ;;  %v10134_v62 = vadd.f32 %v10133_v7, %v23119_v31 }
 0x701   : > { %v10500_v11 = vadd.f32 %v10433_v37, %v10132_v55  ;;  %v10135_v16 = vpop.f32.mrf.mxu1 }
 0x702   : > { %v10650_v33 = vadd.f32 %v10649_v22, %v10563_v38  ;;  %v10501_v61 = vadd.f32 %v10435_v49, %v10134_v62  ;;  %v10136_v9 = vadd.f32 %v10135_v16, %v20941_v53 }
 0x703   : > { %v10564_v42 = vmax.f32 %v10500_v11, 0.0 }
 0x704   : > { %v10565_v25 = vmax.f32 %v10501_v61, 0.0  ;;  %v10502_v20 = vadd.f32 %v10437_v1, %v10136_v9 }
 0x705   : > { %v10663_v5 = vadd.f32 %v10662_v41, %v10564_v42 }
 0x706   : > { %v10651_v45 = vadd.f32 %v10650_v33, %v10565_v25  ;;  %v10566_v19 = vmax.f32 %v10502_v20, 0.0 }
 0x708   : > { %v10652_v43 = vrot.slane %v10651_v45, 4  ;;  %v10664_v2 = vadd.f32 %v10663_v5, %v10566_v19 }
 0x70a   : > { %v10653_v30 = vadd.f32 %v10652_v43, %v10651_v45  ;;  %v10665_v54 = vrot.slane %v10664_v2, 4 }
 0x70c   : > { %v10654_v17 = vrot.slane %v10653_v30, 2  ;;  %v10666_v0 = vadd.f32 %v10665_v54, %v10664_v2 }
 0x70e   : > { %v10655_v27 = vadd.f32 %v10654_v17, %v10653_v30  ;;  %v10667_v21 = vrot.slane %v10666_v0, 2 }
 0x710   : > { %v10656_v29 = vrot.slane %v10655_v27, 1  ;;  %v10668_v52 = vadd.f32 %v10667_v21, %v10666_v0 }
 0x712   : > { %v10657_v60 = vadd.f32 %v10656_v29, %v10655_v27  ;;  %v10669_v26 = vrot.slane %v10668_v52, 1 }
 0x714   : > { %v10678_v63 = vmul.f32 0.015625, %v10657_v60  ;;  %v10670_v53 = vadd.f32 %v10669_v26, %v10668_v52 }
 0x716   : > { %v10686_v34 = vpack.c.bf16 %v10678_v63, %v10678_v63  ;;  %v10679_v32 = vmul.f32 0.015625, %v10670_v53 }
 0x718   : > { %v10746_v39 = vunpack.c.l.b16 %v10686_v34  ;;  %v10687_v56 = vpack.c.bf16 %v10679_v32, %v10679_v32 }
 0x71a   : > { %v10747_v4 = vunpack.c.l.b16 %v10687_v56  ;;  %v10753_v8 = vsel %vm10752_vm9, %v10746_v39, %v10751_v58 }
 0x71b   : > { %v10757_v18 = vpack.c.b16 %v10753_v8, %v10753_v8 }
 0x71c   : > { %v10756_v57 = vsel %vm10752_vm9, %v10747_v4, %v10755_v59 }
 0x71d   : > { %v10758_v50 = vpack.c.b16 %v10756_v57, %v10756_v57 }
 0x71f   : > { %10953 = vmatprep.mubr.bf16.mxu1 %v10758_v50 }
 0x720   : > { %10954 = vmatmul.mubr.bf16.vlgmr.msra.gmra.mxu1 %v10757_v18 }
 0x7e0   : > { %v10955_v14 = vpop.f32.mrf.mxu1 }
 0x7e1   : > { %v10956_v23 = vadd.f32 %v10955_v14, %v10725_v40 }
 0x7e2   : > { %v10957_v28 = vpop.f32.mrf.mxu1 }
 0x7e3   : > { %v10958_v58 = vadd.f32 %v10957_v28, %v10729_v51  ;;  %v10962_v3 = vmax.f32 %v10956_v23, 0.0 }
 0x7e4   : > { %v10959_v47 = vpop.f32.mrf.mxu1 }
 0x7e5   : > { %v10963_v24 = vmax.f32 %v10958_v58, 0.0 }
 0x7e6   : > { %v10960_v37 = vpop.f32.mrf.mxu1 }
 0x7e7   : > { %v10966_v15 = vcombine.low %v10962_v3, %v10963_v24 }
 0x7e9   : > { %10968 = vst [vmem:[%s391_s26] sm:$0xff] %v10966_v15 }
 0x7ea PF: > { %s21_s17 = sadd.s32 1, %s13070_s17  }
 0x7eb   : > { %p18_p5 = scmp.ge.s32.totalorder %s21_s17, 4  }
 0x7ed   :  { %20 = sbr.rel (!%p18_p5) target bundleno = 1 (0x1), region = 94 }

</bundles_post_ra>
